<compile_context>
chip_gen: v5e
topology: v5e:2x2
jax: 0.10.0
libtpu: 0.0.40
codegen_flags: <defaults>
</compile_context>

<pallas_src>
import functools
import math

import jax
import jax.numpy as jnp
from jax import lax
from jax.experimental import pallas as pl
from jax.experimental.pallas import tpu as pltpu

VAR_EPS = 1e-4
LN_EPS = 1e-5
LANE = 128

# Order in which parameter arrays are passed to the fused kernel.
PARAM_ORDER = (
    "enc_w0", "enc_b0", "enc_g0", "enc_be0",
    "enc_w1", "enc_b1", "enc_g1", "enc_be1",
    "enc_w2", "enc_b2",
    "mv_w0", "mv_b0", "mv_g0", "mv_be0",
    "mv_w1_mu", "mv_b1_mu", "mv_w1_var", "mv_b1_var",
    "dec_w0", "dec_b0", "dec_g0", "dec_be0",
    "dec_w1", "dec_b1", "dec_g1", "dec_be1",
    "dec_w2", "dec_b2",
    "head_w_r", "head_b_r", "head_w_s", "head_b_s",
)


def _round_up(x, m):
    return (x + m - 1) // m * m


def _pick_batch_tile(batch):
    # Prefer >=2 grid steps so ("parallel",) can shard across both v7x TCs;
    # 128/256-row tiles keep the MXU M-fill high (review item).
    for t in (256, 128, 64, 32, 16, 8):
        if batch % t == 0 and batch // t >= 2:
            return t
    return batch


# ---------------------------------------------------------------------------
# In-kernel building blocks (operate on values + VMEM param refs).
# ---------------------------------------------------------------------------
def _linear(h, w_ref, b_ref):
    # bf16 operands on the MXU with f32 accumulation; bias add stays in f32.
    return jnp.dot(h.astype(jnp.bfloat16), w_ref[...],
                   preferred_element_type=jnp.float32) + b_ref[...]


def _ln_relu(h, g_ref, beta_ref):
    # LayerNorm statistics stay in f32; rsqrt goes to the EUP slot.
    mean = jnp.mean(h, axis=-1, keepdims=True)
    var = jnp.mean(jnp.square(h - mean), axis=-1, keepdims=True)
    h = (h - mean) * lax.rsqrt(var + LN_EPS) * g_ref[...] + beta_ref[...]
    return jnp.maximum(h, 0.0)


# ---------------------------------------------------------------------------
# Fused forward-pass kernel (one batch tile per grid step).
# ---------------------------------------------------------------------------
def _nbvae_fused_kernel(lat_pad, data_pad, x_ref, lib_ref, eps_ref, *refs):
    (enc_w0, enc_b0, enc_g0, enc_be0,
     enc_w1, enc_b1, enc_g1, enc_be1,
     enc_w2, enc_b2,
     mv_w0, mv_b0, mv_g0, mv_be0,
     mv_w1_mu, mv_b1_mu, mv_w1_var, mv_b1_var,
     dec_w0, dec_b0, dec_g0, dec_be0,
     dec_w1, dec_b1, dec_g1, dec_be1,
     dec_w2, dec_b2,
     head_w_r, head_b_r, head_w_s, head_b_s,
     lat_out_ref, data_out_ref) = refs

    x = x_ref[...]                       # (TB, data_dim) f32
    lib = lib_ref[...]                   # (TB, 1) f32, precomputed row sum
    eps = eps_ref[...]                   # (TB, lat_pad) f32, zero-padded

    # --- encoder: LayerSet(data_dim -> latent_dim) ---
    h = _ln_relu(_linear(x, enc_w0, enc_b0), enc_g0, enc_be0)
    h = _ln_relu(_linear(h, enc_w1, enc_b1), enc_g1, enc_be1)
    latent = _linear(h, enc_w2, enc_b2)                  # (TB, lat_pad)

    # --- meanvar encoder (skip_last_activation=True); mu / raw_var heads come
    #     from column-split (and lane-padded) weights: identical math to
    #     chunking the fused output.
    mh = _ln_relu(_linear(latent, mv_w0, mv_b0), mv_g0, mv_be0)
    mu = _linear(mh, mv_w1_mu, mv_b1_mu)                 # (TB, lat_pad)
    raw_var = _linear(mh, mv_w1_var, mv_b1_var)          # (TB, lat_pad)

    # --- diagonal-covariance reparameterization + KL (run() else-branch) ---
    var = jax.nn.softplus(raw_var)        # nonneg_function = F.softplus
    # NOTE: matches reference var.log() exactly (can be -inf if softplus
    # underflows, same as PyTorch); not clamped on purpose.
    logvar = jnp.log(var)
    std = jnp.sqrt(var) + VAR_EPS         # == exp(0.5*logvar) + VAR_EPS
    gen = mu + eps * std
    kl = -0.5 * (1.0 + logvar - jnp.square(mu) - var)

    # --- decoder + NB head (decode(gen, library_size)) ---
    d = _ln_relu(_linear(gen, dec_w0, dec_b0), dec_g0, dec_be0)
    d = _ln_relu(_linear(d, dec_w1, dec_b1), dec_g1, dec_be1)
    px = _linear(d, dec_w2, dec_b2)
    raw_r = _linear(px, head_w_r, head_b_r)              # output_chunked[0]
    raw_scale = _linear(px, head_w_s, head_b_s)          # output_chunked[1]

    scale = jax.nn.softplus(raw_scale)
    r = jnp.exp(raw_r)
    rate = lib * scale                                   # px_rate = library * scale
    # r*(log(r+e) - log(r+rate+e)) == r*log((r+e)/(r+rate+e)): one log, not two.
    ll = r * jnp.log((r + VAR_EPS) / (r + rate + VAR_EPS))
    recon = -ll                                          # -log_prob(x)

    # 128-lane-aligned direct stores (no unaligned in-kernel concatenate);
    # kl is stored once, the wrapper duplicates it in the packed layout.
    lat_out_ref[:, 0 * lat_pad:1 * lat_pad] = gen
    lat_out_ref[:, 1 * lat_pad:2 * lat_pad] = mu
    lat_out_ref[:, 2 * lat_pad:3 * lat_pad] = logvar
    lat_out_ref[:, 3 * lat_pad:4 * lat_pad] = kl
    data_out_ref[:, 0 * data_pad:1 * data_pad] = recon
    data_out_ref[:, 1 * data_pad:2 * data_pad] = rate
    data_out_ref[:, 2 * data_pad:3 * data_pad] = r
    data_out_ref[:, 3 * data_pad:4 * data_pad] = scale


# ---------------------------------------------------------------------------
# Wrapper: batch-parallel grid, weights VMEM-resident, lane-dense slab outputs.
# ---------------------------------------------------------------------------
def nbvae_forward(params, x, eps, *, latent_dim, batch_tile=None):
    batch, data_dim = x.shape
    assert eps.shape == (batch, latent_dim)
    lat_pad = _round_up(max(latent_dim, LANE), LANE)
    data_pad = _round_up(data_dim, LANE)

    tb = batch_tile or _pick_batch_tile(batch)
    assert batch % tb == 0, (batch, tb)

    # Library size precomputed in f32: x.sum(dim=[1]).unsqueeze(1).
    lib = jnp.sum(x, axis=-1, keepdims=True)
    # Zero-padded reparameterization noise -> padded lanes of `gen` stay 0.
    eps_p = jnp.zeros((batch, lat_pad), jnp.float32).at[:, :latent_dim].set(eps)

    weights = tuple(params[name] for name in PARAM_ORDER)

    def row_spec(cols):
        return pl.BlockSpec((tb, cols), lambda i: (i, 0))

    def const_spec(arr):
        # Full-array VMEM block with a constant index map: fetched from HBM
        # exactly once and resident across the whole batch grid.
        return pl.BlockSpec(arr.shape, lambda i: (0, 0))

    in_specs = [row_spec(data_dim), row_spec(1), row_spec(lat_pad)]
    in_specs += [const_spec(w) for w in weights]
    out_specs = [row_spec(4 * lat_pad), row_spec(4 * data_pad)]
    out_shape = (jax.ShapeDtypeStruct((batch, 4 * lat_pad), jnp.float32),
                 jax.ShapeDtypeStruct((batch, 4 * data_pad), jnp.float32))

    # VMEM budget: double-buffered streamed blocks + weights, with 2x headroom,
    # floored at 32 MiB and capped below physical VMEM.
    stream_bytes = 2 * 4 * (tb * data_dim + tb * 1 + tb * lat_pad)
    out_bytes = 2 * 4 * (tb * 4 * lat_pad + tb * 4 * data_pad)
    weight_bytes = sum(2 * math.prod(w.shape) * w.dtype.itemsize for w in weights)
    vmem_limit = int(min(100 * 1024 * 1024,
                         max(32 * 1024 * 1024,
                             2 * (stream_bytes + out_bytes + weight_bytes))))

    lat_slab, data_slab = pl.pallas_call(
        functools.partial(_nbvae_fused_kernel, lat_pad, data_pad),
        grid_spec=pltpu.PrefetchScalarGridSpec(
            num_scalar_prefetch=0,
            grid=(batch // tb,),
            in_specs=in_specs,
            out_specs=out_specs),
        out_shape=out_shape,
        compiler_params=pltpu.CompilerParams(
            dimension_semantics=("parallel",),
            vmem_limit_bytes=vmem_limit),
    )(x, lib, eps_p, *weights)

    # Repack to the reference packed_result layout:
    #   [gen, mu, logvar, kl] + [kl, recon] + [px_rate, r, scale]
    L, D = latent_dim, data_dim
    gen = lat_slab[:, 0 * lat_pad:0 * lat_pad + L]
    mu = lat_slab[:, 1 * lat_pad:1 * lat_pad + L]
    logvar = lat_slab[:, 2 * lat_pad:2 * lat_pad + L]
    kl = lat_slab[:, 3 * lat_pad:3 * lat_pad + L]
    recon = data_slab[:, 0 * data_pad:0 * data_pad + D]
    rate = data_slab[:, 1 * data_pad:1 * data_pad + D]
    r = data_slab[:, 2 * data_pad:2 * data_pad + D]
    scale = data_slab[:, 3 * data_pad:3 * data_pad + D]
    return jnp.concatenate([gen, mu, logvar, kl, kl, recon, rate, r, scale],
                           axis=-1)


# ---------------------------------------------------------------------------
# Deterministic parameter initialization (synthetic weights, no checkpoint).
# Weights are stored as (in_features, out_features) = PyTorch weight^T,
# zero-padded to 128-lane multiples where the math allows it, and cast to bf16
# (biases / LayerNorm affine stay f32).
# ---------------------------------------------------------------------------
def _init_linear(key, fan_in, fan_out):
    kw, kb = jax.random.split(key)
    w = jax.random.normal(kw, (fan_in, fan_out), jnp.float32) / jnp.sqrt(
        jnp.asarray(fan_in, jnp.float32))
    b = 0.01 * jax.random.normal(kb, (1, fan_out), jnp.float32)
    return w, b


def _pad_to(a, rows, cols):
    out = jnp.zeros((rows, cols), a.dtype)
    return out.at[:a.shape[0], :a.shape[1]].set(a)


def init_params(key, data_dim, latent_dim, hidden_dim, expand_mul=4):
    lat_pad = _round_up(max(latent_dim, LANE), LANE)
    data_pad = _round_up(data_dim, LANE)
    mv_hidden = latent_dim * expand_mul
    bf16 = jnp.bfloat16
    keys = jax.random.split(key, 10)
    p = {}

    # encoder: LayerSet(data_dim -> latent_dim, hidden=hidden_dim, 3 layers)
    w, b = _init_linear(keys[0], data_dim, hidden_dim)
    p["enc_w0"], p["enc_b0"] = w.astype(bf16), b
    p["enc_g0"], p["enc_be0"] = jnp.ones((1, hidden_dim)), jnp.zeros((1, hidden_dim))
    w, b = _init_linear(keys[1], hidden_dim, hidden_dim)
    p["enc_w1"], p["enc_b1"] = w.astype(bf16), b
    p["enc_g1"], p["enc_be1"] = jnp.ones((1, hidden_dim)), jnp.zeros((1, hidden_dim))
    # Latent head: pad output columns to lat_pad (no LayerNorm follows).
    w, b = _init_linear(keys[2], hidden_dim, latent_dim)
    p["enc_w2"] = _pad_to(w, hidden_dim, lat_pad).astype(bf16)
    p["enc_b2"] = _pad_to(b, 1, lat_pad)

    # meanvar encoder: ULayerSet(latent -> 2*latent, hidden=[latent*expand_mul])
    w, b = _init_linear(keys[3], latent_dim, mv_hidden)
    p["mv_w0"] = _pad_to(w, lat_pad, mv_hidden).astype(bf16)   # zero rows for pad lanes
    p["mv_b0"] = b
    p["mv_g0"], p["mv_be0"] = jnp.ones((1, mv_hidden)), jnp.zeros((1, mv_hidden))
    mv_w1, mv_b1 = _init_linear(keys[4], mv_hidden, 2 * latent_dim)
    # Column-split (== chunking the fused output) + lane padding of each head.
    p["mv_w1_mu"] = _pad_to(mv_w1[:, :latent_dim], mv_hidden, lat_pad).astype(bf16)
    p["mv_w1_var"] = _pad_to(mv_w1[:, latent_dim:], mv_hidden, lat_pad).astype(bf16)
    p["mv_b1_mu"] = _pad_to(mv_b1[:, :latent_dim], 1, lat_pad)
    p["mv_b1_var"] = _pad_to(mv_b1[:, latent_dim:], 1, lat_pad)

    # decoder: LayerSet(latent -> hidden_dim, hidden=hidden_dim, 3 layers)
    w, b = _init_linear(keys[5], latent_dim, hidden_dim)
    p["dec_w0"] = _pad_to(w, lat_pad, hidden_dim).astype(bf16)  # zero rows for pad lanes
    p["dec_b0"] = b
    p["dec_g0"], p["dec_be0"] = jnp.ones((1, hidden_dim)), jnp.zeros((1, hidden_dim))
    w, b = _init_linear(keys[6], hidden_dim, hidden_dim)
    p["dec_w1"], p["dec_b1"] = w.astype(bf16), b
    p["dec_g1"], p["dec_be1"] = jnp.ones((1, hidden_dim)), jnp.zeros((1, hidden_dim))
    w, b = _init_linear(keys[7], hidden_dim, hidden_dim)
    p["dec_w2"], p["dec_b2"] = w.astype(bf16), b

    # px_r_scale_dropout_decoder: Linear(hidden_dim, data_dim * dim_mul=2),
    # column-split into the r head and the scale head, each lane-padded.
    head_w, head_b = _init_linear(keys[8], hidden_dim, 2 * data_dim)
    p["head_w_r"] = _pad_to(head_w[:, :data_dim], hidden_dim, data_pad).astype(bf16)
    p["head_w_s"] = _pad_to(head_w[:, data_dim:], hidden_dim, data_pad).astype(bf16)
    p["head_b_r"] = _pad_to(head_b[:, :data_dim], 1, data_pad)
    p["head_b_s"] = _pad_to(head_b[:, data_dim:], 1, data_pad)
    return p


# ---------------------------------------------------------------------------
# Main
# ---------------------------------------------------------------------------
if __name__ == "__main__":
    BATCH, DATA_DIM, LATENT_DIM, HIDDEN_DIM = 256, 192, 32, 128

    key = jax.random.PRNGKey(0)
    kx, keps, kparam = jax.random.split(key, 3)

    # Count-like, non-negative input data (NB likelihood).
    x = jax.random.poisson(kx, 3.0, (BATCH, DATA_DIM)).astype(jnp.float32)
    # Reparameterization noise (torch.randn_like(std) in the reference).
    eps = jax.random.normal(keps, (BATCH, LATENT_DIM), jnp.float32)

    params = init_params(kparam, DATA_DIM, LATENT_DIM, HIDDEN_DIM)

    fwd = jax.jit(functools.partial(nbvae_forward, latent_dim=LATENT_DIM))
    packed = fwd(params, x, eps)
    packed = jax.block_until_ready(packed)

    expected_cols = 5 * LATENT_DIM + 4 * DATA_DIM
    assert packed.shape == (BATCH, expected_cols), packed.shape
    assert bool(jnp.all(jnp.isfinite(packed)))
    print("KERNEL_OK")
</pallas_src>

<mosaic_0001>
module attributes {stable_mosaic.version = 11 : i64} {
  func.func @_nbvae_fused_kernel(%arg0: i32, %arg1: memref<128x192xf32, #tpu.memory_space<vmem>>, %arg2: memref<128x1xf32, #tpu.memory_space<vmem>>, %arg3: memref<128x128xf32, #tpu.memory_space<vmem>>, %arg4: memref<192x128xbf16, #tpu.memory_space<vmem>>, %arg5: memref<1x128xf32, #tpu.memory_space<vmem>>, %arg6: memref<1x128xf32, #tpu.memory_space<vmem>>, %arg7: memref<1x128xf32, #tpu.memory_space<vmem>>, %arg8: memref<128x128xbf16, #tpu.memory_space<vmem>>, %arg9: memref<1x128xf32, #tpu.memory_space<vmem>>, %arg10: memref<1x128xf32, #tpu.memory_space<vmem>>, %arg11: memref<1x128xf32, #tpu.memory_space<vmem>>, %arg12: memref<128x128xbf16, #tpu.memory_space<vmem>>, %arg13: memref<1x128xf32, #tpu.memory_space<vmem>>, %arg14: memref<128x128xbf16, #tpu.memory_space<vmem>>, %arg15: memref<1x128xf32, #tpu.memory_space<vmem>>, %arg16: memref<1x128xf32, #tpu.memory_space<vmem>>, %arg17: memref<1x128xf32, #tpu.memory_space<vmem>>, %arg18: memref<128x128xbf16, #tpu.memory_space<vmem>>, %arg19: memref<1x128xf32, #tpu.memory_space<vmem>>, %arg20: memref<128x128xbf16, #tpu.memory_space<vmem>>, %arg21: memref<1x128xf32, #tpu.memory_space<vmem>>, %arg22: memref<128x128xbf16, #tpu.memory_space<vmem>>, %arg23: memref<1x128xf32, #tpu.memory_space<vmem>>, %arg24: memref<1x128xf32, #tpu.memory_space<vmem>>, %arg25: memref<1x128xf32, #tpu.memory_space<vmem>>, %arg26: memref<128x128xbf16, #tpu.memory_space<vmem>>, %arg27: memref<1x128xf32, #tpu.memory_space<vmem>>, %arg28: memref<1x128xf32, #tpu.memory_space<vmem>>, %arg29: memref<1x128xf32, #tpu.memory_space<vmem>>, %arg30: memref<128x128xbf16, #tpu.memory_space<vmem>>, %arg31: memref<1x128xf32, #tpu.memory_space<vmem>>, %arg32: memref<128x256xbf16, #tpu.memory_space<vmem>>, %arg33: memref<1x256xf32, #tpu.memory_space<vmem>>, %arg34: memref<128x256xbf16, #tpu.memory_space<vmem>>, %arg35: memref<1x256xf32, #tpu.memory_space<vmem>>, %arg36: memref<128x512xf32, #tpu.memory_space<vmem>>, %arg37: memref<128x1024xf32, #tpu.memory_space<vmem>>) attributes {dimension_semantics = [#tpu.dimension_semantics<parallel>], iteration_bounds = array<i64: 2>, scalar_prefetch = 0 : i64, scratch_operands = 0 : i64, tpu.core_type = #tpu.core_type<tc>, window_params = [{transform_indices = @transform_0, window_bounds = array<i64: 128, 192>}, {transform_indices = @transform_1, window_bounds = array<i64: 128, 1>}, {transform_indices = @transform_2, window_bounds = array<i64: 128, 128>}, {pipeline_mode = #tpu.pipeline_mode<synchronous>, transform_indices = @transform_3, window_bounds = array<i64: 192, 128>}, {pipeline_mode = #tpu.pipeline_mode<synchronous>, transform_indices = @transform_4, window_bounds = array<i64: 1, 128>}, {pipeline_mode = #tpu.pipeline_mode<synchronous>, transform_indices = @transform_5, window_bounds = array<i64: 1, 128>}, {pipeline_mode = #tpu.pipeline_mode<synchronous>, transform_indices = @transform_6, window_bounds = array<i64: 1, 128>}, {pipeline_mode = #tpu.pipeline_mode<synchronous>, transform_indices = @transform_7, window_bounds = array<i64: 128, 128>}, {pipeline_mode = #tpu.pipeline_mode<synchronous>, transform_indices = @transform_8, window_bounds = array<i64: 1, 128>}, {pipeline_mode = #tpu.pipeline_mode<synchronous>, transform_indices = @transform_9, window_bounds = array<i64: 1, 128>}, {pipeline_mode = #tpu.pipeline_mode<synchronous>, transform_indices = @transform_10, window_bounds = array<i64: 1, 128>}, {pipeline_mode = #tpu.pipeline_mode<synchronous>, transform_indices = @transform_11, window_bounds = array<i64: 128, 128>}, {pipeline_mode = #tpu.pipeline_mode<synchronous>, transform_indices = @transform_12, window_bounds = array<i64: 1, 128>}, {pipeline_mode = #tpu.pipeline_mode<synchronous>, transform_indices = @transform_13, window_bounds = array<i64: 128, 128>}, {pipeline_mode = #tpu.pipeline_mode<synchronous>, transform_indices = @transform_14, window_bounds = array<i64: 1, 128>}, {pipeline_mode = #tpu.pipeline_mode<synchronous>, transform_indices = @transform_15, window_bounds = array<i64: 1, 128>}, {pipeline_mode = #tpu.pipeline_mode<synchronous>, transform_indices = @transform_16, window_bounds = array<i64: 1, 128>}, {pipeline_mode = #tpu.pipeline_mode<synchronous>, transform_indices = @transform_17, window_bounds = array<i64: 128, 128>}, {pipeline_mode = #tpu.pipeline_mode<synchronous>, transform_indices = @transform_18, window_bounds = array<i64: 1, 128>}, {pipeline_mode = #tpu.pipeline_mode<synchronous>, transform_indices = @transform_19, window_bounds = array<i64: 128, 128>}, {pipeline_mode = #tpu.pipeline_mode<synchronous>, transform_indices = @transform_20, window_bounds = array<i64: 1, 128>}, {pipeline_mode = #tpu.pipeline_mode<synchronous>, transform_indices = @transform_21, window_bounds = array<i64: 128, 128>}, {pipeline_mode = #tpu.pipeline_mode<synchronous>, transform_indices = @transform_22, window_bounds = array<i64: 1, 128>}, {pipeline_mode = #tpu.pipeline_mode<synchronous>, transform_indices = @transform_23, window_bounds = array<i64: 1, 128>}, {pipeline_mode = #tpu.pipeline_mode<synchronous>, transform_indices = @transform_24, window_bounds = array<i64: 1, 128>}, {pipeline_mode = #tpu.pipeline_mode<synchronous>, transform_indices = @transform_25, window_bounds = array<i64: 128, 128>}, {pipeline_mode = #tpu.pipeline_mode<synchronous>, transform_indices = @transform_26, window_bounds = array<i64: 1, 128>}, {pipeline_mode = #tpu.pipeline_mode<synchronous>, transform_indices = @transform_27, window_bounds = array<i64: 1, 128>}, {pipeline_mode = #tpu.pipeline_mode<synchronous>, transform_indices = @transform_28, window_bounds = array<i64: 1, 128>}, {pipeline_mode = #tpu.pipeline_mode<synchronous>, transform_indices = @transform_29, window_bounds = array<i64: 128, 128>}, {pipeline_mode = #tpu.pipeline_mode<synchronous>, transform_indices = @transform_30, window_bounds = array<i64: 1, 128>}, {pipeline_mode = #tpu.pipeline_mode<synchronous>, transform_indices = @transform_31, window_bounds = array<i64: 128, 256>}, {pipeline_mode = #tpu.pipeline_mode<synchronous>, transform_indices = @transform_32, window_bounds = array<i64: 1, 256>}, {pipeline_mode = #tpu.pipeline_mode<synchronous>, transform_indices = @transform_33, window_bounds = array<i64: 128, 256>}, {pipeline_mode = #tpu.pipeline_mode<synchronous>, transform_indices = @transform_34, window_bounds = array<i64: 1, 256>}, {transform_indices = @transform_35, window_bounds = array<i64: 128, 512>}, {transform_indices = @transform_36, window_bounds = array<i64: 128, 1024>}]} {
    %c0 = arith.constant 0 : index
    %c0_0 = arith.constant 0 : index
    %0 = vector.load %arg1[%c0, %c0_0] : memref<128x192xf32, #tpu.memory_space<vmem>>, vector<128x192xf32>
    %c0_1 = arith.constant 0 : index
    %c0_2 = arith.constant 0 : index
    %1 = vector.load %arg2[%c0_1, %c0_2] : memref<128x1xf32, #tpu.memory_space<vmem>>, vector<128x1xf32>
    %c0_3 = arith.constant 0 : index
    %c0_4 = arith.constant 0 : index
    %2 = vector.load %arg3[%c0_3, %c0_4] : memref<128x128xf32, #tpu.memory_space<vmem>>, vector<128x128xf32>
    %3 = arith.truncf %0 : vector<128x192xf32> to vector<128x192xbf16>
    %c0_5 = arith.constant 0 : index
    %c0_6 = arith.constant 0 : index
    %4 = vector.load %arg4[%c0_5, %c0_6] : memref<192x128xbf16, #tpu.memory_space<vmem>>, vector<192x128xbf16>
    %cst = arith.constant dense<0.000000e+00> : vector<128x128xf32>
    %5 = tpu.matmul %3, %4, %cst {dimension_numbers = #tpu.dot_dimension_numbers<[1], [0], [0], [1], [0, 0, 1, 1], [], []>} : vector<128x192xbf16>, vector<192x128xbf16>, vector<128x128xf32> -> vector<128x128xf32>
    %c0_7 = arith.constant 0 : index
    %c0_8 = arith.constant 0 : index
    %6 = vector.load %arg5[%c0_7, %c0_8] : memref<1x128xf32, #tpu.memory_space<vmem>>, vector<1x128xf32>
    %7 = vector.broadcast %6 : vector<1x128xf32> to vector<128x128xf32>
    %8 = arith.addf %5, %7 : vector<128x128xf32>
    %cst_9 = arith.constant dense<0.000000e+00> : vector<128xf32>
    %9 = vector.multi_reduction <add>, %8, %cst_9 [1] : vector<128x128xf32> to vector<128xf32>
    %10 = vector.shape_cast %9 : vector<128xf32> to vector<128x1xf32>
    %cst_10 = arith.constant 1.280000e+02 : f32
    %11 = vector.broadcast %cst_10 : f32 to vector<128x1xf32>
    %12 = arith.divf %10, %11 : vector<128x1xf32>
    %13 = vector.broadcast %12 : vector<128x1xf32> to vector<128x128xf32>
    %14 = arith.subf %8, %13 : vector<128x128xf32>
    %15 = arith.mulf %14, %14 : vector<128x128xf32>
    %cst_11 = arith.constant dense<0.000000e+00> : vector<128xf32>
    %16 = vector.multi_reduction <add>, %15, %cst_11 [1] : vector<128x128xf32> to vector<128xf32>
    %17 = vector.shape_cast %16 : vector<128xf32> to vector<128x1xf32>
    %cst_12 = arith.constant 1.280000e+02 : f32
    %18 = vector.broadcast %cst_12 : f32 to vector<128x1xf32>
    %19 = arith.divf %17, %18 : vector<128x1xf32>
    %20 = vector.broadcast %12 : vector<128x1xf32> to vector<128x128xf32>
    %21 = arith.subf %8, %20 : vector<128x128xf32>
    %cst_13 = arith.constant 9.99999974E-6 : f32
    %22 = vector.broadcast %cst_13 : f32 to vector<128x1xf32>
    %23 = arith.addf %19, %22 : vector<128x1xf32>
    %24 = math.rsqrt %23 : vector<128x1xf32>
    %25 = vector.broadcast %24 : vector<128x1xf32> to vector<128x128xf32>
    %26 = arith.mulf %21, %25 : vector<128x128xf32>
    %c0_14 = arith.constant 0 : index
    %c0_15 = arith.constant 0 : index
    %27 = vector.load %arg6[%c0_14, %c0_15] : memref<1x128xf32, #tpu.memory_space<vmem>>, vector<1x128xf32>
    %28 = vector.broadcast %27 : vector<1x128xf32> to vector<128x128xf32>
    %29 = arith.mulf %26, %28 : vector<128x128xf32>
    %c0_16 = arith.constant 0 : index
    %c0_17 = arith.constant 0 : index
    %30 = vector.load %arg7[%c0_16, %c0_17] : memref<1x128xf32, #tpu.memory_space<vmem>>, vector<1x128xf32>
    %31 = vector.broadcast %30 : vector<1x128xf32> to vector<128x128xf32>
    %32 = arith.addf %29, %31 : vector<128x128xf32>
    %cst_18 = arith.constant 0.000000e+00 : f32
    %33 = vector.broadcast %cst_18 : f32 to vector<128x128xf32>
    %34 = arith.maximumf %32, %33 : vector<128x128xf32>
    %35 = arith.truncf %34 : vector<128x128xf32> to vector<128x128xbf16>
    %c0_19 = arith.constant 0 : index
    %c0_20 = arith.constant 0 : index
    %36 = vector.load %arg8[%c0_19, %c0_20] : memref<128x128xbf16, #tpu.memory_space<vmem>>, vector<128x128xbf16>
    %cst_21 = arith.constant dense<0.000000e+00> : vector<128x128xf32>
    %37 = tpu.matmul %35, %36, %cst_21 {dimension_numbers = #tpu.dot_dimension_numbers<[1], [0], [0], [1], [0, 0, 1, 1], [], []>} : vector<128x128xbf16>, vector<128x128xbf16>, vector<128x128xf32> -> vector<128x128xf32>
    %c0_22 = arith.constant 0 : index
    %c0_23 = arith.constant 0 : index
    %38 = vector.load %arg9[%c0_22, %c0_23] : memref<1x128xf32, #tpu.memory_space<vmem>>, vector<1x128xf32>
    %39 = vector.broadcast %38 : vector<1x128xf32> to vector<128x128xf32>
    %40 = arith.addf %37, %39 : vector<128x128xf32>
    %cst_24 = arith.constant dense<0.000000e+00> : vector<128xf32>
    %41 = vector.multi_reduction <add>, %40, %cst_24 [1] : vector<128x128xf32> to vector<128xf32>
    %42 = vector.shape_cast %41 : vector<128xf32> to vector<128x1xf32>
    %cst_25 = arith.constant 1.280000e+02 : f32
    %43 = vector.broadcast %cst_25 : f32 to vector<128x1xf32>
    %44 = arith.divf %42, %43 : vector<128x1xf32>
    %45 = vector.broadcast %44 : vector<128x1xf32> to vector<128x128xf32>
    %46 = arith.subf %40, %45 : vector<128x128xf32>
    %47 = arith.mulf %46, %46 : vector<128x128xf32>
    %cst_26 = arith.constant dense<0.000000e+00> : vector<128xf32>
    %48 = vector.multi_reduction <add>, %47, %cst_26 [1] : vector<128x128xf32> to vector<128xf32>
    %49 = vector.shape_cast %48 : vector<128xf32> to vector<128x1xf32>
    %cst_27 = arith.constant 1.280000e+02 : f32
    %50 = vector.broadcast %cst_27 : f32 to vector<128x1xf32>
    %51 = arith.divf %49, %50 : vector<128x1xf32>
    %52 = vector.broadcast %44 : vector<128x1xf32> to vector<128x128xf32>
    %53 = arith.subf %40, %52 : vector<128x128xf32>
    %cst_28 = arith.constant 9.99999974E-6 : f32
    %54 = vector.broadcast %cst_28 : f32 to vector<128x1xf32>
    %55 = arith.addf %51, %54 : vector<128x1xf32>
    %56 = math.rsqrt %55 : vector<128x1xf32>
    %57 = vector.broadcast %56 : vector<128x1xf32> to vector<128x128xf32>
    %58 = arith.mulf %53, %57 : vector<128x128xf32>
    %c0_29 = arith.constant 0 : index
    %c0_30 = arith.constant 0 : index
    %59 = vector.load %arg10[%c0_29, %c0_30] : memref<1x128xf32, #tpu.memory_space<vmem>>, vector<1x128xf32>
    %60 = vector.broadcast %59 : vector<1x128xf32> to vector<128x128xf32>
    %61 = arith.mulf %58, %60 : vector<128x128xf32>
    %c0_31 = arith.constant 0 : index
    %c0_32 = arith.constant 0 : index
    %62 = vector.load %arg11[%c0_31, %c0_32] : memref<1x128xf32, #tpu.memory_space<vmem>>, vector<1x128xf32>
    %63 = vector.broadcast %62 : vector<1x128xf32> to vector<128x128xf32>
    %64 = arith.addf %61, %63 : vector<128x128xf32>
    %cst_33 = arith.constant 0.000000e+00 : f32
    %65 = vector.broadcast %cst_33 : f32 to vector<128x128xf32>
    %66 = arith.maximumf %64, %65 : vector<128x128xf32>
    %67 = arith.truncf %66 : vector<128x128xf32> to vector<128x128xbf16>
    %c0_34 = arith.constant 0 : index
    %c0_35 = arith.constant 0 : index
    %68 = vector.load %arg12[%c0_34, %c0_35] : memref<128x128xbf16, #tpu.memory_space<vmem>>, vector<128x128xbf16>
    %cst_36 = arith.constant dense<0.000000e+00> : vector<128x128xf32>
    %69 = tpu.matmul %67, %68, %cst_36 {dimension_numbers = #tpu.dot_dimension_numbers<[1], [0], [0], [1], [0, 0, 1, 1], [], []>} : vector<128x128xbf16>, vector<128x128xbf16>, vector<128x128xf32> -> vector<128x128xf32>
    %c0_37 = arith.constant 0 : index
    %c0_38 = arith.constant 0 : index
    %70 = vector.load %arg13[%c0_37, %c0_38] : memref<1x128xf32, #tpu.memory_space<vmem>>, vector<1x128xf32>
    %71 = vector.broadcast %70 : vector<1x128xf32> to vector<128x128xf32>
    %72 = arith.addf %69, %71 : vector<128x128xf32>
    %73 = arith.truncf %72 : vector<128x128xf32> to vector<128x128xbf16>
    %c0_39 = arith.constant 0 : index
    %c0_40 = arith.constant 0 : index
    %74 = vector.load %arg14[%c0_39, %c0_40] : memref<128x128xbf16, #tpu.memory_space<vmem>>, vector<128x128xbf16>
    %cst_41 = arith.constant dense<0.000000e+00> : vector<128x128xf32>
    %75 = tpu.matmul %73, %74, %cst_41 {dimension_numbers = #tpu.dot_dimension_numbers<[1], [0], [0], [1], [0, 0, 1, 1], [], []>} : vector<128x128xbf16>, vector<128x128xbf16>, vector<128x128xf32> -> vector<128x128xf32>
    %c0_42 = arith.constant 0 : index
    %c0_43 = arith.constant 0 : index
    %76 = vector.load %arg15[%c0_42, %c0_43] : memref<1x128xf32, #tpu.memory_space<vmem>>, vector<1x128xf32>
    %77 = vector.broadcast %76 : vector<1x128xf32> to vector<128x128xf32>
    %78 = arith.addf %75, %77 : vector<128x128xf32>
    %cst_44 = arith.constant dense<0.000000e+00> : vector<128xf32>
    %79 = vector.multi_reduction <add>, %78, %cst_44 [1] : vector<128x128xf32> to vector<128xf32>
    %80 = vector.shape_cast %79 : vector<128xf32> to vector<128x1xf32>
    %cst_45 = arith.constant 1.280000e+02 : f32
    %81 = vector.broadcast %cst_45 : f32 to vector<128x1xf32>
    %82 = arith.divf %80, %81 : vector<128x1xf32>
    %83 = vector.broadcast %82 : vector<128x1xf32> to vector<128x128xf32>
    %84 = arith.subf %78, %83 : vector<128x128xf32>
    %85 = arith.mulf %84, %84 : vector<128x128xf32>
    %cst_46 = arith.constant dense<0.000000e+00> : vector<128xf32>
    %86 = vector.multi_reduction <add>, %85, %cst_46 [1] : vector<128x128xf32> to vector<128xf32>
    %87 = vector.shape_cast %86 : vector<128xf32> to vector<128x1xf32>
    %cst_47 = arith.constant 1.280000e+02 : f32
    %88 = vector.broadcast %cst_47 : f32 to vector<128x1xf32>
    %89 = arith.divf %87, %88 : vector<128x1xf32>
    %90 = vector.broadcast %82 : vector<128x1xf32> to vector<128x128xf32>
    %91 = arith.subf %78, %90 : vector<128x128xf32>
    %cst_48 = arith.constant 9.99999974E-6 : f32
    %92 = vector.broadcast %cst_48 : f32 to vector<128x1xf32>
    %93 = arith.addf %89, %92 : vector<128x1xf32>
    %94 = math.rsqrt %93 : vector<128x1xf32>
    %95 = vector.broadcast %94 : vector<128x1xf32> to vector<128x128xf32>
    %96 = arith.mulf %91, %95 : vector<128x128xf32>
    %c0_49 = arith.constant 0 : index
    %c0_50 = arith.constant 0 : index
    %97 = vector.load %arg16[%c0_49, %c0_50] : memref<1x128xf32, #tpu.memory_space<vmem>>, vector<1x128xf32>
    %98 = vector.broadcast %97 : vector<1x128xf32> to vector<128x128xf32>
    %99 = arith.mulf %96, %98 : vector<128x128xf32>
    %c0_51 = arith.constant 0 : index
    %c0_52 = arith.constant 0 : index
    %100 = vector.load %arg17[%c0_51, %c0_52] : memref<1x128xf32, #tpu.memory_space<vmem>>, vector<1x128xf32>
    %101 = vector.broadcast %100 : vector<1x128xf32> to vector<128x128xf32>
    %102 = arith.addf %99, %101 : vector<128x128xf32>
    %cst_53 = arith.constant 0.000000e+00 : f32
    %103 = vector.broadcast %cst_53 : f32 to vector<128x128xf32>
    %104 = arith.maximumf %102, %103 : vector<128x128xf32>
    %105 = arith.truncf %104 : vector<128x128xf32> to vector<128x128xbf16>
    %c0_54 = arith.constant 0 : index
    %c0_55 = arith.constant 0 : index
    %106 = vector.load %arg18[%c0_54, %c0_55] : memref<128x128xbf16, #tpu.memory_space<vmem>>, vector<128x128xbf16>
    %cst_56 = arith.constant dense<0.000000e+00> : vector<128x128xf32>
    %107 = tpu.matmul %105, %106, %cst_56 {dimension_numbers = #tpu.dot_dimension_numbers<[1], [0], [0], [1], [0, 0, 1, 1], [], []>} : vector<128x128xbf16>, vector<128x128xbf16>, vector<128x128xf32> -> vector<128x128xf32>
    %c0_57 = arith.constant 0 : index
    %c0_58 = arith.constant 0 : index
    %108 = vector.load %arg19[%c0_57, %c0_58] : memref<1x128xf32, #tpu.memory_space<vmem>>, vector<1x128xf32>
    %109 = vector.broadcast %108 : vector<1x128xf32> to vector<128x128xf32>
    %110 = arith.addf %107, %109 : vector<128x128xf32>
    %111 = arith.truncf %104 : vector<128x128xf32> to vector<128x128xbf16>
    %c0_59 = arith.constant 0 : index
    %c0_60 = arith.constant 0 : index
    %112 = vector.load %arg20[%c0_59, %c0_60] : memref<128x128xbf16, #tpu.memory_space<vmem>>, vector<128x128xbf16>
    %cst_61 = arith.constant dense<0.000000e+00> : vector<128x128xf32>
    %113 = tpu.matmul %111, %112, %cst_61 {dimension_numbers = #tpu.dot_dimension_numbers<[1], [0], [0], [1], [0, 0, 1, 1], [], []>} : vector<128x128xbf16>, vector<128x128xbf16>, vector<128x128xf32> -> vector<128x128xf32>
    %c0_62 = arith.constant 0 : index
    %c0_63 = arith.constant 0 : index
    %114 = vector.load %arg21[%c0_62, %c0_63] : memref<1x128xf32, #tpu.memory_space<vmem>>, vector<1x128xf32>
    %115 = vector.broadcast %114 : vector<1x128xf32> to vector<128x128xf32>
    %116 = arith.addf %113, %115 : vector<128x128xf32>
    %cst_64 = arith.constant 0.000000e+00 : f32
    %117 = vector.broadcast %cst_64 : f32 to vector<128x128xf32>
    %118 = arith.maximumf %116, %117 : vector<128x128xf32>
    %119 = vector.broadcast %cst_64 : f32 to vector<128x128xf32>
    %120 = arith.subf %116, %119 : vector<128x128xf32>
    %121 = arith.cmpf one, %120, %120 : vector<128x128xf32>
    %122 = vector.broadcast %cst_64 : f32 to vector<128x128xf32>
    %123 = arith.addf %116, %122 : vector<128x128xf32>
    %124 = math.absf %120 : vector<128x128xf32>
    %cst_65 = arith.constant 0.000000e+00 : f32
    %125 = vector.broadcast %cst_65 : f32 to vector<128x128xf32>
    %126 = arith.subf %125, %124 : vector<128x128xf32>
    %127 = math.exp %126 : vector<128x128xf32>
    %128 = math.log1p %127 : vector<128x128xf32>
    %129 = arith.addf %118, %128 : vector<128x128xf32>
    %130 = arith.select %121, %123, %129 : vector<128x128xi1>, vector<128x128xf32>
    %131 = math.log %130 : vector<128x128xf32>
    %132 = math.sqrt %130 : vector<128x128xf32>
    %cst_66 = arith.constant 9.99999974E-5 : f32
    %133 = vector.broadcast %cst_66 : f32 to vector<128x128xf32>
    %134 = arith.addf %132, %133 : vector<128x128xf32>
    %135 = arith.mulf %2, %134 : vector<128x128xf32>
    %136 = arith.addf %110, %135 : vector<128x128xf32>
    %cst_67 = arith.constant 1.000000e+00 : f32
    %137 = vector.broadcast %cst_67 : f32 to vector<128x128xf32>
    %138 = arith.addf %137, %131 : vector<128x128xf32>
    %139 = arith.mulf %110, %110 : vector<128x128xf32>
    %140 = arith.subf %138, %139 : vector<128x128xf32>
    %141 = arith.subf %140, %130 : vector<128x128xf32>
    %cst_68 = arith.constant -5.000000e-01 : f32
    %142 = vector.broadcast %cst_68 : f32 to vector<128x128xf32>
    %143 = arith.mulf %142, %141 : vector<128x128xf32>
    %144 = arith.truncf %136 : vector<128x128xf32> to vector<128x128xbf16>
    %c0_69 = arith.constant 0 : index
    %c0_70 = arith.constant 0 : index
    %145 = vector.load %arg22[%c0_69, %c0_70] : memref<128x128xbf16, #tpu.memory_space<vmem>>, vector<128x128xbf16>
    %cst_71 = arith.constant dense<0.000000e+00> : vector<128x128xf32>
    %146 = tpu.matmul %144, %145, %cst_71 {dimension_numbers = #tpu.dot_dimension_numbers<[1], [0], [0], [1], [0, 0, 1, 1], [], []>} : vector<128x128xbf16>, vector<128x128xbf16>, vector<128x128xf32> -> vector<128x128xf32>
    %c0_72 = arith.constant 0 : index
    %c0_73 = arith.constant 0 : index
    %147 = vector.load %arg23[%c0_72, %c0_73] : memref<1x128xf32, #tpu.memory_space<vmem>>, vector<1x128xf32>
    %148 = vector.broadcast %147 : vector<1x128xf32> to vector<128x128xf32>
    %149 = arith.addf %146, %148 : vector<128x128xf32>
    %cst_74 = arith.constant dense<0.000000e+00> : vector<128xf32>
    %150 = vector.multi_reduction <add>, %149, %cst_74 [1] : vector<128x128xf32> to vector<128xf32>
    %151 = vector.shape_cast %150 : vector<128xf32> to vector<128x1xf32>
    %cst_75 = arith.constant 1.280000e+02 : f32
    %152 = vector.broadcast %cst_75 : f32 to vector<128x1xf32>
    %153 = arith.divf %151, %152 : vector<128x1xf32>
    %154 = vector.broadcast %153 : vector<128x1xf32> to vector<128x128xf32>
    %155 = arith.subf %149, %154 : vector<128x128xf32>
    %156 = arith.mulf %155, %155 : vector<128x128xf32>
    %cst_76 = arith.constant dense<0.000000e+00> : vector<128xf32>
    %157 = vector.multi_reduction <add>, %156, %cst_76 [1] : vector<128x128xf32> to vector<128xf32>
    %158 = vector.shape_cast %157 : vector<128xf32> to vector<128x1xf32>
    %cst_77 = arith.constant 1.280000e+02 : f32
    %159 = vector.broadcast %cst_77 : f32 to vector<128x1xf32>
    %160 = arith.divf %158, %159 : vector<128x1xf32>
    %161 = vector.broadcast %153 : vector<128x1xf32> to vector<128x128xf32>
    %162 = arith.subf %149, %161 : vector<128x128xf32>
    %cst_78 = arith.constant 9.99999974E-6 : f32
    %163 = vector.broadcast %cst_78 : f32 to vector<128x1xf32>
    %164 = arith.addf %160, %163 : vector<128x1xf32>
    %165 = math.rsqrt %164 : vector<128x1xf32>
    %166 = vector.broadcast %165 : vector<128x1xf32> to vector<128x128xf32>
    %167 = arith.mulf %162, %166 : vector<128x128xf32>
    %c0_79 = arith.constant 0 : index
    %c0_80 = arith.constant 0 : index
    %168 = vector.load %arg24[%c0_79, %c0_80] : memref<1x128xf32, #tpu.memory_space<vmem>>, vector<1x128xf32>
    %169 = vector.broadcast %168 : vector<1x128xf32> to vector<128x128xf32>
    %170 = arith.mulf %167, %169 : vector<128x128xf32>
    %c0_81 = arith.constant 0 : index
    %c0_82 = arith.constant 0 : index
    %171 = vector.load %arg25[%c0_81, %c0_82] : memref<1x128xf32, #tpu.memory_space<vmem>>, vector<1x128xf32>
    %172 = vector.broadcast %171 : vector<1x128xf32> to vector<128x128xf32>
    %173 = arith.addf %170, %172 : vector<128x128xf32>
    %cst_83 = arith.constant 0.000000e+00 : f32
    %174 = vector.broadcast %cst_83 : f32 to vector<128x128xf32>
    %175 = arith.maximumf %173, %174 : vector<128x128xf32>
    %176 = arith.truncf %175 : vector<128x128xf32> to vector<128x128xbf16>
    %c0_84 = arith.constant 0 : index
    %c0_85 = arith.constant 0 : index
    %177 = vector.load %arg26[%c0_84, %c0_85] : memref<128x128xbf16, #tpu.memory_space<vmem>>, vector<128x128xbf16>
    %cst_86 = arith.constant dense<0.000000e+00> : vector<128x128xf32>
    %178 = tpu.matmul %176, %177, %cst_86 {dimension_numbers = #tpu.dot_dimension_numbers<[1], [0], [0], [1], [0, 0, 1, 1], [], []>} : vector<128x128xbf16>, vector<128x128xbf16>, vector<128x128xf32> -> vector<128x128xf32>
    %c0_87 = arith.constant 0 : index
    %c0_88 = arith.constant 0 : index
    %179 = vector.load %arg27[%c0_87, %c0_88] : memref<1x128xf32, #tpu.memory_space<vmem>>, vector<1x128xf32>
    %180 = vector.broadcast %179 : vector<1x128xf32> to vector<128x128xf32>
    %181 = arith.addf %178, %180 : vector<128x128xf32>
    %cst_89 = arith.constant dense<0.000000e+00> : vector<128xf32>
    %182 = vector.multi_reduction <add>, %181, %cst_89 [1] : vector<128x128xf32> to vector<128xf32>
    %183 = vector.shape_cast %182 : vector<128xf32> to vector<128x1xf32>
    %cst_90 = arith.constant 1.280000e+02 : f32
    %184 = vector.broadcast %cst_90 : f32 to vector<128x1xf32>
    %185 = arith.divf %183, %184 : vector<128x1xf32>
    %186 = vector.broadcast %185 : vector<128x1xf32> to vector<128x128xf32>
    %187 = arith.subf %181, %186 : vector<128x128xf32>
    %188 = arith.mulf %187, %187 : vector<128x128xf32>
    %cst_91 = arith.constant dense<0.000000e+00> : vector<128xf32>
    %189 = vector.multi_reduction <add>, %188, %cst_91 [1] : vector<128x128xf32> to vector<128xf32>
    %190 = vector.shape_cast %189 : vector<128xf32> to vector<128x1xf32>
    %cst_92 = arith.constant 1.280000e+02 : f32
    %191 = vector.broadcast %cst_92 : f32 to vector<128x1xf32>
    %192 = arith.divf %190, %191 : vector<128x1xf32>
    %193 = vector.broadcast %185 : vector<128x1xf32> to vector<128x128xf32>
    %194 = arith.subf %181, %193 : vector<128x128xf32>
    %cst_93 = arith.constant 9.99999974E-6 : f32
    %195 = vector.broadcast %cst_93 : f32 to vector<128x1xf32>
    %196 = arith.addf %192, %195 : vector<128x1xf32>
    %197 = math.rsqrt %196 : vector<128x1xf32>
    %198 = vector.broadcast %197 : vector<128x1xf32> to vector<128x128xf32>
    %199 = arith.mulf %194, %198 : vector<128x128xf32>
    %c0_94 = arith.constant 0 : index
    %c0_95 = arith.constant 0 : index
    %200 = vector.load %arg28[%c0_94, %c0_95] : memref<1x128xf32, #tpu.memory_space<vmem>>, vector<1x128xf32>
    %201 = vector.broadcast %200 : vector<1x128xf32> to vector<128x128xf32>
    %202 = arith.mulf %199, %201 : vector<128x128xf32>
    %c0_96 = arith.constant 0 : index
    %c0_97 = arith.constant 0 : index
    %203 = vector.load %arg29[%c0_96, %c0_97] : memref<1x128xf32, #tpu.memory_space<vmem>>, vector<1x128xf32>
    %204 = vector.broadcast %203 : vector<1x128xf32> to vector<128x128xf32>
    %205 = arith.addf %202, %204 : vector<128x128xf32>
    %cst_98 = arith.constant 0.000000e+00 : f32
    %206 = vector.broadcast %cst_98 : f32 to vector<128x128xf32>
    %207 = arith.maximumf %205, %206 : vector<128x128xf32>
    %208 = arith.truncf %207 : vector<128x128xf32> to vector<128x128xbf16>
    %c0_99 = arith.constant 0 : index
    %c0_100 = arith.constant 0 : index
    %209 = vector.load %arg30[%c0_99, %c0_100] : memref<128x128xbf16, #tpu.memory_space<vmem>>, vector<128x128xbf16>
    %cst_101 = arith.constant dense<0.000000e+00> : vector<128x128xf32>
    %210 = tpu.matmul %208, %209, %cst_101 {dimension_numbers = #tpu.dot_dimension_numbers<[1], [0], [0], [1], [0, 0, 1, 1], [], []>} : vector<128x128xbf16>, vector<128x128xbf16>, vector<128x128xf32> -> vector<128x128xf32>
    %c0_102 = arith.constant 0 : index
    %c0_103 = arith.constant 0 : index
    %211 = vector.load %arg31[%c0_102, %c0_103] : memref<1x128xf32, #tpu.memory_space<vmem>>, vector<1x128xf32>
    %212 = vector.broadcast %211 : vector<1x128xf32> to vector<128x128xf32>
    %213 = arith.addf %210, %212 : vector<128x128xf32>
    %214 = arith.truncf %213 : vector<128x128xf32> to vector<128x128xbf16>
    %c0_104 = arith.constant 0 : index
    %c0_105 = arith.constant 0 : index
    %215 = vector.load %arg32[%c0_104, %c0_105] : memref<128x256xbf16, #tpu.memory_space<vmem>>, vector<128x256xbf16>
    %cst_106 = arith.constant dense<0.000000e+00> : vector<128x256xf32>
    %216 = tpu.matmul %214, %215, %cst_106 {dimension_numbers = #tpu.dot_dimension_numbers<[1], [0], [0], [1], [0, 0, 1, 1], [], []>} : vector<128x128xbf16>, vector<128x256xbf16>, vector<128x256xf32> -> vector<128x256xf32>
    %c0_107 = arith.constant 0 : index
    %c0_108 = arith.constant 0 : index
    %217 = vector.load %arg33[%c0_107, %c0_108] : memref<1x256xf32, #tpu.memory_space<vmem>>, vector<1x256xf32>
    %218 = vector.broadcast %217 : vector<1x256xf32> to vector<128x256xf32>
    %219 = arith.addf %216, %218 : vector<128x256xf32>
    %220 = arith.truncf %213 : vector<128x128xf32> to vector<128x128xbf16>
    %c0_109 = arith.constant 0 : index
    %c0_110 = arith.constant 0 : index
    %221 = vector.load %arg34[%c0_109, %c0_110] : memref<128x256xbf16, #tpu.memory_space<vmem>>, vector<128x256xbf16>
    %cst_111 = arith.constant dense<0.000000e+00> : vector<128x256xf32>
    %222 = tpu.matmul %220, %221, %cst_111 {dimension_numbers = #tpu.dot_dimension_numbers<[1], [0], [0], [1], [0, 0, 1, 1], [], []>} : vector<128x128xbf16>, vector<128x256xbf16>, vector<128x256xf32> -> vector<128x256xf32>
    %c0_112 = arith.constant 0 : index
    %c0_113 = arith.constant 0 : index
    %223 = vector.load %arg35[%c0_112, %c0_113] : memref<1x256xf32, #tpu.memory_space<vmem>>, vector<1x256xf32>
    %224 = vector.broadcast %223 : vector<1x256xf32> to vector<128x256xf32>
    %225 = arith.addf %222, %224 : vector<128x256xf32>
    %cst_114 = arith.constant 0.000000e+00 : f32
    %226 = vector.broadcast %cst_114 : f32 to vector<128x256xf32>
    %227 = arith.maximumf %225, %226 : vector<128x256xf32>
    %228 = vector.broadcast %cst_114 : f32 to vector<128x256xf32>
    %229 = arith.subf %225, %228 : vector<128x256xf32>
    %230 = arith.cmpf one, %229, %229 : vector<128x256xf32>
    %231 = vector.broadcast %cst_114 : f32 to vector<128x256xf32>
    %232 = arith.addf %225, %231 : vector<128x256xf32>
    %233 = math.absf %229 : vector<128x256xf32>
    %cst_115 = arith.constant 0.000000e+00 : f32
    %234 = vector.broadcast %cst_115 : f32 to vector<128x256xf32>
    %235 = arith.subf %234, %233 : vector<128x256xf32>
    %236 = math.exp %235 : vector<128x256xf32>
    %237 = math.log1p %236 : vector<128x256xf32>
    %238 = arith.addf %227, %237 : vector<128x256xf32>
    %239 = arith.select %230, %232, %238 : vector<128x256xi1>, vector<128x256xf32>
    %240 = math.exp %219 : vector<128x256xf32>
    %241 = vector.broadcast %1 : vector<128x1xf32> to vector<128x256xf32>
    %242 = arith.mulf %241, %239 : vector<128x256xf32>
    %cst_116 = arith.constant 9.99999974E-5 : f32
    %243 = vector.broadcast %cst_116 : f32 to vector<128x256xf32>
    %244 = arith.addf %240, %243 : vector<128x256xf32>
    %245 = arith.addf %240, %242 : vector<128x256xf32>
    %cst_117 = arith.constant 9.99999974E-5 : f32
    %246 = vector.broadcast %cst_117 : f32 to vector<128x256xf32>
    %247 = arith.addf %245, %246 : vector<128x256xf32>
    %248 = arith.divf %244, %247 : vector<128x256xf32>
    %249 = math.log %248 : vector<128x256xf32>
    %250 = arith.mulf %240, %249 : vector<128x256xf32>
    %cst_118 = arith.constant 0.000000e+00 : f32
    %251 = vector.broadcast %cst_118 : f32 to vector<128x256xf32>
    %252 = arith.subf %251, %250 : vector<128x256xf32>
    %c0_119 = arith.constant 0 : index
    %c0_120 = arith.constant 0 : index
    %253 = vector.load %arg36[%c0_119, %c0_120] : memref<128x512xf32, #tpu.memory_space<vmem>>, vector<128x128xf32>
    tpu.vector_store %arg36[%c0_119, %c0_120], %136 {strides = array<i32>} : memref<128x512xf32, #tpu.memory_space<vmem>>, vector<128x128xf32>,
    %c0_121 = arith.constant 0 : index
    %c128 = arith.constant 128 : index
    %254 = vector.load %arg36[%c0_121, %c128] : memref<128x512xf32, #tpu.memory_space<vmem>>, vector<128x128xf32>
    tpu.vector_store %arg36[%c0_121, %c128], %110 {strides = array<i32>} : memref<128x512xf32, #tpu.memory_space<vmem>>, vector<128x128xf32>,
    %c0_122 = arith.constant 0 : index
    %c256 = arith.constant 256 : index
    %255 = vector.load %arg36[%c0_122, %c256] : memref<128x512xf32, #tpu.memory_space<vmem>>, vector<128x128xf32>
    tpu.vector_store %arg36[%c0_122, %c256], %131 {strides = array<i32>} : memref<128x512xf32, #tpu.memory_space<vmem>>, vector<128x128xf32>,
    %c0_123 = arith.constant 0 : index
    %c384 = arith.constant 384 : index
    %256 = vector.load %arg36[%c0_123, %c384] : memref<128x512xf32, #tpu.memory_space<vmem>>, vector<128x128xf32>
    tpu.vector_store %arg36[%c0_123, %c384], %143 {strides = array<i32>} : memref<128x512xf32, #tpu.memory_space<vmem>>, vector<128x128xf32>,
    %c0_124 = arith.constant 0 : index
    %c0_125 = arith.constant 0 : index
    %257 = vector.load %arg37[%c0_124, %c0_125] : memref<128x1024xf32, #tpu.memory_space<vmem>>, vector<128x256xf32>
    tpu.vector_store %arg37[%c0_124, %c0_125], %252 {strides = array<i32>} : memref<128x1024xf32, #tpu.memory_space<vmem>>, vector<128x256xf32>,
    %c0_126 = arith.constant 0 : index
    %c256_127 = arith.constant 256 : index
    %258 = vector.load %arg37[%c0_126, %c256_127] : memref<128x1024xf32, #tpu.memory_space<vmem>>, vector<128x256xf32>
    tpu.vector_store %arg37[%c0_126, %c256_127], %242 {strides = array<i32>} : memref<128x1024xf32, #tpu.memory_space<vmem>>, vector<128x256xf32>,
    %c0_128 = arith.constant 0 : index
    %c512 = arith.constant 512 : index
    %259 = vector.load %arg37[%c0_128, %c512] : memref<128x1024xf32, #tpu.memory_space<vmem>>, vector<128x256xf32>
    tpu.vector_store %arg37[%c0_128, %c512], %240 {strides = array<i32>} : memref<128x1024xf32, #tpu.memory_space<vmem>>, vector<128x256xf32>,
    %c0_129 = arith.constant 0 : index
    %c768 = arith.constant 768 : index
    %260 = vector.load %arg37[%c0_129, %c768] : memref<128x1024xf32, #tpu.memory_space<vmem>>, vector<128x256xf32>
    tpu.vector_store %arg37[%c0_129, %c768], %239 {strides = array<i32>} : memref<128x1024xf32, #tpu.memory_space<vmem>>, vector<128x256xf32>,
    return
  }
  func.func @transform_0(%arg0: i32) -> (i32, i32) {
    %c0_i32 = arith.constant 0 : i32
    %c0_i32_0 = arith.constant 0 : i32
    return %arg0, %c0_i32 : i32, i32
  }
  func.func @transform_1(%arg0: i32) -> (i32, i32) {
    %c0_i32 = arith.constant 0 : i32
    %c0_i32_0 = arith.constant 0 : i32
    return %arg0, %c0_i32 : i32, i32
  }
  func.func @transform_2(%arg0: i32) -> (i32, i32) {
    %c0_i32 = arith.constant 0 : i32
    %c0_i32_0 = arith.constant 0 : i32
    return %arg0, %c0_i32 : i32, i32
  }
  func.func @transform_3(%arg0: i32) -> (i32, i32) {
    %c0_i32 = arith.constant 0 : i32
    %c0_i32_0 = arith.constant 0 : i32
    %c0_i32_1 = arith.constant 0 : i32
    return %c0_i32, %c0_i32_0 : i32, i32
  }
  func.func @transform_4(%arg0: i32) -> (i32, i32) {
    %c0_i32 = arith.constant 0 : i32
    %c0_i32_0 = arith.constant 0 : i32
    %c0_i32_1 = arith.constant 0 : i32
    return %c0_i32, %c0_i32_0 : i32, i32
  }
  func.func @transform_5(%arg0: i32) -> (i32, i32) {
    %c0_i32 = arith.constant 0 : i32
    %c0_i32_0 = arith.constant 0 : i32
    %c0_i32_1 = arith.constant 0 : i32
    return %c0_i32, %c0_i32_0 : i32, i32
  }
  func.func @transform_6(%arg0: i32) -> (i32, i32) {
    %c0_i32 = arith.constant 0 : i32
    %c0_i32_0 = arith.constant 0 : i32
    %c0_i32_1 = arith.constant 0 : i32
    return %c0_i32, %c0_i32_0 : i32, i32
  }
  func.func @transform_7(%arg0: i32) -> (i32, i32) {
    %c0_i32 = arith.constant 0 : i32
    %c0_i32_0 = arith.constant 0 : i32
    %c0_i32_1 = arith.constant 0 : i32
    return %c0_i32, %c0_i32_0 : i32, i32
  }
  func.func @transform_8(%arg0: i32) -> (i32, i32) {
    %c0_i32 = arith.constant 0 : i32
    %c0_i32_0 = arith.constant 0 : i32
    %c0_i32_1 = arith.constant 0 : i32
    return %c0_i32, %c0_i32_0 : i32, i32
  }
  func.func @transform_9(%arg0: i32) -> (i32, i32) {
    %c0_i32 = arith.constant 0 : i32
    %c0_i32_0 = arith.constant 0 : i32
    %c0_i32_1 = arith.constant 0 : i32
    return %c0_i32, %c0_i32_0 : i32, i32
  }
  func.func @transform_10(%arg0: i32) -> (i32, i32) {
    %c0_i32 = arith.constant 0 : i32
    %c0_i32_0 = arith.constant 0 : i32
    %c0_i32_1 = arith.constant 0 : i32
    return %c0_i32, %c0_i32_0 : i32, i32
  }
  func.func @transform_11(%arg0: i32) -> (i32, i32) {
    %c0_i32 = arith.constant 0 : i32
    %c0_i32_0 = arith.constant 0 : i32
    %c0_i32_1 = arith.constant 0 : i32
    return %c0_i32, %c0_i32_0 : i32, i32
  }
  func.func @transform_12(%arg0: i32) -> (i32, i32) {
    %c0_i32 = arith.constant 0 : i32
    %c0_i32_0 = arith.constant 0 : i32
    %c0_i32_1 = arith.constant 0 : i32
    return %c0_i32, %c0_i32_0 : i32, i32
  }
  func.func @transform_13(%arg0: i32) -> (i32, i32) {
    %c0_i32 = arith.constant 0 : i32
    %c0_i32_0 = arith.constant 0 : i32
    %c0_i32_1 = arith.constant 0 : i32
    return %c0_i32, %c0_i32_0 : i32, i32
  }
  func.func @transform_14(%arg0: i32) -> (i32, i32) {
    %c0_i32 = arith.constant 0 : i32
    %c0_i32_0 = arith.constant 0 : i32
    %c0_i32_1 = arith.constant 0 : i32
    return %c0_i32, %c0_i32_0 : i32, i32
  }
  func.func @transform_15(%arg0: i32) -> (i32, i32) {
    %c0_i32 = arith.constant 0 : i32
    %c0_i32_0 = arith.constant 0 : i32
    %c0_i32_1 = arith.constant 0 : i32
    return %c0_i32, %c0_i32_0 : i32, i32
  }
  func.func @transform_16(%arg0: i32) -> (i32, i32) {
    %c0_i32 = arith.constant 0 : i32
    %c0_i32_0 = arith.constant 0 : i32
    %c0_i32_1 = arith.constant 0 : i32
    return %c0_i32, %c0_i32_0 : i32, i32
  }
  func.func @transform_17(%arg0: i32) -> (i32, i32) {
    %c0_i32 = arith.constant 0 : i32
    %c0_i32_0 = arith.constant 0 : i32
    %c0_i32_1 = arith.constant 0 : i32
    return %c0_i32, %c0_i32_0 : i32, i32
  }
  func.func @transform_18(%arg0: i32) -> (i32, i32) {
    %c0_i32 = arith.constant 0 : i32
    %c0_i32_0 = arith.constant 0 : i32
    %c0_i32_1 = arith.constant 0 : i32
    return %c0_i32, %c0_i32_0 : i32, i32
  }
  func.func @transform_19(%arg0: i32) -> (i32, i32) {
    %c0_i32 = arith.constant 0 : i32
    %c0_i32_0 = arith.constant 0 : i32
    %c0_i32_1 = arith.constant 0 : i32
    return %c0_i32, %c0_i32_0 : i32, i32
  }
  func.func @transform_20(%arg0: i32) -> (i32, i32) {
    %c0_i32 = arith.constant 0 : i32
    %c0_i32_0 = arith.constant 0 : i32
    %c0_i32_1 = arith.constant 0 : i32
    return %c0_i32, %c0_i32_0 : i32, i32
  }
  func.func @transform_21(%arg0: i32) -> (i32, i32) {
    %c0_i32 = arith.constant 0 : i32
    %c0_i32_0 = arith.constant 0 : i32
    %c0_i32_1 = arith.constant 0 : i32
    return %c0_i32, %c0_i32_0 : i32, i32
  }
  func.func @transform_22(%arg0: i32) -> (i32, i32) {
    %c0_i32 = arith.constant 0 : i32
    %c0_i32_0 = arith.constant 0 : i32
    %c0_i32_1 = arith.constant 0 : i32
    return %c0_i32, %c0_i32_0 : i32, i32
  }
  func.func @transform_23(%arg0: i32) -> (i32, i32) {
    %c0_i32 = arith.constant 0 : i32
    %c0_i32_0 = arith.constant 0 : i32
    %c0_i32_1 = arith.constant 0 : i32
    return %c0_i32, %c0_i32_0 : i32, i32
  }
  func.func @transform_24(%arg0: i32) -> (i32, i32) {
    %c0_i32 = arith.constant 0 : i32
    %c0_i32_0 = arith.constant 0 : i32
    %c0_i32_1 = arith.constant 0 : i32
    return %c0_i32, %c0_i32_0 : i32, i32
  }
  func.func @transform_25(%arg0: i32) -> (i32, i32) {
    %c0_i32 = arith.constant 0 : i32
    %c0_i32_0 = arith.constant 0 : i32
    %c0_i32_1 = arith.constant 0 : i32
    return %c0_i32, %c0_i32_0 : i32, i32
  }
  func.func @transform_26(%arg0: i32) -> (i32, i32) {
    %c0_i32 = arith.constant 0 : i32
    %c0_i32_0 = arith.constant 0 : i32
    %c0_i32_1 = arith.constant 0 : i32
    return %c0_i32, %c0_i32_0 : i32, i32
  }
  func.func @transform_27(%arg0: i32) -> (i32, i32) {
    %c0_i32 = arith.constant 0 : i32
    %c0_i32_0 = arith.constant 0 : i32
    %c0_i32_1 = arith.constant 0 : i32
    return %c0_i32, %c0_i32_0 : i32, i32
  }
  func.func @transform_28(%arg0: i32) -> (i32, i32) {
    %c0_i32 = arith.constant 0 : i32
    %c0_i32_0 = arith.constant 0 : i32
    %c0_i32_1 = arith.constant 0 : i32
    return %c0_i32, %c0_i32_0 : i32, i32
  }
  func.func @transform_29(%arg0: i32) -> (i32, i32) {
    %c0_i32 = arith.constant 0 : i32
    %c0_i32_0 = arith.constant 0 : i32
    %c0_i32_1 = arith.constant 0 : i32
    return %c0_i32, %c0_i32_0 : i32, i32
  }
  func.func @transform_30(%arg0: i32) -> (i32, i32) {
    %c0_i32 = arith.constant 0 : i32
    %c0_i32_0 = arith.constant 0 : i32
    %c0_i32_1 = arith.constant 0 : i32
    return %c0_i32, %c0_i32_0 : i32, i32
  }
  func.func @transform_31(%arg0: i32) -> (i32, i32) {
    %c0_i32 = arith.constant 0 : i32
    %c0_i32_0 = arith.constant 0 : i32
    %c0_i32_1 = arith.constant 0 : i32
    return %c0_i32, %c0_i32_0 : i32, i32
  }
  func.func @transform_32(%arg0: i32) -> (i32, i32) {
    %c0_i32 = arith.constant 0 : i32
    %c0_i32_0 = arith.constant 0 : i32
    %c0_i32_1 = arith.constant 0 : i32
    return %c0_i32, %c0_i32_0 : i32, i32
  }
  func.func @transform_33(%arg0: i32) -> (i32, i32) {
    %c0_i32 = arith.constant 0 : i32
    %c0_i32_0 = arith.constant 0 : i32
    %c0_i32_1 = arith.constant 0 : i32
    return %c0_i32, %c0_i32_0 : i32, i32
  }
  func.func @transform_34(%arg0: i32) -> (i32, i32) {
    %c0_i32 = arith.constant 0 : i32
    %c0_i32_0 = arith.constant 0 : i32
    %c0_i32_1 = arith.constant 0 : i32
    return %c0_i32, %c0_i32_0 : i32, i32
  }
  func.func @transform_35(%arg0: i32) -> (i32, i32) {
    %c0_i32 = arith.constant 0 : i32
    %c0_i32_0 = arith.constant 0 : i32
    return %arg0, %c0_i32 : i32, i32
  }
  func.func @transform_36(%arg0: i32) -> (i32, i32) {
    %c0_i32 = arith.constant 0 : i32
    %c0_i32_0 = arith.constant 0 : i32
    return %arg0, %c0_i32 : i32, i32
  }
}

</mosaic_0001>

<bundles_post_ra>
// kernel: nbvae_forward.1
= control target key start
LH: loop header
LB: loop body
LE: loop exit
PB: predicated region body
PF: predicated region fallthrough
CT: control target
= control target key end

     0   :  { %s8486_s6 = smov 1   ;;  %s8487_s10 = smov 2   ;;  %s12097_s0 = inlined_call_operand.smem [shape: u32[37], index: -1, kind: input, shape index: {}] }
   0x1   :  { %s8532_s5 = sld [smem:[%s12097_s0]]   ;;  %s8488_s14 = smov 3  }
   0x2   :  { %s8537_s9 = sld [smem:[%s12097_s0 + %s8486_s6]]   ;;  %s8489_s18 = smov 4  }
   0x3   :  { %s8542_s13 = sld [smem:[%s12097_s0 + %s8487_s10]]   ;;  %s8490_s22 = smov 5  }
   0x4   :  { %s8547_s17 = sld [smem:[%s12097_s0 + %s8488_s14]]   ;;  %s8491_s26 = smov 6  }
   0x5   :  { %s8552_s21 = sld [smem:[%s12097_s0 + %s8489_s18]]   ;;  %s8492_s30 = smov 7  }
   0x6   :  { %s8557_s25 = sld [smem:[%s12097_s0 + %s8490_s22]]   ;;  %s8493_s4 = smov 8  }
   0x7   :  { %s8562_s29 = sld [smem:[%s12097_s0 + %s8491_s26]]   ;;  %s8494_s10 = smov 9  }
   0x8   :  { %12111 = sst [smem:[#allocation2_spill]] %s8537_s9  ;;  %s8495_s15 = smov 10  }
   0x9   :  { %12112 = sst [smem:[#allocation3_spill]] %s8542_s13  ;;  %s8496_s20 = smov 11  }
   0xa   :  { %s8567_s3 = sld [smem:[%s12097_s0 + %s8492_s30]]   ;;  %s8497_s26 = smov 12  }
   0xb   :  { %s8572_s8 = sld [smem:[%s12097_s0 + %s8493_s4]]   ;;  %s8498_s1 = smov 13  }
   0xc   :  { %s8577_s14 = sld [smem:[%s12097_s0 + %s8494_s10]]   ;;  %s8499_s7 = smov 14  }
   0xd   :  { %s8582_s19 = sld [smem:[%s12097_s0 + %s8495_s15]]   ;;  %s8500_s15 = smov 15  }
   0xe   :  { %s8587_s24 = sld [smem:[%s12097_s0 + %s8496_s20]]   ;;  %s8501_s22 = smov 16  }
   0xf   :  { %s8592_s30 = sld [smem:[%s12097_s0 + %s8497_s26]]   ;;  %s8502_s28 = smov 17  }
  0x10   :  { %12113 = sst [smem:[#allocation4_spill]] %s8567_s3 }
  0x11   :  { %s8597_s6 = sld [smem:[%s12097_s0 + %s8498_s1]]  }
  0x12   :  { %s8602_s12 = sld [smem:[%s12097_s0 + %s8499_s7]]   ;;  %s8503_s7 = smov 18  }
  0x13   :  { %s8607_s20 = sld [smem:[%s12097_s0 + %s8500_s15]]   ;;  %s8504_s15 = smov 19  }
  0x14   :  { %s8612_s27 = sld [smem:[%s12097_s0 + %s8501_s22]]   ;;  %s8505_s22 = smov 20  }
  0x15   :  { %s8617_s4 = sld [smem:[%s12097_s0 + %s8502_s28]]   ;;  %s8506_s28 = smov 21  }
  0x16   :  { %s8622_s9 = sld [smem:[%s12097_s0 + %s8503_s7]]   ;;  %s8507_s7 = smov 22  }
  0x17   :  { %s8627_s13 = sld [smem:[%s12097_s0 + %s8504_s15]]   ;;  %s8508_s15 = smov 23  }
  0x19   :  { %12114 = sst [smem:[#allocation5_spill]] %s8607_s20 }
  0x1a   :  { %12115 = sst [smem:[#allocation6_spill]] %s8612_s27 }
  0x1b   :  { %12116 = sst [smem:[#allocation7_spill]] %s8617_s4 }
  0x1c   :  { %12117 = sst [smem:[#allocation8_spill]] %s8622_s9 }
  0x1d   :  { %s8632_s27 = sld [smem:[%s12097_s0 + %s8505_s22]]   ;;  %s8509_s22 = smov 24  }
  0x1e   :  { %s8637_s20 = sld [smem:[%s12097_s0 + %s8506_s28]]   ;;  %s8510_s28 = smov 25  }
  0x1f   :  { %s8642_s9 = sld [smem:[%s12097_s0 + %s8507_s7]]   ;;  %s8511_s7 = smov 26  }
  0x20   :  { %s8647_s4 = sld [smem:[%s12097_s0 + %s8508_s15]]   ;;  %s8512_s15 = smov 27  }
  0x23   :  { %12118 = sst [smem:[#allocation9_spill]] %s8632_s27 }
  0x24   :  { %12119 = sst [smem:[#allocation10_spill]] %s8637_s20 }
  0x25   :  { %12120 = sst [smem:[#allocation11_spill]] %s8642_s9 }
  0x26   :  { %12121 = sst [smem:[#allocation12_spill]] %s8647_s4 }
  0x27   :  { %s8652_s27 = sld [smem:[%s12097_s0 + %s8509_s22]]   ;;  %s8513_s22 = smov 28  }
  0x28   :  { %s8657_s20 = sld [smem:[%s12097_s0 + %s8510_s28]]   ;;  %s8514_s28 = smov 29  }
  0x29   :  { %s8662_s9 = sld [smem:[%s12097_s0 + %s8511_s7]]   ;;  %s8515_s7 = smov 30  }
  0x2a   :  { %s8667_s4 = sld [smem:[%s12097_s0 + %s8512_s15]]   ;;  %s8516_s15 = smov 31  }
  0x2d   :  { %12122 = sst [smem:[#allocation13_spill]] %s8652_s27 }
  0x2e   :  { %12123 = sst [smem:[#allocation14_spill]] %s8657_s20 }
  0x2f   :  { %12124 = sst [smem:[#allocation15_spill]] %s8662_s9 }
  0x30   :  { %12125 = sst [smem:[#allocation16_spill]] %s8667_s4 }
  0x31   :  { %s8672_s27 = sld [smem:[%s12097_s0 + %s8513_s22]]   ;;  %s8517_s22 = smov 32  }
  0x32   :  { %s8677_s20 = sld [smem:[%s12097_s0 + %s8514_s28]]   ;;  %s8518_s28 = smov 33  }
  0x33   :  { %s8682_s9 = sld [smem:[%s12097_s0 + %s8515_s7]]   ;;  %s8519_s7 = smov 34  }
  0x34   :  { %s8687_s4 = sld [smem:[%s12097_s0 + %s8516_s15]]   ;;  %s8520_s15 = smov 35  }
  0x37   :  { %12126 = sst [smem:[#allocation17_spill]] %s8672_s27 }
  0x38   :  { %12127 = sst [smem:[#allocation18_spill]] %s8677_s20 }
  0x39   :  { %12128 = sst [smem:[#allocation19_spill]] %s8682_s9 }
  0x3a   :  { %12129 = sst [smem:[#allocation20_spill]] %s8687_s4 }
  0x3b   :  { %s8692_s27 = sld [smem:[%s12097_s0 + %s8517_s22]]   ;;  %s8521_s22 = smov 36  }
  0x3c   :  { %s8697_s20 = sld [smem:[%s12097_s0 + %s8518_s28]]   ;;  %s8714_s28 = smov 0  }
  0x3d   :  { %s8702_s9 = sld [smem:[%s12097_s0 + %s8519_s7]]  }
  0x3e   :  { %s8707_s4 = sld [smem:[%s12097_s0 + %s8520_s15]]  }
  0x41   :  { %12130 = sst [smem:[#allocation21_spill]] %s8692_s27 }
  0x42   :  { %s8712_s27 = sld [smem:[%s12097_s0 + %s8521_s22]]  }
  0x43 LB: > { %s12131_s3 = sld [smem:[#allocation4_spill]]  ;;  %s7200_s1 = sadd.s32 4294967295, %s8484_s28   ;;  %s8484_s28 = sphi %s8714_s28, %s84_s28  }
  0x44   : > { %p7204_p0 = scmp.ge.s32.totalorder %s8484_s28, 1  ;;  %p1026_p1 = scmp.lt.s32.totalorder %s8484_s28, 3 }
  0x46   : > { %p1027_p2 = pnand %p7204_p0, %p1026_p1 }
  0x47   : > { %s7205_s0 = sshll.u32 (!%p1027_p2), %s7200_s1, 4  ;;  %s12132_s10 = sld [smem:[#allocation7_spill]] (!%p1027_p2) }
  0x48   : > { %1030 = sbr.rel (%p1027_p2) target bundleno = 3200 (0xc80), region = 160  ;;  %p1135_p3 = scmp.lt.s32.totalorder (!%p1027_p2), %s7205_s0, 31 }
  0x49   : > { %s12133_s11 = sld [smem:[#allocation5_spill]] (!%p1027_p2) }
  0x4a   : > { %s12134_s15 = sld [smem:[#allocation6_spill]] (!%p1027_p2) }
  0x4b   : > { %s12137_s16 = sld [smem:[#allocation10_spill]] (!%p1027_p2) }
  0x4c   : > { %s12138_s18 = sld [smem:[#allocation8_spill]] (!%p1027_p2) }
  0x4d   : > { %v7670_v0 = vld [vmem:[%s8547_s17 + $0x38] sm:$0xff]  ;;  %v7669_v2 = vld [vmem:[%s8547_s17 + $0x30] sm:$0xff]  ;;  %s12215_s0 = smov (!%p1135_p3, %s7205_s0), 31  ;;  %v7668_v4 = vld [vmem:[%s8547_s17 + $0x28] sm:$0xff]  ;;  %vm1348_vm0 = vcmask 523264   ;;  %s12139_s23 = sld [smem:[#allocation9_spill]] }
  0x4e   : > { %v7674_v1 = vld [vmem:[%s8547_s17 + $0x58] sm:$0xff]  ;;  %1373 = vmatpush.bf16.msra.mxu0 %v7670_v0  ;;  %7771 = vmatpush.bf16.msra.mxu2 %v7670_v0  ;;  %v7673_v3 = vld [vmem:[%s8547_s17 + $0x50] sm:$0xff]  ;;  %s7660_s2 = sshll.u32 %s12215_s0, 4  ;;  %v7672_v5 = vld [vmem:[%s8547_s17 + $0x48] sm:$0xff]  ;;  %s7661_s22 = sshll.u32 %s12215_s0, 5 }
  0x4f   : > { %1426 = vmatpush.bf16.msra.mxu1 %v7674_v1  ;;  %7779 = vmatpush.bf16.msra.mxu3 %v7674_v1  ;;  %s8731_s7 = scalar_lea.vmem %s8532_s5, %s7660_s2  ;;  %v7667_v6 = vld [vmem:[%s8547_s17 + $0x20] sm:$0xff]  ;;  %v7666_v10 = vld [vmem:[%s8547_s17 + $0x18] sm:$0xff]  ;;  %v7665_v12 = vld [vmem:[%s8547_s17 + $0x10] sm:$0xff]  ;;  %s9496_s26 = scalar_lea.vmem %s8707_s4, %s7661_s22 }
  0x50   : > { %v7671_v7 = vld [vmem:[%s8547_s17 + $0x40] sm:$0xff]  ;;  %v1169_v8 = vld [vmem:[%s8731_s7 + $0x8] sm:$0xff]  ;;  %v1171_v9 = vld [vmem:[%s8731_s7 + $0x18] sm:$0xff]  ;;  %s12140_s1 = sld [smem:[#allocation3_spill]]  ;;  %s12108_s2 = sshll.u32 %s12215_s0, 3 }
  0x51   : > { %v1233_v11 = vpack.c.bf16 %v1171_v9, %v1169_v8  ;;  %v7664_v13 = vld [vmem:[%s8547_s17 + $0x8] sm:$0xff]  ;;  %v7663_v14 = vld [vmem:[%s8547_s17] sm:$0xff]  ;;  %v1170_v16 = vld [vmem:[%s8731_s7 + $0x10] sm:$0xff]  ;;  %s12141_s22 = sld [smem:[#allocation11_spill]] }
  0x52   : > { %1374 = vmatpush.bf16.msra.mxu0 %v7669_v2  ;;  %7772 = vmatpush.bf16.msra.mxu2 %v7669_v2  ;;  %v1168_v15 = vld [vmem:[%s8731_s7] sm:$0xff]  ;;  %v1173_v17 = vld [vmem:[%s8731_s7 + $0x28] sm:$0xff]  ;;  %v1175_v18 = vld [vmem:[%s8731_s7 + $0x38] sm:$0xff] }
  0x53   : > { %1427 = vmatpush.bf16.msra.mxu1 %v7673_v3  ;;  %7780 = vmatpush.bf16.msra.mxu3 %v7673_v3  ;;  %v1232_v19 = vpack.c.bf16 %v1170_v16, %v1168_v15  ;;  %v1235_v20 = vpack.c.bf16 %v1175_v18, %v1173_v17  ;;  %v1172_v21 = vld [vmem:[%s8731_s7 + $0x20] sm:$0xff]  ;;  %v1174_v22 = vld [vmem:[%s8731_s7 + $0x30] sm:$0xff]  ;;  %v1177_v23 = vld [vmem:[%s8731_s7 + $0x48] sm:$0xff] }
  0x54   : > { %v1179_v24 = vld [vmem:[%s8731_s7 + $0x58] sm:$0xff]  ;;  %v1234_v25 = vpack.c.bf16 %v1174_v22, %v1172_v21  ;;  %v1176_v27 = vld [vmem:[%s8731_s7 + $0x40] sm:$0xff]  ;;  %v1178_v28 = vld [vmem:[%s8731_s7 + $0x50] sm:$0xff] }
  0x55   : > { %v1237_v26 = vpack.c.bf16 %v1179_v24, %v1177_v23  ;;  %v1181_v29 = vld [vmem:[%s8731_s7 + $0x68] sm:$0xff]  ;;  %v1183_v30 = vld [vmem:[%s8731_s7 + $0x78] sm:$0xff]  ;;  %v1236_v31 = vpack.c.bf16 %v1178_v28, %v1176_v27  ;;  %v1180_v33 = vld [vmem:[%s8731_s7 + $0x60] sm:$0xff] }
  0x56   : > { %1375 = vmatpush.bf16.msra.mxu0 %v7668_v4  ;;  %7773 = vmatpush.bf16.msra.mxu2 %v7668_v4  ;;  %v1239_v32 = vpack.c.bf16 %v1183_v30, %v1181_v29  ;;  %v1182_v34 = vld [vmem:[%s8731_s7 + $0x70] sm:$0xff]  ;;  %v1184_v36 = vld [vmem:[%s8731_s7 + $0x80] sm:$0xff]  ;;  %v1185_v39 = vld [vmem:[%s8731_s7 + $0x88] sm:$0xff] }
  0x57   : > { %1428 = vmatpush.bf16.msra.mxu1 %v7672_v5  ;;  %7781 = vmatpush.bf16.msra.mxu3 %v7672_v5  ;;  %v1238_v35 = vpack.c.bf16 %v1182_v34, %v1180_v33  ;;  %v1186_v37 = vld [vmem:[%s8731_s7 + $0x90] sm:$0xff]  ;;  %v1187_v40 = vld [vmem:[%s8731_s7 + $0x98] sm:$0xff]  ;;  %v1188_v42 = vld [vmem:[%s8731_s7 + $0xa0] sm:$0xff] }
  0x58   : > { %v1240_v38 = vpack.c.bf16 %v1186_v37, %v1184_v36  ;;  %v1241_v41 = vpack.c.bf16 %v1187_v40, %v1185_v39  ;;  %v1190_v43 = vld [vmem:[%s8731_s7 + $0xb0] sm:$0xff]  ;;  %v1189_v46 = vld [vmem:[%s8731_s7 + $0xa8] sm:$0xff]  ;;  %v1191_v47 = vld [vmem:[%s8731_s7 + $0xb8] sm:$0xff] }
  0x59   : > { %v1242_v44 = vpack.c.bf16 %v1190_v43, %v1188_v42  ;;  %v1243_v48 = vpack.c.bf16 %v1191_v47, %v1189_v46  ;;  %v8771_v49 = vld [vmem:[%s8552_s21] ss:$0 sm:$0xff]  ;;  %v1194_v55 = vld [vmem:[%s8731_s7 + $0xd0] sm:$0xff]  ;;  %v1193_v57 = vld [vmem:[%s8731_s7 + $0xc8] sm:$0xff] }
  0x5a   : > { %1376 = vmatpush.bf16.msra.mxu0 %v7667_v6  ;;  %7774 = vmatpush.bf16.msra.mxu2 %v7667_v6  ;;  %v1192_v54 = vld [vmem:[%s8731_s7 + $0xc0] sm:$0xff]  ;;  %v1195_v58 = vld [vmem:[%s8731_s7 + $0xd8] sm:$0xff]  ;;  %v1198_v5 = vld [vmem:[%s8731_s7 + $0xf0] sm:$0xff] }
  0x5b   : > { %1429 = vmatpush.bf16.msra.mxu1 %v7671_v7  ;;  %7782 = vmatpush.bf16.msra.mxu3 %v7671_v7  ;;  %v1244_v56 = vpack.c.bf16 %v1194_v55, %v1192_v54  ;;  %v1245_v59 = vpack.c.bf16 %v1195_v58, %v1193_v57  ;;  %v1196_v4 = vld [vmem:[%s8731_s7 + $0xe0] sm:$0xff]  ;;  %v1197_v7 = vld [vmem:[%s8731_s7 + $0xe8] sm:$0xff]  ;;  %v1199_v8 = vld [vmem:[%s8731_s7 + $0xf8] sm:$0xff]  ;;  %s9616_s7 = scalar_lea.vmem %s12140_s1, %s12108_s2  ;;  %s12142_s1 = sld [smem:[#allocation14_spill]] }
  0x5c   : > { %v1246_v6 = vpack.c.bf16 %v1198_v5, %v1196_v4  ;;  %v1247_v9 = vpack.c.bf16 %v1199_v8, %v1197_v7  ;;  %v7682_v8 = vld [vmem:[%s12131_s3 + $0x38] sm:$0xff]  ;;  %s12153_s2 = sld [smem:[#allocation2_spill]] }
  0x5e   : > { %1377 = vmatpush.bf16.msra.mxu0 %v7666_v10  ;;  %7266 = vmatmul.msk.bf16.vlgmr.msra.gmra.mxu1 %vm1348_vm0, %v1233_v11 }
  0x5f   : > { %7775 = vmatpush.bf16.msra.mxu2 %v7666_v10  ;;  %7271 = vmatmul.msk.bf16.vlgmr.msra.gmra.mxu3 %vm1348_vm0, %v1243_v48 }
  0x62   : > { %1378 = vmatpush.bf16.msra.mxu0 %v7665_v12 }
  0x63   : > { %7776 = vmatpush.bf16.msra.mxu2 %v7665_v12 }
  0x66   : > { %1379 = vmatpush.bf16.msra.mxu0 %v7664_v13 }
  0x67   : > { %7777 = vmatpush.bf16.msra.mxu2 %v7664_v13 }
  0x6a   : > { %1380 = vmatpush.bf16.msra.mxu0 %v7663_v14 }
  0x6b   : > { %7778 = vmatpush.bf16.msra.mxu2 %v7663_v14 }
  0x6d   : > { %1381 = vmatmul.bf16.vlgmr.msra.gmra.mxu0 %v1232_v19 }
  0x6e   : > { %7267 = vmatmul.msk.bf16.gmra.mxu1 %vm1348_vm0, %v1235_v20  ;;  %1401 = vmatmul.bf16.vlgmr.msra.gmra.mxu2 %v1240_v38 }
  0x6f   : > { %7272 = vmatmul.msk.bf16.gmra.mxu3 %vm1348_vm0, %v1245_v59  ;;  %1930 = vmatpush.bf16.msrb.mxu2 %v7682_v8 }
  0x7d   : > { %1386 = vmatmul.bf16.gmra.mxu0 %v1234_v25  ;;  %v8522_v25 = vmov 128.0  }
  0x7e   : > { %7268 = vmatmul.msk.bf16.gmra.mxu1 %vm1348_vm0, %v1237_v26  ;;  %1406 = vmatmul.bf16.gmra.mxu2 %v1242_v44  ;;  %7851 = vrcp.f32 %v8522_v25 }
  0x7f   : > { %7273 = vmatmul.msk.bf16.gmra.mxu3 %vm1348_vm0, %v1247_v9 }
  0x84   : > { %v7852_v26 = vpop.eup %7851 }
  0x85   : > { %v1504_v27 = vmul.f32 128.0, %v7852_v26  ;;  %vm1508_vm1 = vweird.f32 %v7852_v26 }
  0x87   : > { %v1505_v28 = vsub.f32 1.0, %v1504_v27 }
  0x89   : > { %v1506_v29 = vmul.f32 %v7852_v26, %v1505_v28 }
  0x8b   : > { %v1507_v30 = vadd.f32 %v7852_v26, %v1506_v29 }
  0x8d   : > { %1391 = vmatmul.bf16.gmra.mxu0 %v1236_v31  ;;  %v8799_v31 = vsel %vm1508_vm1, %v7852_v26, %v1507_v30 }
  0x8e   : > { %7269 = vmatmul.msk.bf16.gmra.mxu1 %vm1348_vm0, %v1239_v32  ;;  %1411 = vmatmul.bf16.gmra.mxu2 %v1244_v56 }
  0x9d   : > { %1396 = vmatmul.bf16.gmra.mxu0 %v1238_v35 }
  0x9e   : > { %7270 = vmatmul.msk.bf16.gmra.mxu1 %vm1348_vm0, %v1241_v41  ;;  %1416 = vmatmul.bf16.gmra.mxu2 %v1246_v6 }
  0xdb   : > { %v1431_v45 = vpop.f32.mrf.mxu1 }
  0xe2   : > { %v1456_v56 = vpop.f32.mrf.mxu3 }
  0xe3   : > { %v1433_v51 = vpop.f32.mrf.mxu1 }
  0xea   : > { %v1382_v50 = vpop.f32.mrf.mxu0 }
  0xeb   : > { %v1383_v52 = vadd.f32 %v8771_v49, %v1382_v50  ;;  %v1436_v62 = vpop.f32.mrf.mxu1 }
  0xed   : > { %v1432_v53 = vadd.f32 %v1431_v45, %v1383_v52 }
  0xef   : > { %1471 = vadd.xlane.f32.xlu0 %v1432_v53 }
  0xf1   : > { %v1402_v34 = vpop.f32.mrf.mxu2 }
  0xf2   : > { %v1384_v60 = vpop.f32.mrf.mxu0  ;;  %v1403_v46 = vadd.f32 %v8771_v49, %v1402_v34  ;;  %v7678_v34 = vld [vmem:[%s12131_s3 + $0x18] sm:$0xff] }
  0xf3   : > { %v1385_v61 = vadd.f32 %v8771_v49, %v1384_v60  ;;  %v1438_v3 = vpop.f32.mrf.mxu1 }
  0xf5   : > { %v1434_v63 = vadd.f32 %v1433_v51, %v1385_v61 }
  0xf7   : > { %1473 = vadd.xlane.f32.xlu0 %v1434_v63 }
  0xf9   : > { %v1404_v43 = vpop.f32.mrf.mxu2 }
  0xfa   : > { %v1387_v0 = vpop.f32.mrf.mxu0  ;;  %v1405_v57 = vadd.f32 %v8771_v49, %v1404_v43 }
  0xfb   : > { %v1388_v1 = vadd.f32 %v8771_v49, %v1387_v0  ;;  %v1441_v13 = vpop.f32.mrf.mxu1 }
  0xfd   : > { %v1437_v2 = vadd.f32 %v1436_v62, %v1388_v1 }
  0xff   : > { %1475 = vadd.xlane.f32.xlu1 %v1437_v2 }
 0x102   : > { %v1389_v10 = vpop.f32.mrf.mxu0 }
 0x103   : > { %v1390_v11 = vadd.f32 %v8771_v49, %v1389_v10  ;;  %v1443_v17 = vpop.f32.mrf.mxu1 }
 0x105   : > { %v1439_v12 = vadd.f32 %v1438_v3, %v1390_v11  ;;  %v1458_v3 = vpop.f32.mrf.mxu3 }
 0x107   : > { %1477 = vadd.xlane.f32.xlu1 %v1439_v12 }
 0x10a   : > { %v1392_v14 = vpop.f32.mrf.mxu0 }
 0x10b   : > { %v1393_v15 = vadd.f32 %v8771_v49, %v1392_v14  ;;  %v1446_v22 = vpop.f32.mrf.mxu1 }
 0x10d   : > { %v8788_v16 = vadd.f32 %v1441_v13, %v1393_v15  ;;  %v1461_v15 = vpop.f32.mrf.mxu3 }
 0x10f   : > { %1479 = vadd.xlane.f32.xlu2 %v8788_v16 }
 0x112   : > { %v1394_v18 = vpop.f32.mrf.mxu0 }
 0x113   : > { %v1395_v19 = vadd.f32 %v8771_v49, %v1394_v18  ;;  %v1448_v38 = vpop.f32.mrf.mxu1 }
 0x115   : > { %v8792_v20 = vadd.f32 %v1443_v17, %v1395_v19  ;;  %v7680_v17 = vld [vmem:[%s12131_s3 + $0x28] sm:$0xff]  ;;  %v1463_v26 = vpop.f32.mrf.mxu3 }
 0x117   : > { %1481 = vadd.xlane.f32.xlu2 %v8792_v20 }
 0x11a   : > { %v1397_v21 = vpop.f32.mrf.mxu0 }
 0x11b   : > { %v1398_v23 = vadd.f32 %v8771_v49, %v1397_v21  ;;  %v1451_v47 = vpop.f32.mrf.mxu1 }
 0x11c   : > { %v8817_v51 = vadd.f32 %v1451_v47, %v1403_v46 }
 0x11d   : > { %v8796_v24 = vadd.f32 %v1446_v22, %v1398_v23  ;;  %v1466_v30 = vpop.f32.mrf.mxu3 }
 0x11f   : > { %1483 = vadd.xlane.f32.xlu2 %v8796_v24 }
 0x122   : > { %v1399_v37 = vpop.f32.mrf.mxu0 }
 0x123   : > { %v1400_v40 = vadd.f32 %v8771_v49, %v1399_v37  ;;  %v1453_v59 = vpop.f32.mrf.mxu1 }
 0x124   : > { %v8830_v62 = vadd.f32 %v1453_v59, %v1405_v57 }
 0x125   : > { %v8810_v44 = vadd.f32 %v1448_v38, %v1400_v40  ;;  %v7676_v38 = vld [vmem:[%s12131_s3 + $0x8] sm:$0xff] }
 0x162   : > { %v1472_v32 = vpop.xlane.xlu0 %1471 }
 0x163   : > { %v1510_v33 = vmul.f32 %v8799_v31, %v1472_v32 }
 0x165   : > { %v8802_v35 = vsub.f32 %v1432_v53, %v1510_v33  ;;  %v1407_v53 = vpop.f32.mrf.mxu2  ;;  %v7679_v33 = vld [vmem:[%s12131_s3 + $0x20] sm:$0xff] }
 0x166   : > { %v1408_v0 = vadd.f32 %v8771_v49, %v1407_v53 }
 0x167   : > { %v1542_v36 = vmul.f32 %v8802_v35, %v8802_v35 }
 0x168   : > { %v8835_v4 = vadd.f32 %v1456_v56, %v1408_v0 }
 0x169   : > { %1558 = vadd.xlane.f32.xlu0 %v1542_v36  ;;  %v7677_v36 = vld [vmem:[%s12131_s3 + $0x10] sm:$0xff] }
 0x16a   : > { %v1474_v39 = vpop.xlane.xlu0 %1473 }
 0x16b   : > { %v1511_v41 = vmul.f32 %v8799_v31, %v1474_v39 }
 0x16d   : > { %v8808_v42 = vsub.f32 %v1434_v63, %v1511_v41  ;;  %v1409_v63 = vpop.f32.mrf.mxu2  ;;  %v7675_v41 = vld [vmem:[%s12131_s3] sm:$0xff] }
 0x16e   : > { %v1410_v7 = vadd.f32 %v8771_v49, %v1409_v63 }
 0x16f   : > { %v1543_v45 = vmul.f32 %v8808_v42, %v8808_v42 }
 0x170   : > { %v8847_v13 = vadd.f32 %v1458_v3, %v1410_v7 }
 0x171   : > { %1485 = vadd.xlane.f32.xlu0 %v8810_v44  ;;  %1560 = vadd.xlane.f32.xlu1 %v1543_v45 }
 0x172   : > { %v1476_v48 = vpop.xlane.xlu1 %1475 }
 0x173   : > { %v1512_v50 = vmul.f32 %v8799_v31, %v1476_v48 }
 0x175   : > { %v8819_v52 = vsub.f32 %v1437_v2, %v1512_v50  ;;  %v1412_v10 = vpop.f32.mrf.mxu2 }
 0x176   : > { %v1413_v18 = vadd.f32 %v8771_v49, %v1412_v10 }
 0x177   : > { %v1544_v54 = vmul.f32 %v8819_v52, %v8819_v52 }
 0x178   : > { %v8858_v23 = vadd.f32 %v1461_v15, %v1413_v18 }
 0x179   : > { %1487 = vadd.xlane.f32.xlu0 %v8817_v51  ;;  %1562 = vadd.xlane.f32.xlu1 %v1544_v54 }
 0x17a   : > { %v1478_v55 = vpop.xlane.xlu1 %1477 }
 0x17b   : > { %v1513_v58 = vmul.f32 %v8799_v31, %v1478_v55 }
 0x17d   : > { %v8826_v60 = vsub.f32 %v1439_v12, %v1513_v58  ;;  %v7681_v12 = vld [vmem:[%s12131_s3 + $0x30] sm:$0xff]  ;;  %v1414_v22 = vpop.f32.mrf.mxu2 }
 0x17e   : > { %1931 = vmatpush.bf16.msrb.mxu2 %v7681_v12  ;;  %v1415_v27 = vadd.f32 %v8771_v49, %v1414_v22  ;;  %v1468_v22 = vpop.f32.mrf.mxu3 }
 0x17f   : > { %v1545_v61 = vmul.f32 %v8826_v60, %v8826_v60 }
 0x180   : > { %v8867_v28 = vadd.f32 %v1463_v26, %v1415_v27 }
 0x181   : > { %1564 = vadd.xlane.f32.xlu2 %v1545_v61  ;;  %1489 = vadd.xlane.f32.xlu1 %v8830_v62 }
 0x182   : > { %v1480_v1 = vpop.xlane.xlu2 %1479  ;;  %1932 = vmatpush.bf16.msrb.mxu2 %v7680_v17 }
 0x183   : > { %v1514_v2 = vmul.f32 %v8799_v31, %v1480_v1 }
 0x185   : > { %v8838_v5 = vsub.f32 %v8788_v16, %v1514_v2  ;;  %v1417_v29 = vpop.f32.mrf.mxu2 }
 0x186   : > { %1933 = vmatpush.bf16.msrb.mxu2 %v7679_v33  ;;  %v8910_v33 = vld [vmem:[%s8562_s29] ss:$0 sm:$0xff] }
 0x187   : > { %v1546_v6 = vmul.f32 %v8838_v5, %v8838_v5 }
 0x189   : > { %1566 = vadd.xlane.f32.xlu2 %v1546_v6  ;;  %1491 = vadd.xlane.f32.xlu1 %v8835_v4 }
 0x18a   : > { %v1482_v9 = vpop.xlane.xlu2 %1481  ;;  %1934 = vmatpush.bf16.msrb.mxu2 %v7678_v34 }
 0x18b   : > { %v1515_v11 = vmul.f32 %v8799_v31, %v1482_v9 }
 0x18d   : > { %v8850_v14 = vsub.f32 %v8792_v20, %v1515_v11  ;;  %v1419_v10 = vpop.f32.mrf.mxu2 }
 0x18e   : > { %1935 = vmatpush.bf16.msrb.mxu2 %v7677_v36 }
 0x18f   : > { %v1547_v16 = vmul.f32 %v8850_v14, %v8850_v14 }
 0x191   : > { %1493 = vadd.xlane.f32.xlu2 %v8847_v13  ;;  %1568 = vadd.xlane.f32.xlu0 %v1547_v16  ;;  %v1420_v16 = vadd.f32 %v8771_v49, %v1419_v10 }
 0x192   : > { %v1484_v19 = vpop.xlane.xlu2 %1483  ;;  %1936 = vmatpush.bf16.msrb.mxu2 %v7676_v38 }
 0x193   : > { %v1516_v21 = vmul.f32 %v8799_v31, %v1484_v19  ;;  %v8899_v19 = vld [vmem:[%s8557_s25] ss:$0 sm:$0xff] }
 0x195   : > { %v8861_v20 = vsub.f32 %v8796_v24, %v1516_v21  ;;  %v1418_v24 = vadd.f32 %v8771_v49, %v1417_v29 }
 0x196   : > { %1937 = vmatpush.bf16.msrb.mxu2 %v7675_v41 }
 0x197   : > { %v1548_v25 = vmul.f32 %v8861_v20, %v8861_v20  ;;  %v8871_v32 = vadd.f32 %v1466_v30, %v1418_v24 }
 0x199   : > { %1495 = vadd.xlane.f32.xlu2 %v8858_v23  ;;  %1570 = vadd.xlane.f32.xlu0 %v1548_v25 }
 0x1a1   : > { %1497 = vadd.xlane.f32.xlu0 %v8867_v28 }
 0x1a9   : > { %1499 = vadd.xlane.f32.xlu0 %v8871_v32 }
 0x1dc   : > { %v1559_v37 = vpop.xlane.xlu0 %1558 }
 0x1dd   : > { %v1590_v39 = vmul.f32 %v1559_v37, %v8799_v31 }
 0x1df   : > { %v1606_v40 = vadd.f32 1e-05, %v1590_v39 }
 0x1e1   : > { %7853 = vrsqrt.f32 %v1606_v40  ;;  %vm1628_vm3 = vweird.f32 %v1606_v40 }
 0x1e4   : > { %v1561_v43 = vpop.xlane.xlu1 %1560  ;;  %v1486_v45 = vpop.xlane.xlu0 %1485 }
 0x1e5   : > { %v1591_v46 = vmul.f32 %v1561_v43, %v8799_v31  ;;  %v1517_v47 = vmul.f32 %v8799_v31, %v1486_v45 }
 0x1e7   : > { %v7854_v48 = vpop.eup %7853  ;;  %v1607_v50 = vadd.f32 1e-05, %v1591_v46  ;;  %v8883_v53 = vsub.f32 %v8810_v44, %v1517_v47 }
 0x1e8   : > { %v1623_v54 = vmul.f32 %v7854_v48, %v1606_v40  ;;  %vm1629_vm2 = vweird.f32 %v7854_v48 }
 0x1e9   : > { %7855 = vrsqrt.f32 %v1607_v50  ;;  %v1549_v55 = vmul.f32 %v8883_v53, %v8883_v53  ;;  %vm1630_vm4 = vmor %vm1628_vm3, %vm1629_vm2  ;;  %vm1638_vm6 = vweird.f32 %v1607_v50 }
 0x1ea   : > { %v1624_v56 = vmul.f32 %v7854_v48, %v1623_v54 }
 0x1eb   : > { %1572 = vadd.xlane.f32.xlu1 %v1549_v55 }
 0x1ec   : > { %v1625_v57 = vmul.f32 0.5, %v1624_v56  ;;  %v1563_v58 = vpop.xlane.xlu1 %1562  ;;  %v1488_v59 = vpop.xlane.xlu0 %1487 }
 0x1ed   : > { %v1592_v61 = vmul.f32 %v1563_v58, %v8799_v31  ;;  %v1518_v63 = vmul.f32 %v8799_v31, %v1488_v59 }
 0x1ee   : > { %v1626_v0 = vsub.f32 1.5, %v1625_v57 }
 0x1ef   : > { %v7856_v1 = vpop.eup %7855  ;;  %v1608_v2 = vadd.f32 1e-05, %v1592_v61  ;;  %v8890_v44 = vsub.f32 %v8817_v51, %v1518_v63 }
 0x1f0   : > { %v1627_v3 = vmul.f32 %v7854_v48, %v1626_v0  ;;  %v1633_v6 = vmul.f32 %v7856_v1, %v1607_v50  ;;  %vm1639_vm5 = vweird.f32 %v7856_v1 }
 0x1f1   : > { %7857 = vrsqrt.f32 %v1608_v2  ;;  %v1550_v7 = vmul.f32 %v8890_v44, %v8890_v44  ;;  %vm1640_vm7 = vmor %vm1638_vm6, %vm1639_vm5  ;;  %vm1648_vm9 = vweird.f32 %v1608_v2 }
 0x1f2   : > { %v1631_v8 = vsel %vm1630_vm4, %v7854_v48, %v1627_v3  ;;  %v1634_v9 = vmul.f32 %v7856_v1, %v1633_v6 }
 0x1f3   : > { %1574 = vadd.xlane.f32.xlu1 %v1550_v7  ;;  %v1782_v18 = vmul.f32 %v1631_v8, %v8802_v35  ;;  %v8906_v35 = vadd.f32 %v1468_v22, %v1420_v16 }
 0x1f4   : > { %v1635_v11 = vmul.f32 0.5, %v1634_v9  ;;  %v1565_v12 = vpop.xlane.xlu2 %1564  ;;  %v1490_v15 = vpop.xlane.xlu1 %1489 }
 0x1f5   : > { %v1593_v51 = vmul.f32 %v1565_v12, %v8799_v31  ;;  %v1519_v17 = vmul.f32 %v8799_v31, %v1490_v15  ;;  %v1802_v30 = vmul.f32 %v8899_v19, %v1782_v18 }
 0x1f6   : > { %v1636_v21 = vsub.f32 1.5, %v1635_v11 }
 0x1f7   : > { %v7858_v25 = vpop.eup %7857  ;;  %v1609_v26 = vadd.f32 1e-05, %v1593_v51  ;;  %v8902_v27 = vsub.f32 %v8830_v62, %v1519_v17  ;;  %v1822_v45 = vadd.f32 %v8910_v33, %v1802_v30 }
 0x1f8   : > { %v1637_v29 = vmul.f32 %v7856_v1, %v1636_v21  ;;  %v1643_v49 = vmul.f32 %v7858_v25, %v1608_v2  ;;  %vm1649_vm8 = vweird.f32 %v7858_v25 }
 0x1f9   : > { %7859 = vrsqrt.f32 %v1609_v26  ;;  %v1551_v24 = vmul.f32 %v8902_v27, %v8902_v27  ;;  %vm1650_vm10 = vmor %vm1648_vm9, %vm1649_vm8  ;;  %v1838_v57 = vmax.f32 %v1822_v45, 0.0  ;;  %vm1658_vm12 = vweird.f32 %v1609_v26 }
 0x1fa   : > { %v1641_v34 = vsel %vm1640_vm7, %v7856_v1, %v1637_v29  ;;  %v1644_v36 = vmul.f32 %v7858_v25, %v1643_v49 }
 0x1fb   : > { %1576 = vadd.xlane.f32.xlu2 %v1551_v24  ;;  %1501 = vadd.xlane.f32.xlu1 %v8906_v35  ;;  %v1783_v62 = vmul.f32 %v1641_v34, %v8808_v42 }
 0x1fc   : > { %v1645_v37 = vmul.f32 0.5, %v1644_v36  ;;  %v1567_v38 = vpop.xlane.xlu2 %1566  ;;  %v1492_v39 = vpop.xlane.xlu1 %1491 }
 0x1fd   : > { %v1594_v40 = vmul.f32 %v1567_v38, %v8799_v31  ;;  %v1520_v41 = vmul.f32 %v8799_v31, %v1492_v39  ;;  %v1803_v43 = vmul.f32 %v8899_v19, %v1783_v62 }
 0x1fe   : > { %v1646_v46 = vsub.f32 1.5, %v1645_v37 }
 0x1ff   : > { %v7860_v47 = vpop.eup %7859  ;;  %v1610_v48 = vadd.f32 1e-05, %v1594_v40  ;;  %v8919_v50 = vsub.f32 %v8835_v4, %v1520_v41  ;;  %v1823_v42 = vadd.f32 %v8910_v33, %v1803_v43 }
 0x200   : > { %v1647_v54 = vmul.f32 %v7858_v25, %v1646_v46  ;;  %v1653_v55 = vmul.f32 %v7860_v47, %v1609_v26  ;;  %vm1659_vm11 = vweird.f32 %v7860_v47 }
 0x201   : > { %7861 = vrsqrt.f32 %v1610_v48  ;;  %v1552_v56 = vmul.f32 %v8919_v50, %v8919_v50  ;;  %v1839_v58 = vmax.f32 %v1823_v42, 0.0  ;;  %vm1660_vm13 = vmor %vm1658_vm12, %vm1659_vm11  ;;  %vm1668_vm15 = vweird.f32 %v1610_v48 }
 0x202   : > { %v1654_v59 = vmul.f32 %v7860_v47, %v1653_v55  ;;  %v1651_v61 = vsel %vm1650_vm10, %v7858_v25, %v1647_v54 }
 0x203   : > { %1578 = vadd.xlane.f32.xlu2 %v1552_v56  ;;  %v1854_v63 = vpack.c.bf16 %v1839_v58, %v1838_v57  ;;  %v1784_v2 = vmul.f32 %v1651_v61, %v8819_v52 }
 0x204   : > { %v1655_v0 = vmul.f32 0.5, %v1654_v59  ;;  %v1494_v1 = vpop.xlane.xlu2 %1493  ;;  %v1569_v4 = vpop.xlane.xlu0 %1568 }
 0x205   : > { %v1521_v3 = vmul.f32 %v8799_v31, %v1494_v1  ;;  %v1595_v6 = vmul.f32 %v1569_v4, %v8799_v31  ;;  %1938 = vmatmul.bf16.vlgmr.msrb.gmra.mxu2 %v1854_v63  ;;  %v1804_v16 = vmul.f32 %v8899_v19, %v1784_v2 }
 0x206   : > { %v1656_v7 = vsub.f32 1.5, %v1655_v0 }
 0x207   : > { %v7862_v8 = vpop.eup %7861  ;;  %v1611_v9 = vadd.f32 1e-05, %v1595_v6  ;;  %v8928_v10 = vsub.f32 %v8847_v13, %v1521_v3  ;;  %v1824_v26 = vadd.f32 %v8910_v33, %v1804_v16 }
 0x208   : > { %v1657_v11 = vmul.f32 %v7860_v47, %v1656_v7  ;;  %v1663_v12 = vmul.f32 %v7862_v8, %v1610_v48  ;;  %vm1669_vm14 = vweird.f32 %v7862_v8 }
 0x209   : > { %7863 = vrsqrt.f32 %v1611_v9  ;;  %v1553_v15 = vmul.f32 %v8928_v10, %v8928_v10  ;;  %vm1670_vm0 = vmor %vm1668_vm15, %vm1669_vm14  ;;  %v1840_v62 = vmax.f32 %v1824_v26, 0.0  ;;  %vm1678_vm2 = vweird.f32 %v1611_v9 }
 0x20a   : > { %v1664_v51 = vmul.f32 %v7862_v8, %v1663_v12  ;;  %v1661_v17 = vsel %vm1660_vm13, %v7860_v47, %v1657_v11 }
 0x20b   : > { %1580 = vadd.xlane.f32.xlu0 %v1553_v15  ;;  %v1785_v52 = vmul.f32 %v1661_v17, %v8826_v60 }
 0x20c   : > { %v1665_v18 = vmul.f32 0.5, %v1664_v51  ;;  %v1496_v21 = vpop.xlane.xlu2 %1495  ;;  %v1571_v22 = vpop.xlane.xlu0 %1570 }
 0x20d   : > { %v1522_v13 = vmul.f32 %v8799_v31, %v1496_v21  ;;  %v1805_v25 = vmul.f32 %v8899_v19, %v1785_v52 }
 0x20e   : > { %v1666_v29 = vsub.f32 1.5, %v1665_v18 }
 0x20f   : > { %v7864_v49 = vpop.eup %7863  ;;  %v8938_v24 = vsub.f32 %v8858_v23, %v1522_v13  ;;  %v1825_v30 = vadd.f32 %v8910_v33, %v1805_v25 }
 0x210   : > { %v1667_v34 = vmul.f32 %v7862_v8, %v1666_v29  ;;  %v1673_v60 = vmul.f32 %v7864_v49, %v1611_v9  ;;  %vm1679_vm1 = vweird.f32 %v7864_v49 }
 0x211   : > { %v1554_v36 = vmul.f32 %v8938_v24, %v8938_v24  ;;  %v1841_v37 = vmax.f32 %v1825_v30, 0.0  ;;  %vm1680_vm3 = vmor %vm1678_vm2, %vm1679_vm1 }
 0x212   : > { %v1674_v38 = vmul.f32 %v7864_v49, %v1673_v60  ;;  %v1671_v39 = vsel %vm1670_vm0, %v7862_v8, %v1667_v34 }
 0x213   : > { %1582 = vadd.xlane.f32.xlu1 %v1554_v36  ;;  %v1855_v40 = vpack.c.bf16 %v1841_v37, %v1840_v62  ;;  %v1786_v45 = vmul.f32 %v1671_v39, %v8838_v5 }
 0x214   : > { %v1675_v41 = vmul.f32 0.5, %v1674_v38  ;;  %v1498_v43 = vpop.xlane.xlu0 %1497 }
 0x215   : > { %v1523_v23 = vmul.f32 %v8799_v31, %v1498_v43  ;;  %1943 = vmatmul.bf16.gmra.mxu2 %v1855_v40  ;;  %v1806_v54 = vmul.f32 %v8899_v19, %v1786_v45 }
 0x216   : > { %v1676_v46 = vsub.f32 1.5, %v1675_v41 }
 0x217   : > { %v8946_v47 = vsub.f32 %v8867_v28, %v1523_v23  ;;  %v1826_v28 = vadd.f32 %v8910_v33, %v1806_v54 }
 0x218   : > { %v1677_v48 = vmul.f32 %v7864_v49, %v1676_v46 }
 0x219   : > { %v1555_v42 = vmul.f32 %v8946_v47, %v8946_v47  ;;  %v1842_v0 = vmax.f32 %v1826_v28, 0.0 }
 0x21a   : > { %v1681_v55 = vsel %vm1680_vm3, %v7864_v49, %v1677_v48 }
 0x21b   : > { %1584 = vadd.xlane.f32.xlu2 %v1555_v42  ;;  %v1787_v56 = vmul.f32 %v1681_v55, %v8850_v14  ;;  %v1596_v14 = vmul.f32 %v1571_v22, %v8799_v31 }
 0x21c   : > { %v1500_v57 = vpop.xlane.xlu0 %1499 }
 0x21d   : > { %v1524_v5 = vmul.f32 %v8799_v31, %v1500_v57  ;;  %v1807_v58 = vmul.f32 %v8899_v19, %v1787_v56  ;;  %v1612_v3 = vadd.f32 1e-05, %v1596_v14 }
 0x21f   : > { %v8956_v59 = vsub.f32 %v8871_v32, %v1524_v5  ;;  %v1827_v61 = vadd.f32 %v8910_v33, %v1807_v58  ;;  %7865 = vrsqrt.f32 %v1612_v3  ;;  %vm1688_vm5 = vweird.f32 %v1612_v3 }
 0x221   : > { %v1556_v63 = vmul.f32 %v8956_v59, %v8956_v59  ;;  %v1843_v1 = vmax.f32 %v1827_v61, 0.0 }
 0x223   : > { %1586 = vadd.xlane.f32.xlu0 %v1556_v63  ;;  %v1856_v4 = vpack.c.bf16 %v1843_v1, %v1842_v0 }
 0x225   : > { %1948 = vmatmul.bf16.gmra.mxu2 %v1856_v4  ;;  %v7866_v6 = vpop.eup %7865 }
 0x226   : > { %v1683_v2 = vmul.f32 %v7866_v6, %v1612_v3  ;;  %vm1689_vm4 = vweird.f32 %v7866_v6 }
 0x227   : > { %vm1690_vm6 = vmor %vm1688_vm5, %vm1689_vm4 }
 0x228   : > { %v1684_v7 = vmul.f32 %v7866_v6, %v1683_v2 }
 0x22a   : > { %v1685_v9 = vmul.f32 0.5, %v1684_v7 }
 0x22c   : > { %v1686_v12 = vsub.f32 1.5, %v1685_v9 }
 0x22e   : > { %v1687_v51 = vmul.f32 %v7866_v6, %v1686_v12  ;;  %v8982_v12 = vld [vmem:[%s8572_s8] ss:$0 sm:$0xff] }
 0x230   : > { %v1691_v22 = vsel %vm1690_vm6, %v7866_v6, %v1687_v51 }
 0x231   : > { %v1788_v30 = vmul.f32 %v1691_v22, %v8861_v20 }
 0x233   : > { %v1808_v40 = vmul.f32 %v8899_v19, %v1788_v30 }
 0x235   : > { %v1828_v48 = vadd.f32 %v8910_v33, %v1808_v40 }
 0x25e   : > { %v1573_v8 = vpop.xlane.xlu1 %1572 }
 0x25f   : > { %v1597_v32 = vmul.f32 %v1573_v8, %v8799_v31 }
 0x261   : > { %v1613_v11 = vadd.f32 1e-05, %v1597_v32 }
 0x263   : > { %7867 = vrsqrt.f32 %v1613_v11  ;;  %vm1698_vm8 = vweird.f32 %v1613_v11 }
 0x266   : > { %v1575_v15 = vpop.xlane.xlu1 %1574 }
 0x267   : > { %v1598_v16 = vmul.f32 %v1575_v15, %v8799_v31 }
 0x269   : > { %v7868_v17 = vpop.eup %7867  ;;  %v1614_v52 = vadd.f32 1e-05, %v1598_v16 }
 0x26a   : > { %v1693_v18 = vmul.f32 %v7868_v17, %v1613_v11  ;;  %vm1699_vm7 = vweird.f32 %v7868_v17 }
 0x26b   : > { %7869 = vrsqrt.f32 %v1614_v52  ;;  %vm1700_vm9 = vmor %vm1698_vm8, %vm1699_vm7  ;;  %vm1708_vm11 = vweird.f32 %v1614_v52 }
 0x26c   : > { %v1694_v21 = vmul.f32 %v7868_v17, %v1693_v18 }
 0x26e   : > { %v1695_v13 = vmul.f32 0.5, %v1694_v21  ;;  %v1577_v25 = vpop.xlane.xlu2 %1576  ;;  %v1502_v26 = vpop.xlane.xlu1 %1501 }
 0x26f   : > { %v1599_v29 = vmul.f32 %v1577_v25, %v8799_v31  ;;  %v1525_v49 = vmul.f32 %v8799_v31, %v1502_v26 }
 0x270   : > { %v1696_v34 = vsub.f32 1.5, %v1695_v13 }
 0x271   : > { %v7870_v60 = vpop.eup %7869  ;;  %v1615_v36 = vadd.f32 1e-05, %v1599_v29  ;;  %v8968_v62 = vsub.f32 %v8906_v35, %v1525_v49 }
 0x272   : > { %v1697_v37 = vmul.f32 %v7868_v17, %v1696_v34  ;;  %v1703_v38 = vmul.f32 %v7870_v60, %v1614_v52  ;;  %vm1709_vm10 = vweird.f32 %v7870_v60 }
 0x273   : > { %7871 = vrsqrt.f32 %v1615_v36  ;;  %v1557_v39 = vmul.f32 %v8968_v62, %v8968_v62  ;;  %vm1710_vm12 = vmor %vm1708_vm11, %vm1709_vm10  ;;  %vm1718_vm14 = vweird.f32 %v1615_v36 }
 0x274   : > { %v1704_v41 = vmul.f32 %v7870_v60, %v1703_v38  ;;  %v1701_v43 = vsel %vm1700_vm9, %v7868_v17, %v1697_v37 }
 0x275   : > { %1588 = vadd.xlane.f32.xlu1 %v1557_v39  ;;  %v1789_v20 = vmul.f32 %v1701_v43, %v8883_v53  ;;  %v1844_v53 = vmax.f32 %v1828_v48, 0.0 }
 0x276   : > { %v1705_v23 = vmul.f32 0.5, %v1704_v41  ;;  %v1579_v45 = vpop.xlane.xlu2 %1578 }
 0x277   : > { %v1600_v35 = vmul.f32 %v1579_v45, %v8799_v31  ;;  %v1809_v46 = vmul.f32 %v8899_v19, %v1789_v20 }
 0x278   : > { %v1706_v42 = vsub.f32 1.5, %v1705_v23 }
 0x279   : > { %v7872_v54 = vpop.eup %7871  ;;  %v1616_v55 = vadd.f32 1e-05, %v1600_v35  ;;  %v1829_v56 = vadd.f32 %v8910_v33, %v1809_v46 }
 0x27a   : > { %v1707_v57 = vmul.f32 %v7870_v60, %v1706_v42  ;;  %v1713_v5 = vmul.f32 %v7872_v54, %v1615_v36  ;;  %vm1719_vm13 = vweird.f32 %v7872_v54 }
 0x27b   : > { %7873 = vrsqrt.f32 %v1616_v55  ;;  %v1845_v58 = vmax.f32 %v1829_v56, 0.0  ;;  %vm1720_vm15 = vmor %vm1718_vm14, %vm1719_vm13  ;;  %vm1728_vm1 = vweird.f32 %v1616_v55 }
 0x27c   : > { %v1714_v28 = vmul.f32 %v7872_v54, %v1713_v5  ;;  %v1711_v61 = vsel %vm1710_vm12, %v7870_v60, %v1707_v57 }
 0x27d   : > { %v1857_v63 = vpack.c.bf16 %v1845_v58, %v1844_v53  ;;  %v1790_v14 = vmul.f32 %v1711_v61, %v8890_v44 }
 0x27e   : > { %v1715_v0 = vmul.f32 0.5, %v1714_v28  ;;  %v1581_v1 = vpop.xlane.xlu0 %1580 }
 0x27f   : > { %v1601_v4 = vmul.f32 %v1581_v1, %v8799_v31  ;;  %1953 = vmatmul.bf16.gmra.mxu2 %v1857_v63  ;;  %v1810_v32 = vmul.f32 %v8899_v19, %v1790_v14 }
 0x280   : > { %v1716_v3 = vsub.f32 1.5, %v1715_v0 }
 0x281   : > { %v7874_v6 = vpop.eup %7873  ;;  %v1617_v2 = vadd.f32 1e-05, %v1601_v4  ;;  %v1830_v52 = vadd.f32 %v8910_v33, %v1810_v32 }
 0x282   : > { %v1717_v7 = vmul.f32 %v7872_v54, %v1716_v3  ;;  %v1723_v8 = vmul.f32 %v7874_v6, %v1616_v55  ;;  %vm1729_vm0 = vweird.f32 %v7874_v6 }
 0x283   : > { %7875 = vrsqrt.f32 %v1617_v2  ;;  %vm1730_vm2 = vmor %vm1728_vm1, %vm1729_vm0  ;;  %v1846_v49 = vmax.f32 %v1830_v52, 0.0  ;;  %vm1738_vm4 = vweird.f32 %v1617_v2 }
 0x284   : > { %v1724_v9 = vmul.f32 %v7874_v6, %v1723_v8  ;;  %v1721_v11 = vsel %vm1720_vm15, %v7872_v54, %v1717_v7 }
 0x285   : > { %v1791_v15 = vmul.f32 %v1721_v11, %v8902_v27 }
 0x286   : > { %v1725_v16 = vmul.f32 0.5, %v1724_v9  ;;  %v1583_v51 = vpop.xlane.xlu1 %1582 }
 0x287   : > { %v1602_v44 = vmul.f32 %v1583_v51, %v8799_v31  ;;  %v1811_v17 = vmul.f32 %v8899_v19, %v1791_v15 }
 0x288   : > { %v1726_v18 = vsub.f32 1.5, %v1725_v16  ;;  %v1939_v21 = vpop.f32.mrf.mxu2 }
 0x289   : > { %v7876_v22 = vpop.eup %7875  ;;  %v1618_v13 = vadd.f32 1e-05, %v1602_v44  ;;  %v8989_v25 = vadd.f32 %v8982_v12, %v1939_v21  ;;  %v1831_v26 = vadd.f32 %v8910_v33, %v1811_v17 }
 0x28a   : > { %v1727_v29 = vmul.f32 %v7874_v6, %v1726_v18  ;;  %v1733_v27 = vmul.f32 %v7876_v22, %v1617_v2  ;;  %vm1739_vm3 = vweird.f32 %v7876_v22 }
 0x28b   : > { %7877 = vrsqrt.f32 %v1618_v13  ;;  %1979 = vadd.xlane.f32.xlu2 %v8989_v25  ;;  %v1847_v30 = vmax.f32 %v1831_v26, 0.0  ;;  %vm1740_vm5 = vmor %vm1738_vm4, %vm1739_vm3  ;;  %vm1748_vm7 = vweird.f32 %v1618_v13 }
 0x28c   : > { %v1734_v34 = vmul.f32 %v7876_v22, %v1733_v27  ;;  %v1731_v60 = vsel %vm1730_vm2, %v7874_v6, %v1727_v29 }
 0x28d   : > { %v1858_v36 = vpack.c.bf16 %v1847_v30, %v1846_v49  ;;  %v1792_v40 = vmul.f32 %v1731_v60, %v8919_v50 }
 0x28e   : > { %v1735_v37 = vmul.f32 0.5, %v1734_v34  ;;  %v1585_v38 = vpop.xlane.xlu2 %1584 }
 0x28f   : > { %v1603_v39 = vmul.f32 %v1585_v38, %v8799_v31  ;;  %1958 = vmatmul.bf16.gmra.mxu2 %v1858_v36  ;;  %v1812_v48 = vmul.f32 %v8899_v19, %v1792_v40 }
 0x290   : > { %v1736_v41 = vsub.f32 1.5, %v1735_v37  ;;  %v1941_v43 = vpop.f32.mrf.mxu2 }
 0x291   : > { %v7878_v20 = vpop.eup %7877  ;;  %v1619_v23 = vadd.f32 1e-05, %v1603_v39  ;;  %v8996_v45 = vadd.f32 %v8982_v12, %v1941_v43  ;;  %v1832_v57 = vadd.f32 %v8910_v33, %v1812_v48 }
 0x292   : > { %v1737_v35 = vmul.f32 %v7876_v22, %v1736_v41  ;;  %v1743_v46 = vmul.f32 %v7878_v20, %v1618_v13  ;;  %vm1749_vm6 = vweird.f32 %v7878_v20 }
 0x293   : > { %7879 = vrsqrt.f32 %v1619_v23  ;;  %1981 = vadd.xlane.f32.xlu0 %v8996_v45  ;;  %vm1750_vm8 = vmor %vm1748_vm7, %vm1749_vm6  ;;  %vm1758_vm10 = vweird.f32 %v1619_v23 }
 0x294   : > { %v1741_v42 = vsel %vm1740_vm5, %v7876_v22, %v1737_v35  ;;  %v1744_v54 = vmul.f32 %v7878_v20, %v1743_v46 }
 0x295   : > { %v1793_v50 = vmul.f32 %v1741_v42, %v8928_v10  ;;  %v1848_v10 = vmax.f32 %v1832_v57, 0.0 }
 0x296   : > { %v1745_v55 = vmul.f32 0.5, %v1744_v54 }
 0x297   : > { %v1813_v56 = vmul.f32 %v8899_v19, %v1793_v50 }
 0x298   : > { %v1746_v5 = vsub.f32 1.5, %v1745_v55  ;;  %v1944_v53 = vpop.f32.mrf.mxu2 }
 0x299   : > { %v7880_v58 = vpop.eup %7879  ;;  %v9004_v28 = vadd.f32 %v8982_v12, %v1944_v53  ;;  %v1833_v61 = vadd.f32 %v8910_v33, %v1813_v56 }
 0x29a   : > { %v1747_v63 = vmul.f32 %v7878_v20, %v1746_v5  ;;  %v1753_v0 = vmul.f32 %v7880_v58, %v1619_v23  ;;  %vm1759_vm9 = vweird.f32 %v7880_v58 }
 0x29b   : > { %1983 = vadd.xlane.f32.xlu1 %v9004_v28  ;;  %v1849_v1 = vmax.f32 %v1833_v61, 0.0  ;;  %vm1760_vm11 = vmor %vm1758_vm10, %vm1759_vm9 }
 0x29c   : > { %v1754_v4 = vmul.f32 %v7880_v58, %v1753_v0  ;;  %v1751_v14 = vsel %vm1750_vm8, %v7878_v20, %v1747_v63 }
 0x29d   : > { %v1859_v3 = vpack.c.bf16 %v1849_v1, %v1848_v10  ;;  %v1794_v2 = vmul.f32 %v1751_v14, %v8938_v24 }
 0x29e   : > { %v1755_v6 = vmul.f32 0.5, %v1754_v4 }
 0x29f   : > { %1963 = vmatmul.bf16.gmra.mxu2 %v1859_v3  ;;  %v1814_v11 = vmul.f32 %v8899_v19, %v1794_v2 }
 0x2a0   : > { %v1756_v7 = vsub.f32 1.5, %v1755_v6  ;;  %v1946_v8 = vpop.f32.mrf.mxu2 }
 0x2a1   : > { %v9010_v32 = vadd.f32 %v8982_v12, %v1946_v8  ;;  %v1834_v24 = vadd.f32 %v8910_v33, %v1814_v11 }
 0x2a2   : > { %v1757_v9 = vmul.f32 %v7880_v58, %v1756_v7 }
 0x2a3   : > { %1985 = vadd.xlane.f32.xlu2 %v9010_v32  ;;  %v1850_v18 = vmax.f32 %v1834_v24, 0.0  ;;  %v7690_v24 = vld [vmem:[%s8587_s24 + $0x38] sm:$0xff] }
 0x2a4   : > { %v1761_v15 = vsel %vm1760_vm11, %v7880_v58, %v1757_v9  ;;  %2431 = vmatpush.bf16.msrb.mxu3 %v7690_v24 }
 0x2a5   : > { %v1795_v16 = vmul.f32 %v1761_v15, %v8946_v47  ;;  %v1587_v47 = vpop.xlane.xlu0 %1586 }
 0x2a6   : > { %v1604_v29 = vmul.f32 %v1587_v47, %v8799_v31 }
 0x2a7   : > { %v1815_v51 = vmul.f32 %v8899_v19, %v1795_v16 }
 0x2a8   : > { %v1949_v44 = vpop.f32.mrf.mxu2  ;;  %v1620_v27 = vadd.f32 1e-05, %v1604_v29 }
 0x2a9   : > { %v9018_v17 = vadd.f32 %v8982_v12, %v1949_v44  ;;  %v1835_v52 = vadd.f32 %v8910_v33, %v1815_v51 }
 0x2aa   : > { %7881 = vrsqrt.f32 %v1620_v27  ;;  %vm1768_vm13 = vweird.f32 %v1620_v27 }
 0x2ab   : > { %1987 = vadd.xlane.f32.xlu0 %v9018_v17  ;;  %v1851_v21 = vmax.f32 %v1835_v52, 0.0  ;;  %v7689_v52 = vld [vmem:[%s8587_s24 + $0x30] sm:$0xff] }
 0x2ac   : > { %2432 = vmatpush.bf16.msrb.mxu3 %v7689_v52 }
 0x2ad   : > { %v1860_v22 = vpack.c.bf16 %v1851_v21, %v1850_v18 }
 0x2af   : > { %1968 = vmatmul.bf16.gmra.mxu2 %v1860_v22 }
 0x2b0   : > { %v1951_v13 = vpop.f32.mrf.mxu2  ;;  %v7882_v49 = vpop.eup %7881 }
 0x2b1   : > { %v9023_v26 = vadd.f32 %v8982_v12, %v1951_v13  ;;  %v1763_v30 = vmul.f32 %v7882_v49, %v1620_v27  ;;  %vm1769_vm12 = vweird.f32 %v7882_v49 }
 0x2b2   : > { %vm1770_vm14 = vmor %vm1768_vm13, %vm1769_vm12 }
 0x2b3   : > { %1989 = vadd.xlane.f32.xlu1 %v9023_v26  ;;  %v1764_v34 = vmul.f32 %v7882_v49, %v1763_v30 }
 0x2b5   : > { %v1765_v37 = vmul.f32 0.5, %v1764_v34 }
 0x2b7   : > { %v1766_v39 = vsub.f32 1.5, %v1765_v37  ;;  %v7688_v37 = vld [vmem:[%s8587_s24 + $0x28] sm:$0xff] }
 0x2b8   : > { %2433 = vmatpush.bf16.msrb.mxu3 %v7688_v37 }
 0x2b9   : > { %v1767_v40 = vmul.f32 %v7882_v49, %v1766_v39  ;;  %v7685_v39 = vld [vmem:[%s8587_s24 + $0x10] sm:$0xff] }
 0x2bb   : > { %v1771_v20 = vsel %vm1770_vm14, %v7882_v49, %v1767_v40 }
 0x2bc   : > { %v1796_v46 = vmul.f32 %v1771_v20, %v8956_v59 }
 0x2be   : > { %v1816_v54 = vmul.f32 %v8899_v19, %v1796_v46 }
 0x2c0   : > { %v1836_v59 = vadd.f32 %v8910_v33, %v1816_v54 }
 0x2e8   : > { %v1589_v60 = vpop.xlane.xlu1 %1588 }
 0x2e9   : > { %v1605_v36 = vmul.f32 %v1589_v60, %v8799_v31 }
 0x2eb   : > { %v1621_v38 = vadd.f32 1e-05, %v1605_v36 }
 0x2ed   : > { %7883 = vrsqrt.f32 %v1621_v38  ;;  %vm1778_vm0 = vweird.f32 %v1621_v38 }
 0x2f3   : > { %v7884_v41 = vpop.eup %7883 }
 0x2f4   : > { %v1773_v43 = vmul.f32 %v7884_v41, %v1621_v38  ;;  %vm1779_vm15 = vweird.f32 %v7884_v41  ;;  %v7686_v38 = vld [vmem:[%s8587_s24 + $0x18] sm:$0xff] }
 0x2f5   : > { %vm1780_vm1 = vmor %vm1778_vm0, %vm1779_vm15 }
 0x2f6   : > { %v1774_v23 = vmul.f32 %v7884_v41, %v1773_v43  ;;  %v7684_v43 = vld [vmem:[%s8587_s24 + $0x8] sm:$0xff] }
 0x2f8   : > { %v1775_v35 = vmul.f32 0.5, %v1774_v23 }
 0x2fa   : > { %v1776_v48 = vsub.f32 1.5, %v1775_v35 }
 0x2fc   : > { %v1777_v42 = vmul.f32 %v7884_v41, %v1776_v48  ;;  %v7683_v48 = vld [vmem:[%s8587_s24] sm:$0xff] }
 0x2fe   : > { %v1781_v50 = vsel %vm1780_vm1, %v7884_v41, %v1777_v42  ;;  %v1980_v55 = vpop.xlane.xlu2 %1979 }
 0x2ff   : > { %v2011_v56 = vmul.f32 %v1980_v55, %v8799_v31  ;;  %v1797_v57 = vmul.f32 %v1781_v50, %v8968_v62  ;;  %v1852_v62 = vmax.f32 %v1836_v59, 0.0 }
 0x301   : > { %v9033_v5 = vsub.f32 %v8989_v25, %v2011_v56  ;;  %v1817_v53 = vmul.f32 %v8899_v19, %v1797_v57 }
 0x302   : > { %v1954_v58 = vpop.f32.mrf.mxu2 }
 0x303   : > { %v9038_v61 = vadd.f32 %v8982_v12, %v1954_v58  ;;  %v2043_v63 = vmul.f32 %v9033_v5, %v9033_v5  ;;  %v1837_v0 = vadd.f32 %v8910_v33, %v1817_v53 }
 0x305   : > { %1991 = vadd.xlane.f32.xlu1 %v9038_v61  ;;  %2059 = vadd.xlane.f32.xlu2 %v2043_v63  ;;  %v1853_v10 = vmax.f32 %v1837_v0, 0.0 }
 0x306   : > { %v1982_v25 = vpop.xlane.xlu0 %1981 }
 0x307   : > { %v2012_v1 = vmul.f32 %v1982_v25, %v8799_v31  ;;  %v1861_v19 = vpack.c.bf16 %v1853_v10, %v1852_v62 }
 0x309   : > { %v9046_v4 = vsub.f32 %v8996_v45, %v2012_v1  ;;  %1973 = vmatmul.bf16.gmra.mxu2 %v1861_v19 }
 0x30a   : > { %v1956_v14 = vpop.f32.mrf.mxu2 }
 0x30b   : > { %v9049_v3 = vadd.f32 %v8982_v12, %v1956_v14  ;;  %v2044_v33 = vmul.f32 %v9046_v4, %v9046_v4 }
 0x30d   : > { %1993 = vadd.xlane.f32.xlu2 %v9049_v3  ;;  %2061 = vadd.xlane.f32.xlu0 %v2044_v33 }
 0x30e   : > { %v1984_v6 = vpop.xlane.xlu1 %1983 }
 0x30f   : > { %v2013_v2 = vmul.f32 %v1984_v6, %v8799_v31 }
 0x311   : > { %v9056_v7 = vsub.f32 %v9004_v28, %v2013_v2 }
 0x312   : > { %v1959_v45 = vpop.f32.mrf.mxu2 }
 0x313   : > { %v9059_v8 = vadd.f32 %v8982_v12, %v1959_v45  ;;  %v2045_v9 = vmul.f32 %v9056_v7, %v9056_v7 }
 0x315   : > { %1995 = vadd.xlane.f32.xlu2 %v9059_v8  ;;  %2063 = vadd.xlane.f32.xlu0 %v2045_v9 }
 0x316   : > { %v1986_v11 = vpop.xlane.xlu2 %1985 }
 0x317   : > { %v2014_v15 = vmul.f32 %v1986_v11, %v8799_v31 }
 0x319   : > { %v9066_v16 = vsub.f32 %v9010_v32, %v2014_v15 }
 0x31a   : > { %v1961_v51 = vpop.f32.mrf.mxu2 }
 0x31b   : > { %v2046_v28 = vmul.f32 %v9066_v16, %v9066_v16  ;;  %v9072_v44 = vadd.f32 %v8982_v12, %v1961_v51 }
 0x31d   : > { %2065 = vadd.xlane.f32.xlu1 %v2046_v28  ;;  %1997 = vadd.xlane.f32.xlu0 %v9072_v44 }
 0x31e   : > { %v1988_v18 = vpop.xlane.xlu0 %1987 }
 0x31f   : > { %v2015_v21 = vmul.f32 %v1988_v18, %v8799_v31 }
 0x321   : > { %v9078_v32 = vsub.f32 %v9018_v17, %v2015_v21 }
 0x322   : > { %v1964_v22 = vpop.f32.mrf.mxu2 }
 0x323   : > { %v9081_v13 = vadd.f32 %v8982_v12, %v1964_v22  ;;  %v2047_v47 = vmul.f32 %v9078_v32, %v9078_v32 }
 0x325   : > { %1999 = vadd.xlane.f32.xlu0 %v9081_v13  ;;  %2067 = vadd.xlane.f32.xlu1 %v2047_v47 }
 0x326   : > { %v1990_v29 = vpop.xlane.xlu1 %1989 }
 0x327   : > { %v2016_v27 = vmul.f32 %v1990_v29, %v8799_v31  ;;  %v9139_v29 = vld [vmem:[%s8577_s14] ss:$0 sm:$0xff] }
 0x329   : > { %v9088_v17 = vsub.f32 %v9023_v26, %v2016_v27  ;;  %v7687_v26 = vld [vmem:[%s8587_s24 + $0x20] sm:$0xff] }
 0x32a   : > { %v1966_v49 = vpop.f32.mrf.mxu2  ;;  %2434 = vmatpush.bf16.msrb.mxu3 %v7687_v26 }
 0x32b   : > { %v2048_v30 = vmul.f32 %v9088_v17, %v9088_v17  ;;  %v9093_v34 = vadd.f32 %v8982_v12, %v1966_v49 }
 0x32d   : > { %2069 = vadd.xlane.f32.xlu2 %v2048_v30  ;;  %2001 = vadd.xlane.f32.xlu1 %v9093_v34 }
 0x32e   : > { %2435 = vmatpush.bf16.msrb.mxu3 %v7686_v38 }
 0x332   : > { %v1969_v60 = vpop.f32.mrf.mxu2  ;;  %2436 = vmatpush.bf16.msrb.mxu3 %v7685_v39 }
 0x333   : > { %v9097_v36 = vadd.f32 %v8982_v12, %v1969_v60 }
 0x335   : > { %2003 = vadd.xlane.f32.xlu1 %v9097_v36 }
 0x336   : > { %2437 = vmatpush.bf16.msrb.mxu3 %v7684_v43 }
 0x33a   : > { %2438 = vmatpush.bf16.msrb.mxu3 %v7683_v48  ;;  %v1971_v57 = vpop.f32.mrf.mxu2 }
 0x33b   : > { %v9119_v63 = vadd.f32 %v8982_v12, %v1971_v57 }
 0x378   : > { %v1992_v40 = vpop.xlane.xlu1 %1991  ;;  %v2060_v41 = vpop.xlane.xlu2 %2059 }
 0x379   : > { %v2017_v20 = vmul.f32 %v1992_v40, %v8799_v31  ;;  %v2091_v23 = vmul.f32 %v2060_v41, %v8799_v31  ;;  %v9151_v41 = vld [vmem:[%s8582_s19] ss:$0 sm:$0xff] }
 0x37b   : > { %v9108_v35 = vsub.f32 %v9038_v61, %v2017_v20  ;;  %v2107_v46 = vadd.f32 1e-05, %v2091_v23 }
 0x37d   : > { %7885 = vrsqrt.f32 %v2107_v46  ;;  %v2049_v42 = vmul.f32 %v9108_v35, %v9108_v35  ;;  %vm2129_vm3 = vweird.f32 %v2107_v46 }
 0x37f   : > { %2071 = vadd.xlane.f32.xlu2 %v2049_v42 }
 0x380   : > { %v1994_v54 = vpop.xlane.xlu2 %1993  ;;  %v2062_v50 = vpop.xlane.xlu0 %2061 }
 0x381   : > { %v2018_v55 = vmul.f32 %v1994_v54, %v8799_v31  ;;  %v2092_v56 = vmul.f32 %v2062_v50, %v8799_v31 }
 0x383   : > { %v7886_v53 = vpop.eup %7885  ;;  %v9116_v59 = vsub.f32 %v9049_v3, %v2018_v55  ;;  %v2108_v58 = vadd.f32 1e-05, %v2092_v56 }
 0x384   : > { %v2124_v61 = vmul.f32 %v7886_v53, %v2107_v46  ;;  %vm2130_vm2 = vweird.f32 %v7886_v53 }
 0x385   : > { %7887 = vrsqrt.f32 %v2108_v58  ;;  %v2050_v0 = vmul.f32 %v9116_v59, %v9116_v59  ;;  %vm2131_vm4 = vmor %vm2129_vm3, %vm2130_vm2  ;;  %vm2139_vm6 = vweird.f32 %v2108_v58 }
 0x386   : > { %v2125_v62 = vmul.f32 %v7886_v53, %v2124_v61 }
 0x387   : > { %2005 = vadd.xlane.f32.xlu2 %v9119_v63  ;;  %2073 = vadd.xlane.f32.xlu0 %v2050_v0 }
 0x388   : > { %v2126_v10 = vmul.f32 0.5, %v2125_v62  ;;  %v1996_v25 = vpop.xlane.xlu2 %1995  ;;  %v2064_v1 = vpop.xlane.xlu0 %2063 }
 0x389   : > { %v2019_v19 = vmul.f32 %v1996_v25, %v8799_v31  ;;  %v2093_v14 = vmul.f32 %v2064_v1, %v8799_v31 }
 0x38a   : > { %v2127_v3 = vsub.f32 1.5, %v2126_v10 }
 0x38b   : > { %v7888_v33 = vpop.eup %7887  ;;  %v9127_v6 = vsub.f32 %v9059_v8, %v2019_v19  ;;  %v2109_v2 = vadd.f32 1e-05, %v2093_v14 }
 0x38c   : > { %v2128_v45 = vmul.f32 %v7886_v53, %v2127_v3  ;;  %v2134_v9 = vmul.f32 %v7888_v33, %v2108_v58  ;;  %v1974_v11 = vpop.f32.mrf.mxu2  ;;  %vm2140_vm5 = vweird.f32 %v7888_v33 }
 0x38d   : > { %7889 = vrsqrt.f32 %v2109_v2  ;;  %v9130_v15 = vadd.f32 %v8982_v12, %v1974_v11  ;;  %v2051_v51 = vmul.f32 %v9127_v6, %v9127_v6  ;;  %vm2141_vm7 = vmor %vm2139_vm6, %vm2140_vm5  ;;  %vm2149_vm9 = vweird.f32 %v2109_v2 }
 0x38e   : > { %v2132_v24 = vsel %vm2131_vm4, %v7886_v53, %v2128_v45  ;;  %v2135_v28 = vmul.f32 %v7888_v33, %v2134_v9  ;;  %v7698_v9 = vld [vmem:[%s8597_s6 + $0x38] sm:$0xff] }
 0x38f   : > { %2007 = vadd.xlane.f32.xlu2 %v9130_v15  ;;  %2075 = vadd.xlane.f32.xlu0 %v2051_v51  ;;  %v2283_v21 = vmul.f32 %v2132_v24, %v9033_v5 }
 0x390   : > { %v2136_v8 = vmul.f32 0.5, %v2135_v28  ;;  %v2066_v52 = vpop.xlane.xlu1 %2065  ;;  %v1998_v18 = vpop.xlane.xlu0 %1997  ;;  %2556 = vmatpush.bf16.msrb.mxu1 %v7698_v9 }
 0x391   : > { %v2094_v22 = vmul.f32 %v2066_v52, %v8799_v31  ;;  %v2020_v47 = vmul.f32 %v1998_v18, %v8799_v31  ;;  %v2303_v40 = vmul.f32 %v9139_v29, %v2283_v21 }
 0x392   : > { %v2137_v27 = vsub.f32 1.5, %v2136_v8  ;;  %v7697_v8 = vld [vmem:[%s8597_s6 + $0x30] sm:$0xff] }
 0x393   : > { %v7890_v49 = vpop.eup %7889  ;;  %v2110_v30 = vadd.f32 1e-05, %v2094_v22  ;;  %v9142_v60 = vsub.f32 %v9072_v44, %v2020_v47  ;;  %v2323_v50 = vadd.f32 %v9151_v41, %v2303_v40 }
 0x394   : > { %v2138_v37 = vmul.f32 %v7888_v33, %v2137_v27  ;;  %v2144_v26 = vmul.f32 %v7890_v49, %v2109_v2  ;;  %v1976_v38 = vpop.f32.mrf.mxu2  ;;  %vm2150_vm8 = vweird.f32 %v7890_v49  ;;  %2557 = vmatpush.bf16.msrb.mxu1 %v7697_v8 }
 0x395   : > { %7891 = vrsqrt.f32 %v2110_v30  ;;  %v9145_v5 = vadd.f32 %v8982_v12, %v1976_v38  ;;  %v2052_v39 = vmul.f32 %v9142_v60, %v9142_v60  ;;  %vm2151_vm10 = vmor %vm2149_vm9, %vm2150_vm8  ;;  %v2339_v62 = vmax.f32 %v2323_v50, 0.0 }
 0x396   : > { %v2142_v43 = vsel %vm2141_vm7, %v7888_v33, %v2138_v37  ;;  %v2145_v20 = vmul.f32 %v7890_v49, %v2144_v26  ;;  %vm2159_vm12 = vweird.f32 %v2110_v30 }
 0x397   : > { %v2284_v44 = vmul.f32 %v2142_v43, %v9046_v4  ;;  %2009 = vadd.xlane.f32.xlu0 %v9145_v5  ;;  %2077 = vadd.xlane.f32.xlu1 %v2052_v39 }
 0x398   : > { %v2146_v23 = vmul.f32 0.5, %v2145_v20  ;;  %v2068_v46 = vpop.xlane.xlu1 %2067  ;;  %v2000_v48 = vpop.xlane.xlu0 %1999 }
 0x399   : > { %v2095_v12 = vmul.f32 %v2068_v46, %v8799_v31  ;;  %v2021_v42 = vmul.f32 %v2000_v48, %v8799_v31  ;;  %v2304_v54 = vmul.f32 %v9139_v29, %v2284_v44 }
 0x39a   : > { %v2147_v55 = vsub.f32 1.5, %v2146_v23 }
 0x39b   : > { %v7892_v56 = vpop.eup %7891  ;;  %v2111_v57 = vadd.f32 1e-05, %v2095_v12  ;;  %v9160_v4 = vsub.f32 %v9081_v13, %v2021_v42  ;;  %v2324_v53 = vadd.f32 %v9151_v41, %v2304_v54 }
 0x39c   : > { %v2148_v58 = vmul.f32 %v7890_v49, %v2147_v55  ;;  %v2154_v61 = vmul.f32 %v7892_v56, %v2110_v30  ;;  %vm2160_vm11 = vweird.f32 %v7892_v56 }
 0x39d   : > { %7893 = vrsqrt.f32 %v2111_v57  ;;  %v2053_v0 = vmul.f32 %v9160_v4, %v9160_v4  ;;  %v2340_v10 = vmax.f32 %v2324_v53, 0.0  ;;  %vm2161_vm13 = vmor %vm2159_vm12, %vm2160_vm11  ;;  %vm2169_vm15 = vweird.f32 %v2111_v57 }
 0x39e   : > { %v2152_v25 = vsel %vm2151_vm10, %v7890_v49, %v2148_v58  ;;  %v2155_v1 = vmul.f32 %v7892_v56, %v2154_v61 }
 0x39f   : > { %2079 = vadd.xlane.f32.xlu1 %v2053_v0  ;;  %v2355_v19 = vpack.c.bf16 %v2340_v10, %v2339_v62  ;;  %v2285_v45 = vmul.f32 %v2152_v25, %v9056_v7  ;;  %v7696_v25 = vld [vmem:[%s8597_s6 + $0x28] sm:$0xff] }
 0x3a0   : > { %v2156_v13 = vmul.f32 0.5, %v2155_v1  ;;  %v2070_v14 = vpop.xlane.xlu2 %2069  ;;  %v2002_v3 = vpop.xlane.xlu1 %2001  ;;  %2558 = vmatpush.bf16.msrb.mxu1 %v7696_v25  ;;  %v7695_v1 = vld [vmem:[%s8597_s6 + $0x20] sm:$0xff] }
 0x3a1   : > { %v2096_v33 = vmul.f32 %v2070_v14, %v8799_v31  ;;  %v2022_v2 = vmul.f32 %v2002_v3, %v8799_v31  ;;  %2439 = vmatmul.bf16.vlgmr.msrb.gmra.mxu3 %v2355_v19  ;;  %v2305_v7 = vmul.f32 %v9139_v29, %v2285_v45 }
 0x3a2   : > { %v2157_v11 = vsub.f32 1.5, %v2156_v13 }
 0x3a3   : > { %v7894_v51 = vpop.eup %7893  ;;  %v2112_v24 = vadd.f32 1e-05, %v2096_v33  ;;  %v9170_v28 = vsub.f32 %v9093_v34, %v2022_v2  ;;  %v2325_v26 = vadd.f32 %v9151_v41, %v2305_v7 }
 0x3a4   : > { %v2158_v52 = vmul.f32 %v7892_v56, %v2157_v11  ;;  %v2164_v18 = vmul.f32 %v7894_v51, %v2111_v57  ;;  %vm2170_vm14 = vweird.f32 %v7894_v51  ;;  %2559 = vmatpush.bf16.msrb.mxu1 %v7695_v1 }
 0x3a5   : > { %7895 = vrsqrt.f32 %v2112_v24  ;;  %v2054_v21 = vmul.f32 %v9170_v28, %v9170_v28  ;;  %vm2171_vm0 = vmor %vm2169_vm15, %vm2170_vm14  ;;  %v2341_v23 = vmax.f32 %v2325_v26, 0.0  ;;  %vm2179_vm2 = vweird.f32 %v2112_v24 }
 0x3a6   : > { %v2162_v22 = vsel %vm2161_vm13, %v7892_v56, %v2158_v52  ;;  %v2165_v47 = vmul.f32 %v7894_v51, %v2164_v18 }
 0x3a7   : > { %2081 = vadd.xlane.f32.xlu2 %v2054_v21  ;;  %v2286_v27 = vmul.f32 %v2162_v22, %v9066_v16 }
 0x3a8   : > { %v2166_v34 = vmul.f32 0.5, %v2165_v47  ;;  %v2004_v49 = vpop.xlane.xlu1 %2003 }
 0x3a9   : > { %v2023_v37 = vmul.f32 %v2004_v49, %v8799_v31  ;;  %v2306_v30 = vmul.f32 %v9139_v29, %v2286_v27 }
 0x3aa   : > { %v2167_v38 = vsub.f32 1.5, %v2166_v34 }
 0x3ab   : > { %v7896_v39 = vpop.eup %7895  ;;  %v9181_v40 = vsub.f32 %v9097_v36, %v2023_v37  ;;  %v2326_v43 = vadd.f32 %v9151_v41, %v2306_v30  ;;  %v7693_v37 = vld [vmem:[%s8597_s6 + $0x10] sm:$0xff] }
 0x3ac   : > { %v2168_v20 = vmul.f32 %v7894_v51, %v2167_v38  ;;  %v2174_v16 = vmul.f32 %v7896_v39, %v2112_v24  ;;  %vm2180_vm1 = vweird.f32 %v7896_v39 }
 0x3ad   : > { %v2055_v44 = vmul.f32 %v9181_v40, %v9181_v40  ;;  %v2342_v46 = vmax.f32 %v2326_v43, 0.0  ;;  %vm2181_vm3 = vmor %vm2179_vm2, %vm2180_vm1 }
 0x3ae   : > { %v2172_v48 = vsel %vm2171_vm0, %v7894_v51, %v2168_v20  ;;  %v2175_v12 = vmul.f32 %v7896_v39, %v2174_v16  ;;  %v7692_v20 = vld [vmem:[%s8597_s6 + $0x8] sm:$0xff] }
 0x3af   : > { %2083 = vadd.xlane.f32.xlu0 %v2055_v44  ;;  %v2356_v42 = vpack.c.bf16 %v2342_v46, %v2341_v23  ;;  %v2287_v36 = vmul.f32 %v2172_v48, %v9078_v32 }
 0x3b0   : > { %v2176_v54 = vmul.f32 0.5, %v2175_v12 }
 0x3b1   : > { %2444 = vmatmul.bf16.gmra.mxu3 %v2356_v42  ;;  %v2307_v56 = vmul.f32 %v9139_v29, %v2287_v36 }
 0x3b2   : > { %v2177_v50 = vsub.f32 1.5, %v2176_v54 }
 0x3b3   : > { %v2327_v61 = vadd.f32 %v9151_v41, %v2307_v56 }
 0x3b4   : > { %v2178_v55 = vmul.f32 %v7896_v39, %v2177_v50  ;;  %v7691_v50 = vld [vmem:[%s8597_s6] sm:$0xff] }
 0x3b5   : > { %v2343_v32 = vmax.f32 %v2327_v61, 0.0 }
 0x3b6   : > { %v2182_v57 = vsel %vm2181_vm3, %v7896_v39, %v2178_v55 }
 0x3b7   : > { %v2288_v53 = vmul.f32 %v2182_v57, %v9088_v17  ;;  %v7694_v17 = vld [vmem:[%s8597_s6 + $0x18] sm:$0xff] }
 0x3b8   : > { %2560 = vmatpush.bf16.msrb.mxu1 %v7694_v17 }
 0x3b9   : > { %v2308_v58 = vmul.f32 %v9139_v29, %v2288_v53 }
 0x3bb   : > { %v2328_v0 = vadd.f32 %v9151_v41, %v2308_v58 }
 0x3bc   : > { %2561 = vmatpush.bf16.msrb.mxu1 %v7693_v37 }
 0x3bd   : > { %v2344_v62 = vmax.f32 %v2328_v0, 0.0 }
 0x3bf   : > { %v2357_v10 = vpack.c.bf16 %v2344_v62, %v2343_v32 }
 0x3c0   : > { %2562 = vmatpush.bf16.msrb.mxu1 %v7692_v20 }
 0x3c1   : > { %2449 = vmatmul.bf16.gmra.mxu3 %v2357_v10 }
 0x3c4   : > { %2563 = vmatpush.bf16.msrb.mxu1 %v7691_v50 }
 0x3f2   : > { %v2072_v19 = vpop.xlane.xlu2 %2071 }
 0x3f3   : > { %v2097_v13 = vmul.f32 %v2072_v19, %v8799_v31 }
 0x3f5   : > { %v2113_v14 = vadd.f32 1e-05, %v2097_v13 }
 0x3f7   : > { %7897 = vrsqrt.f32 %v2113_v14  ;;  %vm2189_vm5 = vweird.f32 %v2113_v14 }
 0x3fa   : > { %v2006_v3 = vpop.xlane.xlu2 %2005  ;;  %v2074_v33 = vpop.xlane.xlu0 %2073 }
 0x3fb   : > { %v2024_v2 = vmul.f32 %v2006_v3, %v8799_v31  ;;  %v2098_v45 = vmul.f32 %v2074_v33, %v8799_v31 }
 0x3fd   : > { %v7898_v9 = vpop.eup %7897  ;;  %v9199_v11 = vsub.f32 %v9119_v63, %v2024_v2  ;;  %v2114_v51 = vadd.f32 1e-05, %v2098_v45 }
 0x3fe   : > { %v2184_v24 = vmul.f32 %v7898_v9, %v2113_v14  ;;  %vm2190_vm4 = vweird.f32 %v7898_v9 }
 0x3ff   : > { %7899 = vrsqrt.f32 %v2114_v51  ;;  %v2056_v8 = vmul.f32 %v9199_v11, %v9199_v11  ;;  %vm2191_vm6 = vmor %vm2189_vm5, %vm2190_vm4  ;;  %vm2199_vm8 = vweird.f32 %v2114_v51 }
 0x400   : > { %v2185_v52 = vmul.f32 %v7898_v9, %v2184_v24 }
 0x401   : > { %2085 = vadd.xlane.f32.xlu1 %v2056_v8 }
 0x402   : > { %v2186_v18 = vmul.f32 0.5, %v2185_v52  ;;  %v2008_v21 = vpop.xlane.xlu2 %2007  ;;  %v2076_v7 = vpop.xlane.xlu0 %2075 }
 0x403   : > { %v2025_v22 = vmul.f32 %v2008_v21, %v8799_v31  ;;  %v2099_v47 = vmul.f32 %v2076_v7, %v8799_v31 }
 0x404   : > { %v2187_v27 = vsub.f32 1.5, %v2186_v18 }
 0x405   : > { %v7900_v63 = vpop.eup %7899  ;;  %v9206_v34 = vsub.f32 %v9130_v15, %v2025_v22  ;;  %v2115_v49 = vadd.f32 1e-05, %v2099_v47 }
 0x406   : > { %v2188_v30 = vmul.f32 %v7898_v9, %v2187_v27  ;;  %v2194_v26 = vmul.f32 %v7900_v63, %v2114_v51  ;;  %vm2200_vm7 = vweird.f32 %v7900_v63 }
 0x407   : > { %7901 = vrsqrt.f32 %v2115_v49  ;;  %v2057_v38 = vmul.f32 %v9206_v34, %v9206_v34  ;;  %vm2201_vm9 = vmor %vm2199_vm8, %vm2200_vm7  ;;  %vm2209_vm11 = vweird.f32 %v2115_v49 }
 0x408   : > { %v2192_v39 = vsel %vm2191_vm6, %v7898_v9, %v2188_v30  ;;  %v2195_v43 = vmul.f32 %v7900_v63, %v2194_v26 }
 0x409   : > { %2087 = vadd.xlane.f32.xlu2 %v2057_v38  ;;  %v2289_v48 = vmul.f32 %v2192_v39, %v9108_v35 }
 0x40a   : > { %v2196_v16 = vmul.f32 0.5, %v2195_v43  ;;  %v2078_v44 = vpop.xlane.xlu1 %2077  ;;  %v2010_v15 = vpop.xlane.xlu0 %2009 }
 0x40b   : > { %v2100_v23 = vmul.f32 %v2078_v44, %v8799_v31  ;;  %v2026_v46 = vmul.f32 %v2010_v15, %v8799_v31  ;;  %v2309_v53 = vmul.f32 %v9139_v29, %v2289_v48 }
 0x40c   : > { %v2197_v12 = vsub.f32 1.5, %v2196_v16 }
 0x40d   : > { %v7902_v42 = vpop.eup %7901  ;;  %v2116_v54 = vadd.f32 1e-05, %v2100_v23  ;;  %v9216_v36 = vsub.f32 %v9145_v5, %v2026_v46  ;;  %v2329_v10 = vadd.f32 %v9151_v41, %v2309_v53  ;;  %v9235_v46 = vld [vmem:[%s8592_s30] ss:$0 sm:$0xff] }
 0x40e   : > { %v2198_v55 = vmul.f32 %v7900_v63, %v2197_v12  ;;  %v2204_v56 = vmul.f32 %v7902_v42, %v2115_v49  ;;  %vm2210_vm10 = vweird.f32 %v7902_v42 }
 0x40f   : > { %7903 = vrsqrt.f32 %v2116_v54  ;;  %v2058_v57 = vmul.f32 %v9216_v36, %v9216_v36  ;;  %vm2211_vm12 = vmor %vm2209_vm11, %vm2210_vm10  ;;  %vm2219_vm14 = vweird.f32 %v2116_v54 }
 0x410   : > { %v2202_v35 = vsel %vm2201_vm9, %v7900_v63, %v2198_v55  ;;  %v2205_v58 = vmul.f32 %v7902_v42, %v2204_v56 }
 0x411   : > { %2089 = vadd.xlane.f32.xlu0 %v2058_v57  ;;  %v2290_v61 = vmul.f32 %v2202_v35, %v9116_v59  ;;  %v2345_v59 = vmax.f32 %v2329_v10, 0.0 }
 0x412   : > { %v2206_v0 = vmul.f32 0.5, %v2205_v58  ;;  %v2080_v5 = vpop.xlane.xlu1 %2079 }
 0x413   : > { %v2101_v32 = vmul.f32 %v2080_v5, %v8799_v31  ;;  %v2310_v62 = vmul.f32 %v9139_v29, %v2290_v61 }
 0x414   : > { %v2207_v25 = vsub.f32 1.5, %v2206_v0 }
 0x415   : > { %v7904_v1 = vpop.eup %7903  ;;  %v2117_v19 = vadd.f32 1e-05, %v2101_v32  ;;  %v2330_v13 = vadd.f32 %v9151_v41, %v2310_v62 }
 0x416   : > { %v2208_v14 = vmul.f32 %v7902_v42, %v2207_v25  ;;  %v2214_v17 = vmul.f32 %v7904_v1, %v2116_v54  ;;  %vm2220_vm13 = vweird.f32 %v7904_v1 }
 0x417   : > { %7905 = vrsqrt.f32 %v2117_v19  ;;  %v2346_v3 = vmax.f32 %v2330_v13, 0.0  ;;  %vm2221_vm15 = vmor %vm2219_vm14, %vm2220_vm13  ;;  %vm2229_vm1 = vweird.f32 %v2117_v19 }
 0x418   : > { %v2212_v33 = vsel %vm2211_vm12, %v7902_v42, %v2208_v14  ;;  %v2215_v2 = vmul.f32 %v7904_v1, %v2214_v17 }
 0x419   : > { %v2358_v45 = vpack.c.bf16 %v2346_v3, %v2345_v59  ;;  %v2291_v8 = vmul.f32 %v2212_v33, %v9127_v6 }
 0x41a   : > { %v2216_v9 = vmul.f32 0.5, %v2215_v2  ;;  %v2082_v51 = vpop.xlane.xlu2 %2081 }
 0x41b   : > { %v2102_v24 = vmul.f32 %v2082_v51, %v8799_v31  ;;  %2454 = vmatmul.bf16.gmra.mxu3 %v2358_v45  ;;  %v2311_v47 = vmul.f32 %v9139_v29, %v2291_v8 }
 0x41c   : > { %v2217_v52 = vsub.f32 1.5, %v2216_v9 }
 0x41d   : > { %v7906_v18 = vpop.eup %7905  ;;  %v2118_v21 = vadd.f32 1e-05, %v2102_v24  ;;  %v2331_v6 = vadd.f32 %v9151_v41, %v2311_v47 }
 0x41e   : > { %v2218_v7 = vmul.f32 %v7904_v1, %v2217_v52  ;;  %v2224_v22 = vmul.f32 %v7906_v18, %v2117_v19  ;;  %vm2230_vm0 = vweird.f32 %v7906_v18 }
 0x41f   : > { %7907 = vrsqrt.f32 %v2118_v21  ;;  %vm2231_vm2 = vmor %vm2229_vm1, %vm2230_vm0  ;;  %v2347_v44 = vmax.f32 %v2331_v6, 0.0  ;;  %vm2239_vm4 = vweird.f32 %v2118_v21 }
 0x420   : > { %v2222_v27 = vsel %vm2221_vm15, %v7904_v1, %v2218_v7  ;;  %v2225_v63 = vmul.f32 %v7906_v18, %v2224_v22 }
 0x421   : > { %v2292_v49 = vmul.f32 %v2222_v27, %v9142_v60 }
 0x422   : > { %v2226_v37 = vmul.f32 0.5, %v2225_v63  ;;  %v2084_v2 = vpop.xlane.xlu0 %2083 }
 0x423   : > { %v2312_v30 = vmul.f32 %v9139_v29, %v2292_v49  ;;  %v2103_v45 = vmul.f32 %v2084_v2, %v8799_v31 }
 0x424   : > { %v2227_v26 = vsub.f32 1.5, %v2226_v37  ;;  %v2440_v38 = vpop.f32.mrf.mxu3 }
 0x425   : > { %v7908_v39 = vpop.eup %7907  ;;  %v2332_v43 = vadd.f32 %v9151_v41, %v2312_v30  ;;  %v2441_v55 = vadd.f32 %v9235_v46, %v2440_v38  ;;  %v2119_v9 = vadd.f32 1e-05, %v2103_v45 }
 0x426   : > { %v2228_v20 = vmul.f32 %v7906_v18, %v2227_v26  ;;  %v2234_v16 = vmul.f32 %v7908_v39, %v2118_v21  ;;  %vm2240_vm3 = vweird.f32 %v7908_v39 }
 0x427   : > { %v2348_v15 = vmax.f32 %v2332_v43, 0.0  ;;  %vm2241_vm5 = vmor %vm2239_vm4, %vm2240_vm3  ;;  %7909 = vrsqrt.f32 %v2119_v9  ;;  %vm2249_vm7 = vweird.f32 %v2119_v9 }
 0x428   : > { %v2232_v23 = vsel %vm2231_vm2, %v7906_v18, %v2228_v20  ;;  %v2235_v60 = vmul.f32 %v7908_v39, %v2234_v16 }
 0x429   : > { %v2359_v48 = vpack.c.bf16 %v2348_v15, %v2347_v44  ;;  %v2293_v42 = vmul.f32 %v2232_v23, %v9160_v4 }
 0x42a   : > { %v2236_v12 = vmul.f32 0.5, %v2235_v60 }
 0x42b   : > { %2459 = vmatmul.bf16.gmra.mxu3 %v2359_v48  ;;  %v2313_v35 = vmul.f32 %v9139_v29, %v2293_v42 }
 0x42c   : > { %v2237_v54 = vsub.f32 1.5, %v2236_v12  ;;  %v2442_v50 = vpop.f32.mrf.mxu3 }
 0x42d   : > { %v2443_v56 = vadd.f32 %v9235_v46, %v2442_v50  ;;  %v2333_v4 = vadd.f32 %v9151_v41, %v2313_v35  ;;  %v7910_v51 = vpop.eup %7909 }
 0x42e   : > { %v2238_v57 = vmul.f32 %v7908_v39, %v2237_v54  ;;  %v2244_v24 = vmul.f32 %v7910_v51, %v2119_v9  ;;  %vm2250_vm6 = vweird.f32 %v7910_v51 }
 0x42f   : > { %v2480_v53 = vpack.c.bf16 %v2443_v56, %v2441_v55  ;;  %v2349_v62 = vmax.f32 %v2333_v4, 0.0  ;;  %vm2251_vm8 = vmor %vm2249_vm7, %vm2250_vm6 }
 0x430   : > { %v2242_v58 = vsel %vm2241_vm5, %v7908_v39, %v2238_v57  ;;  %v2245_v8 = vmul.f32 %v7910_v51, %v2244_v24  ;;  %v9268_v24 = vld [vmem:[%s8602_s12] ss:$0 sm:$0xff] }
 0x431   : > { %2564 = vmatmul.bf16.vlgmr.msrb.gmra.mxu1 %v2480_v53  ;;  %v2294_v61 = vmul.f32 %v2242_v58, %v9170_v28 }
 0x432   : > { %v2246_v21 = vmul.f32 0.5, %v2245_v8 }
 0x433   : > { %v2314_v0 = vmul.f32 %v9139_v29, %v2294_v61 }
 0x434   : > { %v2445_v5 = vpop.f32.mrf.mxu3  ;;  %v2247_v22 = vsub.f32 1.5, %v2246_v21 }
 0x435   : > { %v2334_v32 = vadd.f32 %v9151_v41, %v2314_v0  ;;  %v2446_v19 = vadd.f32 %v9235_v46, %v2445_v5 }
 0x436   : > { %v2248_v63 = vmul.f32 %v7910_v51, %v2247_v22 }
 0x437   : > { %v2350_v10 = vmax.f32 %v2334_v32, 0.0 }
 0x438   : > { %v2252_v6 = vsel %vm2251_vm8, %v7910_v51, %v2248_v63 }
 0x439   : > { %v2360_v25 = vpack.c.bf16 %v2350_v10, %v2349_v62  ;;  %v2295_v20 = vmul.f32 %v2252_v6, %v9181_v40 }
 0x43b   : > { %2464 = vmatmul.bf16.gmra.mxu3 %v2360_v25  ;;  %v2315_v48 = vmul.f32 %v9139_v29, %v2295_v20 }
 0x43c   : > { %v2447_v1 = vpop.f32.mrf.mxu3 }
 0x43d   : > { %v2448_v13 = vadd.f32 %v9235_v46, %v2447_v1  ;;  %v2335_v40 = vadd.f32 %v9151_v41, %v2315_v48 }
 0x43f   : > { %v2481_v14 = vpack.c.bf16 %v2448_v13, %v2446_v19  ;;  %v2351_v61 = vmax.f32 %v2335_v40, 0.0 }
 0x441   : > { %2569 = vmatmul.bf16.gmra.mxu1 %v2481_v14 }
 0x444   : > { %v2450_v17 = vpop.f32.mrf.mxu3 }
 0x445   : > { %v2451_v59 = vadd.f32 %v9235_v46, %v2450_v17 }
 0x44c   : > { %v2452_v28 = vpop.f32.mrf.mxu3 }
 0x44d   : > { %v2453_v3 = vadd.f32 %v9235_v46, %v2452_v28 }
 0x44f   : > { %v2482_v33 = vpack.c.bf16 %v2453_v3, %v2451_v59 }
 0x451   : > { %2574 = vmatmul.bf16.gmra.mxu1 %v2482_v33 }
 0x474   : > { %v2086_v52 = vpop.xlane.xlu1 %2085 }
 0x475   : > { %v2104_v18 = vmul.f32 %v2086_v52, %v8799_v31 }
 0x477   : > { %v2120_v7 = vadd.f32 1e-05, %v2104_v18 }
 0x479   : > { %7911 = vrsqrt.f32 %v2120_v7  ;;  %vm2259_vm10 = vweird.f32 %v2120_v7 }
 0x47c   : > { %v2088_v47 = vpop.xlane.xlu2 %2087 }
 0x47d   : > { %v2105_v27 = vmul.f32 %v2088_v47, %v8799_v31 }
 0x47f   : > { %v7912_v49 = vpop.eup %7911  ;;  %v2121_v37 = vadd.f32 1e-05, %v2105_v27 }
 0x480   : > { %v2254_v30 = vmul.f32 %v7912_v49, %v2120_v7  ;;  %vm2260_vm9 = vweird.f32 %v7912_v49 }
 0x481   : > { %7913 = vrsqrt.f32 %v2121_v37  ;;  %vm2261_vm11 = vmor %vm2259_vm10, %vm2260_vm9  ;;  %vm2269_vm13 = vweird.f32 %v2121_v37 }
 0x482   : > { %v2255_v26 = vmul.f32 %v7912_v49, %v2254_v30 }
 0x484   : > { %v2256_v38 = vmul.f32 0.5, %v2255_v26  ;;  %v2090_v39 = vpop.xlane.xlu0 %2089 }
 0x485   : > { %v2106_v43 = vmul.f32 %v2090_v39, %v8799_v31 }
 0x486   : > { %v2257_v16 = vsub.f32 1.5, %v2256_v38 }
 0x487   : > { %v7914_v44 = vpop.eup %7913  ;;  %v2122_v15 = vadd.f32 1e-05, %v2106_v43 }
 0x488   : > { %v2258_v23 = vmul.f32 %v7912_v49, %v2257_v16  ;;  %v2264_v60 = vmul.f32 %v7914_v44, %v2121_v37  ;;  %vm2270_vm12 = vweird.f32 %v7914_v44 }
 0x489   : > { %7915 = vrsqrt.f32 %v2122_v15  ;;  %vm2271_vm14 = vmor %vm2269_vm13, %vm2270_vm12  ;;  %vm2279_vm0 = vweird.f32 %v2122_v15 }
 0x48a   : > { %v2262_v12 = vsel %vm2261_vm11, %v7912_v49, %v2258_v23  ;;  %v2265_v42 = vmul.f32 %v7914_v44, %v2264_v60 }
 0x48b   : > { %v2296_v54 = vmul.f32 %v2262_v12, %v9199_v11 }
 0x48c   : > { %v2266_v50 = vmul.f32 0.5, %v2265_v42 }
 0x48d   : > { %v2316_v55 = vmul.f32 %v9139_v29, %v2296_v54 }
 0x48e   : > { %v2267_v56 = vsub.f32 1.5, %v2266_v50  ;;  %v7714_v50 = vld [vmem:[%s8627_s13 + $0x38] sm:$0xff] }
 0x48f   : > { %v7916_v57 = vpop.eup %7915  ;;  %v2336_v53 = vadd.f32 %v9151_v41, %v2316_v55  ;;  %3174 = vmatpush.bf16.msra.mxu2 %v7714_v50  ;;  %v7707_v50 = vld [vmem:[%s8627_s13] sm:$0xff] }
 0x490   : > { %v2268_v35 = vmul.f32 %v7914_v44, %v2267_v56  ;;  %v2274_v58 = vmul.f32 %v7916_v57, %v2122_v15  ;;  %vm2280_vm15 = vweird.f32 %v7916_v57 }
 0x491   : > { %v2352_v0 = vmax.f32 %v2336_v53, 0.0  ;;  %vm2281_vm1 = vmor %vm2279_vm0, %vm2280_vm15 }
 0x492   : > { %v2272_v4 = vsel %vm2271_vm14, %v7914_v44, %v2268_v35  ;;  %v2275_v5 = vmul.f32 %v7916_v57, %v2274_v58 }
 0x493   : > { %v2361_v32 = vpack.c.bf16 %v2352_v0, %v2351_v61  ;;  %v2297_v62 = vmul.f32 %v2272_v4, %v9206_v34 }
 0x494   : > { %v2276_v11 = vmul.f32 0.5, %v2275_v5 }
 0x495   : > { %2469 = vmatmul.bf16.gmra.mxu3 %v2361_v32  ;;  %v2317_v1 = vmul.f32 %v9139_v29, %v2297_v62 }
 0x496   : > { %v2277_v10 = vsub.f32 1.5, %v2276_v11 }
 0x497   : > { %v2337_v17 = vadd.f32 %v9151_v41, %v2317_v1 }
 0x498   : > { %v2278_v25 = vmul.f32 %v7916_v57, %v2277_v10  ;;  %v7713_v10 = vld [vmem:[%s8627_s13 + $0x30] sm:$0xff] }
 0x499   : > { %v2353_v3 = vmax.f32 %v2337_v17, 0.0  ;;  %3175 = vmatpush.bf16.msra.mxu2 %v7713_v10 }
 0x49a   : > { %v2282_v19 = vsel %vm2281_vm1, %v7916_v57, %v2278_v25 }
 0x49b   : > { %v2298_v13 = vmul.f32 %v2282_v19, %v9216_v36  ;;  %v7712_v19 = vld [vmem:[%s8627_s13 + $0x28] sm:$0xff] }
 0x49d   : > { %v2318_v14 = vmul.f32 %v9139_v29, %v2298_v13  ;;  %3176 = vmatpush.bf16.msra.mxu2 %v7712_v19 }
 0x49e   : > { %v2455_v28 = vpop.f32.mrf.mxu3 }
 0x49f   : > { %v2338_v59 = vadd.f32 %v9151_v41, %v2318_v14  ;;  %v2456_v45 = vadd.f32 %v9235_v46, %v2455_v28  ;;  %v7711_v28 = vld [vmem:[%s8627_s13 + $0x20] sm:$0xff] }
 0x4a1   : > { %v2354_v34 = vmax.f32 %v2338_v59, 0.0  ;;  %3177 = vmatpush.bf16.msra.mxu2 %v7711_v28 }
 0x4a3   : > { %v2362_v33 = vpack.c.bf16 %v2354_v34, %v2353_v3  ;;  %v7710_v34 = vld [vmem:[%s8627_s13 + $0x18] sm:$0xff] }
 0x4a5   : > { %2474 = vmatmul.bf16.gmra.mxu3 %v2362_v33  ;;  %3178 = vmatpush.bf16.msra.mxu2 %v7710_v34 }
 0x4a6   : > { %v2457_v2 = vpop.f32.mrf.mxu3 }
 0x4a7   : > { %v2458_v9 = vadd.f32 %v9235_v46, %v2457_v2 }
 0x4a9   : > { %v2483_v51 = vpack.c.bf16 %v2458_v9, %v2456_v45 }
 0x4ab   : > { %2579 = vmatmul.bf16.gmra.mxu1 %v2483_v51  ;;  %v7709_v51 = vld [vmem:[%s8627_s13 + $0x10] sm:$0xff] }
 0x4ac   : > { %3179 = vmatpush.bf16.msra.mxu2 %v7709_v51 }
 0x4ae   : > { %v2460_v36 = vpop.f32.mrf.mxu3  ;;  %v2565_v29 = vpop.f32.mrf.mxu1 }
 0x4af   : > { %v2566_v8 = vadd.f32 %v9268_v24, %v2565_v29  ;;  %v2461_v18 = vadd.f32 %v9235_v46, %v2460_v36 }
 0x4b1   : > { %2605 = vadd.xlane.f32.xlu1 %v2566_v8 }
 0x4b6   : > { %v2462_v52 = vpop.f32.mrf.mxu3  ;;  %v2567_v41 = vpop.f32.mrf.mxu1 }
 0x4b7   : > { %v2463_v21 = vadd.f32 %v9235_v46, %v2462_v52  ;;  %v2568_v7 = vadd.f32 %v9268_v24, %v2567_v41 }
 0x4b9   : > { %2607 = vadd.xlane.f32.xlu2 %v2568_v7  ;;  %v2484_v22 = vpack.c.bf16 %v2463_v21, %v2461_v18 }
 0x4bb   : > { %2584 = vmatmul.bf16.gmra.mxu1 %v2484_v22 }
 0x4be   : > { %v2465_v47 = vpop.f32.mrf.mxu3  ;;  %v2570_v27 = vpop.f32.mrf.mxu1 }
 0x4bf   : > { %v2571_v63 = vadd.f32 %v9268_v24, %v2570_v27  ;;  %v2466_v30 = vadd.f32 %v9235_v46, %v2465_v47 }
 0x4c1   : > { %2609 = vadd.xlane.f32.xlu0 %v2571_v63 }
 0x4c6   : > { %v2467_v49 = vpop.f32.mrf.mxu3  ;;  %v2572_v37 = vpop.f32.mrf.mxu1 }
 0x4c7   : > { %v2468_v6 = vadd.f32 %v9235_v46, %v2467_v49  ;;  %v2573_v26 = vadd.f32 %v9268_v24, %v2572_v37  ;;  %v7706_v49 = vld [vmem:[%s12132_s10 + $0x38] sm:$0xff]  ;;  %v7705_v37 = vld [vmem:[%s12132_s10 + $0x30] sm:$0xff] }
 0x4c8   : > { %3057 = vmatpush.bf16.msrb.mxu0 %v7706_v49  ;;  %v9399_v49 = vld [vmem:[%s12133_s11] ss:$0 sm:$0xff] }
 0x4c9   : > { %2611 = vadd.xlane.f32.xlu1 %v2573_v26  ;;  %v2485_v38 = vpack.c.bf16 %v2468_v6, %v2466_v30  ;;  %v7704_v30 = vld [vmem:[%s12132_s10 + $0x28] sm:$0xff]  ;;  %v7703_v6 = vld [vmem:[%s12132_s10 + $0x20] sm:$0xff] }
 0x4cb   : > { %2589 = vmatmul.bf16.gmra.mxu1 %v2485_v38  ;;  %v7701_v38 = vld [vmem:[%s12132_s10 + $0x10] sm:$0xff] }
 0x4cc   : > { %3058 = vmatpush.bf16.msrb.mxu0 %v7705_v37 }
 0x4ce   : > { %v2575_v39 = vpop.f32.mrf.mxu1 }
 0x4cf   : > { %v9279_v43 = vadd.f32 %v9268_v24, %v2575_v39  ;;  %v7708_v39 = vld [vmem:[%s8627_s13 + $0x8] sm:$0xff] }
 0x4d0   : > { %3059 = vmatpush.bf16.msrb.mxu0 %v7704_v30  ;;  %3180 = vmatpush.bf16.msra.mxu2 %v7708_v39 }
 0x4d1   : > { %2613 = vadd.xlane.f32.xlu2 %v9279_v43 }
 0x4d4   : > { %3060 = vmatpush.bf16.msrb.mxu0 %v7703_v6  ;;  %3181 = vmatpush.bf16.msra.mxu2 %v7707_v50 }
 0x4d6   : > { %v2577_v20 = vpop.f32.mrf.mxu1 }
 0x4d7   : > { %v9283_v16 = vadd.f32 %v9268_v24, %v2577_v20 }
 0x4d9   : > { %2615 = vadd.xlane.f32.xlu0 %v9283_v16 }
 0x518   : > { %v2470_v44 = vpop.f32.mrf.mxu3 }
 0x519   : > { %v2471_v23 = vadd.f32 %v9235_v46, %v2470_v44 }
 0x520   : > { %v2472_v15 = vpop.f32.mrf.mxu3 }
 0x521   : > { %v2473_v60 = vadd.f32 %v9235_v46, %v2472_v15  ;;  %v7700_v15 = vld [vmem:[%s12132_s10 + $0x8] sm:$0xff] }
 0x523   : > { %v2486_v48 = vpack.c.bf16 %v2473_v60, %v2471_v23 }
 0x524   : > { %v2606_v12 = vpop.xlane.xlu1 %2605 }
 0x525   : > { %v2637_v42 = vmul.f32 %v2606_v12, %v8799_v31  ;;  %2594 = vmatmul.bf16.gmra.mxu1 %v2486_v48 }
 0x527   : > { %v9289_v54 = vsub.f32 %v2566_v8, %v2637_v42 }
 0x528   : > { %v2475_v55 = vpop.f32.mrf.mxu3  ;;  %v2580_v40 = vpop.f32.mrf.mxu1 }
 0x529   : > { %v9293_v56 = vadd.f32 %v9268_v24, %v2580_v40  ;;  %v2669_v57 = vmul.f32 %v9289_v54, %v9289_v54  ;;  %v2476_v4 = vadd.f32 %v9235_v46, %v2475_v55  ;;  %v7699_v55 = vld [vmem:[%s12132_s10] sm:$0xff] }
 0x52b   : > { %2685 = vadd.xlane.f32.xlu1 %v2669_v57  ;;  %2617 = vadd.xlane.f32.xlu0 %v9293_v56 }
 0x52c   : > { %v2608_v53 = vpop.xlane.xlu2 %2607 }
 0x52d   : > { %v2638_v35 = vmul.f32 %v2608_v53, %v8799_v31 }
 0x52f   : > { %v9299_v58 = vsub.f32 %v2568_v7, %v2638_v35 }
 0x530   : > { %v2477_v61 = vpop.f32.mrf.mxu3  ;;  %v2582_v0 = vpop.f32.mrf.mxu1 }
 0x531   : > { %v2478_v5 = vadd.f32 %v9235_v46, %v2477_v61  ;;  %v2670_v32 = vmul.f32 %v9299_v58, %v9299_v58  ;;  %v9306_v11 = vadd.f32 %v9268_v24, %v2582_v0 }
 0x533   : > { %v2487_v62 = vpack.c.bf16 %v2478_v5, %v2476_v4  ;;  %2687 = vadd.xlane.f32.xlu2 %v2670_v32  ;;  %2619 = vadd.xlane.f32.xlu1 %v9306_v11 }
 0x534   : > { %v2610_v25 = vpop.xlane.xlu0 %2609 }
 0x535   : > { %v2639_v1 = vmul.f32 %v2610_v25, %v8799_v31  ;;  %2599 = vmatmul.bf16.gmra.mxu1 %v2487_v62 }
 0x537   : > { %v9312_v46 = vsub.f32 %v2571_v63, %v2639_v1 }
 0x538   : > { %v2585_v13 = vpop.f32.mrf.mxu1 }
 0x539   : > { %v9315_v14 = vadd.f32 %v9268_v24, %v2585_v13  ;;  %v2671_v17 = vmul.f32 %v9312_v46, %v9312_v46 }
 0x53b   : > { %2621 = vadd.xlane.f32.xlu1 %v9315_v14  ;;  %2689 = vadd.xlane.f32.xlu2 %v2671_v17 }
 0x53c   : > { %v2612_v59 = vpop.xlane.xlu1 %2611 }
 0x53d   : > { %v2640_v3 = vmul.f32 %v2612_v59, %v8799_v31 }
 0x53f   : > { %v9323_v33 = vsub.f32 %v2573_v26, %v2640_v3  ;;  %v7702_v26 = vld [vmem:[%s12132_s10 + $0x18] sm:$0xff] }
 0x540   : > { %v2587_v2 = vpop.f32.mrf.mxu1  ;;  %3061 = vmatpush.bf16.msrb.mxu0 %v7702_v26 }
 0x541   : > { %v2672_v45 = vmul.f32 %v9323_v33, %v9323_v33  ;;  %v9328_v9 = vadd.f32 %v9268_v24, %v2587_v2 }
 0x543   : > { %2691 = vadd.xlane.f32.xlu0 %v2672_v45  ;;  %2623 = vadd.xlane.f32.xlu2 %v9328_v9 }
 0x544   : > { %v2614_v36 = vpop.xlane.xlu2 %2613  ;;  %3062 = vmatpush.bf16.msrb.mxu0 %v7701_v38 }
 0x545   : > { %v2641_v29 = vmul.f32 %v2614_v36, %v8799_v31 }
 0x547   : > { %v9334_v8 = vsub.f32 %v9279_v43, %v2641_v29 }
 0x548   : > { %v2590_v52 = vpop.f32.mrf.mxu1  ;;  %3063 = vmatpush.bf16.msrb.mxu0 %v7700_v15 }
 0x549   : > { %v9337_v41 = vadd.f32 %v9268_v24, %v2590_v52  ;;  %v2673_v18 = vmul.f32 %v9334_v8, %v9334_v8 }
 0x54b   : > { %2693 = vadd.xlane.f32.xlu0 %v2673_v18  ;;  %2625 = vadd.xlane.f32.xlu2 %v9337_v41 }
 0x54c   : > { %v2616_v21 = vpop.xlane.xlu0 %2615  ;;  %3064 = vmatpush.bf16.msrb.mxu0 %v7699_v55 }
 0x54d   : > { %v2642_v7 = vmul.f32 %v2616_v21, %v8799_v31 }
 0x54f   : > { %v9344_v22 = vsub.f32 %v9283_v16, %v2642_v7 }
 0x550   : > { %v2592_v47 = vpop.f32.mrf.mxu1 }
 0x551   : > { %v9347_v27 = vadd.f32 %v9268_v24, %v2592_v47  ;;  %v2674_v63 = vmul.f32 %v9344_v22, %v9344_v22 }
 0x553   : > { %2627 = vadd.xlane.f32.xlu0 %v9347_v27  ;;  %2695 = vadd.xlane.f32.xlu1 %v2674_v63 }
 0x59e   : > { %v2686_v43 = vpop.xlane.xlu1 %2685  ;;  %v2618_v20 = vpop.xlane.xlu0 %2617 }
 0x59f   : > { %v2717_v16 = vmul.f32 %v2686_v43, %v8799_v31  ;;  %v2643_v44 = vmul.f32 %v2618_v20, %v8799_v31 }
 0x5a1   : > { %v2733_v23 = vadd.f32 1e-05, %v2717_v16  ;;  %v9363_v60 = vsub.f32 %v9293_v56, %v2643_v44  ;;  %v9411_v44 = vld [vmem:[%s12134_s15] ss:$0 sm:$0xff] }
 0x5a2   : > { %v2595_v48 = vpop.f32.mrf.mxu1 }
 0x5a3   : > { %7917 = vrsqrt.f32 %v2733_v23  ;;  %v9366_v12 = vadd.f32 %v9268_v24, %v2595_v48  ;;  %v2675_v42 = vmul.f32 %v9363_v60, %v9363_v60  ;;  %vm2755_vm3 = vweird.f32 %v2733_v23 }
 0x5a5   : > { %2629 = vadd.xlane.f32.xlu0 %v9366_v12  ;;  %2697 = vadd.xlane.f32.xlu1 %v2675_v42 }
 0x5a6   : > { %v2688_v40 = vpop.xlane.xlu2 %2687  ;;  %v2620_v57 = vpop.xlane.xlu1 %2619 }
 0x5a7   : > { %v2718_v56 = vmul.f32 %v2688_v40, %v8799_v31  ;;  %v2644_v53 = vmul.f32 %v2620_v57, %v8799_v31 }
 0x5a9   : > { %v7918_v35 = vpop.eup %7917  ;;  %v2734_v61 = vadd.f32 1e-05, %v2718_v56  ;;  %v9376_v0 = vsub.f32 %v9306_v11, %v2644_v53 }
 0x5aa   : > { %v2750_v4 = vmul.f32 %v7918_v35, %v2733_v23  ;;  %v2597_v5 = vpop.f32.mrf.mxu1  ;;  %vm2756_vm2 = vweird.f32 %v7918_v35 }
 0x5ab   : > { %7919 = vrsqrt.f32 %v2734_v61  ;;  %v2676_v32 = vmul.f32 %v9376_v0, %v9376_v0  ;;  %v9381_v62 = vadd.f32 %v9268_v24, %v2597_v5  ;;  %vm2757_vm4 = vmor %vm2755_vm3, %vm2756_vm2  ;;  %vm2765_vm6 = vweird.f32 %v2734_v61 }
 0x5ac   : > { %v2751_v10 = vmul.f32 %v7918_v35, %v2750_v4 }
 0x5ad   : > { %2699 = vadd.xlane.f32.xlu2 %v2676_v32  ;;  %2631 = vadd.xlane.f32.xlu1 %v9381_v62  ;;  %v7721_v32 = vld [vmem:[%s12137_s16 + $0x30] sm:$0xff] }
 0x5ae   : > { %v2752_v25 = vmul.f32 0.5, %v2751_v10  ;;  %v2622_v1 = vpop.xlane.xlu1 %2621  ;;  %v2690_v19 = vpop.xlane.xlu2 %2689 }
 0x5af   : > { %v2645_v13 = vmul.f32 %v2622_v1, %v8799_v31  ;;  %v2719_v11 = vmul.f32 %v2690_v19, %v8799_v31 }
 0x5b0   : > { %v2753_v17 = vsub.f32 1.5, %v2752_v25 }
 0x5b1   : > { %v7920_v28 = vpop.eup %7919  ;;  %v9387_v59 = vsub.f32 %v9315_v14, %v2645_v13  ;;  %v2735_v3 = vadd.f32 1e-05, %v2719_v11 }
 0x5b2   : > { %v2754_v34 = vmul.f32 %v7918_v35, %v2753_v17  ;;  %v2760_v2 = vmul.f32 %v7920_v28, %v2734_v61  ;;  %v2600_v45 = vpop.f32.mrf.mxu1  ;;  %vm2766_vm5 = vweird.f32 %v7920_v28 }
 0x5b3   : > { %7921 = vrsqrt.f32 %v2735_v3  ;;  %v9390_v51 = vadd.f32 %v9268_v24, %v2600_v45  ;;  %v2677_v36 = vmul.f32 %v9387_v59, %v9387_v59  ;;  %vm2767_vm7 = vmor %vm2765_vm6, %vm2766_vm5  ;;  %vm2775_vm9 = vweird.f32 %v2735_v3  ;;  %v7722_v45 = vld [vmem:[%s12137_s16 + $0x38] sm:$0xff] }
 0x5b4   : > { %v2758_v29 = vsel %vm2757_vm4, %v7918_v35, %v2754_v34  ;;  %v2761_v52 = vmul.f32 %v7920_v28, %v2760_v2  ;;  %3939 = vmatpush.bf16.msra.mxu3 %v7722_v45 }
 0x5b5   : > { %2701 = vadd.xlane.f32.xlu2 %v2677_v36  ;;  %2633 = vadd.xlane.f32.xlu1 %v9390_v51  ;;  %v2909_v7 = vmul.f32 %v2758_v29, %v9289_v54 }
 0x5b6   : > { %v2762_v14 = vmul.f32 0.5, %v2761_v52  ;;  %v2624_v18 = vpop.xlane.xlu2 %2623  ;;  %v2692_v21 = vpop.xlane.xlu0 %2691 }
 0x5b7   : > { %v2646_v47 = vmul.f32 %v2624_v18, %v8799_v31  ;;  %v2720_v63 = vmul.f32 %v2692_v21, %v8799_v31  ;;  %v2929_v16 = vmul.f32 %v9399_v49, %v2909_v7 }
 0x5b8   : > { %v2763_v37 = vsub.f32 1.5, %v2762_v14  ;;  %3940 = vmatpush.bf16.msra.mxu3 %v7721_v32 }
 0x5b9   : > { %v7922_v30 = vpop.eup %7921  ;;  %v9402_v6 = vsub.f32 %v9328_v9, %v2646_v47  ;;  %v2736_v26 = vadd.f32 1e-05, %v2720_v63  ;;  %v2949_v57 = vadd.f32 %v9411_v44, %v2929_v16 }
 0x5ba   : > { %v2764_v38 = vmul.f32 %v7920_v28, %v2763_v37  ;;  %v2770_v39 = vmul.f32 %v7922_v30, %v2735_v3  ;;  %v2602_v43 = vpop.f32.mrf.mxu1  ;;  %vm2776_vm8 = vweird.f32 %v7922_v30 }
 0x5bb   : > { %7923 = vrsqrt.f32 %v2736_v26  ;;  %v9405_v54 = vadd.f32 %v9268_v24, %v2602_v43  ;;  %v2678_v20 = vmul.f32 %v9402_v6, %v9402_v6  ;;  %vm9423_vm10 = vmor %vm2775_vm9, %vm2776_vm8  ;;  %v2965_v25 = vmax.f32 %v2949_v57, 0.0 }
 0x5bc   : > { %v2768_v15 = vsel %vm2767_vm7, %v7920_v28, %v2764_v38  ;;  %v2771_v9 = vmul.f32 %v7922_v30, %v2770_v39  ;;  %vm2785_vm12 = vweird.f32 %v2736_v26 }
 0x5bd   : > { %v2910_v23 = vmul.f32 %v2768_v15, %v9299_v58  ;;  %2635 = vadd.xlane.f32.xlu2 %v9405_v54  ;;  %2703 = vadd.xlane.f32.xlu0 %v2678_v20 }
 0x5be   : > { %v2772_v48 = vmul.f32 0.5, %v2771_v9  ;;  %v2626_v42 = vpop.xlane.xlu2 %2625  ;;  %v2694_v50 = vpop.xlane.xlu0 %2693 }
 0x5bf   : > { %v2647_v24 = vmul.f32 %v2626_v42, %v8799_v31  ;;  %v2721_v55 = vmul.f32 %v2694_v50, %v8799_v31  ;;  %v2930_v40 = vmul.f32 %v9399_v49, %v2910_v23 }
 0x5c0   : > { %v2773_v56 = vsub.f32 1.5, %v2772_v48 }
 0x5c1   : > { %v7924_v53 = vpop.eup %7923  ;;  %v9420_v35 = vsub.f32 %v9337_v41, %v2647_v24  ;;  %v2737_v58 = vadd.f32 1e-05, %v2721_v55  ;;  %v2950_v61 = vadd.f32 %v9411_v44, %v2930_v40 }
 0x5c2   : > { %v2774_v4 = vmul.f32 %v7922_v30, %v2773_v56  ;;  %v2780_v5 = vmul.f32 %v7924_v53, %v2736_v26  ;;  %vm2786_vm11 = vweird.f32 %v7924_v53 }
 0x5c3   : > { %7925 = vrsqrt.f32 %v2737_v58  ;;  %v2679_v10 = vmul.f32 %v9420_v35, %v9420_v35  ;;  %v2966_v1 = vmax.f32 %v2950_v61, 0.0  ;;  %vm2787_vm13 = vmor %vm2785_vm12, %vm2786_vm11  ;;  %vm2795_vm15 = vweird.f32 %v2737_v58 }
 0x5c4   : > { %v2778_v41 = vsel %vm9423_vm10, %v7922_v30, %v2774_v4  ;;  %v2781_v19 = vmul.f32 %v7924_v53, %v2780_v5 }
 0x5c5   : > { %2705 = vadd.xlane.f32.xlu0 %v2679_v10  ;;  %v2981_v13 = vpack.c.bf16 %v2966_v1, %v2965_v25  ;;  %v2911_v2 = vmul.f32 %v2778_v41, %v9312_v46 }
 0x5c6   : > { %v2782_v11 = vmul.f32 0.5, %v2781_v19  ;;  %v2696_v17 = vpop.xlane.xlu1 %2695  ;;  %v2628_v28 = vpop.xlane.xlu0 %2627 }
 0x5c7   : > { %v2722_v3 = vmul.f32 %v2696_v17, %v8799_v31  ;;  %v2648_v34 = vmul.f32 %v2628_v28, %v8799_v31  ;;  %3065 = vmatmul.bf16.vlgmr.msrb.gmra.mxu0 %v2981_v13  ;;  %3182 = vmatmul.bf16.vlgmr.msra.gmra.mxu2 %v2981_v13  ;;  %v2931_v47 = vmul.f32 %v9399_v49, %v2911_v2 }
 0x5c8   : > { %v2783_v36 = vsub.f32 1.5, %v2782_v11  ;;  %v7720_v11 = vld [vmem:[%s12137_s16 + $0x28] sm:$0xff] }
 0x5c9   : > { %v7926_v29 = vpop.eup %7925  ;;  %v2738_v52 = vadd.f32 1e-05, %v2722_v3  ;;  %v9436_v14 = vsub.f32 %v9347_v27, %v2648_v34  ;;  %v2951_v38 = vadd.f32 %v9411_v44, %v2931_v47  ;;  %3941 = vmatpush.bf16.msra.mxu3 %v7720_v11 }
 0x5ca   : > { %v2784_v18 = vmul.f32 %v7924_v53, %v2783_v36  ;;  %v2790_v21 = vmul.f32 %v7926_v29, %v2737_v58  ;;  %vm2796_vm14 = vweird.f32 %v7926_v29 }
 0x5cb   : > { %7927 = vrsqrt.f32 %v2738_v52  ;;  %v2680_v7 = vmul.f32 %v9436_v14, %v9436_v14  ;;  %vm2797_vm0 = vmor %vm2795_vm15, %vm2796_vm14  ;;  %v2967_v15 = vmax.f32 %v2951_v38, 0.0  ;;  %vm2805_vm2 = vweird.f32 %v2738_v52 }
 0x5cc   : > { %v2788_v46 = vsel %vm2787_vm13, %v7924_v53, %v2784_v18  ;;  %v2791_v63 = vmul.f32 %v7926_v29, %v2790_v21 }
 0x5cd   : > { %2707 = vadd.xlane.f32.xlu1 %v2680_v7  ;;  %v2912_v37 = vmul.f32 %v2788_v46, %v9323_v33 }
 0x5ce   : > { %v2792_v30 = vmul.f32 0.5, %v2791_v63 }
 0x5cf   : > { %v2932_v27 = vmul.f32 %v9399_v49, %v2912_v37 }
 0x5d0   : > { %v2793_v39 = vsub.f32 1.5, %v2792_v30 }
 0x5d1   : > { %v7928_v26 = vpop.eup %7927  ;;  %v2952_v43 = vadd.f32 %v9411_v44, %v2932_v27 }
 0x5d2   : > { %v2794_v20 = vmul.f32 %v7926_v29, %v2793_v39  ;;  %v2800_v16 = vmul.f32 %v7928_v26, %v2738_v52  ;;  %vm2806_vm1 = vweird.f32 %v7928_v26 }
 0x5d3   : > { %v2968_v9 = vmax.f32 %v2952_v43, 0.0  ;;  %vm2807_vm3 = vmor %vm2805_vm2, %vm2806_vm1 }
 0x5d4   : > { %v2798_v23 = vsel %vm2797_vm0, %v7926_v29, %v2794_v20  ;;  %v2801_v48 = vmul.f32 %v7928_v26, %v2800_v16  ;;  %v7719_v20 = vld [vmem:[%s12137_s16 + $0x20] sm:$0xff] }
 0x5d5   : > { %v2982_v42 = vpack.c.bf16 %v2968_v9, %v2967_v15  ;;  %v2913_v50 = vmul.f32 %v2798_v23, %v9334_v8  ;;  %3942 = vmatpush.bf16.msra.mxu3 %v7719_v20 }
 0x5d6   : > { %v2802_v33 = vmul.f32 0.5, %v2801_v48 }
 0x5d7   : > { %3070 = vmatmul.bf16.gmra.mxu0 %v2982_v42  ;;  %3187 = vmatmul.bf16.gmra.mxu2 %v2982_v42  ;;  %v2933_v40 = vmul.f32 %v9399_v49, %v2913_v50 }
 0x5d8   : > { %v2803_v24 = vsub.f32 1.5, %v2802_v33 }
 0x5d9   : > { %v2953_v58 = vadd.f32 %v9411_v44, %v2933_v40 }
 0x5da   : > { %v2804_v55 = vmul.f32 %v7928_v26, %v2803_v24 }
 0x5db   : > { %v2969_v4 = vmax.f32 %v2953_v58, 0.0 }
 0x5dc   : > { %v2808_v57 = vsel %vm2807_vm3, %v7928_v26, %v2804_v55 }
 0x5dd   : > { %v2914_v56 = vmul.f32 %v2808_v57, %v9344_v22 }
 0x5df   : > { %v2934_v53 = vmul.f32 %v9399_v49, %v2914_v56 }
 0x5e1   : > { %v2954_v61 = vadd.f32 %v9411_v44, %v2934_v53 }
 0x5e3   : > { %v2970_v8 = vmax.f32 %v2954_v61, 0.0 }
 0x5e5   : > { %v2983_v5 = vpack.c.bf16 %v2970_v8, %v2969_v4 }
 0x5e7   : > { %3075 = vmatmul.bf16.gmra.mxu0 %v2983_v5  ;;  %3192 = vmatmul.bf16.gmra.mxu2 %v2983_v5 }
 0x618   : > { %v2698_v10 = vpop.xlane.xlu1 %2697  ;;  %v2630_v25 = vpop.xlane.xlu0 %2629 }
 0x619   : > { %v2723_v1 = vmul.f32 %v2698_v10, %v8799_v31  ;;  %v2649_v22 = vmul.f32 %v2630_v25, %v8799_v31 }
 0x61b   : > { %v2739_v41 = vadd.f32 1e-05, %v2723_v1  ;;  %v9455_v19 = vsub.f32 %v9366_v12, %v2649_v22 }
 0x61d   : > { %7929 = vrsqrt.f32 %v2739_v41  ;;  %v2681_v13 = vmul.f32 %v9455_v19, %v9455_v19  ;;  %vm2815_vm5 = vweird.f32 %v2739_v41 }
 0x61f   : > { %2709 = vadd.xlane.f32.xlu2 %v2681_v13 }
 0x620   : > { %v2700_v17 = vpop.xlane.xlu2 %2699  ;;  %v2632_v28 = vpop.xlane.xlu1 %2631 }
 0x621   : > { %v2724_v3 = vmul.f32 %v2700_v17, %v8799_v31  ;;  %v2650_v34 = vmul.f32 %v2632_v28, %v8799_v31 }
 0x623   : > { %v7930_v2 = vpop.eup %7929  ;;  %v2740_v45 = vadd.f32 1e-05, %v2724_v3  ;;  %v9463_v36 = vsub.f32 %v9381_v62, %v2650_v34 }
 0x624   : > { %v2810_v12 = vmul.f32 %v7930_v2, %v2739_v41  ;;  %vm2816_vm4 = vweird.f32 %v7930_v2 }
 0x625   : > { %7931 = vrsqrt.f32 %v2740_v45  ;;  %v2682_v29 = vmul.f32 %v9463_v36, %v9463_v36  ;;  %vm2817_vm6 = vmor %vm2815_vm5, %vm2816_vm4  ;;  %vm2825_vm8 = vweird.f32 %v2740_v45 }
 0x626   : > { %v2811_v52 = vmul.f32 %v7930_v2, %v2810_v12 }
 0x627   : > { %2711 = vadd.xlane.f32.xlu0 %v2682_v29 }
 0x628   : > { %v2812_v18 = vmul.f32 0.5, %v2811_v52  ;;  %v2702_v21 = vpop.xlane.xlu2 %2701  ;;  %v2634_v7 = vpop.xlane.xlu1 %2633 }
 0x629   : > { %v2725_v47 = vmul.f32 %v2702_v21, %v8799_v31  ;;  %v2651_v46 = vmul.f32 %v2634_v7, %v8799_v31 }
 0x62a   : > { %v2813_v63 = vsub.f32 1.5, %v2812_v18 }
 0x62b   : > { %v7932_v37 = vpop.eup %7931  ;;  %v2741_v62 = vadd.f32 1e-05, %v2725_v47  ;;  %v9470_v30 = vsub.f32 %v9390_v51, %v2651_v46 }
 0x62c   : > { %v2814_v27 = vmul.f32 %v7930_v2, %v2813_v63  ;;  %v2820_v38 = vmul.f32 %v7932_v37, %v2740_v45  ;;  %vm2826_vm7 = vweird.f32 %v7932_v37  ;;  %v9492_v45 = vld [vmem:[%s12138_s18] ss:$0 sm:$0xff] }
 0x62d   : > { %7933 = vrsqrt.f32 %v2741_v62  ;;  %v2683_v39 = vmul.f32 %v9470_v30, %v9470_v30  ;;  %vm2827_vm9 = vmor %vm2825_vm8, %vm2826_vm7  ;;  %vm2835_vm11 = vweird.f32 %v2741_v62 }
 0x62e   : > { %v2818_v26 = vsel %vm2817_vm6, %v7930_v2, %v2814_v27  ;;  %v2821_v43 = vmul.f32 %v7932_v37, %v2820_v38 }
 0x62f   : > { %2713 = vadd.xlane.f32.xlu1 %v2683_v39  ;;  %v2915_v48 = vmul.f32 %v2818_v26, %v9363_v60 }
 0x630   : > { %v2822_v16 = vmul.f32 0.5, %v2821_v43  ;;  %v2636_v15 = vpop.xlane.xlu2 %2635  ;;  %v2704_v9 = vpop.xlane.xlu0 %2703 }
 0x631   : > { %v2652_v23 = vmul.f32 %v2636_v15, %v8799_v31  ;;  %v2726_v51 = vmul.f32 %v2704_v9, %v8799_v31  ;;  %v2935_v56 = vmul.f32 %v9399_v49, %v2915_v48 }
 0x632   : > { %v2823_v42 = vsub.f32 1.5, %v2822_v16 }
 0x633   : > { %v7934_v33 = vpop.eup %7933  ;;  %v9479_v50 = vsub.f32 %v9405_v54, %v2652_v23  ;;  %v2742_v24 = vadd.f32 1e-05, %v2726_v51  ;;  %v2955_v5 = vadd.f32 %v9411_v44, %v2935_v56 }
 0x634   : > { %v2824_v55 = vmul.f32 %v7932_v37, %v2823_v42  ;;  %v2830_v40 = vmul.f32 %v7934_v33, %v2741_v62  ;;  %vm2836_vm10 = vweird.f32 %v7934_v33 }
 0x635   : > { %7935 = vrsqrt.f32 %v2742_v24  ;;  %v2684_v57 = vmul.f32 %v9479_v50, %v9479_v50  ;;  %vm2837_vm12 = vmor %vm2835_vm11, %vm2836_vm10  ;;  %vm2845_vm14 = vweird.f32 %v2742_v24 }
 0x636   : > { %v2828_v53 = vsel %vm2827_vm9, %v7932_v37, %v2824_v55  ;;  %v2831_v58 = vmul.f32 %v7934_v33, %v2830_v40 }
 0x637   : > { %2715 = vadd.xlane.f32.xlu2 %v2684_v57  ;;  %v2916_v60 = vmul.f32 %v2828_v53, %v9376_v0  ;;  %v2971_v0 = vmax.f32 %v2955_v5, 0.0 }
 0x638   : > { %v2832_v61 = vmul.f32 0.5, %v2831_v58  ;;  %v2706_v4 = vpop.xlane.xlu0 %2705 }
 0x639   : > { %v2727_v54 = vmul.f32 %v2706_v4, %v8799_v31  ;;  %v2936_v8 = vmul.f32 %v9399_v49, %v2916_v60 }
 0x63a   : > { %v2833_v32 = vsub.f32 1.5, %v2832_v61 }
 0x63b   : > { %v7936_v10 = vpop.eup %7935  ;;  %v2743_v25 = vadd.f32 1e-05, %v2727_v54  ;;  %v2956_v1 = vadd.f32 %v9411_v44, %v2936_v8 }
 0x63c   : > { %v2834_v22 = vmul.f32 %v7934_v33, %v2833_v32  ;;  %v2840_v41 = vmul.f32 %v7936_v10, %v2742_v24  ;;  %vm2846_vm13 = vweird.f32 %v7936_v10 }
 0x63d   : > { %7937 = vrsqrt.f32 %v2743_v25  ;;  %v2972_v13 = vmax.f32 %v2956_v1, 0.0  ;;  %vm2847_vm15 = vmor %vm2845_vm14, %vm2846_vm13  ;;  %vm2855_vm1 = vweird.f32 %v2743_v25 }
 0x63e   : > { %v2841_v11 = vmul.f32 %v7936_v10, %v2840_v41  ;;  %v2838_v17 = vsel %vm2837_vm12, %v7934_v33, %v2834_v22 }
 0x63f   : > { %v2984_v28 = vpack.c.bf16 %v2972_v13, %v2971_v0  ;;  %v2917_v29 = vmul.f32 %v2838_v17, %v9387_v59  ;;  %v9505_v59 = vld [vmem:[%s12139_s23] ss:$0 sm:$0xff]  ;;  %v7718_v17 = vld [vmem:[%s12137_s16 + $0x18] sm:$0xff] }
 0x640   : > { %v2842_v3 = vmul.f32 0.5, %v2841_v11  ;;  %v2708_v34 = vpop.xlane.xlu1 %2707  ;;  %3943 = vmatpush.bf16.msra.mxu3 %v7718_v17 }
 0x641   : > { %v2728_v2 = vmul.f32 %v2708_v34, %v8799_v31  ;;  %3080 = vmatmul.bf16.gmra.mxu0 %v2984_v28  ;;  %3197 = vmatmul.bf16.gmra.mxu2 %v2984_v28  ;;  %v2937_v62 = vmul.f32 %v9399_v49, %v2917_v29 }
 0x642   : > { %v2843_v12 = vsub.f32 1.5, %v2842_v3 }
 0x643   : > { %v7938_v52 = vpop.eup %7937  ;;  %v2744_v18 = vadd.f32 1e-05, %v2728_v2  ;;  %v2957_v20 = vadd.f32 %v9411_v44, %v2937_v62 }
 0x644   : > { %v2844_v21 = vmul.f32 %v7936_v10, %v2843_v12  ;;  %v2850_v7 = vmul.f32 %v7938_v52, %v2743_v25  ;;  %v3066_v47 = vpop.f32.mrf.mxu0  ;;  %vm2856_vm0 = vweird.f32 %v7938_v52 }
 0x645   : > { %7939 = vrsqrt.f32 %v2744_v18  ;;  %v9499_v46 = vadd.f32 %v9492_v45, %v3066_v47  ;;  %vm2857_vm2 = vmor %vm2855_vm1, %vm2856_vm0  ;;  %v2973_v24 = vmax.f32 %v2957_v20, 0.0  ;;  %vm2865_vm4 = vweird.f32 %v2744_v18 }
 0x646   : > { %v2848_v63 = vsel %vm2847_vm15, %v7936_v10, %v2844_v21  ;;  %v2851_v37 = vmul.f32 %v7938_v52, %v2850_v7 }
 0x647   : > { %6870 = vst [vmem:[%s9496_s26 + $0x8] sm:$0xff] %v9499_v46  ;;  %v2918_v27 = vmul.f32 %v2848_v63, %v9402_v6 }
 0x648   : > { %v2852_v38 = vmul.f32 0.5, %v2851_v37 }
 0x649   : > { %v2938_v39 = vmul.f32 %v9399_v49, %v2918_v27 }
 0x64a   : > { %v2853_v26 = vsub.f32 1.5, %v2852_v38  ;;  %v3183_v43 = vpop.f32.mrf.mxu2 }
 0x64b   : > { %v7940_v16 = vpop.eup %7939  ;;  %v9511_v15 = vadd.f32 %v9505_v59, %v3183_v43  ;;  %v2958_v9 = vadd.f32 %v9411_v44, %v2938_v39  ;;  %v7717_v39 = vld [vmem:[%s12137_s16 + $0x10] sm:$0xff] }
 0x64c   : > { %v2854_v23 = vmul.f32 %v7938_v52, %v2853_v26  ;;  %v2860_v51 = vmul.f32 %v7940_v16, %v2744_v18  ;;  %v3068_v48 = vpop.f32.mrf.mxu0  ;;  %vm2866_vm3 = vweird.f32 %v7940_v16  ;;  %3944 = vmatpush.bf16.msra.mxu3 %v7717_v39 }
 0x64d   : > { %v3271_v6 = vand.u32 2147483647, %v9511_v15  ;;  %v9516_v42 = vadd.f32 %v9492_v45, %v3068_v48  ;;  %v2974_v55 = vmax.f32 %v2958_v9, 0.0  ;;  %vm2867_vm5 = vmor %vm2865_vm4, %vm2866_vm3  ;;  %v3223_v9 = vmax.f32 %v9511_v15, 0.0 }
 0x64e   : > { %v2861_v33 = vmul.f32 %v7940_v16, %v2860_v51  ;;  %v2858_v40 = vsel %vm2857_vm2, %v7938_v52, %v2854_v23  ;;  %vm3239_vm7 = vcmp.ne.f32.partialorder %v9511_v15, %v9511_v15 }
 0x64f   : > { %v3287_v57 = vsub.f32 0.0, %v3271_v6  ;;  %6871 = vst [vmem:[%s9496_s26 + $0x28] sm:$0xff] %v9516_v42  ;;  %v2985_v53 = vpack.c.bf16 %v2974_v55, %v2973_v24  ;;  %v2919_v4 = vmul.f32 %v2858_v40, %v9420_v35  ;;  %v7716_v55 = vld [vmem:[%s12137_s16 + $0x8] sm:$0xff] }
 0x650   : > { %v2862_v56 = vmul.f32 0.5, %v2861_v33  ;;  %3945 = vmatpush.bf16.msra.mxu3 %v7716_v55 }
 0x651   : > { %v3303_v58 = vmul.f32 1.442695, %v3287_v57  ;;  %3085 = vmatmul.bf16.gmra.mxu0 %v2985_v53  ;;  %3202 = vmatmul.bf16.gmra.mxu2 %v2985_v53  ;;  %v2939_v1 = vmul.f32 %v9399_v49, %v2919_v4 }
 0x652   : > { %v2863_v60 = vsub.f32 1.5, %v2862_v56  ;;  %v3185_v61 = vpop.f32.mrf.mxu2 }
 0x653   : > { %7941 = vpow2.f32 %v3303_v58  ;;  %v9522_v54 = vadd.f32 %v9505_v59, %v3185_v61  ;;  %v2959_v3 = vadd.f32 %v9411_v44, %v2939_v1 }
 0x654   : > { %v2864_v8 = vmul.f32 %v7940_v16, %v2863_v60  ;;  %v3071_v5 = vpop.f32.mrf.mxu0 }
 0x655   : > { %v3272_v32 = vand.u32 2147483647, %v9522_v54  ;;  %v9526_v10 = vadd.f32 %v9492_v45, %v3071_v5  ;;  %v2975_v52 = vmax.f32 %v2959_v3, 0.0  ;;  %vm3240_vm9 = vcmp.ne.f32.partialorder %v9522_v54, %v9522_v54 }
 0x656   : > { %v2868_v25 = vsel %vm2867_vm5, %v7940_v16, %v2864_v8 }
 0x657   : > { %v3288_v22 = vsub.f32 0.0, %v3272_v32  ;;  %6872 = vst [vmem:[%s9496_s26 + $0x48] sm:$0xff] %v9526_v10  ;;  %v2920_v35 = vmul.f32 %v2868_v25, %v9436_v14  ;;  %v3224_v25 = vmax.f32 %v9522_v54, 0.0 }
 0x659   : > { %v7942_v41 = vpop.eup %7941  ;;  %v3305_v0 = vmul.f32 1.442695, %v3288_v22  ;;  %v2940_v13 = vmul.f32 %v9399_v49, %v2920_v35 }
 0x65a   : > { %v3335_v11 = vadd.f32 1.0, %v7942_v41  ;;  %v3188_v28 = vpop.f32.mrf.mxu2  ;;  %v3338_v34 = vmul.f32 -0.5, %v7942_v41  ;;  %v3341_v47 = vand.u32 2147483647, %v7942_v41 }
 0x65b   : > { %7943 = vpow2.f32 %v3305_v0  ;;  %v9536_v2 = vadd.f32 %v9505_v59, %v3188_v28  ;;  %v2960_v12 = vadd.f32 %v9411_v44, %v2940_v13 }
 0x65c   : > { %7945 = vlog2.f32 %v3335_v11  ;;  %v3073_v14 = vpop.f32.mrf.mxu0  ;;  %v3339_v21 = vadd.f32 1.0, %v3338_v34  ;;  %vm3342_vm6 = vcmp.lt.f32.partialorder %v3341_v47, 0.0004427343  ;;  %v3799_v34 = vmul.f32 %v9499_v46, %v9499_v46 }
 0x65d   : > { %v3273_v29 = vand.u32 2147483647, %v9536_v2  ;;  %v9541_v49 = vadd.f32 %v9492_v45, %v3073_v14  ;;  %v2976_v18 = vmax.f32 %v2960_v12, 0.0  ;;  %vm3241_vm11 = vcmp.ne.f32.partialorder %v9536_v2, %v9536_v2 }
 0x65e   : > { %v3340_v20 = vmul.f32 %v7942_v41, %v3339_v21  ;;  %v7715_v41 = vld [vmem:[%s12137_s16] sm:$0xff] }
 0x65f   : > { %v3289_v7 = vsub.f32 0.0, %v3273_v29  ;;  %6873 = vst [vmem:[%s9496_s26 + $0x68] sm:$0xff] %v9541_v49  ;;  %v2986_v63 = vpack.c.bf16 %v2976_v18, %v2975_v52  ;;  %3946 = vmatpush.bf16.msra.mxu3 %v7715_v41  ;;  %v3225_v18 = vmax.f32 %v9536_v2, 0.0 }
 0x661   : > { %v7944_v37 = vpop.eup %7943  ;;  %v3307_v62 = vmul.f32 1.442695, %v3289_v7  ;;  %3090 = vmatmul.bf16.gmra.mxu0 %v2986_v63  ;;  %3207 = vmatmul.bf16.gmra.mxu2 %v2986_v63 }
 0x662   : > { %v7946_v44 = vpop.eup %7945  ;;  %v3344_v27 = vadd.f32 1.0, %v7944_v37  ;;  %v3347_v38 = vmul.f32 -0.5, %v7944_v37  ;;  %v3190_v26 = vpop.f32.mrf.mxu2  ;;  %v3350_v56 = vand.u32 2147483647, %v7944_v37 }
 0x663   : > { %v3337_v43 = vmul.f32 0.6931472, %v7946_v44  ;;  %7947 = vpow2.f32 %v3307_v62  ;;  %v9547_v16 = vadd.f32 %v9505_v59, %v3190_v26 }
 0x664   : > { %7949 = vlog2.f32 %v3344_v27  ;;  %v3076_v23 = vpop.f32.mrf.mxu0  ;;  %v3348_v33 = vadd.f32 1.0, %v3347_v38  ;;  %vm3351_vm8 = vcmp.lt.f32.partialorder %v3350_v56, 0.0004427343 }
 0x665   : > { %v3343_v51 = vsel %vm3342_vm6, %v3340_v20, %v3337_v43  ;;  %v3274_v48 = vand.u32 2147483647, %v9547_v16  ;;  %v9552_v24 = vadd.f32 %v9492_v45, %v3076_v23  ;;  %v3800_v43 = vmul.f32 %v9516_v42, %v9516_v42 }
 0x666   : > { %v3479_v6 = vadd.f32 %v3343_v51, %v3223_v9  ;;  %v3349_v61 = vmul.f32 %v7944_v37, %v3348_v33  ;;  %v9594_v20 = vmul.f32 %v9526_v10, %v9526_v10  ;;  %v3226_v55 = vmax.f32 %v9547_v16, 0.0 }
 0x667   : > { %v3290_v40 = vsub.f32 0.0, %v3274_v48  ;;  %6874 = vst [vmem:[%s9496_s26 + $0x88] sm:$0xff] %v9552_v24  ;;  %vm3242_vm12 = vcmp.ne.f32.partialorder %v9547_v16, %v9547_v16 }
 0x668   : > { %v9558_v57 = vsel %vm3239_vm7, %v9511_v15, %v3479_v6 }
 0x669   : > { %v7948_v53 = vpop.eup %7947  ;;  %7951 = vlog2.f32 %v9558_v57  ;;  %v3309_v58 = vmul.f32 1.442695, %v3290_v40  ;;  %vm3550_vm13 = vcmp.eq.f32.partialorder %v9558_v57, inf  ;;  %vm3552_vm15 = vcmp.eq.f32.partialorder %v9558_v57, 0.0 }
 0x66a   : > { %v7950_v60 = vpop.eup %7949  ;;  %7953 = vrsqrt.f32 %v9558_v57  ;;  %v3353_v4 = vadd.f32 1.0, %v7948_v53  ;;  %v3193_v8 = vpop.f32.mrf.mxu2  ;;  %v3356_v32 = vmul.f32 -0.5, %v7948_v53  ;;  %v3359_v29 = vand.u32 2147483647, %v7948_v53 }
 0x66b   : > { %v3346_v5 = vmul.f32 0.6931472, %v7950_v60  ;;  %7955 = vpow2.f32 %v3309_v58  ;;  %v9565_v15 = vadd.f32 %v9505_v59, %v3193_v8 }
 0x66c   : > { %7957 = vlog2.f32 %v3353_v4  ;;  %v3078_v1 = vpop.f32.mrf.mxu0  ;;  %v3357_v17 = vadd.f32 1.0, %v3356_v32  ;;  %vm3360_vm10 = vcmp.lt.f32.partialorder %v3359_v29, 0.0004427343 }
 0x66d   : > { %v3352_v22 = vsel %vm3351_vm8, %v3349_v61, %v3346_v5  ;;  %v3275_v35 = vand.u32 2147483647, %v9565_v15  ;;  %v9571_v13 = vadd.f32 %v9492_v45, %v3078_v1  ;;  %vm3243_vm3 = vcmp.ne.f32.partialorder %v9565_v15, %v9565_v15 }
 0x66e   : > { %v3480_v0 = vadd.f32 %v3352_v22, %v3224_v25  ;;  %v3358_v27 = vmul.f32 %v7948_v53, %v3357_v17 }
 0x66f   : > { %v7952_v11 = vpop.eup %7951  ;;  %v3291_v28 = vsub.f32 0.0, %v3275_v35  ;;  %6875 = vst [vmem:[%s9496_s26 + $0xa8] sm:$0xff] %v9571_v13 }
 0x670   : > { %v7954_v3 = vpop.eup %7953  ;;  %v3512_v12 = vmul.f32 0.6931472, %v7952_v11  ;;  %v9578_v14 = vsel %vm3240_vm9, %v9522_v54, %v3480_v0 }
 0x671   : > { %v7956_v52 = vpop.eup %7955  ;;  %7959 = vlog2.f32 %v9578_v14  ;;  %v3311_v21 = vmul.f32 1.442695, %v3291_v28  ;;  %v3544_v7 = vmul.f32 %v7954_v3, %v9558_v57  ;;  %vm3562_vm0 = vcmp.eq.f32.partialorder %v9578_v14, inf }
 0x672   : > { %v7958_v47 = vpop.eup %7957  ;;  %v3783_v63 = vadd.f32 1.0, %v3512_v12  ;;  %6886 = vst [vmem:[%s9496_s26 + $0x10] sm:$0xff] %v3512_v12  ;;  %7961 = vrsqrt.f32 %v9578_v14  ;;  %v3362_v37 = vadd.f32 1.0, %v7956_v52  ;;  %v3365_v62 = vmul.f32 -0.5, %v7956_v52  ;;  %v3195_v54 = vpop.f32.mrf.mxu2 }
 0x673   : > { %v3355_v44 = vmul.f32 0.6931472, %v7958_v47  ;;  %7963 = vpow2.f32 %v3311_v21  ;;  %v9588_v38 = vadd.f32 %v9505_v59, %v3195_v54  ;;  %v3545_v26 = vmul.f32 %v7954_v3, %v3544_v7 }
 0x674   : > { %v3815_v39 = vsub.f32 %v3783_v63, %v3799_v34  ;;  %7965 = vlog2.f32 %v3362_v37  ;;  %v3366_v48 = vadd.f32 1.0, %v3365_v62  ;;  %v3368_v40 = vand.u32 2147483647, %v7956_v52 }
 0x675   : > { %v3361_v9 = vsel %vm3360_vm10, %v3358_v27, %v3355_v44  ;;  %v3276_v6 = vand.u32 2147483647, %v9588_v38  ;;  %v3546_v56 = vmul.f32 0.5, %v3545_v26  ;;  %vm3564_vm2 = vcmp.eq.f32.partialorder %v9578_v14, 0.0 }
 0x676   : > { %v3831_v23 = vsub.f32 %v3815_v39, %v9558_v57  ;;  %v3481_v51 = vadd.f32 %v3361_v9, %v3225_v18  ;;  %v3367_v22 = vmul.f32 %v7956_v52, %v3366_v48  ;;  %vm3369_vm14 = vcmp.lt.f32.partialorder %v3368_v40, 0.0004427343  ;;  %v1216_v39 = vld [vmem:[%s9616_s7] sm:$0xff] }
 0x677   : > { %v7960_v33 = vpop.eup %7959  ;;  %v3292_v4 = vsub.f32 0.0, %v3276_v6  ;;  %v3547_v5 = vsub.f32 1.5, %v3546_v56  ;;  %v3227_v6 = vmax.f32 %v9565_v15, 0.0  ;;  %vm3244_vm4 = vcmp.ne.f32.partialorder %v9588_v38, %v9588_v38 }
 0x678   : > { %v7962_v53 = vpop.eup %7961  ;;  %v3847_v58 = vmul.f32 -0.5, %v3831_v23  ;;  %v3514_v60 = vmul.f32 0.6931472, %v7960_v33  ;;  %v9604_v61 = vsel %vm3241_vm11, %v9536_v2, %v3481_v51 }
 0x679   : > { %v7964_v8 = vpop.eup %7963  ;;  %7967 = vlog2.f32 %v9604_v61  ;;  %v3556_v32 = vmul.f32 %v7962_v53, %v9578_v14  ;;  %v3548_v0 = vmul.f32 %v7954_v3, %v3547_v5  ;;  %v3313_v28 = vmul.f32 1.442695, %v3292_v4 }
 0x67a   : > { %v7966_v25 = vpop.eup %7965  ;;  %6902 = vst [vmem:[%s9496_s26 + $0x18] sm:$0xff] %v3847_v58  ;;  %v3784_v1 = vadd.f32 1.0, %v3514_v60  ;;  %7969 = vrsqrt.f32 %v9604_v61  ;;  %v3371_v35 = vadd.f32 1.0, %v7964_v8  ;;  %v3374_v41 = vmul.f32 -0.5, %v7964_v8 }
 0x67b   : > { %6887 = vst [vmem:[%s9496_s26 + $0x30] sm:$0xff] %v3514_v60  ;;  %v3364_v2 = vmul.f32 0.6931472, %v7966_v25  ;;  %v3557_v11 = vmul.f32 %v7962_v53, %v3556_v32  ;;  %v3549_v12 = vmul.f32 %v3548_v0, %v9558_v57  ;;  %v3553_v3 = vand.u32 2147483648, %v9558_v57 }
 0x67c   : > { %v3816_v17 = vsub.f32 %v3784_v1, %v3800_v43  ;;  %7971 = vlog2.f32 %v3371_v35  ;;  %v3375_v7 = vadd.f32 1.0, %v3374_v41  ;;  %v3377_v47 = vand.u32 2147483647, %v7964_v8 }
 0x67d   : > { %v3370_v34 = vsel %vm3369_vm14, %v3367_v22, %v3364_v2  ;;  %v3558_v29 = vmul.f32 0.5, %v3557_v11  ;;  %7973 = vpow2.f32 %v3313_v28  ;;  %v3551_v63 = vsel %vm3550_vm13, %v9558_v57, %v3549_v12  ;;  %v1217_v22 = vld [vmem:[%s9616_s7 + $0x8] sm:$0xff] }
 0x67e   : > { %v3832_v52 = vsub.f32 %v3816_v17, %v9578_v14  ;;  %v3482_v18 = vadd.f32 %v3370_v34, %v3226_v55  ;;  %v3554_v26 = vsel %vm3552_vm15, %v3553_v3, %v3551_v63  ;;  %v3376_v57 = vmul.f32 %v7964_v8, %v3375_v7 }
 0x67f   : > { %v7968_v21 = vpop.eup %7967  ;;  %v3559_v37 = vsub.f32 1.5, %v3558_v29  ;;  %v3735_v9 = vadd.f32 0.0001, %v3554_v26  ;;  %vm3378_vm1 = vcmp.lt.f32.partialorder %v3377_v47, 0.0004427343  ;;  %v3228_v7 = vmax.f32 %v9588_v38, 0.0 }
 0x680   : > { %v9625_v62 = vpop.eup %7969  ;;  %v3848_v54 = vmul.f32 -0.5, %v3832_v52  ;;  %v3516_v44 = vmul.f32 0.6931472, %v7968_v21  ;;  %v9631_v27 = vsel %vm3242_vm12, %v9547_v16, %v3482_v18  ;;  %v3803_v21 = vmul.f32 %v9552_v24, %v9552_v24 }
 0x681   : > { %7975 = vlog2.f32 %v9631_v27  ;;  %v3560_v43 = vmul.f32 %v7962_v53, %v3559_v37  ;;  %v3568_v23 = vmul.f32 %v9625_v62, %v9604_v61  ;;  %v3751_v55 = vmul.f32 %v3735_v9, %v1216_v39 }
 0x682   : > { %v7972_v51 = vpop.eup %7971  ;;  %6903 = vst [vmem:[%s9496_s26 + $0x38] sm:$0xff] %v3848_v54  ;;  %v3785_v48 = vadd.f32 1.0, %v3516_v44  ;;  %7977 = vrsqrt.f32 %v9631_v27  ;;  %v3565_v53 = vand.u32 2147483648, %v9578_v14  ;;  %vm3574_vm5 = vcmp.eq.f32.partialorder %v9604_v61, inf }
 0x683   : > { %6888 = vst [vmem:[%s9496_s26 + $0x50] sm:$0xff] %v3516_v44  ;;  %v3373_v16 = vmul.f32 0.6931472, %v7972_v51  ;;  %v3561_v33 = vmul.f32 %v3560_v43, %v9578_v14  ;;  %v7974_v40 = vpop.eup %7973  ;;  %v3569_v5 = vmul.f32 %v9625_v62, %v3568_v23  ;;  %vm3576_vm7 = vcmp.eq.f32.partialorder %v9604_v61, 0.0 }
 0x684   : > { %v3817_v56 = vsub.f32 %v3785_v48, %v9594_v20  ;;  %v3380_v60 = vadd.f32 1.0, %v7974_v40  ;;  %v3383_v4 = vmul.f32 -0.5, %v7974_v40  ;;  %v3767_v20 = vadd.f32 %v3751_v55, %v9499_v46 }
 0x685   : > { %v3379_v58 = vsel %vm3378_vm1, %v3376_v57, %v3373_v16  ;;  %v3563_v25 = vsel %vm3562_vm0, %v9578_v14, %v3561_v33  ;;  %v3802_v46 = vmul.f32 %v9541_v49, %v9541_v49  ;;  %v3570_v14 = vmul.f32 0.5, %v3569_v5 }
 0x686   : > { %v3833_v8 = vsub.f32 %v3817_v56, %v9604_v61  ;;  %v3483_v32 = vadd.f32 %v3379_v58, %v3227_v6  ;;  %7979 = vlog2.f32 %v3380_v60  ;;  %v3566_v35 = vsel %vm3564_vm2, %v3565_v53, %v3563_v25  ;;  %6854 = vst [vmem:[%s9496_s26] sm:$0xff] %v3767_v20  ;;  %v1218_v58 = vld [vmem:[%s9616_s7 + $0x10] sm:$0xff] }
 0x687   : > { %v7976_v1 = vpop.eup %7975  ;;  %v3736_v17 = vadd.f32 0.0001, %v3566_v35  ;;  %v3384_v12 = vadd.f32 1.0, %v3383_v4  ;;  %v3386_v52 = vand.u32 2147483647, %v7974_v40  ;;  %v3577_v16 = vand.u32 2147483648, %v9604_v61 }
 0x688   : > { %v7978_v2 = vpop.eup %7977  ;;  %v3849_v41 = vmul.f32 -0.5, %v3833_v8  ;;  %v3518_v0 = vmul.f32 0.6931472, %v7976_v1  ;;  %v9658_v11 = vsel %vm3243_vm3, %v9565_v15, %v3483_v32  ;;  %v3571_v15 = vsub.f32 1.5, %v3570_v14 }
 0x689   : > { %7981 = vlog2.f32 %v9658_v11  ;;  %v3580_v28 = vmul.f32 %v7978_v2, %v9631_v27  ;;  %v3752_v29 = vmul.f32 %v3736_v17, %v1217_v22  ;;  %v3385_v26 = vmul.f32 %v7974_v40, %v3384_v12 }
 0x68a   : > { %6904 = vst [vmem:[%s9496_s26 + $0x58] sm:$0xff] %v3849_v41  ;;  %v3786_v34 = vadd.f32 1.0, %v3518_v0  ;;  %7983 = vrsqrt.f32 %v9658_v11  ;;  %v3572_v37 = vmul.f32 %v9625_v62, %v3571_v15  ;;  %vm3387_vm6 = vcmp.lt.f32.partialorder %v3386_v52, 0.0004427343 }
 0x68b   : > { %6889 = vst [vmem:[%s9496_s26 + $0x70] sm:$0xff] %v3518_v0  ;;  %v3581_v18 = vmul.f32 %v7978_v2, %v3580_v28  ;;  %v3768_v47 = vadd.f32 %v3752_v29, %v9516_v42  ;;  %vm3586_vm8 = vcmp.eq.f32.partialorder %v9631_v27, inf  ;;  %vm3588_vm9 = vcmp.eq.f32.partialorder %v9631_v27, 0.0 }
 0x68c   : > { %v3818_v3 = vsub.f32 %v3786_v34, %v3802_v46  ;;  %v7980_v63 = vpop.eup %7979  ;;  %v3573_v42 = vmul.f32 %v3572_v37, %v9604_v61  ;;  %vm3598_vm10 = vcmp.eq.f32.partialorder %v9658_v11, inf  ;;  %vm3600_vm11 = vcmp.eq.f32.partialorder %v9658_v11, 0.0 }
 0x68d   : > { %v3582_v54 = vmul.f32 0.5, %v3581_v18  ;;  %v3382_v39 = vmul.f32 0.6931472, %v7980_v63  ;;  %v3863_v43 = vpack.c.bf16 %v3768_v47, %v3767_v20  ;;  %6855 = vst [vmem:[%s9496_s26 + $0x20] sm:$0xff] %v3768_v47 }
 0x68e   : > { %v3834_v44 = vsub.f32 %v3818_v3, %v9631_v27  ;;  %v3575_v33 = vsel %vm3574_vm5, %v9604_v61, %v3573_v42  ;;  %v3589_v61 = vand.u32 2147483648, %v9631_v27 }
 0x68f   : > { %v7982_v9 = vpop.eup %7981  ;;  %v3583_v23 = vsub.f32 1.5, %v3582_v54  ;;  %v3388_v6 = vsel %vm3387_vm6, %v3385_v26, %v3382_v39  ;;  %3947 = vmatmul.bf16.vlgmr.msra.gmra.mxu3 %v3863_v43  ;;  %v3578_v60 = vsel %vm3576_vm7, %v3577_v16, %v3575_v33 }
 0x690   : > { %v7984_v51 = vpop.eup %7983  ;;  %v3850_v62 = vmul.f32 -0.5, %v3834_v44  ;;  %v3520_v48 = vmul.f32 0.6931472, %v7982_v9  ;;  %v3484_v57 = vadd.f32 %v3388_v6, %v3228_v7  ;;  %v3737_v32 = vadd.f32 0.0001, %v3578_v60  ;;  %v1220_v9 = vld [vmem:[%s9616_s7 + $0x20] sm:$0xff] }
 0x691   : > { %v3584_v55 = vmul.f32 %v7978_v2, %v3583_v23  ;;  %v3592_v40 = vmul.f32 %v7984_v51, %v9658_v11  ;;  %v1219_v2 = vld [vmem:[%s9616_s7 + $0x18] sm:$0xff]  ;;  %v3601_v44 = vand.u32 2147483648, %v9658_v11 }
 0x692   : > { %6905 = vst [vmem:[%s9496_s26 + $0x78] sm:$0xff] %v3850_v62  ;;  %v3787_v56 = vadd.f32 1.0, %v3520_v48  ;;  %v2710_v53 = vpop.xlane.xlu2 %2709  ;;  %v9696_v4 = vsel %vm3244_vm4, %v9588_v38, %v3484_v57  ;;  %v3753_v22 = vmul.f32 %v3737_v32, %v1218_v58 }
 0x693   : > { %6890 = vst [vmem:[%s9496_s26 + $0x90] sm:$0xff] %v3520_v48  ;;  %v2729_v5 = vmul.f32 %v2710_v53, %v8799_v31  ;;  %v3585_v8 = vmul.f32 %v3584_v55, %v9631_v27  ;;  %7985 = vlog2.f32 %v9696_v4  ;;  %v3593_v20 = vmul.f32 %v7984_v51, %v3592_v40 }
 0x694   : > { %v3819_v25 = vsub.f32 %v3787_v56, %v3803_v21  ;;  %7987 = vrsqrt.f32 %v9696_v4  ;;  %v3769_v46 = vadd.f32 %v3753_v22, %v9526_v10  ;;  %v3804_v21 = vmul.f32 %v9571_v13, %v9571_v13 }
 0x695   : > { %v9703_v1 = vadd.f32 1e-05, %v2729_v5  ;;  %v3587_v38 = vsel %vm3586_vm8, %v9631_v27, %v3585_v8  ;;  %v3594_v0 = vmul.f32 0.5, %v3593_v20  ;;  %vm3610_vm15 = vcmp.eq.f32.partialorder %v9696_v4, inf }
 0x696   : > { %v3835_v35 = vsub.f32 %v3819_v25, %v9658_v11  ;;  %v3590_v41 = vsel %vm3588_vm9, %v3589_v61, %v3587_v38  ;;  %6856 = vst [vmem:[%s9496_s26 + $0x40] sm:$0xff] %v3769_v46  ;;  %v3613_v25 = vand.u32 2147483648, %v9696_v4  ;;  %vm3612_vm0 = vcmp.eq.f32.partialorder %v9696_v4, 0.0  ;;  %v1221_v38 = vld [vmem:[%s9616_s7 + $0x28] sm:$0xff] }
 0x697   : > { %7989 = vrsqrt.f32 %v9703_v1  ;;  %v3738_v17 = vadd.f32 0.0001, %v3590_v41  ;;  %v3595_v28 = vsub.f32 1.5, %v3594_v0  ;;  %vm2875_vm13 = vweird.f32 %v9703_v1 }
 0x698   : > { %v3851_v14 = vmul.f32 -0.5, %v3835_v35 }
 0x699   : > { %v3754_v34 = vmul.f32 %v3738_v17, %v1219_v2  ;;  %v7986_v12 = vpop.eup %7985  ;;  %v3596_v52 = vmul.f32 %v7984_v51, %v3595_v28 }
 0x69a   : > { %6906 = vst [vmem:[%s9496_s26 + $0x98] sm:$0xff] %v3851_v14  ;;  %v2712_v29 = vpop.xlane.xlu0 %2711  ;;  %v7988_v15 = vpop.eup %7987  ;;  %v3522_v18 = vmul.f32 0.6931472, %v7986_v12 }
 0x69b   : > { %v2730_v27 = vmul.f32 %v2712_v29, %v8799_v31  ;;  %v3770_v3 = vadd.f32 %v3754_v34, %v9541_v49  ;;  %v3597_v10 = vmul.f32 %v3596_v52, %v9658_v11  ;;  %v3604_v7 = vmul.f32 %v7988_v15, %v9696_v4  ;;  %v8461_v29 = vld [vmem:[%s12133_s11] ss:$0 sm:$0xff] }
 0x69c   : > { %v3788_v63 = vadd.f32 1.0, %v3522_v18  ;;  %6891 = vst [vmem:[%s9496_s26 + $0xb0] sm:$0xff] %v3522_v18 }
 0x69d   : > { %v7990_v47 = vpop.eup %7989  ;;  %v2746_v37 = vadd.f32 1e-05, %v2730_v27  ;;  %v3864_v54 = vpack.c.bf16 %v3770_v3, %v3769_v46  ;;  %6857 = vst [vmem:[%s9496_s26 + $0x60] sm:$0xff] %v3770_v3  ;;  %v3599_v49 = vsel %vm3598_vm10, %v9658_v11, %v3597_v10  ;;  %v3605_v26 = vmul.f32 %v7988_v15, %v3604_v7  ;;  %v8462_v10 = vld [vmem:[%s12134_s15] ss:$0 sm:$0xff] }
 0x69e   : > { %v2870_v39 = vmul.f32 %v7990_v47, %v9703_v1  ;;  %v3820_v43 = vsub.f32 %v3788_v63, %v3804_v21  ;;  %v3602_v42 = vsel %vm3600_vm11, %v3601_v44, %v3599_v49  ;;  %vm2876_vm12 = vweird.f32 %v7990_v47 }
 0x69f   : > { %7991 = vrsqrt.f32 %v2746_v37  ;;  %3952 = vmatmul.bf16.gmra.mxu3 %v3864_v54  ;;  %v3606_v51 = vmul.f32 0.5, %v3605_v26  ;;  %v3739_v62 = vadd.f32 0.0001, %v3602_v42  ;;  %vm2877_vm14 = vmor %vm2875_vm13, %vm2876_vm12  ;;  %vm2885_vm2 = vweird.f32 %v2746_v37 }
 0x6a0   : > { %v2871_v23 = vmul.f32 %v7990_v47, %v2870_v39  ;;  %v3836_v48 = vsub.f32 %v3820_v43, %v9696_v4 }
 0x6a1   : > { %v3607_v57 = vsub.f32 1.5, %v3606_v51  ;;  %v3755_v33 = vmul.f32 %v3739_v62, %v1220_v9 }
 0x6a2   : > { %v2872_v6 = vmul.f32 0.5, %v2871_v23  ;;  %v2714_v16 = vpop.xlane.xlu1 %2713  ;;  %v3852_v55 = vmul.f32 -0.5, %v3836_v48 }
 0x6a3   : > { %v2731_v11 = vmul.f32 %v2714_v16, %v8799_v31  ;;  %v3608_v56 = vmul.f32 %v7988_v15, %v3607_v57  ;;  %v3771_v53 = vadd.f32 %v3755_v33, %v9552_v24 }
 0x6a4   : > { %v2873_v40 = vsub.f32 1.5, %v2872_v6  ;;  %6907 = vst [vmem:[%s9496_s26 + $0xb8] sm:$0xff] %v3852_v55 }
 0x6a5   : > { %v7992_v58 = vpop.eup %7991  ;;  %v2747_v60 = vadd.f32 1e-05, %v2731_v11  ;;  %v3609_v32 = vmul.f32 %v3608_v56, %v9696_v4  ;;  %6858 = vst [vmem:[%s9496_s26 + $0x80] sm:$0xff] %v3771_v53 }
 0x6a6   : > { %v2874_v5 = vmul.f32 %v7990_v47, %v2873_v40  ;;  %v2880_v8 = vmul.f32 %v7992_v58, %v2746_v37  ;;  %vm2886_vm1 = vweird.f32 %v7992_v58 }
 0x6a7   : > { %7993 = vrsqrt.f32 %v2747_v60  ;;  %v3611_v24 = vsel %vm3610_vm15, %v9696_v4, %v3609_v32  ;;  %vm2887_vm3 = vmor %vm2885_vm2, %vm2886_vm1  ;;  %vm2895_vm5 = vweird.f32 %v2747_v60 }
 0x6a8   : > { %v2878_v61 = vsel %vm2877_vm14, %v7990_v47, %v2874_v5  ;;  %v2881_v20 = vmul.f32 %v7992_v58, %v2880_v8  ;;  %v3614_v22 = vsel %vm3612_vm0, %v3613_v25, %v3611_v24 }
 0x6a9   : > { %v3740_v2 = vadd.f32 0.0001, %v3614_v22  ;;  %v2921_v0 = vmul.f32 %v2878_v61, %v9455_v19 }
 0x6aa   : > { %v2882_v35 = vmul.f32 0.5, %v2881_v20  ;;  %v2716_v1 = vpop.xlane.xlu2 %2715 }
 0x6ab   : > { %v2732_v41 = vmul.f32 %v2716_v1, %v8799_v31  ;;  %v3756_v46 = vmul.f32 %v3740_v2, %v1221_v38  ;;  %v2941_v52 = vmul.f32 %v8461_v29, %v2921_v0 }
 0x6ac   : > { %v2883_v17 = vsub.f32 1.5, %v2882_v35 }
 0x6ad   : > { %v7994_v14 = vpop.eup %7993  ;;  %v2748_v28 = vadd.f32 1e-05, %v2732_v41  ;;  %v3772_v12 = vadd.f32 %v3756_v46, %v9571_v13  ;;  %v2961_v7 = vadd.f32 %v8462_v10, %v2941_v52 }
 0x6ae   : > { %v2884_v34 = vmul.f32 %v7992_v58, %v2883_v17  ;;  %v2890_v4 = vmul.f32 %v7994_v14, %v2747_v60  ;;  %vm2896_vm4 = vweird.f32 %v7994_v14 }
 0x6af   : > { %7995 = vrsqrt.f32 %v2748_v28  ;;  %v3865_v27 = vpack.c.bf16 %v3772_v12, %v3771_v53  ;;  %6859 = vst [vmem:[%s9496_s26 + $0xa0] sm:$0xff] %v3772_v12  ;;  %v2977_v44 = vmax.f32 %v2961_v7, 0.0  ;;  %vm2897_vm6 = vmor %vm2895_vm5, %vm2896_vm4  ;;  %vm2905_vm8 = vweird.f32 %v2748_v28 }
 0x6b0   : > { %v2888_v15 = vsel %vm2887_vm3, %v7992_v58, %v2884_v34  ;;  %v2891_v18 = vmul.f32 %v7994_v14, %v2890_v4 }
 0x6b1   : > { %v2922_v19 = vmul.f32 %v2888_v15, %v9463_v36  ;;  %3957 = vmatmul.bf16.gmra.mxu3 %v3865_v27 }
 0x6b2   : > { %v2892_v3 = vmul.f32 0.5, %v2891_v18 }
 0x6b3   : > { %v2942_v21 = vmul.f32 %v8461_v29, %v2922_v19 }
 0x6b4   : > { %v2893_v47 = vsub.f32 1.5, %v2892_v3 }
 0x6b5   : > { %v7996_v63 = vpop.eup %7995  ;;  %v2962_v37 = vadd.f32 %v8462_v10, %v2942_v21 }
 0x6b6   : > { %v2894_v13 = vmul.f32 %v7994_v14, %v2893_v47  ;;  %v2900_v54 = vmul.f32 %v7996_v63, %v2748_v28  ;;  %vm2906_vm7 = vweird.f32 %v7996_v63 }
 0x6b7   : > { %v2978_v39 = vmax.f32 %v2962_v37, 0.0  ;;  %vm2907_vm9 = vmor %vm2905_vm8, %vm2906_vm7 }
 0x6b8   : > { %v2901_v49 = vmul.f32 %v7996_v63, %v2900_v54  ;;  %v2898_v26 = vsel %vm2897_vm6, %v7994_v14, %v2894_v13  ;;  %v9783_v13 = vld [vmem:[%s12138_s18] ss:$0 sm:$0xff] }
 0x6b9   : > { %v2987_v43 = vpack.c.bf16 %v2978_v39, %v2977_v44  ;;  %v2923_v42 = vmul.f32 %v2898_v26, %v9470_v30 }
 0x6ba   : > { %v2902_v36 = vmul.f32 0.5, %v2901_v49 }
 0x6bb   : > { %3095 = vmatmul.bf16.gmra.mxu0 %v2987_v43  ;;  %3212 = vmatmul.bf16.gmra.mxu2 %v2987_v43  ;;  %v2943_v6 = vmul.f32 %v8461_v29, %v2923_v42 }
 0x6bc   : > { %v2903_v9 = vsub.f32 1.5, %v2902_v36 }
 0x6bd   : > { %v2963_v55 = vadd.f32 %v8462_v10, %v2943_v6 }
 0x6be   : > { %v2904_v23 = vmul.f32 %v7996_v63, %v2903_v9  ;;  %v3081_v51 = vpop.f32.mrf.mxu0 }
 0x6bf   : > { %v9749_v62 = vadd.f32 %v9492_v45, %v3081_v51  ;;  %v2979_v58 = vmax.f32 %v2963_v55, 0.0 }
 0x6c0   : > { %v2908_v48 = vsel %vm2907_vm9, %v7996_v63, %v2904_v23 }
 0x6c1   : > { %6876 = vst [vmem:[%s9496_s26 + $0xc8] sm:$0xff] %v9749_v62  ;;  %v2924_v16 = vmul.f32 %v2908_v48, %v9479_v50 }
 0x6c3   : > { %v2944_v57 = vmul.f32 %v8461_v29, %v2924_v16 }
 0x6c4   : > { %v3198_v33 = vpop.f32.mrf.mxu2 }
 0x6c5   : > { %v3199_v11 = vadd.f32 %v9505_v59, %v3198_v33  ;;  %v2964_v30 = vadd.f32 %v8462_v10, %v2944_v57 }
 0x6c6   : > { %v3083_v40 = vpop.f32.mrf.mxu0 }
 0x6c7   : > { %v3277_v56 = vand.u32 2147483647, %v3199_v11  ;;  %v9756_v53 = vadd.f32 %v9492_v45, %v3083_v40  ;;  %v2980_v60 = vmax.f32 %v2964_v30, 0.0  ;;  %v3229_v21 = vmax.f32 %v3199_v11, 0.0 }
 0x6c8   : > { %vm3245_vm11 = vcmp.ne.f32.partialorder %v3199_v11, %v3199_v11 }
 0x6c9   : > { %v3293_v5 = vsub.f32 0.0, %v3277_v56  ;;  %6877 = vst [vmem:[%s9496_s26 + $0xe8] sm:$0xff] %v9756_v53  ;;  %v2988_v8 = vpack.c.bf16 %v2980_v60, %v2979_v58 }
 0x6cb   : > { %v3315_v32 = vmul.f32 1.442695, %v3293_v5  ;;  %3100 = vmatmul.bf16.gmra.mxu0 %v2988_v8  ;;  %3217 = vmatmul.bf16.gmra.mxu2 %v2988_v8 }
 0x6cc   : > { %v3200_v50 = vpop.f32.mrf.mxu2 }
 0x6cd   : > { %7997 = vpow2.f32 %v3315_v32  ;;  %v9761_v25 = vadd.f32 %v9505_v59, %v3200_v50  ;;  %v3805_v32 = vmul.f32 %v9749_v62, %v9749_v62 }
 0x6ce   : > { %v3086_v20 = vpop.f32.mrf.mxu0 }
 0x6cf   : > { %v3278_v61 = vand.u32 2147483647, %v9761_v25  ;;  %v9765_v24 = vadd.f32 %v9492_v45, %v3086_v20  ;;  %v3230_v36 = vmax.f32 %v9761_v25, 0.0  ;;  %vm3246_vm13 = vcmp.ne.f32.partialorder %v9761_v25, %v9761_v25 }
 0x6d1   : > { %v3294_v38 = vsub.f32 0.0, %v3278_v61  ;;  %6878 = vst [vmem:[%s9496_s26 + $0x108] sm:$0xff] %v9765_v24 }
 0x6d3   : > { %v7998_v22 = vpop.eup %7997  ;;  %v3317_v35 = vmul.f32 1.442695, %v3294_v38  ;;  %v9819_v38 = vmul.f32 %v9765_v24, %v9765_v24 }
 0x6d4   : > { %v3389_v1 = vadd.f32 1.0, %v7998_v22  ;;  %v3392_v2 = vmul.f32 -0.5, %v7998_v22  ;;  %v3203_v41 = vpop.f32.mrf.mxu2  ;;  %v3395_v34 = vand.u32 2147483647, %v7998_v22 }
 0x6d5   : > { %7999 = vpow2.f32 %v3317_v35  ;;  %v9770_v0 = vadd.f32 %v9505_v59, %v3203_v41 }
 0x6d6   : > { %8001 = vlog2.f32 %v3389_v1  ;;  %v3088_v17 = vpop.f32.mrf.mxu0  ;;  %v3393_v14 = vadd.f32 1.0, %v3392_v2  ;;  %vm3396_vm10 = vcmp.lt.f32.partialorder %v3395_v34, 0.0004427343 }
 0x6d7   : > { %v3279_v46 = vand.u32 2147483647, %v9770_v0  ;;  %v9774_v28 = vadd.f32 %v9492_v45, %v3088_v17  ;;  %vm3247_vm15 = vcmp.ne.f32.partialorder %v9770_v0, %v9770_v0 }
 0x6d8   : > { %v3394_v27 = vmul.f32 %v7998_v22, %v3393_v14 }
 0x6d9   : > { %v3295_v4 = vsub.f32 0.0, %v3279_v46  ;;  %6879 = vst [vmem:[%s9496_s26 + $0x128] sm:$0xff] %v9774_v28 }
 0x6db   : > { %v8000_v12 = vpop.eup %7999  ;;  %v3319_v15 = vmul.f32 1.442695, %v3295_v4  ;;  %v9822_v4 = vld [vmem:[%s12139_s23] ss:$0 sm:$0xff] }
 0x6dc   : > { %v8002_v29 = vpop.eup %8001  ;;  %v3398_v52 = vadd.f32 1.0, %v8000_v12  ;;  %v3401_v19 = vmul.f32 -0.5, %v8000_v12  ;;  %v3205_v3 = vpop.f32.mrf.mxu2  ;;  %v3404_v39 = vand.u32 2147483647, %v8000_v12 }
 0x6dd   : > { %v3391_v18 = vmul.f32 0.6931472, %v8002_v29  ;;  %v9779_v45 = vadd.f32 %v9505_v59, %v3205_v3 }
 0x6de   : > { %8003 = vlog2.f32 %v3398_v52  ;;  %v3091_v7 = vpop.f32.mrf.mxu0  ;;  %v3402_v63 = vadd.f32 1.0, %v3401_v19  ;;  %vm3405_vm12 = vcmp.lt.f32.partialorder %v3404_v39, 0.0004427343 }
 0x6df   : > { %v3397_v10 = vsel %vm3396_vm10, %v3394_v27, %v3391_v18  ;;  %8005 = vpow2.f32 %v3319_v15  ;;  %v3280_v37 = vand.u32 2147483647, %v9779_v45  ;;  %v9786_v54 = vadd.f32 %v9783_v13, %v3091_v7 }
 0x6e0   : > { %v3485_v47 = vadd.f32 %v3397_v10, %v3229_v21  ;;  %v3403_v42 = vmul.f32 %v8000_v12, %v3402_v63  ;;  %v3231_v15 = vmax.f32 %v9770_v0, 0.0  ;;  %v3232_v19 = vmax.f32 %v9779_v45, 0.0 }
 0x6e1   : > { %v3296_v49 = vsub.f32 0.0, %v3280_v37  ;;  %6880 = vst [vmem:[%s9496_s26 + $0x148] sm:$0xff] %v9786_v54  ;;  %vm3248_vm2 = vcmp.ne.f32.partialorder %v9779_v45, %v9779_v45 }
 0x6e2   : > { %v9788_v44 = vsel %vm3245_vm11, %v3199_v11, %v3485_v47 }
 0x6e3   : > { %8007 = vlog2.f32 %v9788_v44  ;;  %v3321_v23 = vmul.f32 1.442695, %v3296_v49  ;;  %vm3622_vm0 = vcmp.eq.f32.partialorder %v9788_v44, inf  ;;  %vm3624_vm3 = vcmp.eq.f32.partialorder %v9788_v44, 0.0 }
 0x6e4   : > { %v8004_v26 = vpop.eup %8003  ;;  %8009 = vrsqrt.f32 %v9788_v44  ;;  %v3208_v51 = vpop.f32.mrf.mxu2 }
 0x6e5   : > { %v8006_v43 = vpop.eup %8005  ;;  %v3400_v9 = vmul.f32 0.6931472, %v8004_v26  ;;  %v9796_v16 = vadd.f32 %v9505_v59, %v3208_v51  ;;  %8011 = vpow2.f32 %v3321_v23 }
 0x6e6   : > { %v3407_v48 = vadd.f32 1.0, %v8006_v43  ;;  %v3410_v6 = vmul.f32 -0.5, %v8006_v43  ;;  %v3093_v33 = vpop.f32.mrf.mxu0  ;;  %v3413_v61 = vand.u32 2147483647, %v8006_v43 }
 0x6e7   : > { %v3406_v57 = vsel %vm3405_vm12, %v3403_v42, %v3400_v9  ;;  %v3281_v30 = vand.u32 2147483647, %v9796_v16  ;;  %v9802_v40 = vadd.f32 %v9783_v13, %v3093_v33  ;;  %v3625_v9 = vand.u32 2147483648, %v9788_v44 }
 0x6e8   : > { %v3486_v55 = vadd.f32 %v3406_v57, %v3230_v36  ;;  %8013 = vlog2.f32 %v3407_v48  ;;  %v3411_v60 = vadd.f32 1.0, %v3410_v6  ;;  %vm3414_vm14 = vcmp.lt.f32.partialorder %v3413_v61, 0.0004427343  ;;  %v1222_v61 = vld [vmem:[%s9616_s7 + $0x30] sm:$0xff] }
 0x6e9   : > { %v8008_v11 = vpop.eup %8007  ;;  %v3297_v5 = vsub.f32 0.0, %v3281_v30  ;;  %6881 = vst [vmem:[%s9496_s26 + $0x168] sm:$0xff] %v9802_v40  ;;  %vm3249_vm7 = vcmp.ne.f32.partialorder %v9796_v16, %v9796_v16 }
 0x6ea   : > { %v8010_v56 = vpop.eup %8009  ;;  %v3524_v58 = vmul.f32 0.6931472, %v8008_v11  ;;  %v9805_v59 = vsel %vm3246_vm13, %v9761_v25, %v3486_v55  ;;  %v3806_v25 = vmul.f32 %v9756_v53, %v9756_v53  ;;  %v3412_v17 = vmul.f32 %v8006_v43, %v3411_v60 }
 0x6eb   : > { %8015 = vlog2.f32 %v9805_v59  ;;  %v3616_v8 = vmul.f32 %v8010_v56, %v9788_v44  ;;  %v8012_v20 = vpop.eup %8011  ;;  %v3323_v22 = vmul.f32 1.442695, %v3297_v5  ;;  %vm3634_vm4 = vcmp.eq.f32.partialorder %v9805_v59, inf }
 0x6ec   : > { %v3789_v50 = vadd.f32 1.0, %v3524_v58  ;;  %6892 = vst [vmem:[%s9496_s26 + $0xd0] sm:$0xff] %v3524_v58  ;;  %8017 = vrsqrt.f32 %v9805_v59  ;;  %v3210_v35 = vpop.f32.mrf.mxu2  ;;  %v3416_v46 = vadd.f32 1.0, %v8012_v20  ;;  %v3419_v14 = vmul.f32 -0.5, %v8012_v20 }
 0x6ed   : > { %v3617_v1 = vmul.f32 %v8010_v56, %v3616_v8  ;;  %8019 = vpow2.f32 %v3323_v22  ;;  %v9825_v12 = vadd.f32 %v9822_v4, %v3210_v35  ;;  %v3422_v36 = vand.u32 2147483647, %v8012_v20 }
 0x6ee   : > { %v8014_v2 = vpop.eup %8013  ;;  %v3821_v41 = vsub.f32 %v3789_v50, %v3805_v32  ;;  %8021 = vlog2.f32 %v3416_v46  ;;  %v3420_v63 = vadd.f32 1.0, %v3419_v14  ;;  %v3233_v50 = vmax.f32 %v9796_v16, 0.0 }
 0x6ef   : > { %v3409_v34 = vmul.f32 0.6931472, %v8014_v2  ;;  %v3618_v29 = vmul.f32 0.5, %v3617_v1  ;;  %v3282_v3 = vand.u32 2147483647, %v9825_v12  ;;  %v3637_v46 = vand.u32 2147483648, %v9805_v59 }
 0x6f0   : > { %v3837_v52 = vsub.f32 %v3821_v41, %v9788_v44  ;;  %v3421_v33 = vmul.f32 %v8012_v20, %v3420_v63  ;;  %vm3423_vm1 = vcmp.lt.f32.partialorder %v3422_v36, 0.0004427343  ;;  %vm3636_vm6 = vcmp.eq.f32.partialorder %v9805_v59, 0.0  ;;  %v1223_v36 = vld [vmem:[%s9616_s7 + $0x38] sm:$0xff] }
 0x6f1   : > { %v8016_v18 = vpop.eup %8015  ;;  %v3415_v27 = vsel %vm3414_vm14, %v3412_v17, %v3409_v34  ;;  %v3298_v37 = vsub.f32 0.0, %v3282_v3  ;;  %v3619_v39 = vsub.f32 1.5, %v3618_v29  ;;  %vm3250_vm10 = vcmp.ne.f32.partialorder %v9825_v12, %v9825_v12 }
 0x6f2   : > { %v8018_v21 = vpop.eup %8017  ;;  %v3853_v10 = vmul.f32 -0.5, %v3837_v52  ;;  %v3526_v7 = vmul.f32 0.6931472, %v8016_v18  ;;  %v3487_v47 = vadd.f32 %v3415_v27, %v3231_v15 }
 0x6f3   : > { %v3628_v49 = vmul.f32 %v8018_v21, %v9805_v59  ;;  %v8020_v42 = vpop.eup %8019  ;;  %v3325_v23 = vmul.f32 1.442695, %v3298_v37  ;;  %v3620_v51 = vmul.f32 %v8010_v56, %v3619_v39 }
 0x6f4   : > { %6908 = vst [vmem:[%s9496_s26 + $0xd8] sm:$0xff] %v3853_v10  ;;  %v3790_v26 = vadd.f32 1.0, %v3526_v7  ;;  %v9837_v43 = vsel %vm3247_vm15, %v9770_v0, %v3487_v47  ;;  %v8022_v6 = vpop.eup %8021  ;;  %v3425_v55 = vadd.f32 1.0, %v8020_v42  ;;  %v3428_v0 = vmul.f32 -0.5, %v8020_v42 }
 0x6f5   : > { %6893 = vst [vmem:[%s9496_s26 + $0xf0] sm:$0xff] %v3526_v7  ;;  %8023 = vlog2.f32 %v9837_v43  ;;  %v3629_v48 = vmul.f32 %v8018_v21, %v3628_v49  ;;  %v3418_v11 = vmul.f32 0.6931472, %v8022_v6  ;;  %v3621_v30 = vmul.f32 %v3620_v51, %v9788_v44 }
 0x6f6   : > { %v3822_v57 = vsub.f32 %v3790_v26, %v3806_v25  ;;  %8025 = vrsqrt.f32 %v9837_v43  ;;  %v3429_v22 = vadd.f32 1.0, %v3428_v0  ;;  %v3431_v17 = vand.u32 2147483647, %v8020_v42 }
 0x6f7   : > { %8027 = vpow2.f32 %v3325_v23  ;;  %v3630_v60 = vmul.f32 0.5, %v3629_v48  ;;  %v3424_v56 = vsel %vm3423_vm1, %v3421_v33, %v3418_v11  ;;  %v3623_v5 = vsel %vm3622_vm0, %v9788_v44, %v3621_v30 }
 0x6f8   : > { %v3838_v58 = vsub.f32 %v3822_v57, %v9805_v59  ;;  %8029 = vlog2.f32 %v3425_v55  ;;  %v3488_v32 = vadd.f32 %v3424_v56, %v3232_v19  ;;  %v3626_v20 = vsel %vm3624_vm3, %v3625_v9, %v3623_v5 }
 0x6f9   : > { %v3631_v35 = vsub.f32 1.5, %v3630_v60  ;;  %v3741_v1 = vadd.f32 0.0001, %v3626_v20  ;;  %v3430_v3 = vmul.f32 %v8020_v42, %v3429_v22  ;;  %vm3432_vm5 = vcmp.lt.f32.partialorder %v3431_v17, 0.0004427343 }
 0x6fa   : > { %v3854_v8 = vmul.f32 -0.5, %v3838_v58  ;;  %v9859_v44 = vsel %vm3248_vm2, %v9779_v45, %v3488_v32  ;;  %v3808_v0 = vmul.f32 %v9774_v28, %v9774_v28  ;;  %v3234_v32 = vmax.f32 %v9825_v12, 0.0 }
 0x6fb   : > { %v8024_v25 = vpop.eup %8023  ;;  %8031 = vlog2.f32 %v9859_v44  ;;  %v3632_v34 = vmul.f32 %v8018_v21, %v3631_v35  ;;  %v3757_v29 = vmul.f32 %v3741_v1, %v1222_v61  ;;  %vm3646_vm9 = vcmp.eq.f32.partialorder %v9837_v43, inf }
 0x6fc   : > { %v8026_v2 = vpop.eup %8025  ;;  %6909 = vst [vmem:[%s9496_s26 + $0xf8] sm:$0xff] %v3854_v8  ;;  %v3528_v41 = vmul.f32 0.6931472, %v8024_v25  ;;  %8033 = vrsqrt.f32 %v9859_v44  ;;  %vm3648_vm11 = vcmp.eq.f32.partialorder %v9837_v43, 0.0  ;;  %vm3658_vm12 = vcmp.eq.f32.partialorder %v9859_v44, inf }
 0x6fd   : > { %v8028_v14 = vpop.eup %8027  ;;  %v3640_v52 = vmul.f32 %v8026_v2, %v9837_v43  ;;  %v3633_v10 = vmul.f32 %v3632_v34, %v9805_v59  ;;  %v3773_v7 = vadd.f32 %v3757_v29, %v9749_v62  ;;  %v1224_v29 = vld [vmem:[%s9616_s7 + $0x40] sm:$0xff]  ;;  %vm3660_vm13 = vcmp.eq.f32.partialorder %v9859_v44, 0.0 }
 0x6fe   : > { %v8030_v15 = vpop.eup %8029  ;;  %v3791_v18 = vadd.f32 1.0, %v3528_v41  ;;  %6894 = vst [vmem:[%s9496_s26 + $0x110] sm:$0xff] %v3528_v41  ;;  %v3434_v27 = vadd.f32 1.0, %v8028_v14  ;;  %v3437_v19 = vmul.f32 -0.5, %v8028_v14  ;;  %v3440_v6 = vand.u32 2147483647, %v8028_v14 }
 0x6ff   : > { %v3427_v45 = vmul.f32 0.6931472, %v8030_v15  ;;  %v3641_v47 = vmul.f32 %v8026_v2, %v3640_v52  ;;  %v3635_v37 = vsel %vm3634_vm4, %v9805_v59, %v3633_v10  ;;  %6860 = vst [vmem:[%s9496_s26 + $0xc0] sm:$0xff] %v3773_v7 }
 0x700   : > { %v3823_v21 = vsub.f32 %v3791_v18, %v9819_v38  ;;  %8035 = vlog2.f32 %v3434_v27  ;;  %v3438_v26 = vadd.f32 1.0, %v3437_v19  ;;  %v3638_v62 = vsel %vm3636_vm6, %v3637_v46, %v3635_v37 }
 0x701   : > { %v3433_v63 = vsel %vm3432_vm5, %v3430_v3, %v3427_v45  ;;  %v8032_v9 = vpop.eup %8031  ;;  %v3742_v38 = vadd.f32 0.0001, %v3638_v62  ;;  %v3642_v42 = vmul.f32 0.5, %v3641_v47  ;;  %vm3441_vm8 = vcmp.lt.f32.partialorder %v3440_v6, 0.0004427343 }
 0x702   : > { %v3839_v39 = vsub.f32 %v3823_v21, %v9837_v43  ;;  %v3489_v49 = vadd.f32 %v3433_v63, %v3233_v50  ;;  %v8034_v23 = vpop.eup %8033  ;;  %v3530_v48 = vmul.f32 0.6931472, %v8032_v9  ;;  %v3439_v58 = vmul.f32 %v8028_v14, %v3438_v26 }
 0x703   : > { %v3758_v57 = vmul.f32 %v3742_v38, %v1223_v36  ;;  %v3643_v33 = vsub.f32 1.5, %v3642_v42  ;;  %v3652_v55 = vmul.f32 %v8034_v23, %v9859_v44  ;;  %v3661_v21 = vand.u32 2147483648, %v9859_v44 }
 0x704   : > { %v3855_v51 = vmul.f32 -0.5, %v3839_v39  ;;  %v9879_v59 = vsel %vm3249_vm7, %v9796_v16, %v3489_v49  ;;  %v3792_v30 = vadd.f32 1.0, %v3530_v48  ;;  %6895 = vst [vmem:[%s9496_s26 + $0x130] sm:$0xff] %v3530_v48  ;;  %v1225_v49 = vld [vmem:[%s9616_s7 + $0x48] sm:$0xff] }
 0x705   : > { %8037 = vlog2.f32 %v9879_v59  ;;  %v3774_v60 = vadd.f32 %v3758_v57, %v9756_v53  ;;  %v3644_v56 = vmul.f32 %v8026_v2, %v3643_v33  ;;  %v3653_v5 = vmul.f32 %v8034_v23, %v3652_v55 }
 0x706   : > { %v8036_v11 = vpop.eup %8035  ;;  %6910 = vst [vmem:[%s9496_s26 + $0x118] sm:$0xff] %v3855_v51  ;;  %8039 = vrsqrt.f32 %v9879_v59  ;;  %v3824_v8 = vsub.f32 %v3792_v30, %v3808_v0  ;;  %v3649_v53 = vand.u32 2147483648, %v9837_v43  ;;  %v3810_v57 = vmul.f32 %v9802_v40, %v9802_v40 }
 0x707   : > { %v3436_v16 = vmul.f32 0.6931472, %v8036_v11  ;;  %v3866_v61 = vpack.c.bf16 %v3774_v60, %v3773_v7  ;;  %6861 = vst [vmem:[%s9496_s26 + $0xe0] sm:$0xff] %v3774_v60  ;;  %v3645_v20 = vmul.f32 %v3644_v56, %v9837_v43  ;;  %v3654_v25 = vmul.f32 0.5, %v3653_v5  ;;  %v9912_v7 = vld [vmem:[%s12141_s22] ss:$0 sm:$0xff] }
 0x708   : > { %v3840_v22 = vsub.f32 %v3824_v8, %v9859_v44  ;;  %vm3670_vm14 = vcmp.eq.f32.partialorder %v9879_v59, inf  ;;  %vm3672_vm15 = vcmp.eq.f32.partialorder %v9879_v59, 0.0  ;;  %v1226_v8 = vld [vmem:[%s9616_s7 + $0x50] sm:$0xff]  ;;  %s12145_s22 = sld [smem:[#allocation15_spill]] }
 0x709   : > { %v3442_v50 = vsel %vm3441_vm8, %v3439_v58, %v3436_v16  ;;  %3962 = vmatmul.bf16.gmra.mxu3 %v3866_v61  ;;  %v3647_v2 = vsel %vm3646_vm9, %v9837_v43, %v3645_v20  ;;  %v3655_v41 = vsub.f32 1.5, %v3654_v25  ;;  %v3809_v43 = vmul.f32 %v9786_v54, %v9786_v54 }
 0x70a   : > { %v3490_v35 = vadd.f32 %v3442_v50, %v3234_v32  ;;  %v3856_v46 = vmul.f32 -0.5, %v3840_v22  ;;  %v3650_v52 = vsel %vm3648_vm11, %v3649_v53, %v3647_v2  ;;  %v3673_v58 = vand.u32 2147483648, %v9879_v59 }
 0x70b   : > { %v8038_v1 = vpop.eup %8037  ;;  %v3656_v15 = vmul.f32 %v8034_v23, %v3655_v41  ;;  %v3743_v18 = vadd.f32 0.0001, %v3650_v52  ;;  %v1227_v41 = vld [vmem:[%s9616_s7 + $0x58] sm:$0xff] }
 0x70c   : > { %v8040_v17 = vpop.eup %8039  ;;  %v3532_v14 = vmul.f32 0.6931472, %v8038_v1  ;;  %v9900_v34 = vsel %vm3250_vm10, %v9825_v12, %v3490_v35  ;;  %6911 = vst [vmem:[%s9496_s26 + $0x138] sm:$0xff] %v3856_v46 }
 0x70d   : > { %8041 = vlog2.f32 %v9900_v34  ;;  %v3664_v27 = vmul.f32 %v8040_v17, %v9879_v59  ;;  %v3657_v12 = vmul.f32 %v3656_v15, %v9859_v44  ;;  %v3759_v45 = vmul.f32 %v3743_v18, %v1224_v29 }
 0x70e   : > { %v3793_v19 = vadd.f32 1.0, %v3532_v14  ;;  %8043 = vrsqrt.f32 %v9900_v34  ;;  %6896 = vst [vmem:[%s9496_s26 + $0x150] sm:$0xff] %v3532_v14  ;;  %vm3682_vm0 = vcmp.eq.f32.partialorder %v9900_v34, inf  ;;  %v3685_v1 = vand.u32 2147483648, %v9900_v34 }
 0x70f   : > { %v3665_v3 = vmul.f32 %v8040_v17, %v3664_v27  ;;  %v3659_v47 = vsel %vm3658_vm12, %v9859_v44, %v3657_v12  ;;  %v3775_v63 = vadd.f32 %v3759_v45, %v9765_v24  ;;  %vm3684_vm1 = vcmp.eq.f32.partialorder %v9900_v34, 0.0 }
 0x710   : > { %v3825_v10 = vsub.f32 %v3793_v19, %v3809_v43  ;;  %v3662_v26 = vsel %vm3660_vm13, %v3661_v21, %v3659_v47 }
 0x711   : > { %v3666_v37 = vmul.f32 0.5, %v3665_v3  ;;  %v3744_v9 = vadd.f32 0.0001, %v3662_v26  ;;  %6862 = vst [vmem:[%s9496_s26 + $0x100] sm:$0xff] %v3775_v63 }
 0x712   : > { %v3841_v39 = vsub.f32 %v3825_v10, %v9879_v59  ;;  %v3948_v62 = vpop.f32.mrf.mxu3 }
 0x713   : > { %v8042_v36 = vpop.eup %8041  ;;  %v3667_v38 = vsub.f32 1.5, %v3666_v37  ;;  %v9923_v48 = vadd.f32 %v9912_v7, %v3948_v62  ;;  %v3760_v24 = vmul.f32 %v3744_v9, %v1225_v49 }
 0x714   : > { %v8044_v42 = vpop.eup %8043  ;;  %v3857_v23 = vmul.f32 -0.5, %v3841_v39  ;;  %v3534_v51 = vmul.f32 0.6931472, %v8042_v36 }
 0x715   : > { %v3668_v44 = vmul.f32 %v8040_v17, %v3667_v38  ;;  %v3676_v6 = vmul.f32 %v8044_v42, %v9900_v34  ;;  %3988 = vadd.xlane.f32.xlu0 %v9923_v48  ;;  %v3776_v55 = vadd.f32 %v3760_v24, %v9774_v28 }
 0x716   : > { %6912 = vst [vmem:[%s9496_s26 + $0x158] sm:$0xff] %v3857_v23  ;;  %v3794_v33 = vadd.f32 1.0, %v3534_v51 }
 0x717   : > { %6897 = vst [vmem:[%s9496_s26 + $0x170] sm:$0xff] %v3534_v51  ;;  %v3669_v11 = vmul.f32 %v3668_v44, %v9879_v59  ;;  %v3677_v0 = vmul.f32 %v8044_v42, %v3676_v6  ;;  %v3867_v16 = vpack.c.bf16 %v3776_v55, %v3775_v63 }
 0x718   : > { %v3826_v30 = vsub.f32 %v3794_v33, %v3810_v57  ;;  %6863 = vst [vmem:[%s9496_s26 + $0x120] sm:$0xff] %v3776_v55 }
 0x719   : > { %v3671_v60 = vsel %vm3670_vm14, %v9879_v59, %v3669_v11  ;;  %v3678_v56 = vmul.f32 0.5, %v3677_v0  ;;  %3967 = vmatmul.bf16.gmra.mxu3 %v3867_v16 }
 0x71a   : > { %v3842_v5 = vsub.f32 %v3826_v30, %v9900_v34  ;;  %v3674_v28 = vsel %vm3672_vm15, %v3673_v58, %v3671_v60  ;;  %v3950_v32 = vpop.f32.mrf.mxu3 }
 0x71b   : > { %v3679_v50 = vsub.f32 1.5, %v3678_v56  ;;  %v3745_v61 = vadd.f32 0.0001, %v3674_v28  ;;  %v9941_v25 = vadd.f32 %v9912_v7, %v3950_v32 }
 0x71c   : > { %v3858_v20 = vmul.f32 -0.5, %v3842_v5 }
 0x71d   : > { %v3680_v22 = vmul.f32 %v8044_v42, %v3679_v50  ;;  %v3761_v35 = vmul.f32 %v3745_v61, %v1226_v8  ;;  %3990 = vadd.xlane.f32.xlu1 %v9941_v25 }
 0x71e   : > { %6913 = vst [vmem:[%s9496_s26 + $0x178] sm:$0xff] %v3858_v20 }
 0x71f   : > { %v3681_v59 = vmul.f32 %v3680_v22, %v9900_v34  ;;  %v3777_v53 = vadd.f32 %v3761_v35, %v9786_v54 }
 0x721   : > { %v3683_v2 = vsel %vm3682_vm0, %v9900_v34, %v3681_v59  ;;  %6864 = vst [vmem:[%s9496_s26 + $0x140] sm:$0xff] %v3777_v53 }
 0x722   : > { %v3686_v17 = vsel %vm3684_vm1, %v3685_v1, %v3683_v2  ;;  %v3953_v46 = vpop.f32.mrf.mxu3 }
 0x723   : > { %v3746_v14 = vadd.f32 0.0001, %v3686_v17  ;;  %v9954_v29 = vadd.f32 %v9912_v7, %v3953_v46 }
 0x725   : > { %v3762_v52 = vmul.f32 %v3746_v14, %v1227_v41  ;;  %3992 = vadd.xlane.f32.xlu2 %v9954_v29 }
 0x727   : > { %v3778_v54 = vadd.f32 %v3762_v52, %v9802_v40 }
 0x729   : > { %v3868_v15 = vpack.c.bf16 %v3778_v54, %v3777_v53  ;;  %6865 = vst [vmem:[%s9496_s26 + $0x160] sm:$0xff] %v3778_v54 }
 0x72a   : > { %v3955_v18 = vpop.f32.mrf.mxu3 }
 0x72b   : > { %3972 = vmatmul.bf16.gmra.mxu3 %v3868_v15  ;;  %v9960_v34 = vadd.f32 %v9912_v7, %v3955_v18 }
 0x72d   : > { %3994 = vadd.xlane.f32.xlu0 %v9960_v34 }
 0x734   : > { %v3958_v27 = vpop.f32.mrf.mxu3 }
 0x735   : > { %v9964_v43 = vadd.f32 %v9912_v7, %v3958_v27 }
 0x737   : > { %3996 = vadd.xlane.f32.xlu1 %v9964_v43 }
 0x738   : > { %v3096_v19 = vpop.f32.mrf.mxu0 }
 0x739   : > { %v9968_v12 = vadd.f32 %v9783_v13, %v3096_v19 }
 0x73b   : > { %6882 = vst [vmem:[%s9496_s26 + $0x188] sm:$0xff] %v9968_v12 }
 0x73c   : > { %v3960_v40 = vpop.f32.mrf.mxu3 }
 0x73d   : > { %v9973_v45 = vadd.f32 %v9912_v7, %v3960_v40 }
 0x73e   : > { %v3213_v3 = vpop.f32.mrf.mxu2 }
 0x73f   : > { %v3214_v10 = vadd.f32 %v9822_v4, %v3213_v3  ;;  %3998 = vadd.xlane.f32.xlu2 %v9973_v45 }
 0x740   : > { %v3098_v21 = vpop.f32.mrf.mxu0 }
 0x741   : > { %v3283_v47 = vand.u32 2147483647, %v3214_v10  ;;  %v9978_v63 = vadd.f32 %v9783_v13, %v3098_v21  ;;  %v3235_v50 = vmax.f32 %v3214_v10, 0.0  ;;  %vm3251_vm3 = vcmp.ne.f32.partialorder %v3214_v10, %v3214_v10 }
 0x743   : > { %v3299_v37 = vsub.f32 0.0, %v3283_v47  ;;  %6883 = vst [vmem:[%s9496_s26 + $0x1a8] sm:$0xff] %v9978_v63  ;;  %v3811_v47 = vmul.f32 %v9968_v12, %v9968_v12 }
 0x745   : > { %v3327_v39 = vmul.f32 1.442695, %v3299_v37 }
 0x746   : > { %v3215_v49 = vpop.f32.mrf.mxu2 }
 0x747   : > { %8045 = vpow2.f32 %v3327_v39  ;;  %v3216_v26 = vadd.f32 %v9822_v4, %v3215_v49 }
 0x748   : > { %v3101_v62 = vpop.f32.mrf.mxu0 }
 0x749   : > { %v3284_v36 = vand.u32 2147483647, %v3216_v26  ;;  %v9984_v9 = vadd.f32 %v9783_v13, %v3101_v62  ;;  %v3236_v14 = vmax.f32 %v3216_v26, 0.0  ;;  %vm3252_vm5 = vcmp.ne.f32.partialorder %v3216_v26, %v3216_v26 }
 0x74b   : > { %v3300_v38 = vsub.f32 0.0, %v3284_v36  ;;  %6884 = vst [vmem:[%s9496_s26 + $0x1c8] sm:$0xff] %v9984_v9 }
 0x74d   : > { %v8046_v42 = vpop.eup %8045  ;;  %v3329_v23 = vmul.f32 1.442695, %v3300_v38 }
 0x74e   : > { %v3443_v51 = vadd.f32 1.0, %v8046_v42  ;;  %v3446_v24 = vmul.f32 -0.5, %v8046_v42  ;;  %v3218_v44 = vpop.f32.mrf.mxu2  ;;  %v3449_v0 = vand.u32 2147483647, %v8046_v42 }
 0x74f   : > { %8047 = vpow2.f32 %v3329_v23  ;;  %v9989_v6 = vadd.f32 %v9822_v4, %v3218_v44 }
 0x750   : > { %8049 = vlog2.f32 %v3443_v51  ;;  %v3103_v57 = vpop.f32.mrf.mxu0  ;;  %v3447_v55 = vadd.f32 1.0, %v3446_v24  ;;  %vm3450_vm2 = vcmp.lt.f32.partialorder %v3449_v0, 0.0004427343 }
 0x751   : > { %v3285_v33 = vand.u32 2147483647, %v9989_v6  ;;  %v9993_v11 = vadd.f32 %v9783_v13, %v3103_v57  ;;  %v3237_v57 = vmax.f32 %v9989_v6, 0.0  ;;  %vm3253_vm7 = vcmp.ne.f32.partialorder %v9989_v6, %v9989_v6 }
 0x752   : > { %v3448_v8 = vmul.f32 %v8046_v42, %v3447_v55 }
 0x753   : > { %v3301_v30 = vsub.f32 0.0, %v3285_v33  ;;  %6885 = vst [vmem:[%s9496_s26 + $0x1e8] sm:$0xff] %v9993_v11 }
 0x755   : > { %v8048_v58 = vpop.eup %8047  ;;  %v3331_v56 = vmul.f32 1.442695, %v3301_v30 }
 0x756   : > { %v8050_v16 = vpop.eup %8049  ;;  %v3452_v60 = vadd.f32 1.0, %v8048_v58  ;;  %v3455_v28 = vmul.f32 -0.5, %v8048_v58  ;;  %v3220_v32 = vpop.f32.mrf.mxu2  ;;  %v3458_v53 = vand.u32 2147483647, %v8048_v58 }
 0x757   : > { %v3445_v5 = vmul.f32 0.6931472, %v8050_v16  ;;  %v9998_v61 = vadd.f32 %v9822_v4, %v3220_v32 }
 0x758   : > { %8051 = vlog2.f32 %v3452_v60  ;;  %v3456_v22 = vadd.f32 1.0, %v3455_v28  ;;  %vm3459_vm4 = vcmp.lt.f32.partialorder %v3458_v53, 0.0004427343  ;;  %v3812_v28 = vmul.f32 %v9978_v63, %v9978_v63 }
 0x759   : > { %v3451_v13 = vsel %vm3450_vm2, %v3448_v8, %v3445_v5  ;;  %8053 = vpow2.f32 %v3331_v56  ;;  %v3286_v35 = vand.u32 2147483647, %v9998_v61  ;;  %vm3254_vm11 = vcmp.ne.f32.partialorder %v9998_v61, %v9998_v61 }
 0x75a   : > { %v3491_v20 = vadd.f32 %v3451_v13, %v3235_v50  ;;  %v3457_v4 = vmul.f32 %v8048_v58, %v3456_v22 }
 0x75b   : > { %v3302_v1 = vsub.f32 0.0, %v3286_v35 }
 0x75c   : > { %v10001_v59 = vsel %vm3251_vm3, %v3214_v10, %v3491_v20 }
 0x75d   : > { %8055 = vlog2.f32 %v10001_v59  ;;  %v3333_v46 = vmul.f32 1.442695, %v3302_v1  ;;  %vm3694_vm8 = vcmp.eq.f32.partialorder %v10001_v59, inf  ;;  %vm3696_vm9 = vcmp.eq.f32.partialorder %v10001_v59, 0.0 }
 0x75e   : > { %v8052_v2 = vpop.eup %8051  ;;  %8057 = vrsqrt.f32 %v10001_v59  ;;  %v3697_v1 = vand.u32 2147483648, %v10001_v59 }
 0x75f   : > { %v8054_v41 = vpop.eup %8053  ;;  %v3454_v17 = vmul.f32 0.6931472, %v8052_v2  ;;  %8059 = vpow2.f32 %v3333_v46  ;;  %v3238_v46 = vmax.f32 %v9998_v61, 0.0 }
 0x760   : > { %v3461_v52 = vadd.f32 1.0, %v8054_v41  ;;  %v3464_v15 = vmul.f32 -0.5, %v8054_v41  ;;  %v3467_v39 = vand.u32 2147483647, %v8054_v41 }
 0x761   : > { %v3460_v54 = vsel %vm3459_vm4, %v3457_v4, %v3454_v17 }
 0x762   : > { %v3492_v18 = vadd.f32 %v3460_v54, %v3236_v14  ;;  %8061 = vlog2.f32 %v3461_v52  ;;  %v3465_v10 = vadd.f32 1.0, %v3464_v15  ;;  %vm3468_vm6 = vcmp.lt.f32.partialorder %v3467_v39, 0.0004427343  ;;  %v1228_v14 = vld [vmem:[%s9616_s7 + $0x60] sm:$0xff] }
 0x763   : > { %v8056_v27 = vpop.eup %8055 }
 0x764   : > { %v8058_v19 = vpop.eup %8057  ;;  %v3536_v40 = vmul.f32 0.6931472, %v8056_v27  ;;  %v10005_v3 = vsel %vm3252_vm5, %v3216_v26, %v3492_v18  ;;  %v3466_v23 = vmul.f32 %v8054_v41, %v3465_v10 }
 0x765   : > { %8063 = vlog2.f32 %v10005_v3  ;;  %v3688_v21 = vmul.f32 %v8058_v19, %v10001_v59  ;;  %v8060_v49 = vpop.eup %8059  ;;  %vm3706_vm12 = vcmp.eq.f32.partialorder %v10005_v3, inf  ;;  %vm3708_vm13 = vcmp.eq.f32.partialorder %v10005_v3, 0.0 }
 0x766   : > { %v3795_v37 = vadd.f32 1.0, %v3536_v40  ;;  %6898 = vst [vmem:[%s9496_s26 + $0x190] sm:$0xff] %v3536_v40  ;;  %8065 = vrsqrt.f32 %v10005_v3  ;;  %v3470_v42 = vadd.f32 1.0, %v8060_v49  ;;  %v3473_v51 = vmul.f32 -0.5, %v8060_v49 }
 0x767   : > { %v3689_v36 = vmul.f32 %v8058_v19, %v3688_v21  ;;  %v3476_v13 = vand.u32 2147483647, %v8060_v49 }
 0x768   : > { %v8062_v62 = vpop.eup %8061  ;;  %v3827_v38 = vsub.f32 %v3795_v37, %v3811_v47  ;;  %8067 = vlog2.f32 %v3470_v42  ;;  %v3474_v56 = vadd.f32 1.0, %v3473_v51  ;;  %v3813_v47 = vmul.f32 %v9984_v9, %v9984_v9  ;;  %v1229_v51 = vld [vmem:[%s9616_s7 + $0x68] sm:$0xff] }
 0x769   : > { %v3463_v26 = vmul.f32 0.6931472, %v8062_v62  ;;  %v3690_v24 = vmul.f32 0.5, %v3689_v36  ;;  %vm3477_vm10 = vcmp.lt.f32.partialorder %v3476_v13, 0.0004427343  ;;  %v3709_v42 = vand.u32 2147483648, %v10005_v3 }
 0x76a   : > { %v3843_v44 = vsub.f32 %v3827_v38, %v10001_v59  ;;  %v3475_v2 = vmul.f32 %v8060_v49, %v3474_v56 }
 0x76b   : > { %v8064_v33 = vpop.eup %8063  ;;  %v3469_v55 = vsel %vm3468_vm6, %v3466_v23, %v3463_v26  ;;  %v3691_v0 = vsub.f32 1.5, %v3690_v24 }
 0x76c   : > { %v8066_v30 = vpop.eup %8065  ;;  %v3859_v58 = vmul.f32 -0.5, %v3843_v44  ;;  %v3538_v16 = vmul.f32 0.6931472, %v8064_v33  ;;  %v3493_v60 = vadd.f32 %v3469_v55, %v3237_v57 }
 0x76d   : > { %v3692_v5 = vmul.f32 %v8058_v19, %v3691_v0  ;;  %v3700_v8 = vmul.f32 %v8066_v30, %v10005_v3 }
 0x76e   : > { %6914 = vst [vmem:[%s9496_s26 + $0x198] sm:$0xff] %v3859_v58  ;;  %v3796_v32 = vadd.f32 1.0, %v3538_v16  ;;  %v10022_v50 = vsel %vm3253_vm7, %v9989_v6, %v3493_v60  ;;  %v8068_v35 = vpop.eup %8067 }
 0x76f   : > { %6899 = vst [vmem:[%s9496_s26 + $0x1b0] sm:$0xff] %v3538_v16  ;;  %8069 = vlog2.f32 %v10022_v50  ;;  %v3693_v20 = vmul.f32 %v3692_v5, %v10001_v59  ;;  %v3701_v22 = vmul.f32 %v8066_v30, %v3700_v8  ;;  %v3472_v6 = vmul.f32 0.6931472, %v8068_v35 }
 0x770   : > { %v3828_v53 = vsub.f32 %v3796_v32, %v3812_v28  ;;  %8071 = vrsqrt.f32 %v10022_v50  ;;  %v3814_v5 = vmul.f32 %v9993_v11, %v9993_v11  ;;  %vm3718_vm14 = vcmp.eq.f32.partialorder %v10022_v50, inf }
 0x771   : > { %v3695_v41 = vsel %vm3694_vm8, %v10001_v59, %v3693_v20  ;;  %v3702_v17 = vmul.f32 0.5, %v3701_v22  ;;  %v3478_v54 = vsel %vm3477_vm10, %v3475_v2, %v3472_v6  ;;  %vm3720_vm15 = vcmp.eq.f32.partialorder %v10022_v50, 0.0 }
 0x772   : > { %v3844_v4 = vsub.f32 %v3828_v53, %v10005_v3  ;;  %v3698_v52 = vsel %vm3696_vm9, %v3697_v1, %v3695_v41  ;;  %v3494_v19 = vadd.f32 %v3478_v54, %v3238_v46  ;;  %v1230_v1 = vld [vmem:[%s9616_s7 + $0x70] sm:$0xff] }
 0x773   : > { %v3703_v15 = vsub.f32 1.5, %v3702_v17  ;;  %v3747_v18 = vadd.f32 0.0001, %v3698_v52 }
 0x774   : > { %v3860_v27 = vmul.f32 -0.5, %v3844_v4  ;;  %v10041_v39 = vsel %vm3254_vm11, %v9998_v61, %v3494_v19  ;;  %v1231_v19 = vld [vmem:[%s9616_s7 + $0x78] sm:$0xff]  ;;  %s12144_s7 = sld [smem:[#allocation13_spill]] }
 0x775   : > { %v8070_v40 = vpop.eup %8069  ;;  %v3704_v59 = vmul.f32 %v8066_v30, %v3703_v15  ;;  %v3763_v10 = vmul.f32 %v3747_v18, %v1228_v14  ;;  %8073 = vlog2.f32 %v10041_v39  ;;  %vm3730_vm0 = vcmp.eq.f32.partialorder %v10041_v39, inf }
 0x776   : > { %v8072_v21 = vpop.eup %8071  ;;  %6915 = vst [vmem:[%s9496_s26 + $0x1b8] sm:$0xff] %v3860_v27  ;;  %v3540_v37 = vmul.f32 0.6931472, %v8070_v40  ;;  %8075 = vrsqrt.f32 %v10041_v39  ;;  %v3733_v15 = vand.u32 2147483648, %v10041_v39  ;;  %vm3732_vm1 = vcmp.eq.f32.partialorder %v10041_v39, 0.0 }
 0x777   : > { %v3705_v49 = vmul.f32 %v3704_v59, %v10005_v3  ;;  %v3779_v36 = vadd.f32 %v3763_v10, %v9968_v12  ;;  %v3712_v62 = vmul.f32 %v8072_v21, %v10022_v50 }
 0x778   : > { %v3797_v38 = vadd.f32 1.0, %v3540_v37  ;;  %6900 = vst [vmem:[%s9496_s26 + $0x1d0] sm:$0xff] %v3540_v37 }
 0x779   : > { %v3707_v26 = vsel %vm3706_vm12, %v10005_v3, %v3705_v49  ;;  %6866 = vst [vmem:[%s9496_s26 + $0x180] sm:$0xff] %v3779_v36  ;;  %v3713_v61 = vmul.f32 %v8072_v21, %v3712_v62 }
 0x77a   : > { %v3829_v23 = vsub.f32 %v3797_v38, %v3813_v47  ;;  %v3710_v12 = vsel %vm3708_vm13, %v3709_v42, %v3707_v26 }
 0x77b   : > { %v3748_v24 = vadd.f32 0.0001, %v3710_v12  ;;  %v3714_v44 = vmul.f32 0.5, %v3713_v61  ;;  %v8074_v33 = vpop.eup %8073 }
 0x77c   : > { %v3845_v57 = vsub.f32 %v3829_v23, %v10022_v50  ;;  %v8076_v30 = vpop.eup %8075  ;;  %v3542_v16 = vmul.f32 0.6931472, %v8074_v33  ;;  %v7729_v23 = vld [vmem:[%s12142_s1 + $0x30] sm:$0xff] }
 0x77d   : > { %v3764_v55 = vmul.f32 %v3748_v24, %v1229_v51  ;;  %v3715_v0 = vsub.f32 1.5, %v3714_v44  ;;  %v3724_v56 = vmul.f32 %v8076_v30, %v10041_v39  ;;  %v7728_v51 = vld [vmem:[%s12142_s1 + $0x28] sm:$0xff] }
 0x77e   : > { %v3861_v58 = vmul.f32 -0.5, %v3845_v57  ;;  %v3798_v8 = vadd.f32 1.0, %v3542_v16  ;;  %6901 = vst [vmem:[%s9496_s26 + $0x1f0] sm:$0xff] %v3542_v16  ;;  %v7727_v57 = vld [vmem:[%s12142_s1 + $0x20] sm:$0xff] }
 0x77f   : > { %v3780_v3 = vadd.f32 %v3764_v55, %v9978_v63  ;;  %v3716_v60 = vmul.f32 %v8072_v21, %v3715_v0  ;;  %v3725_v13 = vmul.f32 %v8076_v30, %v3724_v56  ;;  %v3721_v63 = vand.u32 2147483648, %v10022_v50  ;;  %v7730_v21 = vld [vmem:[%s12142_s1 + $0x38] sm:$0xff] }
 0x780   : > { %6916 = vst [vmem:[%s9496_s26 + $0x1d8] sm:$0xff] %v3861_v58  ;;  %v3830_v20 = vsub.f32 %v3798_v8, %v3814_v5  ;;  %4440 = vmatpush.bf16.msra.mxu1 %v7730_v21  ;;  %v7726_v0 = vld [vmem:[%s12142_s1 + $0x18] sm:$0xff] }
 0x781   : > { %v3869_v28 = vpack.c.bf16 %v3780_v3, %v3779_v36  ;;  %v3717_v32 = vmul.f32 %v3716_v60, %v10022_v50  ;;  %6867 = vst [vmem:[%s9496_s26 + $0x1a0] sm:$0xff] %v3780_v3  ;;  %v3726_v35 = vmul.f32 0.5, %v3725_v13  ;;  %v7725_v3 = vld [vmem:[%s12142_s1 + $0x10] sm:$0xff] }
 0x782   : > { %v3846_v53 = vsub.f32 %v3830_v20, %v10041_v39 }
 0x783   : > { %3977 = vmatmul.bf16.gmra.mxu3 %v3869_v28  ;;  %v3719_v22 = vsel %vm3718_vm14, %v10022_v50, %v3717_v32  ;;  %v3727_v2 = vsub.f32 1.5, %v3726_v35 }
 0x784   : > { %v3722_v6 = vsel %vm3720_vm15, %v3721_v63, %v3719_v22  ;;  %v3862_v17 = vmul.f32 -0.5, %v3846_v53  ;;  %4441 = vmatpush.bf16.msra.mxu1 %v7729_v23 }
 0x785   : > { %v3749_v41 = vadd.f32 0.0001, %v3722_v6  ;;  %v3728_v4 = vmul.f32 %v8076_v30, %v3727_v2 }
 0x786   : > { %6917 = vst [vmem:[%s9496_s26 + $0x1f8] sm:$0xff] %v3862_v17 }
 0x787   : > { %v3765_v46 = vmul.f32 %v3749_v41, %v1230_v1  ;;  %v3729_v52 = vmul.f32 %v3728_v4, %v10041_v39  ;;  %v7724_v41 = vld [vmem:[%s12142_s1 + $0x8] sm:$0xff] }
 0x788   : > { %v3989_v14 = vpop.xlane.xlu0 %3988  ;;  %4442 = vmatpush.bf16.msra.mxu1 %v7728_v51 }
 0x789   : > { %v3781_v54 = vadd.f32 %v3765_v46, %v9984_v9  ;;  %v4020_v50 = vmul.f32 %v3989_v14, %v8799_v31  ;;  %v3731_v18 = vsel %vm3730_vm0, %v10041_v39, %v3729_v52 }
 0x78a   : > { %v3734_v40 = vsel %vm3732_vm1, %v3733_v15, %v3731_v18  ;;  %v7723_v15 = vld [vmem:[%s12142_s1] sm:$0xff]  ;;  %s12154_s1 = sshll.u32 %s12215_s0, 3 }
 0x78b   : > { %6868 = vst [vmem:[%s9496_s26 + $0x1c0] sm:$0xff] %v3781_v54  ;;  %v10080_v27 = vsub.f32 %v9923_v48, %v4020_v50  ;;  %v3750_v59 = vadd.f32 0.0001, %v3734_v40  ;;  %s10606_s3 = scalar_lea.vmem %s12153_s2, %s12154_s1  ;;  %s12155_s2 = sld [smem:[#allocation21_spill]] }
 0x78c   : > { %v3963_v10 = vpop.f32.mrf.mxu3  ;;  %4443 = vmatpush.bf16.msra.mxu1 %v7727_v57  ;;  %s7662_s1 = sshll.u32 %s12215_s0, 6 }
 0x78d   : > { %v4052_v9 = vmul.f32 %v10080_v27, %v10080_v27  ;;  %v10087_v47 = vadd.f32 %v9912_v7, %v3963_v10  ;;  %v3766_v37 = vmul.f32 %v3750_v59, %v1231_v19 }
 0x78f   : > { %4068 = vadd.xlane.f32.xlu0 %v4052_v9  ;;  %4000 = vadd.xlane.f32.xlu2 %v10087_v47  ;;  %v3782_v39 = vadd.f32 %v3766_v37, %v9993_v11 }
 0x790   : > { %v3991_v48 = vpop.xlane.xlu1 %3990  ;;  %4444 = vmatpush.bf16.msra.mxu1 %v7726_v0 }
 0x791   : > { %v4021_v49 = vmul.f32 %v3991_v48, %v8799_v31  ;;  %v3870_v36 = vpack.c.bf16 %v3782_v39, %v3781_v54  ;;  %6869 = vst [vmem:[%s9496_s26 + $0x1e0] sm:$0xff] %v3782_v39  ;;  %s12143_s26 = sld [smem:[#allocation12_spill]] }
 0x793   : > { %v10094_v62 = vsub.f32 %v9941_v25, %v4021_v49  ;;  %3982 = vmatmul.bf16.gmra.mxu3 %v3870_v36 }
 0x794   : > { %v3965_v38 = vpop.f32.mrf.mxu3  ;;  %4445 = vmatpush.bf16.msra.mxu1 %v7725_v3 }
 0x795   : > { %v4053_v42 = vmul.f32 %v10094_v62, %v10094_v62  ;;  %v10099_v26 = vadd.f32 %v9912_v7, %v3965_v38 }
 0x797   : > { %4070 = vadd.xlane.f32.xlu1 %v4053_v42  ;;  %4002 = vadd.xlane.f32.xlu0 %v10099_v26 }
 0x798   : > { %v3993_v11 = vpop.xlane.xlu2 %3992  ;;  %4446 = vmatpush.bf16.msra.mxu1 %v7724_v41 }
 0x799   : > { %v4022_v61 = vmul.f32 %v3993_v11, %v8799_v31 }
 0x79b   : > { %v10105_v25 = vsub.f32 %v9954_v29, %v4022_v61 }
 0x79c   : > { %v3968_v12 = vpop.f32.mrf.mxu3  ;;  %4447 = vmatpush.bf16.msra.mxu1 %v7723_v15 }
 0x79d   : > { %v4054_v24 = vmul.f32 %v10105_v25, %v10105_v25  ;;  %v10111_v44 = vadd.f32 %v9912_v7, %v3968_v12 }
 0x79f   : > { %4072 = vadd.xlane.f32.xlu1 %v4054_v24  ;;  %4004 = vadd.xlane.f32.xlu0 %v10111_v44 }
 0x7a0   : > { %v3995_v33 = vpop.xlane.xlu0 %3994 }
 0x7a1   : > { %v4023_v55 = vmul.f32 %v3995_v33, %v8799_v31 }
 0x7a3   : > { %v10117_v29 = vsub.f32 %v9960_v34, %v4023_v55 }
 0x7a4   : > { %v3970_v30 = vpop.f32.mrf.mxu3 }
 0x7a5   : > { %v4055_v58 = vmul.f32 %v10117_v29, %v10117_v29  ;;  %v10123_v16 = vadd.f32 %v9912_v7, %v3970_v30  ;;  %v10183_v30 = vld [vmem:[%s12143_s26] ss:$0 sm:$0xff]  ;;  %s12146_s26 = sld [smem:[#allocation18_spill]] }
 0x7a7   : > { %4074 = vadd.xlane.f32.xlu2 %v4055_v58  ;;  %4006 = vadd.xlane.f32.xlu1 %v10123_v16 }
 0x7aa   : > { %v3997_v60 = vpop.xlane.xlu1 %3996 }
 0x7ab   : > { %v4024_v56 = vmul.f32 %v3997_v60, %v8799_v31 }
 0x7ad   : > { %v10129_v34 = vsub.f32 %v9964_v43, %v4024_v56 }
 0x7ae   : > { %v3973_v5 = vpop.f32.mrf.mxu3 }
 0x7af   : > { %v10132_v8 = vadd.f32 %v9912_v7, %v3973_v5  ;;  %v4056_v28 = vmul.f32 %v10129_v34, %v10129_v34 }
 0x7b1   : > { %4008 = vadd.xlane.f32.xlu1 %v10132_v8  ;;  %4076 = vadd.xlane.f32.xlu2 %v4056_v28 }
 0x7b2   : > { %v3999_v32 = vpop.xlane.xlu2 %3998 }
 0x7b3   : > { %v4025_v13 = vmul.f32 %v3999_v32, %v8799_v31 }
 0x7b5   : > { %v10139_v20 = vsub.f32 %v9973_v45, %v4025_v13 }
 0x7b6   : > { %v3975_v63 = vpop.f32.mrf.mxu3 }
 0x7b7   : > { %v10142_v43 = vadd.f32 %v9912_v7, %v3975_v63  ;;  %v4057_v22 = vmul.f32 %v10139_v20, %v10139_v20 }
 0x7b9   : > { %4078 = vadd.xlane.f32.xlu0 %v4057_v22  ;;  %4010 = vadd.xlane.f32.xlu2 %v10142_v43  ;;  %v10192_v22 = vld [vmem:[%s12144_s7] ss:$0 sm:$0xff]  ;;  %s12147_s7 = sld [smem:[#allocation16_spill]] }
 0x802   : > { %v4069_v35 = vpop.xlane.xlu0 %4068  ;;  %v4001_v53 = vpop.xlane.xlu2 %4000 }
 0x803   : > { %v4100_v1 = vmul.f32 %v4069_v35, %v8799_v31  ;;  %v4026_v6 = vmul.f32 %v4001_v53, %v8799_v31 }
 0x805   : > { %v4116_v2 = vadd.f32 1e-05, %v4100_v1  ;;  %v10151_v17 = vsub.f32 %v10087_v47, %v4026_v6 }
 0x806   : > { %v3978_v45 = vpop.f32.mrf.mxu3 }
 0x807   : > { %v10154_v4 = vadd.f32 %v9912_v7, %v3978_v45  ;;  %8077 = vrsqrt.f32 %v4116_v2  ;;  %v4058_v46 = vmul.f32 %v10151_v17, %v10151_v17  ;;  %vm4138_vm3 = vweird.f32 %v4116_v2 }
 0x809   : > { %4012 = vadd.xlane.f32.xlu2 %v10154_v4  ;;  %4080 = vadd.xlane.f32.xlu0 %v4058_v46 }
 0x80a   : > { %v4071_v14 = vpop.xlane.xlu1 %4070  ;;  %v4003_v54 = vpop.xlane.xlu0 %4002 }
 0x80b   : > { %v4101_v52 = vmul.f32 %v4071_v14, %v8799_v31  ;;  %v4027_v50 = vmul.f32 %v4003_v54, %v8799_v31 }
 0x80d   : > { %v8078_v18 = vpop.eup %8077  ;;  %v4117_v19 = vadd.f32 1e-05, %v4101_v52  ;;  %v10163_v10 = vsub.f32 %v10099_v26, %v4027_v50 }
 0x80e   : > { %v3980_v40 = vpop.f32.mrf.mxu3  ;;  %v4133_v59 = vmul.f32 %v8078_v18, %v4116_v2  ;;  %vm4139_vm2 = vweird.f32 %v8078_v18 }
 0x80f   : > { %v10166_v9 = vadd.f32 %v9912_v7, %v3980_v40  ;;  %8079 = vrsqrt.f32 %v4117_v19  ;;  %v4059_v47 = vmul.f32 %v10163_v10, %v10163_v10  ;;  %vm4140_vm4 = vmor %vm4138_vm3, %vm4139_vm2  ;;  %vm4148_vm6 = vweird.f32 %v4117_v19 }
 0x810   : > { %v4134_v21 = vmul.f32 %v8078_v18, %v4133_v59 }
 0x811   : > { %4014 = vadd.xlane.f32.xlu0 %v10166_v9  ;;  %4082 = vadd.xlane.f32.xlu1 %v4059_v47 }
 0x812   : > { %v4135_v37 = vmul.f32 0.5, %v4134_v21  ;;  %v4073_v48 = vpop.xlane.xlu1 %4072  ;;  %v4005_v49 = vpop.xlane.xlu0 %4004 }
 0x813   : > { %v4102_v39 = vmul.f32 %v4073_v48, %v8799_v31  ;;  %v4028_v38 = vmul.f32 %v4005_v49, %v8799_v31 }
 0x814   : > { %v4136_v36 = vsub.f32 1.5, %v4135_v37 }
 0x815   : > { %v8080_v42 = vpop.eup %8079  ;;  %v4118_v26 = vadd.f32 1e-05, %v4102_v39  ;;  %v10174_v23 = vsub.f32 %v10111_v44, %v4028_v38 }
 0x816   : > { %v4137_v11 = vmul.f32 %v8078_v18, %v4136_v36  ;;  %v4143_v61 = vmul.f32 %v8080_v42, %v4117_v19  ;;  %v3983_v51 = vpop.f32.mrf.mxu3  ;;  %vm4149_vm5 = vweird.f32 %v8080_v42 }
 0x817   : > { %8081 = vrsqrt.f32 %v4118_v26  ;;  %v10177_v57 = vadd.f32 %v9912_v7, %v3983_v51  ;;  %v4060_v33 = vmul.f32 %v10174_v23, %v10174_v23  ;;  %vm4150_vm7 = vmor %vm4148_vm6, %vm4149_vm5  ;;  %vm4158_vm9 = vweird.f32 %v4118_v26 }
 0x818   : > { %v4141_v12 = vsel %vm4140_vm4, %v8078_v18, %v4137_v11  ;;  %v4144_v24 = vmul.f32 %v8080_v42, %v4143_v61 }
 0x819   : > { %4016 = vadd.xlane.f32.xlu0 %v10177_v57  ;;  %4084 = vadd.xlane.f32.xlu1 %v4060_v33  ;;  %v4292_v44 = vmul.f32 %v4141_v12, %v10080_v27 }
 0x81a   : > { %v4145_v55 = vmul.f32 0.5, %v4144_v24  ;;  %v4075_v0 = vpop.xlane.xlu2 %4074  ;;  %v4007_v58 = vpop.xlane.xlu1 %4006 }
 0x81b   : > { %v4103_v3 = vmul.f32 %v4075_v0, %v8799_v31  ;;  %v4029_v56 = vmul.f32 %v4007_v58, %v8799_v31  ;;  %v4312_v35 = vmul.f32 %v10183_v30, %v4292_v44 }
 0x81c   : > { %v4146_v60 = vsub.f32 1.5, %v4145_v55 }
 0x81d   : > { %v8082_v5 = vpop.eup %8081  ;;  %v4119_v28 = vadd.f32 1e-05, %v4103_v3  ;;  %v10189_v63 = vsub.f32 %v10123_v16, %v4029_v56  ;;  %v4332_v16 = vadd.f32 %v10192_v22, %v4312_v35 }
 0x81e   : > { %v4147_v32 = vmul.f32 %v8080_v42, %v4146_v60  ;;  %v4153_v13 = vmul.f32 %v8082_v5, %v4118_v26  ;;  %v3985_v27 = vpop.f32.mrf.mxu3  ;;  %vm4159_vm8 = vweird.f32 %v8082_v5 }
 0x81f   : > { %8083 = vrsqrt.f32 %v4119_v28  ;;  %v10196_v6 = vadd.f32 %v9912_v7, %v3985_v27  ;;  %v4061_v2 = vmul.f32 %v10189_v63, %v10189_v63  ;;  %vm4160_vm10 = vmor %vm4158_vm9, %vm4159_vm8  ;;  %v4348_v21 = vmax.f32 %v4332_v16, 0.0 }
 0x820   : > { %v4151_v53 = vsel %vm4150_vm7, %v8080_v42, %v4147_v32  ;;  %v4154_v1 = vmul.f32 %v8082_v5, %v4153_v13  ;;  %vm4168_vm12 = vweird.f32 %v4119_v28 }
 0x821   : > { %v4293_v45 = vmul.f32 %v4151_v53, %v10094_v62  ;;  %4086 = vadd.xlane.f32.xlu2 %v4061_v2  ;;  %4018 = vadd.xlane.f32.xlu1 %v10196_v6 }
 0x822   : > { %v4155_v41 = vmul.f32 0.5, %v4154_v1 }
 0x823   : > { %v4313_v46 = vmul.f32 %v10183_v30, %v4293_v45 }
 0x824   : > { %v4009_v14 = vpop.xlane.xlu1 %4008  ;;  %v4156_v52 = vsub.f32 1.5, %v4155_v41  ;;  %v4077_v7 = vpop.xlane.xlu2 %4076 }
 0x825   : > { %v4030_v54 = vmul.f32 %v4009_v14, %v8799_v31  ;;  %v8084_v50 = vpop.eup %8083  ;;  %v4333_v15 = vadd.f32 %v10192_v22, %v4313_v46  ;;  %v4104_v18 = vmul.f32 %v4077_v7, %v8799_v31 }
 0x826   : > { %v4157_v62 = vmul.f32 %v8082_v5, %v4156_v52  ;;  %v4163_v19 = vmul.f32 %v8084_v50, %v4119_v28  ;;  %vm4169_vm11 = vweird.f32 %v8084_v50 }
 0x827   : > { %v10208_v40 = vsub.f32 %v10132_v8, %v4030_v54  ;;  %v4120_v59 = vadd.f32 1e-05, %v4104_v18  ;;  %v4349_v47 = vmax.f32 %v4333_v15, 0.0  ;;  %vm4170_vm13 = vmor %vm4168_vm12, %vm4169_vm11 }
 0x828   : > { %v4161_v37 = vsel %vm4160_vm10, %v8082_v5, %v4157_v62  ;;  %v4164_v48 = vmul.f32 %v8084_v50, %v4163_v19 }
 0x829   : > { %v4062_v39 = vmul.f32 %v10208_v40, %v10208_v40  ;;  %8085 = vrsqrt.f32 %v4120_v59  ;;  %v4364_v49 = vpack.c.bf16 %v4349_v47, %v4348_v21  ;;  %v4294_v38 = vmul.f32 %v4161_v37, %v10105_v25 }
 0x82a   : > { %v4165_v36 = vmul.f32 0.5, %v4164_v48  ;;  %vm4178_vm15 = vweird.f32 %v4120_v59 }
 0x82b   : > { %4088 = vadd.xlane.f32.xlu2 %v4062_v39  ;;  %4448 = vmatmul.bf16.vlgmr.msra.gmra.mxu1 %v4364_v49  ;;  %v4314_v55 = vmul.f32 %v10183_v30, %v4294_v38 }
 0x82c   : > { %v4166_v42 = vsub.f32 1.5, %v4165_v36  ;;  %v4011_v8 = vpop.xlane.xlu2 %4010  ;;  %v4079_v26 = vpop.xlane.xlu0 %4078 }
 0x82d   : > { %v4031_v11 = vmul.f32 %v4011_v8, %v8799_v31  ;;  %v4105_v61 = vmul.f32 %v4079_v26, %v8799_v31  ;;  %v4334_v56 = vadd.f32 %v10192_v22, %v4314_v55 }
 0x82e   : > { %v4167_v51 = vmul.f32 %v8084_v50, %v4166_v42 }
 0x82f   : > { %v8086_v12 = vpop.eup %8085  ;;  %v10216_v24 = vsub.f32 %v10142_v43, %v4031_v11  ;;  %v4121_v33 = vadd.f32 1e-05, %v4105_v61  ;;  %v4350_v13 = vmax.f32 %v4334_v56, 0.0 }
 0x830   : > { %v4171_v25 = vsel %vm4170_vm13, %v8084_v50, %v4167_v51  ;;  %v4173_v0 = vmul.f32 %v8086_v12, %v4120_v59  ;;  %vm4179_vm14 = vweird.f32 %v8086_v12 }
 0x831   : > { %v4295_v44 = vmul.f32 %v4171_v25, %v10117_v29  ;;  %8087 = vrsqrt.f32 %v4121_v33  ;;  %v4063_v58 = vmul.f32 %v10216_v24, %v10216_v24  ;;  %vm4180_vm0 = vmor %vm4178_vm15, %vm4179_vm14  ;;  %vm4188_vm2 = vweird.f32 %v4121_v33 }
 0x832   : > { %v4174_v3 = vmul.f32 %v8086_v12, %v4173_v0 }
 0x833   : > { %4090 = vadd.xlane.f32.xlu0 %v4063_v58  ;;  %v4315_v60 = vmul.f32 %v10183_v30, %v4295_v44 }
 0x834   : > { %v4175_v5 = vmul.f32 0.5, %v4174_v3 }
 0x835   : > { %v4335_v43 = vadd.f32 %v10192_v22, %v4315_v60 }
 0x836   : > { %v4176_v28 = vsub.f32 1.5, %v4175_v5 }
 0x837   : > { %v8088_v32 = vpop.eup %8087  ;;  %v4351_v35 = vmax.f32 %v4335_v43, 0.0 }
 0x838   : > { %v4177_v27 = vmul.f32 %v8086_v12, %v4176_v28  ;;  %v4183_v29 = vmul.f32 %v8088_v32, %v4121_v33  ;;  %vm4189_vm1 = vweird.f32 %v8088_v32 }
 0x839   : > { %v4365_v53 = vpack.c.bf16 %v4351_v35, %v4350_v13  ;;  %vm4190_vm3 = vmor %vm4188_vm2, %vm4189_vm1 }
 0x83a   : > { %v4181_v1 = vsel %vm4180_vm0, %v8086_v12, %v4177_v27  ;;  %v4184_v2 = vmul.f32 %v8088_v32, %v4183_v29 }
 0x83b   : > { %4453 = vmatmul.bf16.gmra.mxu1 %v4365_v53  ;;  %v4296_v41 = vmul.f32 %v4181_v1, %v10129_v34 }
 0x83c   : > { %v4185_v45 = vmul.f32 0.5, %v4184_v2 }
 0x83d   : > { %v4316_v14 = vmul.f32 %v10183_v30, %v4296_v41 }
 0x83e   : > { %v4186_v16 = vsub.f32 1.5, %v4185_v45 }
 0x83f   : > { %v4336_v50 = vadd.f32 %v10192_v22, %v4316_v14 }
 0x840   : > { %v4187_v46 = vmul.f32 %v8088_v32, %v4186_v16 }
 0x841   : > { %v4352_v18 = vmax.f32 %v4336_v50, 0.0 }
 0x842   : > { %v4191_v52 = vsel %vm4190_vm3, %v8088_v32, %v4187_v46 }
 0x843   : > { %v4297_v54 = vmul.f32 %v4191_v52, %v10139_v20 }
 0x845   : > { %v4317_v7 = vmul.f32 %v10183_v30, %v4297_v54 }
 0x847   : > { %v4337_v15 = vadd.f32 %v10192_v22, %v4317_v7 }
 0x849   : > { %v4353_v62 = vmax.f32 %v4337_v15, 0.0 }
 0x84b   : > { %v4366_v19 = vpack.c.bf16 %v4353_v62, %v4352_v18 }
 0x84d   : > { %4458 = vmatmul.bf16.gmra.mxu1 %v4366_v19 }
 0x87c   : > { %v4013_v34 = vpop.xlane.xlu2 %4012  ;;  %v4081_v21 = vpop.xlane.xlu0 %4080 }
 0x87d   : > { %v4032_v59 = vmul.f32 %v4013_v34, %v8799_v31  ;;  %v4106_v37 = vmul.f32 %v4081_v21, %v8799_v31 }
 0x87f   : > { %v10233_v47 = vsub.f32 %v10154_v4, %v4032_v59  ;;  %v4122_v20 = vadd.f32 1e-05, %v4106_v37 }
 0x881   : > { %v4064_v48 = vmul.f32 %v10233_v47, %v10233_v47  ;;  %8089 = vrsqrt.f32 %v4122_v20  ;;  %vm4198_vm5 = vweird.f32 %v4122_v20 }
 0x883   : > { %4092 = vadd.xlane.f32.xlu1 %v4064_v48 }
 0x884   : > { %v4083_v39 = vpop.xlane.xlu1 %4082  ;;  %v4015_v49 = vpop.xlane.xlu0 %4014 }
 0x885   : > { %v4107_v36 = vmul.f32 %v4083_v39, %v8799_v31  ;;  %v4033_v38 = vmul.f32 %v4015_v49, %v8799_v31 }
 0x887   : > { %v8090_v42 = vpop.eup %8089  ;;  %v4123_v8 = vadd.f32 1e-05, %v4107_v36  ;;  %v10241_v26 = vsub.f32 %v10166_v9, %v4033_v38 }
 0x888   : > { %v4193_v4 = vmul.f32 %v8090_v42, %v4122_v20  ;;  %vm4199_vm4 = vweird.f32 %v8090_v42 }
 0x889   : > { %8091 = vrsqrt.f32 %v4123_v8  ;;  %v4065_v11 = vmul.f32 %v10241_v26, %v10241_v26  ;;  %vm4200_vm6 = vmor %vm4198_vm5, %vm4199_vm4  ;;  %vm4208_vm8 = vweird.f32 %v4123_v8 }
 0x88a   : > { %v4194_v61 = vmul.f32 %v8090_v42, %v4193_v4 }
 0x88b   : > { %4094 = vadd.xlane.f32.xlu2 %v4065_v11 }
 0x88c   : > { %v4195_v51 = vmul.f32 0.5, %v4194_v61  ;;  %v4085_v12 = vpop.xlane.xlu1 %4084  ;;  %v4017_v33 = vpop.xlane.xlu0 %4016 }
 0x88d   : > { %v4108_v55 = vmul.f32 %v4085_v12, %v8799_v31  ;;  %v4034_v25 = vmul.f32 %v4017_v33, %v8799_v31 }
 0x88e   : > { %v4196_v0 = vsub.f32 1.5, %v4195_v51 }
 0x88f   : > { %v8092_v44 = vpop.eup %8091  ;;  %v4124_v58 = vadd.f32 1e-05, %v4108_v55  ;;  %v10248_v9 = vsub.f32 %v10177_v57, %v4034_v25 }
 0x890   : > { %v4197_v3 = vmul.f32 %v8090_v42, %v4196_v0  ;;  %v4203_v60 = vmul.f32 %v8092_v44, %v4123_v8  ;;  %vm4209_vm7 = vweird.f32 %v8092_v44 }
 0x891   : > { %8093 = vrsqrt.f32 %v4124_v58  ;;  %v4066_v56 = vmul.f32 %v10248_v9, %v10248_v9  ;;  %vm4210_vm9 = vmor %vm4208_vm8, %vm4209_vm7  ;;  %vm4218_vm11 = vweird.f32 %v4124_v58 }
 0x892   : > { %v4201_v5 = vsel %vm4200_vm6, %v8090_v42, %v4197_v3  ;;  %v4204_v43 = vmul.f32 %v8092_v44, %v4203_v60  ;;  %v10268_v42 = vld [vmem:[%s12145_s22] ss:$0 sm:$0xff]  ;;  %s12148_s22 = sld [smem:[#allocation17_spill]] }
 0x893   : > { %4096 = vadd.xlane.f32.xlu0 %v4066_v56  ;;  %v4298_v35 = vmul.f32 %v4201_v5, %v10151_v17 }
 0x894   : > { %v4205_v28 = vmul.f32 0.5, %v4204_v43  ;;  %v4087_v32 = vpop.xlane.xlu2 %4086  ;;  %v4019_v13 = vpop.xlane.xlu1 %4018 }
 0x895   : > { %v4109_v27 = vmul.f32 %v4087_v32, %v8799_v31  ;;  %v4035_v57 = vmul.f32 %v4019_v13, %v8799_v31  ;;  %v4318_v17 = vmul.f32 %v10183_v30, %v4298_v35 }
 0x896   : > { %v4206_v29 = vsub.f32 1.5, %v4205_v28 }
 0x897   : > { %v8094_v53 = vpop.eup %8093  ;;  %v4125_v1 = vadd.f32 1e-05, %v4109_v27  ;;  %v10256_v2 = vsub.f32 %v10196_v6, %v4035_v57  ;;  %v4338_v15 = vadd.f32 %v10192_v22, %v4318_v17 }
 0x898   : > { %v4207_v45 = vmul.f32 %v8092_v44, %v4206_v29  ;;  %v4213_v41 = vmul.f32 %v8094_v53, %v4124_v58  ;;  %vm4219_vm10 = vweird.f32 %v8094_v53 }
 0x899   : > { %8095 = vrsqrt.f32 %v4125_v1  ;;  %v4067_v16 = vmul.f32 %v10256_v2, %v10256_v2  ;;  %vm4220_vm12 = vmor %vm4218_vm11, %vm4219_vm10  ;;  %vm4228_vm14 = vweird.f32 %v4125_v1 }
 0x89a   : > { %v4211_v46 = vsel %vm4210_vm9, %v8092_v44, %v4207_v45  ;;  %v4214_v14 = vmul.f32 %v8094_v53, %v4213_v41 }
 0x89b   : > { %v4299_v52 = vmul.f32 %v4211_v46, %v10163_v10  ;;  %4098 = vadd.xlane.f32.xlu1 %v4067_v16  ;;  %v4354_v10 = vmax.f32 %v4338_v15, 0.0 }
 0x89c   : > { %v4215_v54 = vmul.f32 0.5, %v4214_v14 }
 0x89d   : > { %v4319_v50 = vmul.f32 %v10183_v30, %v4299_v52 }
 0x89e   : > { %v4089_v7 = vpop.xlane.xlu2 %4088  ;;  %v4216_v18 = vsub.f32 1.5, %v4215_v54 }
 0x89f   : > { %v4110_v6 = vmul.f32 %v4089_v7, %v8799_v31  ;;  %v8096_v62 = vpop.eup %8095  ;;  %v4339_v34 = vadd.f32 %v10192_v22, %v4319_v50 }
 0x8a0   : > { %v4217_v59 = vmul.f32 %v8094_v53, %v4216_v18  ;;  %v4223_v21 = vmul.f32 %v8096_v62, %v4125_v1  ;;  %vm4229_vm13 = vweird.f32 %v8096_v62 }
 0x8a1   : > { %v4126_v19 = vadd.f32 1e-05, %v4110_v6  ;;  %v4355_v37 = vmax.f32 %v4339_v34, 0.0  ;;  %vm4230_vm15 = vmor %vm4228_vm14, %vm4229_vm13 }
 0x8a2   : > { %v4221_v20 = vsel %vm4220_vm12, %v8094_v53, %v4217_v59  ;;  %v4224_v48 = vmul.f32 %v8096_v62, %v4223_v21 }
 0x8a3   : > { %8097 = vrsqrt.f32 %v4126_v19  ;;  %v4367_v39 = vpack.c.bf16 %v4355_v37, %v4354_v10  ;;  %v4300_v36 = vmul.f32 %v4221_v20, %v10174_v23  ;;  %vm4238_vm1 = vweird.f32 %v4126_v19 }
 0x8a4   : > { %v4225_v49 = vmul.f32 0.5, %v4224_v48 }
 0x8a5   : > { %4463 = vmatmul.bf16.gmra.mxu1 %v4367_v39  ;;  %v4320_v23 = vmul.f32 %v10183_v30, %v4300_v36 }
 0x8a6   : > { %v4091_v38 = vpop.xlane.xlu0 %4090  ;;  %v4226_v8 = vsub.f32 1.5, %v4225_v49 }
 0x8a7   : > { %v4111_v4 = vmul.f32 %v4091_v38, %v8799_v31  ;;  %v4340_v60 = vadd.f32 %v10192_v22, %v4320_v23 }
 0x8a8   : > { %v4449_v61 = vpop.f32.mrf.mxu1  ;;  %v4227_v51 = vmul.f32 %v8096_v62, %v4226_v8 }
 0x8a9   : > { %v8098_v11 = vpop.eup %8097  ;;  %v4127_v33 = vadd.f32 1e-05, %v4111_v4  ;;  %v10272_v55 = vadd.f32 %v10268_v42, %v4449_v61 }
 0x8aa   : > { %v4233_v12 = vmul.f32 %v8098_v11, %v4126_v19  ;;  %v4231_v25 = vsel %vm4230_vm15, %v8096_v62, %v4227_v51  ;;  %vm4239_vm0 = vweird.f32 %v8098_v11 }
 0x8ab   : > { %8099 = vrsqrt.f32 %v4127_v33  ;;  %v4301_v44 = vmul.f32 %v4231_v25, %v10189_v63  ;;  %4489 = vadd.xlane.f32.xlu2 %v10272_v55  ;;  %v4356_v63 = vmax.f32 %v4340_v60, 0.0  ;;  %vm4240_vm2 = vmor %vm4238_vm1, %vm4239_vm0  ;;  %vm4248_vm4 = vweird.f32 %v4127_v33 }
 0x8ac   : > { %v4234_v0 = vmul.f32 %v8098_v11, %v4233_v12 }
 0x8ad   : > { %v4321_v3 = vmul.f32 %v10183_v30, %v4301_v44 }
 0x8ae   : > { %v4235_v58 = vmul.f32 0.5, %v4234_v0 }
 0x8af   : > { %v4341_v43 = vadd.f32 %v10192_v22, %v4321_v3 }
 0x8b0   : > { %v4236_v56 = vsub.f32 1.5, %v4235_v58  ;;  %v4451_v5 = vpop.f32.mrf.mxu1 }
 0x8b1   : > { %v8100_v28 = vpop.eup %8099  ;;  %v10281_v13 = vadd.f32 %v10268_v42, %v4451_v5  ;;  %v4357_v27 = vmax.f32 %v4341_v43, 0.0 }
 0x8b2   : > { %v4237_v32 = vmul.f32 %v8098_v11, %v4236_v56  ;;  %v4243_v35 = vmul.f32 %v8100_v28, %v4127_v33  ;;  %vm4249_vm3 = vweird.f32 %v8100_v28 }
 0x8b3   : > { %4491 = vadd.xlane.f32.xlu0 %v10281_v13  ;;  %v4368_v53 = vpack.c.bf16 %v4357_v27, %v4356_v63  ;;  %vm4250_vm5 = vmor %vm4248_vm4, %vm4249_vm3 }
 0x8b4   : > { %v4241_v57 = vsel %vm4240_vm2, %v8098_v11, %v4237_v32  ;;  %v4244_v29 = vmul.f32 %v8100_v28, %v4243_v35 }
 0x8b5   : > { %4468 = vmatmul.bf16.gmra.mxu1 %v4368_v53  ;;  %v4302_v45 = vmul.f32 %v4241_v57, %v10208_v40 }
 0x8b6   : > { %v4245_v1 = vmul.f32 0.5, %v4244_v29 }
 0x8b7   : > { %v4322_v14 = vmul.f32 %v10183_v30, %v4302_v45 }
 0x8b8   : > { %v4246_v41 = vsub.f32 1.5, %v4245_v1  ;;  %v4454_v16 = vpop.f32.mrf.mxu1 }
 0x8b9   : > { %v10286_v17 = vadd.f32 %v10268_v42, %v4454_v16  ;;  %v4342_v40 = vadd.f32 %v10192_v22, %v4322_v14 }
 0x8ba   : > { %v4247_v46 = vmul.f32 %v8100_v28, %v4246_v41 }
 0x8bb   : > { %4493 = vadd.xlane.f32.xlu1 %v10286_v17  ;;  %v4358_v18 = vmax.f32 %v4342_v40, 0.0 }
 0x8bc   : > { %v4251_v52 = vsel %vm4250_vm5, %v8100_v28, %v4247_v46 }
 0x8bd   : > { %v4303_v54 = vmul.f32 %v4251_v52, %v10216_v24 }
 0x8bf   : > { %v4323_v7 = vmul.f32 %v10183_v30, %v4303_v54 }
 0x8c0   : > { %v4456_v6 = vpop.f32.mrf.mxu1 }
 0x8c1   : > { %v10294_v50 = vadd.f32 %v10268_v42, %v4456_v6  ;;  %v4343_v15 = vadd.f32 %v10192_v22, %v4323_v7 }
 0x8c3   : > { %4495 = vadd.xlane.f32.xlu2 %v10294_v50  ;;  %v4359_v62 = vmax.f32 %v4343_v15, 0.0 }
 0x8c5   : > { %v4369_v19 = vpack.c.bf16 %v4359_v62, %v4358_v18 }
 0x8c7   : > { %4473 = vmatmul.bf16.gmra.mxu1 %v4369_v19 }
 0x8ca   : > { %v4459_v34 = vpop.f32.mrf.mxu1 }
 0x8cb   : > { %v10299_v59 = vadd.f32 %v10268_v42, %v4459_v34 }
 0x8cd   : > { %4497 = vadd.xlane.f32.xlu0 %v10299_v59 }
 0x8d2   : > { %v4461_v24 = vpop.f32.mrf.mxu1 }
 0x8d3   : > { %v10303_v21 = vadd.f32 %v10268_v42, %v4461_v24 }
 0x8d5   : > { %4499 = vadd.xlane.f32.xlu1 %v10303_v21 }
 0x8f6   : > { %v4093_v10 = vpop.xlane.xlu1 %4092 }
 0x8f7   : > { %v4112_v37 = vmul.f32 %v4093_v10, %v8799_v31 }
 0x8f9   : > { %v4128_v20 = vadd.f32 1e-05, %v4112_v37 }
 0x8fb   : > { %8101 = vrsqrt.f32 %v4128_v20  ;;  %vm4258_vm7 = vweird.f32 %v4128_v20 }
 0x8fe   : > { %v4095_v48 = vpop.xlane.xlu2 %4094 }
 0x8ff   : > { %v4113_v49 = vmul.f32 %v4095_v48, %v8799_v31 }
 0x901   : > { %v8102_v39 = vpop.eup %8101  ;;  %v4129_v38 = vadd.f32 1e-05, %v4113_v49 }
 0x902   : > { %v4253_v36 = vmul.f32 %v8102_v39, %v4128_v20  ;;  %vm4259_vm6 = vweird.f32 %v8102_v39 }
 0x903   : > { %8103 = vrsqrt.f32 %v4129_v38  ;;  %vm4260_vm8 = vmor %vm4258_vm7, %vm4259_vm6  ;;  %vm4268_vm10 = vweird.f32 %v4129_v38 }
 0x904   : > { %v4254_v8 = vmul.f32 %v8102_v39, %v4253_v36 }
 0x906   : > { %v4255_v4 = vmul.f32 0.5, %v4254_v8  ;;  %v4097_v61 = vpop.xlane.xlu0 %4096 }
 0x907   : > { %v4114_v51 = vmul.f32 %v4097_v61, %v8799_v31 }
 0x908   : > { %v4256_v11 = vsub.f32 1.5, %v4255_v4 }
 0x909   : > { %v8104_v33 = vpop.eup %8103  ;;  %v4130_v23 = vadd.f32 1e-05, %v4114_v51 }
 0x90a   : > { %v4257_v12 = vmul.f32 %v8102_v39, %v4256_v11  ;;  %v4263_v25 = vmul.f32 %v8104_v33, %v4129_v38  ;;  %vm4269_vm9 = vweird.f32 %v8104_v33 }
 0x90b   : > { %8105 = vrsqrt.f32 %v4130_v23  ;;  %vm4270_vm11 = vmor %vm4268_vm10, %vm4269_vm9  ;;  %vm4278_vm13 = vweird.f32 %v4130_v23 }
 0x90c   : > { %v4261_v0 = vsel %vm4260_vm8, %v8102_v39, %v4257_v12  ;;  %v4264_v44 = vmul.f32 %v8104_v33, %v4263_v25 }
 0x90d   : > { %v4304_v60 = vmul.f32 %v4261_v0, %v10233_v47 }
 0x90e   : > { %v4265_v58 = vmul.f32 0.5, %v4264_v44  ;;  %v4099_v3 = vpop.xlane.xlu1 %4098 }
 0x90f   : > { %v4115_v56 = vmul.f32 %v4099_v3, %v8799_v31  ;;  %v4324_v63 = vmul.f32 %v10183_v30, %v4304_v60 }
 0x910   : > { %v4266_v5 = vsub.f32 1.5, %v4265_v58 }
 0x911   : > { %v8106_v43 = vpop.eup %8105  ;;  %v4131_v28 = vadd.f32 1e-05, %v4115_v56  ;;  %v4344_v1 = vadd.f32 %v10192_v22, %v4324_v63 }
 0x912   : > { %v4267_v32 = vmul.f32 %v8104_v33, %v4266_v5  ;;  %v4273_v35 = vmul.f32 %v8106_v43, %v4130_v23  ;;  %vm4279_vm12 = vweird.f32 %v8106_v43 }
 0x913   : > { %8107 = vrsqrt.f32 %v4131_v28  ;;  %vm4280_vm14 = vmor %vm4278_vm13, %vm4279_vm12  ;;  %v4360_v52 = vmax.f32 %v4344_v1, 0.0  ;;  %vm4288_vm0 = vweird.f32 %v4131_v28  ;;  %v7737_v1 = vld [vmem:[%s12146_s26 + $0x30] sm:$0xff] }
 0x914   : > { %v4271_v27 = vsel %vm4270_vm11, %v8104_v33, %v4267_v32  ;;  %v4274_v57 = vmul.f32 %v8106_v43, %v4273_v35 }
 0x915   : > { %v4305_v29 = vmul.f32 %v4271_v27, %v10241_v26 }
 0x916   : > { %v4275_v53 = vmul.f32 0.5, %v4274_v57 }
 0x917   : > { %v4325_v47 = vmul.f32 %v10183_v30, %v4305_v29 }
 0x918   : > { %v4276_v45 = vsub.f32 1.5, %v4275_v53 }
 0x919   : > { %v8108_v41 = vpop.eup %8107  ;;  %v4345_v16 = vadd.f32 %v10192_v22, %v4325_v47  ;;  %v7738_v47 = vld [vmem:[%s12146_s26 + $0x38] sm:$0xff] }
 0x91a   : > { %v4277_v46 = vmul.f32 %v8106_v43, %v4276_v45  ;;  %v4283_v14 = vmul.f32 %v8108_v41, %v4131_v28  ;;  %vm4289_vm15 = vweird.f32 %v8108_v41  ;;  %4941 = vmatpush.bf16.msra.mxu0 %v7738_v47  ;;  %v7736_v45 = vld [vmem:[%s12146_s26 + $0x28] sm:$0xff] }
 0x91b   : > { %v4361_v54 = vmax.f32 %v4345_v16, 0.0  ;;  %vm4290_vm1 = vmor %vm4288_vm0, %vm4289_vm15 }
 0x91c   : > { %v4281_v7 = vsel %vm4280_vm14, %v8106_v43, %v4277_v46  ;;  %v4284_v40 = vmul.f32 %v8108_v41, %v4283_v14 }
 0x91d   : > { %v4370_v6 = vpack.c.bf16 %v4361_v54, %v4360_v52  ;;  %v4306_v18 = vmul.f32 %v4281_v7, %v10248_v9  ;;  %v7733_v54 = vld [vmem:[%s12146_s26 + $0x10] sm:$0xff] }
 0x91e   : > { %v4285_v26 = vmul.f32 0.5, %v4284_v40  ;;  %v4490_v15 = vpop.xlane.xlu2 %4489  ;;  %4942 = vmatpush.bf16.msra.mxu0 %v7737_v1 }
 0x91f   : > { %v4521_v62 = vmul.f32 %v4490_v15, %v8799_v31  ;;  %4478 = vmatmul.bf16.gmra.mxu1 %v4370_v6  ;;  %v4326_v9 = vmul.f32 %v10183_v30, %v4306_v18  ;;  %v7732_v18 = vld [vmem:[%s12146_s26 + $0x8] sm:$0xff] }
 0x920   : > { %v4286_v19 = vsub.f32 1.5, %v4285_v26 }
 0x921   : > { %v10319_v34 = vsub.f32 %v10272_v55, %v4521_v62  ;;  %v4346_v38 = vadd.f32 %v10192_v22, %v4326_v9 }
 0x922   : > { %v4287_v24 = vmul.f32 %v8108_v41, %v4286_v19  ;;  %v4464_v10 = vpop.f32.mrf.mxu1  ;;  %4943 = vmatpush.bf16.msra.mxu0 %v7736_v45 }
 0x923   : > { %v10322_v37 = vadd.f32 %v10268_v42, %v4464_v10  ;;  %v4553_v20 = vmul.f32 %v10319_v34, %v10319_v34  ;;  %v4362_v51 = vmax.f32 %v4346_v38, 0.0 }
 0x924   : > { %v4291_v48 = vsel %vm4290_vm1, %v8108_v41, %v4287_v24  ;;  %v7735_v41 = vld [vmem:[%s12146_s26 + $0x20] sm:$0xff] }
 0x925   : > { %v4307_v39 = vmul.f32 %v4291_v48, %v10256_v2  ;;  %4501 = vadd.xlane.f32.xlu1 %v10322_v37  ;;  %4569 = vadd.xlane.f32.xlu2 %v4553_v20 }
 0x926   : > { %v4492_v55 = vpop.xlane.xlu0 %4491  ;;  %4944 = vmatpush.bf16.msra.mxu0 %v7735_v41 }
 0x927   : > { %v4522_v49 = vmul.f32 %v4492_v55, %v8799_v31  ;;  %v4327_v36 = vmul.f32 %v10183_v30, %v4307_v39 }
 0x929   : > { %v10333_v8 = vsub.f32 %v10281_v13, %v4522_v49  ;;  %v4347_v4 = vadd.f32 %v10192_v22, %v4327_v36 }
 0x92a   : > { %v4466_v11 = vpop.f32.mrf.mxu1 }
 0x92b   : > { %v4554_v61 = vmul.f32 %v10333_v8, %v10333_v8  ;;  %v10339_v2 = vadd.f32 %v10268_v42, %v4466_v11  ;;  %v4363_v12 = vmax.f32 %v4347_v4, 0.0 }
 0x92d   : > { %4571 = vadd.xlane.f32.xlu0 %v4554_v61  ;;  %4503 = vadd.xlane.f32.xlu2 %v10339_v2  ;;  %v4371_v33 = vpack.c.bf16 %v4363_v12, %v4362_v51 }
 0x92e   : > { %v4494_v30 = vpop.xlane.xlu1 %4493 }
 0x92f   : > { %v4523_v23 = vmul.f32 %v4494_v30, %v8799_v31  ;;  %4483 = vmatmul.bf16.gmra.mxu1 %v4371_v33 }
 0x931   : > { %v10344_v13 = vsub.f32 %v10286_v17, %v4523_v23 }
 0x932   : > { %v4469_v22 = vpop.f32.mrf.mxu1 }
 0x933   : > { %v4555_v25 = vmul.f32 %v10344_v13, %v10344_v13  ;;  %v10349_v0 = vadd.f32 %v10268_v42, %v4469_v22 }
 0x935   : > { %4573 = vadd.xlane.f32.xlu0 %v4555_v25  ;;  %4505 = vadd.xlane.f32.xlu2 %v10349_v0 }
 0x936   : > { %v4496_v44 = vpop.xlane.xlu2 %4495 }
 0x937   : > { %v4524_v58 = vmul.f32 %v4496_v44, %v8799_v31 }
 0x939   : > { %v10354_v3 = vsub.f32 %v10294_v50, %v4524_v58 }
 0x93a   : > { %v4471_v60 = vpop.f32.mrf.mxu1 }
 0x93b   : > { %v4556_v17 = vmul.f32 %v10354_v3, %v10354_v3  ;;  %v10359_v56 = vadd.f32 %v10268_v42, %v4471_v60 }
 0x93d   : > { %4575 = vadd.xlane.f32.xlu1 %v4556_v17  ;;  %4507 = vadd.xlane.f32.xlu0 %v10359_v56 }
 0x940   : > { %v4498_v5 = vpop.xlane.xlu0 %4497 }
 0x941   : > { %v4525_v43 = vmul.f32 %v4498_v5, %v8799_v31 }
 0x943   : > { %v10364_v28 = vsub.f32 %v10299_v59, %v4525_v43 }
 0x944   : > { %v4474_v50 = vpop.f32.mrf.mxu1 }
 0x945   : > { %v10367_v32 = vadd.f32 %v10268_v42, %v4474_v50  ;;  %v4557_v35 = vmul.f32 %v10364_v28, %v10364_v28 }
 0x947   : > { %4509 = vadd.xlane.f32.xlu0 %v10367_v32  ;;  %4577 = vadd.xlane.f32.xlu1 %v4557_v35 }
 0x948   : > { %v4500_v63 = vpop.xlane.xlu1 %4499 }
 0x949   : > { %v4526_v27 = vmul.f32 %v4500_v63, %v8799_v31  ;;  %v10425_v63 = vld [vmem:[%s12147_s7] ss:$0 sm:$0xff]  ;;  %s12149_s7 = sld [smem:[#allocation20_spill]] }
 0x94b   : > { %v10374_v59 = vsub.f32 %v10303_v21, %v4526_v27  ;;  %v7734_v21 = vld [vmem:[%s12146_s26 + $0x18] sm:$0xff] }
 0x94c   : > { %v4476_v57 = vpop.f32.mrf.mxu1  ;;  %4945 = vmatpush.bf16.msra.mxu0 %v7734_v21 }
 0x94d   : > { %v10377_v29 = vadd.f32 %v10268_v42, %v4476_v57  ;;  %v4558_v53 = vmul.f32 %v10374_v59, %v10374_v59 }
 0x94f   : > { %4579 = vadd.xlane.f32.xlu2 %v4558_v53  ;;  %4511 = vadd.xlane.f32.xlu1 %v10377_v29 }
 0x950   : > { %4946 = vmatpush.bf16.msra.mxu0 %v7733_v54 }
 0x954   : > { %4947 = vmatpush.bf16.msra.mxu0 %v7732_v18 }
 0x998   : > { %v4502_v16 = vpop.xlane.xlu1 %4501  ;;  %v4570_v46 = vpop.xlane.xlu2 %4569 }
 0x999   : > { %v4527_v14 = vmul.f32 %v4502_v16, %v8799_v31  ;;  %v4601_v52 = vmul.f32 %v4570_v46, %v8799_v31  ;;  %v10433_v46 = vld [vmem:[%s12148_s22] ss:$0 sm:$0xff]  ;;  %s12152_s22 = sld [smem:[#allocation19_spill]] }
 0x99b   : > { %v10391_v7 = vsub.f32 %v10322_v37, %v4527_v14  ;;  %v4617_v40 = vadd.f32 1e-05, %v4601_v52  ;;  %v7731_v37 = vld [vmem:[%s12146_s26] sm:$0xff] }
 0x99c   : > { %v4479_v6 = vpop.f32.mrf.mxu1  ;;  %4948 = vmatpush.bf16.msra.mxu0 %v7731_v37 }
 0x99d   : > { %8109 = vrsqrt.f32 %v4617_v40  ;;  %v10394_v26 = vadd.f32 %v10268_v42, %v4479_v6  ;;  %v4559_v15 = vmul.f32 %v10391_v7, %v10391_v7  ;;  %vm4639_vm3 = vweird.f32 %v4617_v40 }
 0x99f   : > { %4581 = vadd.xlane.f32.xlu2 %v4559_v15  ;;  %4513 = vadd.xlane.f32.xlu1 %v10394_v26 }
 0x9a0   : > { %v4572_v62 = vpop.xlane.xlu0 %4571  ;;  %v4504_v19 = vpop.xlane.xlu2 %4503 }
 0x9a1   : > { %v4602_v24 = vmul.f32 %v4572_v62, %v8799_v31  ;;  %v4528_v10 = vmul.f32 %v4504_v19, %v8799_v31 }
 0x9a3   : > { %v4618_v20 = vadd.f32 1e-05, %v4602_v24  ;;  %v8110_v9 = vpop.eup %8109  ;;  %v10404_v48 = vsub.f32 %v10339_v2, %v4528_v10 }
 0x9a4   : > { %v4634_v39 = vmul.f32 %v8110_v9, %v4617_v40  ;;  %v4481_v55 = vpop.f32.mrf.mxu1  ;;  %vm4640_vm2 = vweird.f32 %v8110_v9 }
 0x9a5   : > { %8111 = vrsqrt.f32 %v4618_v20  ;;  %v10407_v49 = vadd.f32 %v10268_v42, %v4481_v55  ;;  %v4560_v36 = vmul.f32 %v10404_v48, %v10404_v48  ;;  %vm4641_vm4 = vmor %vm4639_vm3, %vm4640_vm2  ;;  %vm4649_vm6 = vweird.f32 %v4618_v20 }
 0x9a6   : > { %v4635_v38 = vmul.f32 %v8110_v9, %v4634_v39 }
 0x9a7   : > { %4515 = vadd.xlane.f32.xlu2 %v10407_v49  ;;  %4583 = vadd.xlane.f32.xlu0 %v4560_v36 }
 0x9a8   : > { %v4574_v4 = vpop.xlane.xlu0 %4573  ;;  %v4636_v11 = vmul.f32 0.5, %v4635_v38  ;;  %v4506_v61 = vpop.xlane.xlu2 %4505 }
 0x9a9   : > { %v4603_v2 = vmul.f32 %v4574_v4, %v8799_v31  ;;  %v4529_v51 = vmul.f32 %v4506_v61, %v8799_v31 }
 0x9aa   : > { %v4637_v30 = vsub.f32 1.5, %v4636_v11 }
 0x9ab   : > { %v8112_v12 = vpop.eup %8111  ;;  %v4619_v33 = vadd.f32 1e-05, %v4603_v2  ;;  %v10415_v22 = vsub.f32 %v10349_v0, %v4529_v51 }
 0x9ac   : > { %v4644_v23 = vmul.f32 %v8112_v12, %v4618_v20  ;;  %v4638_v25 = vmul.f32 %v8110_v9, %v4637_v30  ;;  %v4484_v44 = vpop.f32.mrf.mxu1  ;;  %vm4650_vm5 = vweird.f32 %v8112_v12 }
 0x9ad   : > { %8113 = vrsqrt.f32 %v4619_v33  ;;  %v10418_v60 = vadd.f32 %v10268_v42, %v4484_v44  ;;  %v4561_v17 = vmul.f32 %v10415_v22, %v10415_v22  ;;  %vm4651_vm7 = vmor %vm4649_vm6, %vm4650_vm5  ;;  %vm4659_vm9 = vweird.f32 %v4619_v33 }
 0x9ae   : > { %v4645_v58 = vmul.f32 %v8112_v12, %v4644_v23  ;;  %v4642_v5 = vsel %vm4641_vm4, %v8110_v9, %v4638_v25 }
 0x9af   : > { %4517 = vadd.xlane.f32.xlu2 %v10418_v60  ;;  %4585 = vadd.xlane.f32.xlu0 %v4561_v17  ;;  %v4793_v27 = vmul.f32 %v4642_v5, %v10319_v34 }
 0x9b0   : > { %v4646_v43 = vmul.f32 0.5, %v4645_v58  ;;  %v4576_v0 = vpop.xlane.xlu1 %4575  ;;  %v4508_v35 = vpop.xlane.xlu0 %4507 }
 0x9b1   : > { %v4604_v50 = vmul.f32 %v4576_v0, %v8799_v31  ;;  %v4530_v53 = vmul.f32 %v4508_v35, %v8799_v31  ;;  %v4813_v14 = vmul.f32 %v10425_v63, %v4793_v27 }
 0x9b2   : > { %v4647_v57 = vsub.f32 1.5, %v4646_v43 }
 0x9b3   : > { %v8114_v47 = vpop.eup %8113  ;;  %v4620_v1 = vadd.f32 1e-05, %v4604_v50  ;;  %v10430_v21 = vsub.f32 %v10359_v56, %v4530_v53  ;;  %v4833_v18 = vadd.f32 %v10433_v46, %v4813_v14 }
 0x9b4   : > { %v4648_v45 = vmul.f32 %v8112_v12, %v4647_v57  ;;  %v4654_v41 = vmul.f32 %v8114_v47, %v4619_v33  ;;  %v4486_v16 = vpop.f32.mrf.mxu1  ;;  %vm4660_vm8 = vweird.f32 %v8114_v47 }
 0x9b5   : > { %8115 = vrsqrt.f32 %v4620_v1  ;;  %v10437_v54 = vadd.f32 %v10268_v42, %v4486_v16  ;;  %v4562_v6 = vmul.f32 %v10430_v21, %v10430_v21  ;;  %vm4661_vm10 = vmor %vm4659_vm9, %vm4660_vm8  ;;  %v4849_v11 = vmax.f32 %v4833_v18, 0.0 }
 0x9b6   : > { %v4652_v34 = vsel %vm4651_vm7, %v8112_v12, %v4648_v45  ;;  %v4655_v52 = vmul.f32 %v8114_v47, %v4654_v41  ;;  %vm4669_vm12 = vweird.f32 %v4620_v1 }
 0x9b7   : > { %v4794_v40 = vmul.f32 %v4652_v34, %v10333_v8  ;;  %4519 = vadd.xlane.f32.xlu0 %v10437_v54  ;;  %4587 = vadd.xlane.f32.xlu1 %v4562_v6 }
 0x9b8   : > { %v4656_v15 = vmul.f32 0.5, %v4655_v52 }
 0x9b9   : > { %v4814_v56 = vmul.f32 %v10425_v63, %v4794_v40 }
 0x9ba   : > { %v4657_v62 = vsub.f32 1.5, %v4656_v15  ;;  %v4578_v19 = vpop.xlane.xlu1 %4577  ;;  %v4510_v24 = vpop.xlane.xlu0 %4509 }
 0x9bb   : > { %v8116_v10 = vpop.eup %8115  ;;  %v4834_v42 = vadd.f32 %v10433_v46, %v4814_v56  ;;  %v4605_v8 = vmul.f32 %v4578_v19, %v8799_v31  ;;  %v4531_v37 = vmul.f32 %v4510_v24, %v8799_v31 }
 0x9bc   : > { %v4658_v20 = vmul.f32 %v8114_v47, %v4657_v62  ;;  %v4664_v9 = vmul.f32 %v8116_v10, %v4620_v1  ;;  %vm4670_vm11 = vweird.f32 %v8116_v10 }
 0x9bd   : > { %v4621_v39 = vadd.f32 1e-05, %v4605_v8  ;;  %v10449_v55 = vsub.f32 %v10367_v32, %v4531_v37  ;;  %v4850_v36 = vmax.f32 %v4834_v42, 0.0  ;;  %vm4671_vm13 = vmor %vm4669_vm12, %vm4670_vm11 }
 0x9be   : > { %v4662_v38 = vsel %vm4661_vm10, %v8114_v47, %v4658_v20  ;;  %v4665_v4 = vmul.f32 %v8116_v10, %v4664_v9  ;;  %v7588_v9 = vld [vmem:[%s12149_s7 + $0x70] sm:$0xf] }
 0x9bf   : > { %8117 = vrsqrt.f32 %v4621_v39  ;;  %v4563_v61 = vmul.f32 %v10449_v55, %v10449_v55  ;;  %v4865_v51 = vpack.c.bf16 %v4850_v36, %v4849_v11  ;;  %v4795_v12 = vmul.f32 %v4662_v38, %v10344_v13  ;;  %v7753_v36 = vld [vmem:[%s12149_s7 + $0x74] sm:$0xf]  ;;  %v7770_v11 = vld [vmem:[%s8697_s20 + $0x74] sm:$0xf0] }
 0x9c0   : > { %v4666_v2 = vmul.f32 0.5, %v4665_v4  ;;  %vm4679_vm15 = vweird.f32 %v4621_v39  ;;  %v7590_v4 = vld [vmem:[%s12149_s7 + $0x78] sm:$0xf0] }
 0x9c1   : > { %4589 = vadd.xlane.f32.xlu1 %v4563_v61  ;;  %4949 = vmatmul.bf16.vlgmr.msra.gmra.mxu0 %v4865_v51  ;;  %v4815_v13 = vmul.f32 %v10425_v63, %v4795_v12  ;;  %v7593_v61 = vor.u32 %v7753_v36, %v7590_v4  ;;  %v7620_v4 = vld [vmem:[%s8697_s20 + $0x30] sm:$0xf] }
 0x9c2   : > { %v4667_v30 = vsub.f32 1.5, %v4666_v2  ;;  %v4580_v33 = vpop.xlane.xlu2 %4579  ;;  %v4512_v23 = vpop.xlane.xlu1 %4511 }
 0x9c3   : > { %v4606_v32 = vmul.f32 %v4580_v33, %v8799_v31  ;;  %v4532_v25 = vmul.f32 %v4512_v23, %v8799_v31  ;;  %v4835_v53 = vadd.f32 %v10433_v46, %v4815_v13  ;;  %5149 = vmatpush.bf16.msrb.mxu3 %v7593_v61  ;;  %v7752_v33 = vld [vmem:[%s12149_s7 + $0x64] sm:$0xf0]  ;;  %v7751_v23 = vld [vmem:[%s12149_s7 + $0x64] sm:$0xf]  ;;  %v7762_v61 = vld [vmem:[%s8697_s20 + $0x34] sm:$0xf0] }
 0x9c4   : > { %v4668_v44 = vmul.f32 %v8116_v10, %v4667_v30  ;;  %v7580_v30 = vld [vmem:[%s12149_s7 + $0x60] sm:$0xf]  ;;  %v7768_v13 = vld [vmem:[%s8697_s20 + $0x64] sm:$0xf0] }
 0x9c5   : > { %v8118_v58 = vpop.eup %8117  ;;  %v4622_v17 = vadd.f32 1e-05, %v4606_v32  ;;  %v10457_v5 = vsub.f32 %v10377_v29, %v4532_v25  ;;  %v4851_v41 = vmax.f32 %v4835_v53, 0.0  ;;  %v7749_v53 = vld [vmem:[%s12149_s7 + $0x54] sm:$0xf] }
 0x9c6   : > { %v4672_v43 = vsel %vm4671_vm13, %v8116_v10, %v4668_v44  ;;  %v4674_v0 = vmul.f32 %v8118_v58, %v4621_v39  ;;  %vm4680_vm14 = vweird.f32 %v8118_v58  ;;  %v7754_v39 = vld [vmem:[%s12149_s7 + $0x74] sm:$0xf0]  ;;  %v7581_v44 = vor.u32 %v7752_v33, %v7580_v30  ;;  %v7548_v33 = vld [vmem:[%s12149_s7 + $0x20] sm:$0xf] }
 0x9c7   : > { %v4796_v50 = vmul.f32 %v4672_v43, %v10354_v3  ;;  %8119 = vrsqrt.f32 %v4622_v17  ;;  %v4564_v35 = vmul.f32 %v10457_v5, %v10457_v5  ;;  %vm4681_vm0 = vmor %vm4679_vm15, %vm4680_vm14  ;;  %vm4689_vm2 = vweird.f32 %v4622_v17 }
 0x9c8   : > { %v4675_v27 = vmul.f32 %v8118_v58, %v4674_v0  ;;  %v7589_v38 = vor.u32 %v7754_v39, %v7588_v9  ;;  %v7746_v9 = vld [vmem:[%s12149_s7 + $0x34] sm:$0xf0]  ;;  %v7745_v39 = vld [vmem:[%s12149_s7 + $0x34] sm:$0xf] }
 0x9c9   : > { %4591 = vadd.xlane.f32.xlu2 %v4564_v35  ;;  %v4816_v57 = vmul.f32 %v10425_v63, %v4796_v50 }
 0x9ca   : > { %v4676_v47 = vmul.f32 0.5, %v4675_v27  ;;  %5100 = vmatpush.bf16.msrb.mxu2 %v7589_v38  ;;  %v7572_v27 = vld [vmem:[%s12149_s7 + $0x50] sm:$0xf]  ;;  %v7558_v38 = vld [vmem:[%s12149_s7 + $0x38] sm:$0xf0] }
 0x9cb   : > { %v4836_v29 = vadd.f32 %v10433_v46, %v4816_v57  ;;  %v7750_v57 = vld [vmem:[%s12149_s7 + $0x54] sm:$0xf0] }
 0x9cc   : > { %v4677_v1 = vsub.f32 1.5, %v4676_v47 }
 0x9cd   : > { %v8120_v45 = vpop.eup %8119  ;;  %v4852_v16 = vmax.f32 %v4836_v29, 0.0  ;;  %v7573_v29 = vor.u32 %v7750_v57, %v7572_v27  ;;  %v7760_v27 = vld [vmem:[%s8697_s20 + $0x24] sm:$0xf0] }
 0x9ce   : > { %v4678_v14 = vmul.f32 %v8118_v58, %v4677_v1  ;;  %v4684_v3 = vmul.f32 %v8120_v45, %v4622_v17  ;;  %vm4690_vm1 = vweird.f32 %v8120_v45  ;;  %v7644_v17 = vld [vmem:[%s8697_s20 + $0x60] sm:$0xf]  ;;  %5101 = vmatpush.bf16.msrb.mxu2 %v7581_v44  ;;  %v7574_v1 = vld [vmem:[%s12149_s7 + $0x58] sm:$0xf0]  ;;  %v7743_v44 = vld [vmem:[%s12149_s7 + $0x24] sm:$0xf] }
 0x9cf   : > { %v4866_v34 = vpack.c.bf16 %v4852_v16, %v4851_v41  ;;  %vm4691_vm3 = vmor %vm4689_vm2, %vm4690_vm1  ;;  %v7645_v0 = vor.u32 %v7768_v13, %v7644_v17  ;;  %v7577_v41 = vor.u32 %v7749_v53, %v7574_v1 }
 0x9d0   : > { %v4682_v52 = vsel %vm4681_vm0, %v8118_v58, %v4678_v14  ;;  %v4685_v40 = vmul.f32 %v8120_v45, %v4684_v3  ;;  %v7582_v58 = vld [vmem:[%s12149_s7 + $0x68] sm:$0xf0] }
 0x9d1   : > { %4954 = vmatmul.bf16.gmra.mxu0 %v4866_v34  ;;  %v4797_v15 = vmul.f32 %v4682_v52, %v10364_v28  ;;  %v7585_v43 = vor.u32 %v7751_v23, %v7582_v58  ;;  %v7564_v34 = vld [vmem:[%s12149_s7 + $0x40] sm:$0xf]  ;;  %v7748_v52 = vld [vmem:[%s12149_s7 + $0x44] sm:$0xf0]  ;;  %v7550_v58 = vld [vmem:[%s12149_s7 + $0x28] sm:$0xf0] }
 0x9d2   : > { %v4686_v6 = vmul.f32 0.5, %v4685_v40  ;;  %5102 = vmatpush.bf16.msrb.mxu2 %v7573_v29  ;;  %v7747_v40 = vld [vmem:[%s12149_s7 + $0x44] sm:$0xf] }
 0x9d3   : > { %v4817_v62 = vmul.f32 %v10425_v63, %v4797_v15  ;;  %5150 = vmatpush.bf16.msrb.mxu3 %v7585_v43  ;;  %v7553_v43 = vor.u32 %v7743_v44, %v7550_v58 }
 0x9d4   : > { %v4687_v56 = vsub.f32 1.5, %v4686_v6 }
 0x9d5   : > { %v4837_v28 = vadd.f32 %v10433_v46, %v4817_v62  ;;  %v7628_v62 = vld [vmem:[%s8697_s20 + $0x40] sm:$0xf] }
 0x9d6   : > { %v4688_v18 = vmul.f32 %v8120_v45, %v4687_v56  ;;  %v7565_v56 = vor.u32 %v7748_v52, %v7564_v34  ;;  %v7604_v34 = vld [vmem:[%s8697_s20 + $0x10] sm:$0xf] }
 0x9d7   : > { %v4853_v8 = vmax.f32 %v4837_v28, 0.0  ;;  %5151 = vmatpush.bf16.msrb.mxu3 %v7577_v41  ;;  %v7742_v41 = vld [vmem:[%s12149_s7 + $0x14] sm:$0xf0] }
 0x9d8   : > { %v4692_v19 = vsel %vm4691_vm3, %v8120_v45, %v4688_v18  ;;  %v7636_v45 = vld [vmem:[%s8697_s20 + $0x50] sm:$0xf]  ;;  %v7566_v18 = vld [vmem:[%s12149_s7 + $0x48] sm:$0xf0]  ;;  %5103 = vmatpush.bf16.msrb.mxu2 %v7565_v56 }
 0x9d9   : > { %v4798_v24 = vmul.f32 %v4692_v19, %v10374_v59  ;;  %v7652_v59 = vld [vmem:[%s8697_s20 + $0x70] sm:$0xf]  ;;  %v7764_v19 = vld [vmem:[%s8697_s20 + $0x44] sm:$0xf0] }
 0x9da   : > { %v7653_v2 = vor.u32 %v7770_v11, %v7652_v59  ;;  %v7561_v11 = vor.u32 %v7745_v39, %v7558_v38  ;;  %v7534_v39 = vld [vmem:[%s12149_s7 + $0x8] sm:$0xf0] }
 0x9db   : > { %v4818_v10 = vmul.f32 %v10425_v63, %v4798_v24  ;;  %v7569_v24 = vor.u32 %v7747_v40, %v7566_v18 }
 0x9dc   : > { %5300 = vmatpush.bf16.msrb.mxu1 %v7653_v2  ;;  %v7621_v2 = vor.u32 %v7762_v61, %v7620_v4 }
 0x9dd   : > { %v4838_v42 = vadd.f32 %v10433_v46, %v4818_v10  ;;  %v7629_v10 = vor.u32 %v7764_v19, %v7628_v62  ;;  %5152 = vmatpush.bf16.msrb.mxu3 %v7569_v24  ;;  %v7532_v19 = vld [vmem:[%s12149_s7] sm:$0xf]  ;;  %v7740_v24 = vld [vmem:[%s12149_s7 + $0x4] sm:$0xf0] }
 0x9df   : > { %v4854_v37 = vmax.f32 %v4838_v42, 0.0 }
 0x9e0   : > { %5301 = vmatpush.bf16.msrb.mxu1 %v7645_v0  ;;  %v7612_v0 = vld [vmem:[%s8697_s20 + $0x20] sm:$0xf] }
 0x9e1   : > { %v4867_v20 = vpack.c.bf16 %v4854_v37, %v4853_v8  ;;  %5153 = vmatpush.bf16.msrb.mxu3 %v7561_v11  ;;  %v7613_v29 = vor.u32 %v7760_v27, %v7612_v0 }
 0x9e3   : > { %4959 = vmatmul.bf16.gmra.mxu0 %v4867_v20  ;;  %v7556_v20 = vld [vmem:[%s12149_s7 + $0x30] sm:$0xf] }
 0x9e5   : > { %5154 = vmatpush.bf16.msrb.mxu3 %v7553_v43 }
 0xa12   : > { %v4582_v51 = vpop.xlane.xlu2 %4581  ;;  %v4514_v12 = vpop.xlane.xlu1 %4513 }
 0xa13   : > { %v4607_v32 = vmul.f32 %v4582_v51, %v8799_v31  ;;  %v4533_v25 = vmul.f32 %v4514_v12, %v8799_v31 }
 0xa15   : > { %v10486_v50 = vadd.f32 1e-05, %v4607_v32  ;;  %v10489_v35 = vsub.f32 %v10394_v26, %v4533_v25  ;;  %v7766_v26 = vld [vmem:[%s8697_s20 + $0x54] sm:$0xf0]  ;;  %v7744_v25 = vld [vmem:[%s12149_s7 + $0x24] sm:$0xf0] }
 0xa16   : > { %v7637_v16 = vor.u32 %v7766_v26, %v7636_v45  ;;  %v7549_v13 = vor.u32 %v7744_v25, %v7548_v33  ;;  %v7540_v26 = vld [vmem:[%s12149_s7 + $0x10] sm:$0xf] }
 0xa17   : > { %8121 = vrsqrt.f32 %v10486_v50  ;;  %v4565_v47 = vmul.f32 %v10489_v35, %v10489_v35  ;;  %vm4699_vm5 = vweird.f32 %v10486_v50 }
 0xa18   : > { %5302 = vmatpush.bf16.msrb.mxu1 %v7637_v16  ;;  %v7741_v16 = vld [vmem:[%s12149_s7 + $0x14] sm:$0xf] }
 0xa19   : > { %4593 = vadd.xlane.f32.xlu0 %v4565_v47 }
 0xa1a   : > { %v4516_v14 = vpop.xlane.xlu2 %4515  ;;  %v4584_v3 = vpop.xlane.xlu0 %4583 }
 0xa1b   : > { %v4534_v6 = vmul.f32 %v4516_v14, %v8799_v31  ;;  %v4608_v15 = vmul.f32 %v4584_v3, %v8799_v31  ;;  %v7541_v14 = vor.u32 %v7742_v41, %v7540_v26  ;;  %v7542_v3 = vld [vmem:[%s12149_s7 + $0x18] sm:$0xf0] }
 0xa1c   : > { %5303 = vmatpush.bf16.msrb.mxu1 %v7629_v10 }
 0xa1d   : > { %v10508_v28 = vpop.eup %8121  ;;  %v10511_v42 = vsub.f32 %v10407_v49, %v4534_v6  ;;  %v10513_v8 = vadd.f32 1e-05, %v4608_v15  ;;  %v7557_v49 = vor.u32 %v7746_v9, %v7556_v20  ;;  %v7545_v6 = vor.u32 %v7741_v16, %v7542_v3  ;;  %v7758_v15 = vld [vmem:[%s8697_s20 + $0x14] sm:$0xf0]  ;;  %v7739_v9 = vld [vmem:[%s12149_s7 + $0x4] sm:$0xf] }
 0xa1e   : > { %v4694_v37 = vmul.f32 %v10508_v28, %v10486_v50  ;;  %vm4700_vm4 = vweird.f32 %v10508_v28  ;;  %v7605_v56 = vor.u32 %v7758_v15, %v7604_v34  ;;  %v7533_v20 = vor.u32 %v7740_v24, %v7532_v19 }
 0xa1f   : > { %8123 = vrsqrt.f32 %v10513_v8  ;;  %v4566_v36 = vmul.f32 %v10511_v42, %v10511_v42  ;;  %5104 = vmatpush.bf16.msrb.mxu2 %v7557_v49  ;;  %vm10549_vm6 = vmor %vm4699_vm5, %vm4700_vm4  ;;  %5155 = vmatpush.bf16.msrb.mxu3 %v7545_v6  ;;  %v7537_v4 = vor.u32 %v7739_v9, %v7534_v39  ;;  %vm4709_vm8 = vweird.f32 %v10513_v8 }
 0xa20   : > { %v4695_v59 = vmul.f32 %v10508_v28, %v4694_v37  ;;  %5304 = vmatpush.bf16.msrb.mxu1 %v7621_v2 }
 0xa21   : > { %4595 = vadd.xlane.f32.xlu1 %v4566_v36  ;;  %v7596_v36 = vld [vmem:[%s8697_s20] sm:$0xf] }
 0xa22   : > { %v4696_v51 = vmul.f32 0.5, %v4695_v59  ;;  %v4518_v12 = vpop.xlane.xlu2 %4517  ;;  %v4586_v30 = vpop.xlane.xlu0 %4585  ;;  %v7756_v59 = vld [vmem:[%s8697_s20 + $0x4] sm:$0xf0] }
 0xa23   : > { %v4535_v23 = vmul.f32 %v4518_v12, %v8799_v31  ;;  %v4609_v32 = vmul.f32 %v4586_v30, %v8799_v31  ;;  %5105 = vmatpush.bf16.msrb.mxu2 %v7549_v13  ;;  %v7597_v2 = vor.u32 %v7756_v59, %v7596_v36  ;;  %5156 = vmatpush.bf16.msrb.mxu3 %v7537_v4 }
 0xa24   : > { %v4697_v17 = vsub.f32 1.5, %v4696_v51  ;;  %5305 = vmatpush.bf16.msrb.mxu1 %v7613_v29 }
 0xa25   : > { %v8124_v57 = vpop.eup %8123  ;;  %v10537_v53 = vsub.f32 %v10418_v60, %v4535_v23  ;;  %v10539_v47 = vadd.f32 1e-05, %v4609_v32 }
 0xa26   : > { %v4698_v1 = vmul.f32 %v10508_v28, %v4697_v17  ;;  %v4704_v45 = vmul.f32 %v8124_v57, %v10513_v8  ;;  %vm4710_vm7 = vweird.f32 %v8124_v57 }
 0xa27   : > { %8125 = vrsqrt.f32 %v10539_v47  ;;  %v4567_v50 = vmul.f32 %v10537_v53, %v10537_v53  ;;  %5106 = vmatpush.bf16.msrb.mxu2 %v7541_v14  ;;  %vm4711_vm9 = vmor %vm4709_vm8, %vm4710_vm7  ;;  %vm4719_vm11 = vweird.f32 %v10539_v47 }
 0xa28   : > { %v4702_v52 = vsel %vm10549_vm6, %v10508_v28, %v4698_v1  ;;  %v4705_v40 = vmul.f32 %v8124_v57, %v4704_v45  ;;  %5306 = vmatpush.bf16.msrb.mxu1 %v7605_v56  ;;  %v7769_v56 = vld [vmem:[%s8697_s20 + $0x74] sm:$0xf] }
 0xa29   : > { %4597 = vadd.xlane.f32.xlu2 %v4567_v50  ;;  %v4799_v10 = vmul.f32 %v4702_v52, %v10391_v7 }
 0xa2a   : > { %v4706_v18 = vmul.f32 0.5, %v4705_v40  ;;  %v4520_v62 = vpop.xlane.xlu0 %4519  ;;  %v4588_v37 = vpop.xlane.xlu1 %4587 }
 0xa2b   : > { %v4536_v28 = vmul.f32 %v4520_v62, %v8799_v31  ;;  %v4610_v38 = vmul.f32 %v4588_v37, %v8799_v31  ;;  %5107 = vmatpush.bf16.msrb.mxu2 %v7533_v20  ;;  %v4819_v33 = vmul.f32 %v10425_v63, %v4799_v10  ;;  %v10592_v37 = vld [vmem:[%s12152_s22] ss:$0 sm:$0xff] }
 0xa2c   : > { %v4707_v49 = vsub.f32 1.5, %v4706_v18  ;;  %5307 = vmatpush.bf16.msrb.mxu1 %v7597_v2  ;;  %v7654_v18 = vld [vmem:[%s8697_s20 + $0x78] sm:$0xf0] }
 0xa2d   : > { %v8126_v11 = vpop.eup %8125  ;;  %v10572_v61 = vsub.f32 %v10437_v54, %v4536_v28  ;;  %v4626_v12 = vadd.f32 1e-05, %v4610_v38  ;;  %v4839_v58 = vadd.f32 %v10433_v46, %v4819_v33 }
 0xa2e   : > { %v4708_v7 = vmul.f32 %v8124_v57, %v4707_v49  ;;  %v4714_v51 = vmul.f32 %v8126_v11, %v10539_v47  ;;  %vm4720_vm10 = vweird.f32 %v8126_v11 }
 0xa2f   : > { %v4568_v30 = vmul.f32 %v10572_v61, %v10572_v61  ;;  %8127 = vrsqrt.f32 %v4626_v12  ;;  %vm4721_vm12 = vmor %vm4719_vm11, %vm4720_vm10  ;;  %vm4729_vm14 = vweird.f32 %v4626_v12 }
 0xa30   : > { %v4712_v23 = vsel %vm4711_vm9, %v8124_v57, %v4708_v7  ;;  %v4715_v32 = vmul.f32 %v8126_v11, %v4714_v51 }
 0xa31   : > { %v4800_v54 = vmul.f32 %v4712_v23, %v10404_v48  ;;  %4599 = vadd.xlane.f32.xlu0 %v4568_v30  ;;  %v4855_v48 = vmax.f32 %v4839_v58, 0.0  ;;  %v8523_v58 = vmov 0  }
 0xa32   : > { %v4716_v25 = vmul.f32 0.5, %v4715_v32  ;;  %7829 = vset.pattern.permute.xlu1 %v8523_v58  ;;  %7831 = vset.pattern.permute.xlu0 %v8523_v58 }
 0xa33   : > { %v4820_v44 = vmul.f32 %v10425_v63, %v4800_v54  ;;  %v7767_v54 = vld [vmem:[%s8697_s20 + $0x64] sm:$0xf]  ;;  %7830 = vset.pattern.permute.xlu2 %v8523_v58 }
 0xa34   : > { %v4590_v8 = vpop.xlane.xlu1 %4589  ;;  %v4717_v17 = vsub.f32 1.5, %v4716_v25  ;;  %v7646_v25 = vld [vmem:[%s8697_s20 + $0x68] sm:$0xf0] }
 0xa35   : > { %v4611_v13 = vmul.f32 %v4590_v8, %v8799_v31  ;;  %v4840_v43 = vadd.f32 %v10433_v46, %v4820_v44  ;;  %v8128_v0 = vpop.eup %8127  ;;  %v7649_v44 = vor.u32 %v7767_v54, %v7646_v25 }
 0xa36   : > { %v4718_v27 = vmul.f32 %v8126_v11, %v4717_v17  ;;  %v4724_v29 = vmul.f32 %v8128_v0, %v4626_v12  ;;  %vm4730_vm13 = vweird.f32 %v8128_v0  ;;  %v1200_v17 = vld [vmem:[%s10606_s3] sm:$0xff] }
 0xa37   : > { %v4627_v57 = vadd.f32 1e-05, %v4611_v13  ;;  %v4856_v1 = vmax.f32 %v4840_v43, 0.0  ;;  %vm4731_vm15 = vmor %vm4729_vm14, %vm4730_vm13  ;;  %v7765_v13 = vld [vmem:[%s8697_s20 + $0x54] sm:$0xf] }
 0xa38   : > { %v4722_v45 = vsel %vm4721_vm12, %v8126_v11, %v4718_v27  ;;  %v4725_v26 = vmul.f32 %v8128_v0, %v4724_v29  ;;  %v7638_v43 = vld [vmem:[%s8697_s20 + $0x58] sm:$0xf0] }
 0xa39   : > { %8129 = vrsqrt.f32 %v4627_v57  ;;  %v4868_v41 = vpack.c.bf16 %v4856_v1, %v4855_v48  ;;  %v4801_v50 = vmul.f32 %v4722_v45, %v10415_v22  ;;  %v7657_v22 = vor.u32 %v7769_v56, %v7654_v18  ;;  %v1204_v56 = vld [vmem:[%s10606_s3 + $0x20] sm:$0xff] }
 0xa3a   : > { %v4726_v16 = vmul.f32 0.5, %v4725_v26  ;;  %vm4739_vm1 = vweird.f32 %v4627_v57  ;;  %6040 = vperm.xlu1 %7829, %v1200_v17   ;;  %v7763_v18 = vld [vmem:[%s8697_s20 + $0x44] sm:$0xf] }
 0xa3b   : > { %4964 = vmatmul.bf16.gmra.mxu0 %v4868_v41  ;;  %v4821_v15 = vmul.f32 %v10425_v63, %v4801_v50 }
 0xa3c   : > { %v4592_v60 = vpop.xlane.xlu2 %4591  ;;  %v4727_v3 = vsub.f32 1.5, %v4726_v16  ;;  %5349 = vmatpush.bf16.msrb.mxu0 %v7657_v22  ;;  %v1203_v22 = vld [vmem:[%s10606_s3 + $0x18] sm:$0xff] }
 0xa3d   : > { %v4612_v14 = vmul.f32 %v4592_v60, %v8799_v31  ;;  %v4841_v20 = vadd.f32 %v10433_v46, %v4821_v15  ;;  %v1201_v15 = vld [vmem:[%s10606_s3 + $0x8] sm:$0xff] }
 0xa3e   : > { %v4950_v52 = vpop.f32.mrf.mxu0  ;;  %v4728_v40 = vmul.f32 %v8128_v0, %v4727_v3 }
 0xa3f   : > { %v8130_v47 = vpop.eup %8129  ;;  %v4628_v34 = vadd.f32 1e-05, %v4612_v14  ;;  %v4857_v11 = vmax.f32 %v4841_v20, 0.0  ;;  %v7761_v20 = vld [vmem:[%s8697_s20 + $0x34] sm:$0xf] }
 0xa40   : > { %v4734_v6 = vmul.f32 %v8130_v47, %v4627_v57  ;;  %v4732_v62 = vsel %vm4731_vm15, %v8128_v0, %v4728_v40  ;;  %vm4740_vm0 = vweird.f32 %v8130_v47  ;;  %5350 = vmatpush.bf16.msrb.mxu0 %v7649_v44  ;;  %v7641_v57 = vor.u32 %v7765_v13, %v7638_v43 }
 0xa41   : > { %8131 = vrsqrt.f32 %v4628_v34  ;;  %v4802_v24 = vmul.f32 %v4732_v62, %v10430_v21  ;;  %v4951_v21 = vadd.f32 %v10592_v37, %v4950_v52  ;;  %vm4741_vm2 = vmor %vm4739_vm1, %vm4740_vm0  ;;  %vm4749_vm4 = vweird.f32 %v4628_v34  ;;  %6045 = vperm.xlu2 %7830, %v1201_v15   ;;  %v7630_v62 = vld [vmem:[%s8697_s20 + $0x48] sm:$0xf0] }
 0xa42   : > { %v4735_v19 = vmul.f32 %v8130_v47, %v4734_v6  ;;  %6060 = vperm.xlu1 %7829, %v1204_v56  }
 0xa43   : > { %v4822_v28 = vmul.f32 %v10425_v63, %v4802_v24 }
 0xa44   : > { %v4736_v10 = vmul.f32 0.5, %v4735_v19  ;;  %5351 = vmatpush.bf16.msrb.mxu0 %v7641_v57  ;;  %v7633_v19 = vor.u32 %v7763_v18, %v7630_v62 }
 0xa45   : > { %v4842_v49 = vadd.f32 %v10433_v46, %v4822_v28 }
 0xa46   : > { %v4737_v9 = vsub.f32 1.5, %v4736_v10  ;;  %v4952_v36 = vpop.f32.mrf.mxu0 }
 0xa47   : > { %v8132_v39 = vpop.eup %8131  ;;  %v4953_v59 = vadd.f32 %v10592_v37, %v4952_v36  ;;  %v4858_v2 = vmax.f32 %v4842_v49, 0.0 }
 0xa48   : > { %v4738_v38 = vmul.f32 %v8130_v47, %v4737_v9  ;;  %v4744_v4 = vmul.f32 %v8132_v39, %v4628_v34  ;;  %vm4750_vm3 = vweird.f32 %v8132_v39  ;;  %5352 = vmatpush.bf16.msrb.mxu0 %v7633_v19  ;;  %v7622_v9 = vld [vmem:[%s8697_s20 + $0x38] sm:$0xf0] }
 0xa49   : > { %v10599_v12 = vpack.c.bf16 %v4953_v59, %v4951_v21  ;;  %v4869_v30 = vpack.c.bf16 %v4858_v2, %v4857_v11  ;;  %vm4751_vm5 = vmor %vm4749_vm4, %vm4750_vm3  ;;  %6055 = vperm.xlu2 %7830, %v1203_v22   ;;  %v7625_v36 = vor.u32 %v7761_v20, %v7622_v9  ;;  %v1205_v59 = vld [vmem:[%s10606_s3 + $0x28] sm:$0xff]  ;;  %v7759_v2 = vld [vmem:[%s8697_s20 + $0x24] sm:$0xf] }
 0xa4a   : > { %v4742_v7 = vsel %vm4741_vm2, %v8130_v47, %v4738_v38  ;;  %v4745_v51 = vmul.f32 %v8132_v39, %v4744_v4 }
 0xa4b   : > { %5108 = vmatmul.bf16.vlgmr.msrb.gmra.mxu2 %v10599_v12  ;;  %5157 = vmatmul.bf16.vlgmr.msrb.gmra.mxu3 %v10599_v12  ;;  %v4803_v23 = vmul.f32 %v4742_v7, %v10449_v55  ;;  %v1202_v55 = vld [vmem:[%s10606_s3 + $0x10] sm:$0xff]  ;;  %v7614_v7 = vld [vmem:[%s8697_s20 + $0x28] sm:$0xf0] }
 0xa4c   : > { %v4746_v33 = vmul.f32 0.5, %v4745_v51  ;;  %4969 = vmatmul.bf16.gmra.mxu0 %v4869_v30  ;;  %5308 = vmatmul.bf16.vlgmr.msrb.gmra.mxu1 %v10599_v12  ;;  %v7757_v51 = vld [vmem:[%s8697_s20 + $0x14] sm:$0xf] }
 0xa4d   : > { %v4823_v27 = vmul.f32 %v10425_v63, %v4803_v23  ;;  %6050 = vperm.xlu0 %7831, %v1202_v55   ;;  %5353 = vmatpush.bf16.msrb.mxu0 %v7625_v36  ;;  %v7617_v23 = vor.u32 %v7759_v2, %v7614_v7 }
 0xa4e   : > { %v4747_v32 = vsub.f32 1.5, %v4746_v33  ;;  %v4955_v8 = vpop.f32.mrf.mxu0 }
 0xa4f   : > { %v4843_v45 = vadd.f32 %v10433_v46, %v4823_v27  ;;  %v4956_v16 = vadd.f32 %v10592_v37, %v4955_v8 }
 0xa50   : > { %v4748_v0 = vmul.f32 %v8132_v39, %v4747_v32  ;;  %v7606_v32 = vld [vmem:[%s8697_s20 + $0x18] sm:$0xf0] }
 0xa51   : > { %v4859_v50 = vmax.f32 %v4843_v45, 0.0  ;;  %6065 = vperm.xlu2 %7830, %v1205_v59   ;;  %5354 = vmatpush.bf16.msrb.mxu0 %v7617_v23  ;;  %v7609_v8 = vor.u32 %v7757_v51, %v7606_v32  ;;  %v10671_v32 = vld [vmem:[%s8702_s9] sm:$0x3] }
 0xa52   : > { %v4752_v29 = vsel %vm4751_vm5, %v8132_v39, %v4748_v0 }
 0xa53   : > { %v4804_v48 = vmul.f32 %v4752_v29, %v10457_v5 }
 0xa55   : > { %v4824_v1 = vmul.f32 %v10425_v63, %v4804_v48  ;;  %5355 = vmatpush.bf16.msrb.mxu0 %v7609_v8 }
 0xa56   : > { %v4957_v26 = vpop.f32.mrf.mxu0 }
 0xa57   : > { %v4844_v41 = vadd.f32 %v10433_v46, %v4824_v1  ;;  %v4958_v60 = vadd.f32 %v10592_v37, %v4957_v26 }
 0xa59   : > { %v4860_v14 = vmax.f32 %v4844_v41, 0.0  ;;  %v10624_v3 = vpack.c.bf16 %v4958_v60, %v4956_v16 }
 0xa5b   : > { %v4870_v47 = vpack.c.bf16 %v4860_v14, %v4859_v50  ;;  %5113 = vmatmul.bf16.gmra.mxu2 %v10624_v3  ;;  %5162 = vmatmul.bf16.gmra.mxu3 %v10624_v3 }
 0xa5c   : > { %5313 = vmatmul.bf16.gmra.mxu1 %v10624_v3 }
 0xa5d   : > { %4974 = vmatmul.bf16.gmra.mxu0 %v4870_v47 }
 0xa60   : > { %v4960_v5 = vpop.f32.mrf.mxu0 }
 0xa61   : > { %v4961_v52 = vadd.f32 %v10592_v37, %v4960_v5 }
 0xa68   : > { %v4962_v34 = vpop.f32.mrf.mxu0 }
 0xa69   : > { %v4963_v40 = vadd.f32 %v10592_v37, %v4962_v34 }
 0xa6b   : > { %v10631_v6 = vpack.c.bf16 %v4963_v40, %v4961_v52 }
 0xa6d   : > { %5118 = vmatmul.bf16.gmra.mxu2 %v10631_v6  ;;  %5167 = vmatmul.bf16.gmra.mxu3 %v10631_v6 }
 0xa6e   : > { %5318 = vmatmul.bf16.gmra.mxu1 %v10631_v6 }
 0xa8c   : > { %v4594_v24 = vpop.xlane.xlu0 %4593 }
 0xa8d   : > { %v4613_v10 = vmul.f32 %v4594_v24, %v8799_v31  ;;  %v7755_v24 = vld [vmem:[%s8697_s20 + $0x4] sm:$0xf] }
 0xa8f   : > { %v4629_v28 = vadd.f32 1e-05, %v4613_v10  ;;  %v7598_v10 = vld [vmem:[%s8697_s20 + $0x8] sm:$0xf0] }
 0xa90   : > { %v7601_v20 = vor.u32 %v7755_v24, %v7598_v10 }
 0xa91   : > { %8133 = vrsqrt.f32 %v4629_v28  ;;  %vm4759_vm7 = vweird.f32 %v4629_v28 }
 0xa92   : > { %5356 = vmatpush.bf16.msrb.mxu0 %v7601_v20 }
 0xa94   : > { %v4596_v39 = vpop.xlane.xlu1 %4595 }
 0xa95   : > { %v4614_v49 = vmul.f32 %v4596_v39, %v8799_v31 }
 0xa97   : > { %v8134_v38 = vpop.eup %8133  ;;  %v4630_v4 = vadd.f32 1e-05, %v4614_v49 }
 0xa98   : > { %v4754_v21 = vmul.f32 %v8134_v38, %v4629_v28  ;;  %vm4760_vm6 = vweird.f32 %v8134_v38 }
 0xa99   : > { %8135 = vrsqrt.f32 %v4630_v4  ;;  %vm4761_vm8 = vmor %vm4759_vm7, %vm4760_vm6  ;;  %vm4769_vm10 = vweird.f32 %v4630_v4 }
 0xa9a   : > { %v4755_v11 = vmul.f32 %v8134_v38, %v4754_v21 }
 0xa9c   : > { %v4756_v30 = vmul.f32 0.5, %v4755_v11  ;;  %v4598_v33 = vpop.xlane.xlu2 %4597 }
 0xa9d   : > { %v4615_v54 = vmul.f32 %v4598_v33, %v8799_v31 }
 0xa9e   : > { %v4757_v25 = vsub.f32 1.5, %v4756_v30 }
 0xa9f   : > { %v8136_v44 = vpop.eup %8135  ;;  %v4631_v58 = vadd.f32 1e-05, %v4615_v54 }
 0xaa0   : > { %v4758_v17 = vmul.f32 %v8134_v38, %v4757_v25  ;;  %v4764_v13 = vmul.f32 %v8136_v44, %v4630_v4  ;;  %vm4770_vm9 = vweird.f32 %v8136_v44 }
 0xaa1   : > { %8137 = vrsqrt.f32 %v4631_v58  ;;  %vm4771_vm11 = vmor %vm4769_vm10, %vm4770_vm9  ;;  %vm4779_vm13 = vweird.f32 %v4631_v58 }
 0xaa2   : > { %v4762_v43 = vsel %vm4761_vm8, %v8134_v38, %v4758_v17  ;;  %v4765_v0 = vmul.f32 %v8136_v44, %v4764_v13 }
 0xaa3   : > { %v4805_v57 = vmul.f32 %v4762_v43, %v10489_v35 }
 0xaa4   : > { %v4766_v55 = vmul.f32 0.5, %v4765_v0  ;;  %v4600_v27 = vpop.xlane.xlu0 %4599 }
 0xaa5   : > { %v4616_v29 = vmul.f32 %v4600_v27, %v8799_v31  ;;  %v4825_v16 = vmul.f32 %v10425_v63, %v4805_v57 }
 0xaa6   : > { %v4767_v48 = vsub.f32 1.5, %v4766_v55 }
 0xaa7   : > { %v8138_v1 = vpop.eup %8137  ;;  %v4632_v45 = vadd.f32 1e-05, %v4616_v29  ;;  %v4845_v31 = vadd.f32 %v10433_v46, %v4825_v16  ;;  %v1206_v16 = vld [vmem:[%s10606_s3 + $0x30] sm:$0xff] }
 0xaa8   : > { %v4768_v26 = vmul.f32 %v8136_v44, %v4767_v48  ;;  %v4774_v41 = vmul.f32 %v8138_v1, %v4631_v58  ;;  %vm4780_vm12 = vweird.f32 %v8138_v1  ;;  %6070 = vperm.xlu1 %7829, %v1206_v16  }
 0xaa9   : > { %8139 = vrsqrt.f32 %v4632_v45  ;;  %vm4781_vm14 = vmor %vm4779_vm13, %vm4780_vm12  ;;  %v4861_v56 = vmax.f32 %v4845_v31, 0.0  ;;  %vm4789_vm0 = vweird.f32 %v4632_v45 }
 0xaaa   : > { %v4772_v60 = vsel %vm4771_vm11, %v8136_v44, %v4768_v26  ;;  %v4775_v50 = vmul.f32 %v8138_v1, %v4774_v41 }
 0xaab   : > { %v4806_v14 = vmul.f32 %v4772_v60, %v10511_v42 }
 0xaac   : > { %v4776_v47 = vmul.f32 0.5, %v4775_v50 }
 0xaad   : > { %v4826_v35 = vmul.f32 %v10425_v63, %v4806_v14 }
 0xaae   : > { %v4777_v5 = vsub.f32 1.5, %v4776_v47 }
 0xaaf   : > { %v8140_v34 = vpop.eup %8139  ;;  %v4846_v52 = vadd.f32 %v10433_v46, %v4826_v35 }
 0xab0   : > { %v4778_v40 = vmul.f32 %v8138_v1, %v4777_v5  ;;  %v4784_v15 = vmul.f32 %v8140_v34, %v4632_v45  ;;  %vm4790_vm15 = vweird.f32 %v8140_v34 }
 0xab1   : > { %v4862_v18 = vmax.f32 %v4846_v52, 0.0  ;;  %vm4791_vm1 = vmor %vm4789_vm0, %vm4790_vm15 }
 0xab2   : > { %v4782_v62 = vsel %vm4781_vm14, %v8138_v1, %v4778_v40  ;;  %v4785_v42 = vmul.f32 %v8140_v34, %v4784_v15 }
 0xab3   : > { %v4871_v19 = vpack.c.bf16 %v4862_v18, %v4861_v56  ;;  %v4807_v28 = vmul.f32 %v4782_v62, %v10537_v53 }
 0xab4   : > { %v4786_v22 = vmul.f32 0.5, %v4785_v42 }
 0xab5   : > { %4979 = vmatmul.bf16.gmra.mxu0 %v4871_v19  ;;  %v4827_v49 = vmul.f32 %v10425_v63, %v4807_v28 }
 0xab6   : > { %v4787_v9 = vsub.f32 1.5, %v4786_v22 }
 0xab7   : > { %v4847_v53 = vadd.f32 %v10433_v46, %v4827_v49 }
 0xab8   : > { %v4788_v39 = vmul.f32 %v8140_v34, %v4787_v9  ;;  %v4965_v36 = vpop.f32.mrf.mxu0 }
 0xab9   : > { %v4966_v2 = vadd.f32 %v10592_v37, %v4965_v36  ;;  %v4863_v51 = vmax.f32 %v4847_v53, 0.0 }
 0xaba   : > { %v4792_v38 = vsel %vm4791_vm1, %v8140_v34, %v4788_v39 }
 0xabb   : > { %v4808_v4 = vmul.f32 %v4792_v38, %v10572_v61 }
 0xabd   : > { %v4828_v21 = vmul.f32 %v10425_v63, %v4808_v4  ;;  %v10677_v63 = vperm.slane %v10671_v32, 0 }
 0xabf   : > { %v4848_v59 = vadd.f32 %v10433_v46, %v4828_v21  ;;  %v5014_v46 = vld [vmem:[%s12155_s2] sm:$0x3]  ;;  %s10704_s2 = scalar_lea.vmem %s8712_s27, %s7662_s1 }
 0xac0   : > { %v4967_v11 = vpop.f32.mrf.mxu0  ;;  %v10683_v8 = vperm.slane %v5014_v46, 0  ;;  %v10685_v44 = vperm.slane %v5014_v46, 1 }
 0xac1   : > { %v4968_v7 = vadd.f32 %v10592_v37, %v4967_v11  ;;  %v4864_v30 = vmax.f32 %v4848_v59, 0.0 }
 0xac3   : > { %v10668_v33 = vpack.c.bf16 %v4968_v7, %v4966_v2  ;;  %v4872_v23 = vpack.c.bf16 %v4864_v30, %v4863_v51 }
 0xac5   : > { %4984 = vmatmul.bf16.gmra.mxu0 %v4872_v23  ;;  %5123 = vmatmul.bf16.gmra.mxu2 %v10668_v33 }
 0xac6   : > { %5172 = vmatmul.bf16.gmra.mxu3 %v10668_v33  ;;  %5323 = vmatmul.bf16.gmra.mxu1 %v10668_v33 }
 0xac9   : > { %v4970_v61 = vpop.f32.mrf.mxu0  ;;  %v5309_v54 = vpop.f32.mrf.mxu1 }
 0xaca   : > { %v10681_v25 = vadd.f32 %v5309_v54, %v10677_v63  ;;  %v4971_v45 = vadd.f32 %v10592_v37, %v4970_v61 }
 0xacc   : > { %v5494_v58 = vand.u32 2147483647, %v10681_v25  ;;  %vm5430_vm3 = vcmp.ne.f32.partialorder %v10681_v25, %v10681_v25 }
 0xace   : > { %v5526_v17 = vsub.f32 0.0, %v5494_v58  ;;  %v5109_v13 = vpop.f32.mrf.mxu2  ;;  %v5158_v43 = vpop.f32.mrf.mxu3 }
 0xacf   : > { %v5110_v0 = vadd.f32 %v5109_v13, %v10683_v8  ;;  %v5159_v55 = vadd.f32 %v5158_v43, %v10685_v44 }
 0xad0   : > { %v5558_v27 = vmul.f32 1.442695, %v5526_v17 }
 0xad1   : > { %v5974_v57 = vmul.f32 1.442695, %v5110_v0  ;;  %v5976_v29 = vmul.f32 1.442695, %v5159_v55  ;;  %v4972_v48 = vpop.f32.mrf.mxu0  ;;  %v5311_v1 = vpop.f32.mrf.mxu1 }
 0xad2   : > { %8141 = vpow2.f32 %v5558_v27  ;;  %v4973_v26 = vadd.f32 %v10592_v37, %v4972_v48  ;;  %v10693_v41 = vadd.f32 %v5311_v1, %v10677_v63 }
 0xad3   : > { %8143 = vpow2.f32 %v5974_v57 }
 0xad4   : > { %8145 = vpow2.f32 %v5976_v29  ;;  %v10697_v60 = vpack.c.bf16 %v4973_v26, %v4971_v45  ;;  %v5496_v50 = vand.u32 2147483647, %v10693_v41  ;;  %v10752_v26 = vpop.permute.xlu1 %6040  ;;  %vm5432_vm5 = vcmp.ne.f32.partialorder %v10693_v41, %v10693_v41 }
 0xad5   : > { %5357 = vmatmul.bf16.vlgmr.msrb.gmra.mxu0 %v10599_v12 }
 0xad6   : > { %v5528_v14 = vsub.f32 0.0, %v5496_v50  ;;  %5128 = vmatmul.bf16.gmra.mxu2 %v10697_v60  ;;  %5177 = vmatmul.bf16.gmra.mxu3 %v10697_v60  ;;  %v5111_v47 = vpop.f32.mrf.mxu2  ;;  %v5160_v35 = vpop.f32.mrf.mxu3 }
 0xad7   : > { %5328 = vmatmul.bf16.gmra.mxu1 %v10697_v60  ;;  %v5112_v31 = vadd.f32 %v5111_v47, %v10683_v8  ;;  %v5161_v5 = vadd.f32 %v5160_v35, %v10685_v44 }
 0xad8   : > { %v8142_v34 = vpop.eup %8141  ;;  %v5562_v52 = vmul.f32 1.442695, %v5528_v14 }
 0xad9   : > { %v10709_v12 = vpop.eup %8143  ;;  %v5978_v40 = vmul.f32 1.442695, %v5112_v31  ;;  %v5980_v15 = vmul.f32 1.442695, %v5161_v5  ;;  %v5314_v18 = vpop.f32.mrf.mxu1  ;;  %v5622_v62 = vadd.f32 1.0, %v8142_v34  ;;  %v5625_v24 = vmul.f32 -0.5, %v8142_v34 }
 0xada   : > { %v4975_v56 = vpop.f32.mrf.mxu0  ;;  %v10711_v42 = vpop.eup %8145  ;;  %6982 = vst [vmem:[%s10704_s2 + $0x20] sm:$0xff] %v10709_v12  ;;  %8147 = vpow2.f32 %v5562_v52  ;;  %v10716_v19 = vadd.f32 %v5314_v18, %v10677_v63  ;;  %v5628_v46 = vand.u32 2147483647, %v8142_v34 }
 0xadb   : > { %6983 = vst [vmem:[%s10704_s2 + $0x28] sm:$0xff] %v10711_v42  ;;  %8149 = vpow2.f32 %v5978_v40  ;;  %v4976_v49 = vadd.f32 %v10592_v37, %v4975_v56  ;;  %v5626_v2 = vadd.f32 1.0, %v5625_v24  ;;  %v1208_v40 = vld [vmem:[%s10606_s3 + $0x40] sm:$0xff] }
 0xadc   : > { %8151 = vpow2.f32 %v5980_v15  ;;  %v5498_v22 = vand.u32 2147483647, %v10716_v19  ;;  %vm5629_vm2 = vcmp.lt.f32.partialorder %v5628_v46, 0.0004427343  ;;  %6080 = vperm.xlu1 %7829, %v1208_v40   ;;  %vm5434_vm7 = vcmp.ne.f32.partialorder %v10716_v19, %v10716_v19 }
 0xadd   : > { %8153 = vlog2.f32 %v5622_v62  ;;  %v5627_v43 = vmul.f32 %v8142_v34, %v5626_v2 }
 0xade   : > { %v5530_v10 = vsub.f32 0.0, %v5498_v22  ;;  %v5114_v28 = vpop.f32.mrf.mxu2  ;;  %v5163_v20 = vpop.f32.mrf.mxu3  ;;  %v5400_v22 = vmax.f32 %v10693_v41, 0.0 }
 0xadf   : > { %v5115_v9 = vadd.f32 %v5114_v28, %v10683_v8  ;;  %v5164_v39 = vadd.f32 %v5163_v20, %v10685_v44 }
 0xae0   : > { %v10723_v36 = vpop.eup %8147  ;;  %v5566_v38 = vmul.f32 1.442695, %v5530_v10 }
 0xae1   : > { %v10726_v4 = vpop.eup %8149  ;;  %v5982_v21 = vmul.f32 1.442695, %v5115_v9  ;;  %v5984_v53 = vmul.f32 1.442695, %v5164_v39  ;;  %v5316_v11 = vpop.f32.mrf.mxu1  ;;  %v5640_v7 = vadd.f32 1.0, %v10723_v36  ;;  %v5643_v17 = vmul.f32 -0.5, %v10723_v36 }
 0xae2   : > { %v4977_v59 = vpop.f32.mrf.mxu0  ;;  %v10729_v51 = vpop.eup %8151  ;;  %6984 = vst [vmem:[%s10704_s2 + $0x60] sm:$0xff] %v10726_v4  ;;  %8155 = vpow2.f32 %v5566_v38  ;;  %v10735_v23 = vadd.f32 %v5316_v11, %v10677_v63  ;;  %v5646_v50 = vand.u32 2147483647, %v10723_v36 }
 0xae3   : > { %v4978_v30 = vadd.f32 %v10592_v37, %v4977_v59  ;;  %v8154_v61 = vpop.eup %8153  ;;  %6985 = vst [vmem:[%s10704_s2 + $0x68] sm:$0xff] %v10729_v51  ;;  %8157 = vpow2.f32 %v5982_v21  ;;  %v5398_v37 = vmax.f32 %v10681_v25, 0.0  ;;  %v5644_v16 = vadd.f32 1.0, %v5643_v17 }
 0xae4   : > { %8159 = vpow2.f32 %v5984_v53  ;;  %v5500_v58 = vand.u32 2147483647, %v10735_v23  ;;  %v5624_v13 = vmul.f32 0.6931472, %v8154_v61  ;;  %vm5647_vm4 = vcmp.lt.f32.partialorder %v5646_v50, 0.0004427343 }
 0xae5   : > { %v10739_v54 = vpack.c.bf16 %v4978_v30, %v4976_v49  ;;  %5362 = vmatmul.bf16.gmra.mxu0 %v10624_v3  ;;  %8161 = vlog2.f32 %v5640_v7  ;;  %v5645_v24 = vmul.f32 %v10723_v36, %v5644_v16  ;;  %v10783_v36 = vpop.permute.xlu2 %6045  ;;  %vm5436_vm14 = vcmp.ne.f32.partialorder %v10735_v23, %v10735_v23 }
 0xae6   : > { %v5532_v0 = vsub.f32 0.0, %v5500_v58  ;;  %v5116_v55 = vpop.f32.mrf.mxu2  ;;  %v5165_v27 = vpop.f32.mrf.mxu3  ;;  %v5630_v29 = vsel %vm5629_vm2, %v5627_v43, %v5624_v13 }
 0xae7   : > { %5133 = vmatmul.bf16.gmra.mxu2 %v10739_v54  ;;  %5182 = vmatmul.bf16.gmra.mxu3 %v10739_v54  ;;  %v5117_v57 = vadd.f32 %v5116_v55, %v10683_v8  ;;  %v5166_v3 = vadd.f32 %v5165_v27, %v10685_v44  ;;  %v5910_v45 = vadd.f32 %v5630_v29, %v5398_v37  ;;  %v1209_v27 = vld [vmem:[%s10606_s3 + $0x48] sm:$0xff]  ;;  %v5402_v29 = vmax.f32 %v10716_v19, 0.0 }
 0xae8   : > { %5333 = vmatmul.bf16.gmra.mxu1 %v10739_v54  ;;  %v10750_v48 = vpop.eup %8155  ;;  %v5570_v1 = vmul.f32 1.442695, %v5532_v0  ;;  %6085 = vperm.xlu0 %7831, %v1209_v27  }
 0xae9   : > { %v10755_v14 = vpop.eup %8157  ;;  %v5986_v47 = vmul.f32 1.442695, %v5117_v57  ;;  %v5988_v35 = vmul.f32 1.442695, %v5166_v3  ;;  %v5658_v31 = vadd.f32 1.0, %v10750_v48  ;;  %v5942_v34 = vsel %vm5430_vm3, %v10681_v25, %v5910_v45 }
 0xaea   : > { %v10760_v5 = vpop.eup %8159  ;;  %6986 = vst [vmem:[%s10704_s2 + $0xa0] sm:$0xff] %v10755_v14  ;;  %8163 = vpow2.f32 %v5570_v1  ;;  %v6118_v56 = vmul.f32 %v10752_v26, %v5942_v34  ;;  %v5661_v62 = vmul.f32 -0.5, %v10750_v48  ;;  %v5664_v30 = vand.u32 2147483647, %v10750_v48 }
 0xaeb   : > { %v5319_v52 = vpop.f32.mrf.mxu1  ;;  %v8162_v15 = vpop.eup %8161  ;;  %6987 = vst [vmem:[%s10704_s2 + $0xa8] sm:$0xff] %v10760_v5  ;;  %8165 = vpow2.f32 %v5986_v47 }
 0xaec   : > { %v10770_v18 = vadd.f32 %v5319_v52, %v10677_v63  ;;  %8167 = vpow2.f32 %v5988_v35  ;;  %7014 = vst [vmem:[%s10704_s2 + $0x30] sm:$0xff] %v5942_v34  ;;  %v5642_v25 = vmul.f32 0.6931472, %v8162_v15  ;;  %v6182_v10 = vadd.f32 %v10709_v12, %v6118_v56 }
 0xaed   : > { %6950 = vst [vmem:[%s10704_s2 + $0x10] sm:$0xff] %v6118_v56  ;;  %8169 = vlog2.f32 %v5658_v31  ;;  %v5662_v53 = vadd.f32 1.0, %v5661_v62  ;;  %vm5665_vm6 = vcmp.lt.f32.partialorder %v5664_v30, 0.0004427343  ;;  %v6150_v52 = vadd.f32 0.0001, %v10709_v12 }
 0xaee   : > { %v5502_v28 = vand.u32 2147483647, %v10770_v18  ;;  %v5648_v20 = vsel %vm5647_vm4, %v5645_v24, %v5642_v25  ;;  %v10779_v9 = vadd.f32 0.0001, %v6182_v10  ;;  %vm5438_vm3 = vcmp.ne.f32.partialorder %v10770_v18, %v10770_v18 }
 0xaef   : > { %v5912_v49 = vadd.f32 %v5648_v20, %v5400_v22  ;;  %v5663_v0 = vmul.f32 %v10750_v48, %v5662_v53  ;;  %v10824_v22 = vpop.permute.xlu0 %6050 }
 0xaf0   : > { %v5534_v39 = vsub.f32 0.0, %v5502_v28  ;;  %v5119_v38 = vpop.f32.mrf.mxu2  ;;  %v5168_v21 = vpop.f32.mrf.mxu3  ;;  %8171 = vrcp.f32 %v10779_v9  ;;  %v6255_v56 = vand.u32 2147483647, %v10779_v9  ;;  %v6257_v62 = vand.u32 2147483648, %v10779_v9 }
 0xaf1   : > { %v10781_v59 = vpop.eup %8163  ;;  %v5120_v11 = vadd.f32 %v5119_v38, %v10683_v8  ;;  %v5169_v2 = vadd.f32 %v5168_v21, %v10685_v44  ;;  %v5944_v58 = vsel %vm5432_vm5, %v10693_v41, %v5912_v49  ;;  %vm6251_vm9 = vweird.f32 %v10779_v9 }
 0xaf2   : > { %v10787_v7 = vpop.eup %8165  ;;  %v5574_v61 = vmul.f32 1.442695, %v5534_v39  ;;  %v6120_v37 = vmul.f32 %v10783_v36, %v5944_v58  ;;  %v5676_v55 = vadd.f32 1.0, %v10781_v59  ;;  %7016 = vst [vmem:[%s10704_s2 + $0x70] sm:$0xff] %v5944_v58  ;;  %v5679_v34 = vmul.f32 -0.5, %v10781_v59  ;;  %v1207_v39 = vld [vmem:[%s10606_s3 + $0x38] sm:$0xff] }
 0xaf3   : > { %v10793_v46 = vpop.eup %8167  ;;  %6988 = vst [vmem:[%s10704_s2 + $0xe0] sm:$0xff] %v10787_v7  ;;  %v5990_v17 = vmul.f32 1.442695, %v5120_v11  ;;  %v5321_v13 = vpop.f32.mrf.mxu1  ;;  %v5992_v57 = vmul.f32 1.442695, %v5169_v2  ;;  %6075 = vperm.xlu2 %7830, %v1207_v39   ;;  %vm10840_vm10 = vcmp.eq.f32.partialorder %v6255_v56, 8.507059e+37 }
 0xaf4   : > { %v8170_v43 = vpop.eup %8169  ;;  %6989 = vst [vmem:[%s10704_s2 + $0xe8] sm:$0xff] %v10793_v46  ;;  %8173 = vpow2.f32 %v5574_v61  ;;  %v10806_v3 = vadd.f32 %v5321_v13, %v10677_v63  ;;  %v6184_v1 = vadd.f32 %v10726_v4, %v6120_v37  ;;  %v5680_v21 = vadd.f32 1.0, %v5679_v34 }
 0xaf5   : > { %v5660_v41 = vmul.f32 0.6931472, %v8170_v43  ;;  %6952 = vst [vmem:[%s10704_s2 + $0x50] sm:$0xff] %v6120_v37  ;;  %8175 = vpow2.f32 %v5990_v17  ;;  %5367 = vmatmul.bf16.gmra.mxu0 %v10631_v6  ;;  %v5682_v53 = vand.u32 2147483647, %v10781_v59 }
 0xaf6   : > { %8177 = vpow2.f32 %v5992_v57  ;;  %v5504_v48 = vand.u32 2147483647, %v10806_v3  ;;  %v8172_v16 = vpop.eup %8171  ;;  %v10813_v50 = vadd.f32 0.0001, %v6184_v1  ;;  %v5404_v1 = vmax.f32 %v10735_v23, 0.0 }
 0xaf7   : > { %v5666_v45 = vsel %vm5665_vm6, %v5663_v0, %v5660_v41  ;;  %8179 = vlog2.f32 %v5676_v55  ;;  %v6247_v40 = vmul.f32 %v8172_v16, %v10779_v9  ;;  %vm6252_vm8 = vweird.f32 %v8172_v16 }
 0xaf8   : > { %v5121_v47 = vpop.f32.mrf.mxu2  ;;  %v5170_v35 = vpop.f32.mrf.mxu3  ;;  %v5914_v31 = vadd.f32 %v5666_v45, %v5402_v29  ;;  %v5536_v6 = vsub.f32 0.0, %v5504_v48  ;;  %8181 = vrcp.f32 %v10813_v50  ;;  %vm6253_vm11 = vmor %vm6251_vm9, %vm6252_vm8  ;;  %v6258_v55 = vor.u32 1.1754944e-38, %v6257_v62 }
 0xaf9   : > { %v5122_v15 = vadd.f32 %v5121_v47, %v10683_v8  ;;  %v6248_v24 = vsub.f32 1.0, %v6247_v40  ;;  %v5171_v20 = vadd.f32 %v5170_v35, %v10685_v44  ;;  %v5681_v9 = vmul.f32 %v10781_v59, %v5680_v21 }
 0xafa   : > { %v10826_v25 = vpop.eup %8173  ;;  %v5578_v10 = vmul.f32 1.442695, %v5536_v6  ;;  %v5946_v38 = vsel %vm5434_vm7, %v10716_v19, %v5914_v31  ;;  %vm5683_vm12 = vcmp.lt.f32.partialorder %v5682_v53, 0.0004427343  ;;  %v6152_v31 = vadd.f32 0.0001, %v10726_v4 }
 0xafb   : > { %v5994_v28 = vmul.f32 1.442695, %v5122_v15  ;;  %v10830_v49 = vpop.eup %8175  ;;  %v6249_v2 = vmul.f32 %v8172_v16, %v6248_v24  ;;  %v5996_v30 = vmul.f32 1.442695, %v5171_v20  ;;  %v6122_v61 = vmul.f32 %v10824_v22, %v5946_v38  ;;  %7018 = vst [vmem:[%s10704_s2 + $0xb0] sm:$0xff] %v5946_v38  ;;  %v10867_v15 = vpop.permute.xlu2 %6055 }
 0xafc   : > { %v10834_v11 = vpop.eup %8177  ;;  %6990 = vst [vmem:[%s10704_s2 + $0x120] sm:$0xff] %v10830_v49  ;;  %8183 = vpow2.f32 %v5578_v10  ;;  %v5694_v17 = vadd.f32 1.0, %v10826_v25  ;;  %v5697_v27 = vmul.f32 -0.5, %v10826_v25  ;;  %v6285_v40 = vand.u32 2147483647, %v10813_v50 }
 0xafd   : > { %v8180_v58 = vpop.eup %8179  ;;  %6991 = vst [vmem:[%s10704_s2 + $0x128] sm:$0xff] %v10834_v11  ;;  %8185 = vpow2.f32 %v5994_v28  ;;  %v6250_v13 = vadd.f32 %v8172_v16, %v6249_v2  ;;  %v6186_v43 = vadd.f32 %v10755_v14, %v6122_v61  ;;  %v6287_v6 = vand.u32 2147483648, %v10813_v50 }
 0xafe   : > { %8187 = vpow2.f32 %v5996_v30  ;;  %v5678_v37 = vmul.f32 0.6931472, %v8180_v58  ;;  %v8182_v0 = vpop.eup %8181  ;;  %6954 = vst [vmem:[%s10704_s2 + $0x90] sm:$0xff] %v6122_v61  ;;  %v5698_v47 = vadd.f32 1.0, %v5697_v27  ;;  %v5700_v62 = vand.u32 2147483647, %v10826_v25 }
 0xaff   : > { %8189 = vlog2.f32 %v5694_v17  ;;  %v6254_v57 = vsel %vm6253_vm11, %v8172_v16, %v6250_v13  ;;  %v6277_v41 = vmul.f32 %v8182_v0, %v10813_v50  ;;  %v10854_v29 = vadd.f32 0.0001, %v6186_v43  ;;  %v1211_v30 = vld [vmem:[%s10606_s3 + $0x58] sm:$0xff] }
 0xb00   : > { %v6259_v48 = vsel %vm10840_vm10, %v6258_v55, %v6254_v57  ;;  %v5684_v45 = vsel %vm5683_vm12, %v5681_v9, %v5678_v37  ;;  %vm6282_vm13 = vweird.f32 %v8182_v0  ;;  %v5406_v28 = vmax.f32 %v10770_v18, 0.0  ;;  %6095 = vperm.xlu1 %7829, %v1211_v30   ;;  %v10893_v9 = vpop.permute.xlu1 %6060 }
 0xb01   : > { %v6260_v59 = vmul.f32 %v6259_v48, %v6150_v52  ;;  %v6278_v34 = vsub.f32 1.0, %v6277_v41  ;;  %8191 = vrcp.f32 %v10854_v29  ;;  %v5916_v56 = vadd.f32 %v5684_v45, %v5404_v1 }
 0xb02   : > { %v10859_v35 = vpop.eup %8183  ;;  %vm6281_vm15 = vweird.f32 %v10813_v50  ;;  %v5699_v39 = vmul.f32 %v10826_v25, %v5698_v47  ;;  %vm6286_vm1 = vcmp.eq.f32.partialorder %v6285_v40, 8.507059e+37  ;;  %v6288_v50 = vor.u32 1.1754944e-38, %v6287_v6 }
 0xb03   : > { %v10863_v16 = vpop.eup %8185  ;;  %8193 = vlog2.f32 %v6260_v59  ;;  %v6279_v52 = vmul.f32 %v8182_v0, %v6278_v34  ;;  %v5948_v20 = vsel %vm5436_vm14, %v10735_v23, %v5916_v56  ;;  %v5712_v2 = vadd.f32 1.0, %v10859_v35  ;;  %vm6283_vm0 = vmor %vm6281_vm15, %vm6282_vm13 }
 0xb04   : > { %v8188_v24 = vpop.eup %8187  ;;  %6992 = vst [vmem:[%s10704_s2 + $0x160] sm:$0xff] %v10863_v16  ;;  %v6124_v21 = vmul.f32 %v10867_v15, %v5948_v20  ;;  %vm5701_vm2 = vcmp.lt.f32.partialorder %v5700_v62, 0.0004427343  ;;  %v5715_v23 = vmul.f32 -0.5, %v10859_v35  ;;  %v6315_v41 = vand.u32 2147483647, %v10854_v29 }
 0xb05   : > { %v8190_v10 = vpop.eup %8189  ;;  %6993 = vst [vmem:[%s10704_s2 + $0x168] sm:$0xff] %v8188_v24  ;;  %5372 = vmatmul.bf16.gmra.mxu0 %v10668_v33  ;;  %v6280_v38 = vadd.f32 %v8182_v0, %v6279_v52  ;;  %8195 = vlog2.f32 %v5712_v2  ;;  %v6317_v48 = vand.u32 2147483648, %v10854_v29  ;;  %v5718_v45 = vand.u32 2147483647, %v10859_v35  ;;  %v10911_v2 = vpop.permute.xlu2 %6065 }
 0xb06   : > { %7020 = vst [vmem:[%s10704_s2 + $0xf0] sm:$0xff] %v5948_v20  ;;  %v5696_v53 = vmul.f32 0.6931472, %v8190_v10  ;;  %v6188_v25 = vadd.f32 %v10787_v7, %v6124_v21  ;;  %vm6311_vm5 = vweird.f32 %v10854_v29  ;;  %v5408_v24 = vmax.f32 %v10806_v3, 0.0 }
 0xb07   : > { %v8192_v33 = vpop.eup %8191  ;;  %v6284_v61 = vsel %vm6283_vm0, %v8182_v0, %v6280_v38  ;;  %6956 = vst [vmem:[%s10704_s2 + $0xd0] sm:$0xff] %v6124_v21  ;;  %v5716_v0 = vadd.f32 1.0, %v5715_v23  ;;  %v6318_v52 = vor.u32 1.1754944e-38, %v6317_v48  ;;  %vm5719_vm7 = vcmp.lt.f32.partialorder %v5718_v45, 0.0004427343 }
 0xb08   : > { %v5702_v58 = vsel %vm5701_vm2, %v5699_v39, %v5696_v53  ;;  %v6289_v19 = vsel %vm6286_vm1, %v6288_v50, %v6284_v61  ;;  %v6307_v17 = vmul.f32 %v8192_v33, %v10854_v29  ;;  %v10889_v55 = vadd.f32 0.0001, %v6188_v25  ;;  %v1210_v25 = vld [vmem:[%s10606_s3 + $0x50] sm:$0xff] }
 0xb09   : > { %v5918_v13 = vadd.f32 %v5702_v58, %v5406_v28  ;;  %v8194_v43 = vpop.eup %8193  ;;  %v6290_v37 = vmul.f32 %v6289_v19, %v6152_v31  ;;  %vm6312_vm4 = vweird.f32 %v8192_v33  ;;  %vm6316_vm8 = vcmp.eq.f32.partialorder %v6315_v41, 8.507059e+37  ;;  %6090 = vperm.xlu2 %7830, %v1210_v25  }
 0xb0a   : > { %v6727_v27 = vmul.f32 0.6931472, %v8194_v43  ;;  %v6308_v57 = vsub.f32 1.0, %v6307_v17  ;;  %vm6313_vm6 = vmor %vm6311_vm5, %vm6312_vm4  ;;  %vm5440_vm9 = vcmp.ne.f32.partialorder %v10806_v3, %v10806_v3  ;;  %v6345_v19 = vand.u32 2147483647, %v10889_v55 }
 0xb0b   : > { %v5950_v1 = vsel %vm5438_vm3, %v10770_v18, %v5918_v13  ;;  %8197 = vlog2.f32 %v6290_v37  ;;  %v8196_v34 = vpop.eup %8195  ;;  %v5717_v18 = vmul.f32 %v10859_v35, %v5716_v0  ;;  %v6347_v17 = vand.u32 2147483648, %v10889_v55 }
 0xb0c   : > { %7022 = vst [vmem:[%s10704_s2 + $0x130] sm:$0xff] %v5950_v1  ;;  %v6790_v47 = vmul.f32 %v10709_v12, %v6727_v27  ;;  %v6309_v59 = vmul.f32 %v8192_v33, %v6308_v57  ;;  %8199 = vrcp.f32 %v10889_v55  ;;  %v6126_v31 = vmul.f32 %v10893_v9, %v5950_v1 }
 0xb0d   : > { %v5714_v62 = vmul.f32 0.6931472, %v8196_v34  ;;  %v6154_v12 = vadd.f32 0.0001, %v10755_v14  ;;  %vm6341_vm11 = vweird.f32 %v10889_v55  ;;  %v6156_v27 = vadd.f32 0.0001, %v10787_v7 }
 0xb0e   : > { %v6822_v40 = vsub.f32 0.0, %v6790_v47  ;;  %v6310_v6 = vadd.f32 %v8192_v33, %v6309_v59  ;;  %v6190_v56 = vadd.f32 %v10830_v49, %v6126_v31  ;;  %6958 = vst [vmem:[%s10704_s2 + $0x110] sm:$0xff] %v6126_v31  ;;  %vm6346_vm13 = vcmp.eq.f32.partialorder %v6345_v19, 8.507059e+37 }
 0xb0f   : > { %v5720_v28 = vsel %vm5719_vm7, %v5717_v18, %v5714_v62  ;;  %v6348_v57 = vor.u32 1.1754944e-38, %v6347_v17  ;;  %v6158_v62 = vadd.f32 0.0001, %v10830_v49 }
 0xb10   : > { %6918 = vst [vmem:[%s10704_s2] sm:$0xff] %v6822_v40  ;;  %v6314_v10 = vsel %vm6313_vm6, %v8192_v33, %v6310_v6  ;;  %v6222_v29 = vadd.f32 0.0001, %v6190_v56  ;;  %v5920_v39 = vadd.f32 %v5720_v28, %v5408_v24 }
 0xb11   : > { %v8198_v35 = vpop.eup %8197  ;;  %v6319_v20 = vsel %vm6316_vm8, %v6318_v52, %v6314_v10 }
 0xb12   : > { %v8200_v38 = vpop.eup %8199  ;;  %v6731_v21 = vmul.f32 0.6931472, %v8198_v35  ;;  %v6320_v53 = vmul.f32 %v6319_v20, %v6154_v12  ;;  %8201 = vrcp.f32 %v6222_v29  ;;  %v5952_v23 = vsel %vm5440_vm9, %v10806_v3, %v5920_v39 }
 0xb13   : > { %v6337_v30 = vmul.f32 %v8200_v38, %v10889_v55  ;;  %v6128_v61 = vmul.f32 %v10911_v2, %v5952_v23  ;;  %7024 = vst [vmem:[%s10704_s2 + $0x170] sm:$0xff] %v5952_v23  ;;  %vm6342_vm10 = vweird.f32 %v8200_v38  ;;  %v6375_v47 = vand.u32 2147483647, %v6222_v29 }
 0xb14   : > { %v6792_v50 = vmul.f32 %v10726_v4, %v6731_v21  ;;  %8203 = vlog2.f32 %v6320_v53  ;;  %vm6343_vm12 = vmor %vm6341_vm11, %vm6342_vm10  ;;  %v6377_v59 = vand.u32 2147483648, %v6222_v29  ;;  %vm6371_vm15 = vweird.f32 %v6222_v29 }
 0xb15   : > { %5377 = vmatmul.bf16.gmra.mxu0 %v10697_v60  ;;  %v6338_v33 = vsub.f32 1.0, %v6337_v30  ;;  %v6192_v4 = vadd.f32 %v10863_v16, %v6128_v61  ;;  %6960 = vst [vmem:[%s10704_s2 + $0x150] sm:$0xff] %v6128_v61  ;;  %vm6376_vm1 = vcmp.eq.f32.partialorder %v6375_v47, 8.507059e+37 }
 0xb16   : > { %v6824_v58 = vsub.f32 0.0, %v6792_v50  ;;  %v6378_v6 = vor.u32 1.1754944e-38, %v6377_v59  ;;  %v6160_v50 = vadd.f32 0.0001, %v10863_v16 }
 0xb17   : > { %v6339_v13 = vmul.f32 %v8200_v38, %v6338_v33  ;;  %v6224_v37 = vadd.f32 0.0001, %v6192_v4 }
 0xb18   : > { %v8202_v43 = vpop.eup %8201  ;;  %6920 = vst [vmem:[%s10704_s2 + $0x40] sm:$0xff] %v6824_v58 }
 0xb19   : > { %v6340_v3 = vadd.f32 %v8200_v38, %v6339_v13  ;;  %v6367_v60 = vmul.f32 %v8202_v43, %v6222_v29  ;;  %8205 = vrcp.f32 %v6224_v37  ;;  %vm6372_vm14 = vweird.f32 %v8202_v43 }
 0xb1a   : > { %v8204_v0 = vpop.eup %8203  ;;  %vm6373_vm0 = vmor %vm6371_vm15, %vm6372_vm14  ;;  %v6407_v35 = vand.u32 2147483648, %v6224_v37  ;;  %v6405_v39 = vand.u32 2147483647, %v6224_v37  ;;  %vm6401_vm3 = vweird.f32 %v6224_v37 }
 0xb1b   : > { %v6735_v41 = vmul.f32 0.6931472, %v8204_v0  ;;  %v6344_v1 = vsel %vm6343_vm12, %v8200_v38, %v6340_v3  ;;  %v6368_v48 = vsub.f32 1.0, %v6367_v60  ;;  %v8465_v60 = vld [vmem:[%s12152_s22] ss:$0 sm:$0xff] }
 0xb1c   : > { %v6349_v45 = vsel %vm6346_vm13, %v6348_v57, %v6344_v1  ;;  %v6408_v53 = vor.u32 1.1754944e-38, %v6407_v35  ;;  %vm6406_vm5 = vcmp.eq.f32.partialorder %v6405_v39, 8.507059e+37  ;;  %v1212_v35 = vld [vmem:[%s10606_s3 + $0x60] sm:$0xff] }
 0xb1d   : > { %v6794_v31 = vmul.f32 %v10755_v14, %v6735_v41  ;;  %v6350_v34 = vmul.f32 %v6349_v45, %v6156_v27  ;;  %v6369_v55 = vmul.f32 %v8202_v43, %v6368_v48  ;;  %v1214_v45 = vld [vmem:[%s10606_s3 + $0x70] sm:$0xff]  ;;  %6100 = vperm.xlu0 %7831, %v1212_v35  }
 0xb1e   : > { %6110 = vperm.xlu1 %7829, %v1214_v45  }
 0xb1f   : > { %v6826_v18 = vsub.f32 0.0, %v6794_v31  ;;  %8207 = vlog2.f32 %v6350_v34  ;;  %v6370_v40 = vadd.f32 %v8202_v43, %v6369_v55  ;;  %v8206_v56 = vpop.eup %8205 }
 0xb20   : > { %v6397_v52 = vmul.f32 %v8206_v56, %v6224_v37  ;;  %vm6402_vm2 = vweird.f32 %v8206_v56 }
 0xb21   : > { %6922 = vst [vmem:[%s10704_s2 + $0x80] sm:$0xff] %v6826_v18  ;;  %v6374_v24 = vsel %vm6373_vm0, %v8202_v43, %v6370_v40  ;;  %vm6403_vm4 = vmor %vm6401_vm3, %vm6402_vm2 }
 0xb22   : > { %v6379_v12 = vsel %vm6376_vm1, %v6378_v6, %v6374_v24  ;;  %v6398_v28 = vsub.f32 1.0, %v6397_v52 }
 0xb23   : > { %v6380_v10 = vmul.f32 %v6379_v12, %v6158_v62 }
 0xb24   : > { %v6399_v29 = vmul.f32 %v8206_v56, %v6398_v28 }
 0xb25   : > { %5382 = vmatmul.bf16.gmra.mxu0 %v10739_v54  ;;  %v8208_v14 = vpop.eup %8207  ;;  %8209 = vlog2.f32 %v6380_v10  ;;  %v10953_v10 = vperm.slane %v10671_v32, 1 }
 0xb26   : > { %v6739_v20 = vmul.f32 0.6931472, %v8208_v14  ;;  %v6400_v21 = vadd.f32 %v8206_v56, %v6399_v29 }
 0xb28   : > { %v6796_v38 = vmul.f32 %v10787_v7, %v6739_v20  ;;  %v6404_v23 = vsel %vm6403_vm4, %v8206_v56, %v6400_v21 }
 0xb29   : > { %v6409_v33 = vsel %vm6406_vm5, %v6408_v53, %v6404_v23 }
 0xb2a   : > { %v6828_v30 = vsub.f32 0.0, %v6796_v38  ;;  %v6410_v25 = vmul.f32 %v6409_v33, %v6160_v50 }
 0xb2b   : > { %v8210_v54 = vpop.eup %8209 }
 0xb2c   : > { %6924 = vst [vmem:[%s10704_s2 + $0xc0] sm:$0xff] %v6828_v30  ;;  %v6743_v61 = vmul.f32 0.6931472, %v8210_v54  ;;  %8211 = vlog2.f32 %v6410_v25 }
 0xb2e   : > { %v6798_v58 = vmul.f32 %v10830_v49, %v6743_v61 }
 0xb30   : > { %v6830_v7 = vsub.f32 0.0, %v6798_v58 }
 0xb32   : > { %v4980_v19 = vpop.f32.mrf.mxu0  ;;  %6926 = vst [vmem:[%s10704_s2 + $0x100] sm:$0xff] %v6830_v7  ;;  %v8212_v17 = vpop.eup %8211 }
 0xb33   : > { %v6747_v13 = vmul.f32 0.6931472, %v8212_v17  ;;  %v4981_v37 = vadd.f32 %v8465_v60, %v4980_v19  ;;  %v1215_v19 = vld [vmem:[%s10606_s3 + $0x78] sm:$0xff] }
 0xb34   : > { %6115 = vperm.xlu0 %7831, %v1215_v19  }
 0xb35   : > { %v6800_v4 = vmul.f32 %v10863_v16, %v6747_v13 }
 0xb37   : > { %v6832_v43 = vsub.f32 0.0, %v6800_v4 }
 0xb39   : > { %6928 = vst [vmem:[%s10704_s2 + $0x140] sm:$0xff] %v6832_v43 }
 0xb3a   : > { %v4982_v3 = vpop.f32.mrf.mxu0 }
 0xb3b   : > { %v4983_v0 = vadd.f32 %v8465_v60, %v4982_v3 }
 0xb3d   : > { %v4996_v27 = vpack.c.bf16 %v4983_v0, %v4981_v37 }
 0xb3f   : > { %5138 = vmatmul.bf16.gmra.mxu2 %v4996_v27  ;;  %5187 = vmatmul.bf16.gmra.mxu3 %v4996_v27 }
 0xb40   : > { %5338 = vmatmul.bf16.gmra.mxu1 %v4996_v27  ;;  %5387 = vmatmul.bf16.gmra.mxu0 %v4996_v27 }
 0xb42   : > { %v4985_v49 = vpop.f32.mrf.mxu0 }
 0xb43   : > { %v5324_v57 = vpop.f32.mrf.mxu1  ;;  %v4986_v18 = vadd.f32 %v8465_v60, %v4985_v49 }
 0xb44   : > { %v10942_v41 = vadd.f32 %v5324_v57, %v10677_v63 }
 0xb46   : > { %v5506_v1 = vand.u32 2147483647, %v10942_v41  ;;  %vm5442_vm7 = vcmp.ne.f32.partialorder %v10942_v41, %v10942_v41 }
 0xb48   : > { %v5538_v16 = vsub.f32 0.0, %v5506_v1  ;;  %v5124_v48 = vpop.f32.mrf.mxu2 }
 0xb49   : > { %v5125_v47 = vadd.f32 %v5124_v48, %v10683_v8  ;;  %v5173_v59 = vpop.f32.mrf.mxu3 }
 0xb4a   : > { %v5582_v31 = vmul.f32 1.442695, %v5538_v16  ;;  %v5174_v34 = vadd.f32 %v5173_v59, %v10685_v44  ;;  %v4987_v55 = vpop.f32.mrf.mxu0  ;;  %v10984_v59 = vadd.f32 0.0001, %v10711_v42  ;;  %v10997_v42 = vadd.f32 0.0001, %v10760_v5  ;;  %v11007_v5 = vpop.permute.xlu1 %6070 }
 0xb4b   : > { %v5998_v40 = vmul.f32 1.442695, %v5125_v47  ;;  %v4988_v6 = vadd.f32 %v8465_v60, %v4987_v55  ;;  %v5326_v56 = vpop.f32.mrf.mxu1 }
 0xb4c   : > { %8213 = vpow2.f32 %v5582_v31  ;;  %v6000_v62 = vmul.f32 1.442695, %v5174_v34  ;;  %v10949_v24 = vadd.f32 %v5326_v56, %v10677_v63  ;;  %v10993_v56 = vadd.f32 0.0001, %v10729_v51 }
 0xb4d   : > { %8215 = vpow2.f32 %v5998_v40  ;;  %v4997_v12 = vpack.c.bf16 %v4988_v6, %v4986_v18 }
 0xb4e   : > { %8217 = vpow2.f32 %v6000_v62  ;;  %v5508_v52 = vand.u32 2147483647, %v10949_v24  ;;  %v5410_v62 = vmax.f32 %v10942_v41, 0.0  ;;  %vm5444_vm8 = vcmp.ne.f32.partialorder %v10949_v24, %v10949_v24 }
 0xb4f   : > { %5143 = vmatmul.bf16.gmra.mxu2 %v4997_v12  ;;  %5192 = vmatmul.bf16.gmra.mxu3 %v4997_v12 }
 0xb50   : > { %v5540_v28 = vsub.f32 0.0, %v5508_v52  ;;  %5343 = vmatmul.bf16.gmra.mxu1 %v4997_v12  ;;  %5392 = vmatmul.bf16.gmra.mxu0 %v4997_v12  ;;  %v5126_v14 = vpop.f32.mrf.mxu2 }
 0xb51   : > { %v5127_v20 = vadd.f32 %v5126_v14, %v10683_v8  ;;  %v5175_v29 = vpop.f32.mrf.mxu3  ;;  %v11001_v14 = vadd.f32 0.0001, %v10793_v46 }
 0xb52   : > { %v8214_v39 = vpop.eup %8213  ;;  %v5586_v38 = vmul.f32 1.442695, %v5540_v28  ;;  %v5176_v21 = vadd.f32 %v5175_v29, %v10685_v44  ;;  %v5358_v53 = vpop.f32.mrf.mxu0  ;;  %v1213_v28 = vld [vmem:[%s10606_s3 + $0x68] sm:$0xff] }
 0xb53   : > { %v10958_v30 = vpop.eup %8215  ;;  %v6002_v32 = vmul.f32 1.442695, %v5127_v20  ;;  %v10961_v50 = vadd.f32 %v5358_v53, %v10953_v10  ;;  %v5730_v23 = vadd.f32 1.0, %v8214_v39  ;;  %v5733_v25 = vmul.f32 -0.5, %v8214_v39  ;;  %6105 = vperm.xlu2 %7830, %v1213_v28  }
 0xb54   : > { %v10963_v54 = vpop.eup %8217  ;;  %6994 = vst [vmem:[%s10704_s2 + $0x1a0] sm:$0xff] %v10958_v30  ;;  %8219 = vpow2.f32 %v5586_v38  ;;  %v6004_v33 = vmul.f32 1.442695, %v5176_v21  ;;  %v5329_v61 = vpop.f32.mrf.mxu1  ;;  %v5736_v57 = vand.u32 2147483647, %v8214_v39 }
 0xb55   : > { %6995 = vst [vmem:[%s10704_s2 + $0x1a8] sm:$0xff] %v10963_v54  ;;  %8221 = vpow2.f32 %v6002_v32  ;;  %v5495_v58 = vand.u32 2147483647, %v10961_v50  ;;  %v5734_v4 = vadd.f32 1.0, %v5733_v25  ;;  %v10988_v31 = vadd.f32 %v5329_v61, %v10677_v63 }
 0xb56   : > { %8223 = vpow2.f32 %v6004_v33  ;;  %vm5737_vm6 = vcmp.lt.f32.partialorder %v5736_v57, 0.0004427343  ;;  %vm5431_vm10 = vcmp.ne.f32.partialorder %v10961_v50, %v10961_v50 }
 0xb57   : > { %8225 = vlog2.f32 %v5730_v23  ;;  %v5527_v7 = vsub.f32 0.0, %v5495_v58  ;;  %v5735_v34 = vmul.f32 %v8214_v39, %v5734_v4  ;;  %v5510_v35 = vand.u32 2147483647, %v10988_v31 }
 0xb58   : > { %v11018_v4 = vadd.f32 0.0001, %v10834_v11 }
 0xb59   : > { %v5129_v17 = vpop.f32.mrf.mxu2  ;;  %v5178_v13 = vpop.f32.mrf.mxu3  ;;  %v5560_v3 = vmul.f32 1.442695, %v5527_v7  ;;  %v5542_v57 = vsub.f32 0.0, %v5510_v35 }
 0xb5a   : > { %v10971_v43 = vpop.eup %8219  ;;  %v5130_v60 = vadd.f32 %v5129_v17, %v10683_v8  ;;  %v5179_v37 = vadd.f32 %v5178_v13, %v10685_v44  ;;  %v5360_v0 = vpop.f32.mrf.mxu0 }
 0xb5b   : > { %v10975_v27 = vpop.eup %8221  ;;  %v10978_v49 = vadd.f32 %v5360_v0, %v10953_v10  ;;  %8227 = vpow2.f32 %v5560_v3  ;;  %v5748_v45 = vadd.f32 1.0, %v10971_v43  ;;  %v5751_v6 = vmul.f32 -0.5, %v10971_v43 }
 0xb5c   : > { %v8224_v1 = vpop.eup %8223  ;;  %6996 = vst [vmem:[%s10704_s2 + $0x1e0] sm:$0xff] %v10975_v27  ;;  %v6006_v16 = vmul.f32 1.442695, %v5130_v60  ;;  %v6008_v48 = vmul.f32 1.442695, %v5179_v37  ;;  %v5331_v55 = vpop.f32.mrf.mxu1  ;;  %v5412_v0 = vmax.f32 %v10949_v24, 0.0 }
 0xb5d   : > { %v8226_v47 = vpop.eup %8225  ;;  %6997 = vst [vmem:[%s10704_s2 + $0x1e8] sm:$0xff] %v8224_v1  ;;  %v5497_v18 = vand.u32 2147483647, %v10978_v49  ;;  %v11005_v20 = vadd.f32 %v5331_v55, %v10677_v63  ;;  %v5752_v46 = vadd.f32 1.0, %v5751_v6  ;;  %v5754_v25 = vand.u32 2147483647, %v10971_v43 }
 0xb5e   : > { %8229 = vpow2.f32 %v6006_v16  ;;  %v5732_v40 = vmul.f32 0.6931472, %v8226_v47  ;;  %v5590_v28 = vmul.f32 1.442695, %v5542_v57  ;;  %vm5433_vm12 = vcmp.ne.f32.partialorder %v10978_v49, %v10978_v49 }
 0xb5f   : > { %8231 = vpow2.f32 %v6008_v48  ;;  %v5529_v12 = vsub.f32 0.0, %v5497_v18  ;;  %v5512_v3 = vand.u32 2147483647, %v11005_v20  ;;  %v5753_v1 = vmul.f32 %v10971_v43, %v5752_v46 }
 0xb60   : > { %v5738_v52 = vsel %vm5737_vm6, %v5735_v34, %v5732_v40  ;;  %8233 = vlog2.f32 %v5748_v45  ;;  %v5399_v45 = vmax.f32 %v10961_v50, 0.0  ;;  %vm11036_vm9 = vcmp.lt.f32.partialorder %v5754_v25, 0.0004427343 }
 0xb61   : > { %v5922_v51 = vadd.f32 %v5738_v52, %v5410_v62  ;;  %v5131_v29 = vpop.f32.mrf.mxu2  ;;  %v5180_v39 = vpop.f32.mrf.mxu3  ;;  %v5564_v21 = vmul.f32 1.442695, %v5529_v12  ;;  %v5544_v43 = vsub.f32 0.0, %v5512_v3  ;;  %v5414_v52 = vmax.f32 %v10988_v31, 0.0 }
 0xb62   : > { %v8228_v38 = vpop.eup %8227  ;;  %v5132_v53 = vadd.f32 %v5131_v29, %v10683_v8  ;;  %v5181_v32 = vadd.f32 %v5180_v39, %v10685_v44  ;;  %v5363_v61 = vpop.f32.mrf.mxu0  ;;  %v11054_v25 = vadd.f32 0.0001, %v10958_v30 }
 0xb63   : > { %v5631_v23 = vadd.f32 1.0, %v8228_v38  ;;  %v5634_v33 = vmul.f32 -0.5, %v8228_v38  ;;  %8235 = vpow2.f32 %v5564_v21  ;;  %v5954_v7 = vsel %vm5442_vm7, %v10942_v41, %v5922_v51 }
 0xb64   : > { %v11014_v58 = vpop.eup %8229  ;;  %v6010_v19 = vmul.f32 1.442695, %v5132_v53  ;;  %v6012_v17 = vmul.f32 1.442695, %v5181_v32  ;;  %v6130_v60 = vmul.f32 %v11007_v5, %v5954_v7  ;;  %v11027_v41 = vadd.f32 %v5363_v61, %v10953_v10  ;;  %7026 = vst [vmem:[%s10704_s2 + $0x1b0] sm:$0xff] %v5954_v7 }
 0xb65   : > { %v8232_v13 = vpop.eup %8231  ;;  %8237 = vlog2.f32 %v5631_v23  ;;  %6998 = vst [vmem:[%s10704_s2 + $0x220] sm:$0xff] %v11014_v58  ;;  %v5635_v11 = vadd.f32 1.0, %v5634_v33  ;;  %v5334_v47 = vpop.f32.mrf.mxu1  ;;  %v5637_v55 = vand.u32 2147483647, %v8228_v38  ;;  %v5594_v61 = vmul.f32 1.442695, %v5544_v43 }
 0xb66   : > { %v8234_v37 = vpop.eup %8233  ;;  %6999 = vst [vmem:[%s10704_s2 + $0x228] sm:$0xff] %v8232_v13  ;;  %v6194_v16 = vadd.f32 %v10958_v30, %v6130_v60  ;;  %8239 = vpow2.f32 %v6010_v19  ;;  %v5499_v35 = vand.u32 2147483647, %v11027_v41  ;;  %v5401_v19 = vmax.f32 %v10978_v49, 0.0  ;;  %v11059_v13 = vpop.permute.xlu2 %6075 }
 0xb67   : > { %6962 = vst [vmem:[%s10704_s2 + $0x190] sm:$0xff] %v6130_v60  ;;  %v5750_v48 = vmul.f32 0.6931472, %v8234_v37  ;;  %8241 = vpow2.f32 %v6012_v17  ;;  %v5636_v29 = vmul.f32 %v8228_v38, %v5635_v11  ;;  %vm5638_vm11 = vcmp.lt.f32.partialorder %v5637_v55, 0.0004427343 }
 0xb68   : > { %v11040_v18 = vadd.f32 0.0001, %v6194_v16  ;;  %v5531_v17 = vsub.f32 0.0, %v5499_v35  ;;  %v5416_v60 = vmax.f32 %v11005_v20, 0.0  ;;  %v11085_v43 = vadd.f32 0.0001, %v10975_v27 }
 0xb69   : > { %v5756_v40 = vsel %vm11036_vm9, %v5753_v1, %v5750_v48  ;;  %v8236_v12 = vpop.eup %8235  ;;  %vm5435_vm3 = vcmp.ne.f32.partialorder %v11027_v41, %v11027_v41 }
 0xb6a   : > { %v5134_v6 = vpop.f32.mrf.mxu2  ;;  %v5183_v62 = vpop.f32.mrf.mxu3  ;;  %v5649_v39 = vadd.f32 1.0, %v8236_v12  ;;  %v5652_v21 = vmul.f32 -0.5, %v8236_v12  ;;  %8243 = vrcp.f32 %v11040_v18  ;;  %v5924_v32 = vadd.f32 %v5756_v40, %v5412_v0 }
 0xb6b   : > { %v8238_v51 = vpop.eup %8237  ;;  %v5135_v46 = vadd.f32 %v5134_v6, %v10683_v8  ;;  %v5184_v23 = vadd.f32 %v5183_v62, %v10685_v44  ;;  %v11064_v0 = vadd.f32 %v5334_v47, %v10677_v63  ;;  %v5568_v57 = vmul.f32 1.442695, %v5531_v17 }
 0xb6c   : > { %v5633_v53 = vmul.f32 0.6931472, %v8238_v51  ;;  %v11051_v33 = vpop.eup %8239  ;;  %8245 = vlog2.f32 %v5649_v39  ;;  %v5653_v37 = vadd.f32 1.0, %v5652_v21  ;;  %v5956_v1 = vsel %vm5444_vm8, %v10949_v24, %v5924_v32  ;;  %v5365_v21 = vpop.f32.mrf.mxu0 }
 0xb6d   : > { %v8242_v38 = vpop.eup %8241  ;;  %8247 = vpow2.f32 %v5590_v28  ;;  %7000 = vst [vmem:[%s10704_s2 + $0x260] sm:$0xff] %v11051_v33  ;;  %v6014_v11 = vmul.f32 1.442695, %v5135_v46  ;;  %v6016_v16 = vmul.f32 1.442695, %v5184_v23  ;;  %v6132_v34 = vmul.f32 %v11059_v13, %v5956_v1  ;;  %v5336_v40 = vpop.f32.mrf.mxu1 }
 0xb6e   : > { %v5639_v7 = vsel %vm5638_vm11, %v5636_v29, %v5633_v53  ;;  %7001 = vst [vmem:[%s10704_s2 + $0x268] sm:$0xff] %v8242_v38  ;;  %8249 = vpow2.f32 %v5594_v61  ;;  %v5655_v47 = vand.u32 2147483647, %v8236_v12  ;;  %v5514_v62 = vand.u32 2147483647, %v11064_v0 }
 0xb6f   : > { %v5911_v3 = vadd.f32 %v5639_v7, %v5399_v45  ;;  %7028 = vst [vmem:[%s10704_s2 + $0x1f0] sm:$0xff] %v5956_v1  ;;  %8251 = vpow2.f32 %v5568_v57  ;;  %v6196_v28 = vadd.f32 %v10975_v27, %v6132_v34  ;;  %v11101_v32 = vadd.f32 %v5336_v40, %v10677_v63 }
 0xb70   : > { %v11072_v48 = vpop.eup %8243  ;;  %6964 = vst [vmem:[%s10704_s2 + $0x1d0] sm:$0xff] %v6132_v34  ;;  %8253 = vpow2.f32 %v6014_v11  ;;  %vm5656_vm13 = vcmp.lt.f32.partialorder %v5655_v47, 0.0004427343  ;;  %v6437_v38 = vand.u32 2147483648, %v11040_v18  ;;  %vm6431_vm15 = vweird.f32 %v11040_v18 }
 0xb71   : > { %v5943_v45 = vsel %vm5431_vm10, %v10961_v50, %v5911_v3  ;;  %v6427_v24 = vmul.f32 %v11072_v48, %v11040_v18  ;;  %v5654_v50 = vmul.f32 %v8236_v12, %v5653_v37  ;;  %8255 = vpow2.f32 %v6016_v16 }
 0xb72   : > { %v6119_v55 = vmul.f32 %v10752_v26, %v5943_v45  ;;  %7015 = vst [vmem:[%s10704_s2 + $0x38] sm:$0xff] %v5943_v45  ;;  %v8246_v6 = vpop.eup %8245  ;;  %v11093_v26 = vld [vmem:[%s10704_s2 + $0x28] sm:$0xff]  ;;  %v6435_v12 = vand.u32 2147483647, %v11040_v18  ;;  %v11098_v53 = vadd.f32 0.0001, %v6196_v28  ;;  %vm6432_vm14 = vweird.f32 %v11072_v48 }
 0xb73   : > { %v11090_v35 = vpop.eup %8247  ;;  %v5651_v29 = vmul.f32 0.6931472, %v8246_v6  ;;  %v6428_v39 = vsub.f32 1.0, %v6427_v24  ;;  %v11112_v3 = vadd.f32 %v5365_v21, %v10953_v10  ;;  %v5546_v57 = vsub.f32 0.0, %v5514_v62  ;;  %vm6433_vm0 = vmor %vm6431_vm15, %vm6432_vm14 }
 0xb74   : > { %v6183_v51 = vadd.f32 %v11093_v26, %v6119_v55  ;;  %6951 = vst [vmem:[%s10704_s2 + $0x18] sm:$0xff] %v6119_v55  ;;  %v11107_v7 = vpop.eup %8249  ;;  %8257 = vrcp.f32 %v11098_v53  ;;  %v5403_v1 = vmax.f32 %v11027_v41, 0.0  ;;  %v5516_v47 = vand.u32 2147483647, %v11101_v32 }
 0xb75   : > { %v5657_v23 = vsel %vm5656_vm13, %v5654_v50, %v5651_v29  ;;  %v6429_v61 = vmul.f32 %v11072_v48, %v6428_v39  ;;  %v8252_v37 = vpop.eup %8251  ;;  %vm6436_vm1 = vcmp.eq.f32.partialorder %v6435_v12, 8.507059e+37  ;;  %v6438_v55 = vor.u32 1.1754944e-38, %v6437_v38 }
 0xb76   : > { %v11103_v46 = vadd.f32 0.0001, %v6183_v51  ;;  %v5913_v17 = vadd.f32 %v5657_v23, %v5401_v19  ;;  %v11117_v11 = vpop.eup %8253  ;;  %v5667_v45 = vadd.f32 1.0, %v8252_v37  ;;  %v5670_v24 = vmul.f32 -0.5, %v8252_v37 }
 0xb77   : > { %v6430_v16 = vadd.f32 %v11072_v48, %v6429_v61  ;;  %v8256_v34 = vpop.eup %8255  ;;  %7002 = vst [vmem:[%s10704_s2 + $0x2a0] sm:$0xff] %v11117_v11  ;;  %v5501_v6 = vand.u32 2147483647, %v11112_v3  ;;  %v6465_v51 = vand.u32 2147483647, %v11098_v53  ;;  %v11147_v12 = vsub.f32 0.0, %v5516_v47 }
 0xb78   : > { %8259 = vrcp.f32 %v11103_v46  ;;  %v5945_v19 = vsel %vm5433_vm12, %v10978_v49, %v5913_v17  ;;  %v6270_v49 = vand.u32 2147483647, %v11103_v46  ;;  %v6272_v50 = vand.u32 2147483648, %v11103_v46  ;;  %7003 = vst [vmem:[%s10704_s2 + $0x2a8] sm:$0xff] %v8256_v34 }
 0xb79   : > { %v6121_v18 = vmul.f32 %v10783_v36, %v5945_v19  ;;  %7017 = vst [vmem:[%s10704_s2 + $0x78] sm:$0xff] %v5945_v19  ;;  %v6434_v40 = vsel %vm6433_vm0, %v11072_v48, %v6430_v16  ;;  %8261 = vlog2.f32 %v5667_v45  ;;  %v11136_v36 = vld [vmem:[%s10704_s2 + $0x68] sm:$0xff]  ;;  %v11144_v48 = vmul.f32 1.442695, %v5546_v57 }
 0xb7a   : > { %v6439_v28 = vsel %vm6436_vm1, %v6438_v55, %v6434_v40  ;;  %v11141_v29 = vpop.eup %8257  ;;  %v5673_v21 = vand.u32 2147483647, %v8252_v37  ;;  %vm6266_vm2 = vweird.f32 %v11103_v46  ;;  %v5671_v38 = vadd.f32 1.0, %v5670_v24 }
 0xb7b   : > { %v6185_v62 = vadd.f32 %v11136_v36, %v6121_v18  ;;  %6953 = vst [vmem:[%s10704_s2 + $0x58] sm:$0xff] %v6121_v18  ;;  %v6440_v39 = vmul.f32 %v6439_v28, %v11054_v25  ;;  %v6457_v17 = vmul.f32 %v11141_v29, %v11098_v53  ;;  %vm6461_vm4 = vweird.f32 %v11098_v53 }
 0xb7c   : > { %vm11158_vm5 = vcmp.eq.f32.partialorder %v6270_v49, 8.507059e+37  ;;  %v5533_v19 = vsub.f32 0.0, %v5501_v6  ;;  %v6273_v16 = vor.u32 1.1754944e-38, %v6272_v50  ;;  %vm11163_vm6 = vcmp.eq.f32.partialorder %v6465_v51, 8.507059e+37 }
 0xb7d   : > { %v11150_v61 = vadd.f32 0.0001, %v6185_v62  ;;  %8263 = vlog2.f32 %v6440_v39  ;;  %v6467_v47 = vand.u32 2147483648, %v11098_v53  ;;  %vm11168_vm7 = vcmp.lt.f32.partialorder %v5673_v21, 0.0004427343 }
 0xb7e   : > { %v8260_v23 = vpop.eup %8259  ;;  %v6458_v24 = vsub.f32 1.0, %v6457_v17  ;;  %v5572_v49 = vmul.f32 1.442695, %v5533_v19  ;;  %v5672_v6 = vmul.f32 %v8252_v37, %v5671_v38  ;;  %v5766_v50 = vadd.f32 1.0, %v11090_v35 }
 0xb7f   : > { %v6262_v25 = vmul.f32 %v8260_v23, %v11103_v46  ;;  %8265 = vrcp.f32 %v11150_v61  ;;  %v8262_v34 = vpop.eup %8261  ;;  %vm6267_vm8 = vweird.f32 %v8260_v23  ;;  %v5769_v51 = vmul.f32 -0.5, %v11090_v35 }
 0xb80   : > { %v5669_v40 = vmul.f32 0.6931472, %v8262_v34  ;;  %v6459_v28 = vmul.f32 %v11141_v29, %v6458_v24  ;;  %8267 = vpow2.f32 %v5572_v49  ;;  %vm6462_vm9 = vweird.f32 %v11141_v29  ;;  %vm6268_vm10 = vmor %vm6266_vm2, %vm6267_vm8  ;;  %v5136_v24 = vpop.f32.mrf.mxu2 }
 0xb81   : > { %v6263_v18 = vsub.f32 1.0, %v6262_v25  ;;  %v6468_v21 = vor.u32 1.1754944e-38, %v6467_v47  ;;  %8269 = vlog2.f32 %v5766_v50  ;;  %v6300_v19 = vand.u32 2147483647, %v11150_v61  ;;  %vm6463_vm12 = vmor %vm6461_vm4, %vm6462_vm9 }
 0xb82   : > { %v5675_v39 = vsel %vm11168_vm7, %v5672_v6, %v5669_v40  ;;  %v6460_v38 = vadd.f32 %v11141_v29, %v6459_v28  ;;  %vm6296_vm11 = vweird.f32 %v11150_v61  ;;  %v6302_v47 = vand.u32 2147483648, %v11150_v61 }
 0xb83   : > { %v6264_v62 = vmul.f32 %v8260_v23, %v6263_v18  ;;  %v8264_v17 = vpop.eup %8263  ;;  %v5915_v37 = vadd.f32 %v5675_v39, %v5403_v1  ;;  %v5772_v55 = vand.u32 2147483647, %v11090_v35  ;;  %v5770_v46 = vadd.f32 1.0, %v5769_v51 }
 0xb84   : > { %v6751_v18 = vmul.f32 0.6931472, %v8264_v17  ;;  %vm5446_vm13 = vcmp.ne.f32.partialorder %v10988_v31, %v10988_v31  ;;  %v5137_v57 = vadd.f32 %v5136_v24, %v10683_v8  ;;  %v5185_v17 = vpop.f32.mrf.mxu3  ;;  %vm11219_vm15 = vcmp.eq.f32.partialorder %v6300_v19, 8.507059e+37 }
 0xb85   : > { %v6265_v25 = vadd.f32 %v8260_v23, %v6264_v62  ;;  %v8266_v34 = vpop.eup %8265  ;;  %v5947_v1 = vsel %vm5435_vm3, %v11027_v41, %v5915_v37  ;;  %v6464_v62 = vsel %vm6463_vm12, %v11141_v29, %v6460_v38  ;;  %vm5773_vm1 = vcmp.lt.f32.partialorder %v5772_v55, 0.0004427343 }
 0xb86   : > { %v6292_v40 = vmul.f32 %v8266_v34, %v11150_v61  ;;  %v6123_v50 = vmul.f32 %v10824_v22, %v5947_v1  ;;  %7019 = vst [vmem:[%s10704_s2 + $0xb8] sm:$0xff] %v5947_v1  ;;  %v11203_v28 = vpop.eup %8267  ;;  %v6469_v53 = vsel %vm11163_vm6, %v6468_v21, %v6464_v62  ;;  %v11212_v22 = vld [vmem:[%s10704_s2 + $0xa8] sm:$0xff]  ;;  %vm6297_vm14 = vweird.f32 %v8266_v34  ;;  %v11238_v61 = vpop.permute.xlu1 %6080 }
 0xb87   : > { %v6269_v49 = vsel %vm6268_vm10, %v8260_v23, %v6265_v25  ;;  %v6802_v23 = vmul.f32 %v10958_v30, %v6751_v18  ;;  %v8270_v30 = vpop.eup %8269  ;;  %v6470_v51 = vmul.f32 %v6469_v53, %v11085_v43  ;;  %v5688_v21 = vmul.f32 -0.5, %v11203_v28  ;;  %v5368_v25 = vpop.f32.mrf.mxu0  ;;  %vm6298_vm0 = vmor %vm6296_vm11, %vm6297_vm14 }
 0xb88   : > { %v6274_v6 = vsel %vm11158_vm5, %v6273_v16, %v6269_v49  ;;  %v6293_v39 = vsub.f32 1.0, %v6292_v40  ;;  %v6187_v29 = vadd.f32 %v11212_v22, %v6123_v50  ;;  %6955 = vst [vmem:[%s10704_s2 + $0x98] sm:$0xff] %v6123_v50  ;;  %v5768_v18 = vmul.f32 0.6931472, %v8270_v30 }
 0xb89   : > { %v6275_v41 = vmul.f32 %v6274_v6, %v10984_v59  ;;  %v6834_v16 = vsub.f32 0.0, %v6802_v23  ;;  %v5685_v59 = vadd.f32 1.0, %v11203_v28  ;;  %v5771_v43 = vmul.f32 %v11090_v35, %v5770_v46 }
 0xb8a   : > { %v6294_v45 = vmul.f32 %v8266_v34, %v6293_v39  ;;  %v11224_v38 = vadd.f32 0.0001, %v6187_v29  ;;  %v5186_v49 = vadd.f32 %v5185_v17, %v10685_v44  ;;  %v6303_v40 = vor.u32 1.1754944e-38, %v6302_v47 }
 0xb8b   : > { %8271 = vlog2.f32 %v6275_v41  ;;  %6930 = vst [vmem:[%s10704_s2 + $0x180] sm:$0xff] %v6834_v16  ;;  %v11232_v19 = vadd.f32 %v5368_v25, %v10953_v10  ;;  %v5689_v6 = vadd.f32 1.0, %v5688_v21  ;;  %v5774_v23 = vsel %vm5773_vm1, %v5771_v43, %v5768_v18 }
 0xb8c   : > { %8273 = vlog2.f32 %v6470_v51  ;;  %v6295_v24 = vadd.f32 %v8266_v34, %v6294_v45  ;;  %v6018_v50 = vmul.f32 1.442695, %v5137_v57  ;;  %v5405_v35 = vmax.f32 %v11112_v3, 0.0 }
 0xb8d   : > { %8275 = vlog2.f32 %v5685_v59  ;;  %v5926_v47 = vadd.f32 %v5774_v23, %v5414_v52  ;;  %v5691_v41 = vand.u32 2147483647, %v11203_v28  ;;  %v6020_v39 = vmul.f32 1.442695, %v5186_v49 }
 0xb8e   : > { %8277 = vrcp.f32 %v11224_v38  ;;  %v6299_v1 = vsel %vm6298_vm0, %v8266_v34, %v6295_v24  ;;  %v5602_v34 = vmul.f32 1.442695, %v11147_v12  ;;  %v5503_v30 = vand.u32 2147483647, %v11232_v19 }
 0xb8f   : > { %v6304_v62 = vsel %vm11219_vm15, %v6303_v40, %v6299_v1  ;;  %8279 = vpow2.f32 %v11144_v48  ;;  %v5958_v48 = vsel %vm5446_vm13, %v10988_v31, %v5926_v47  ;;  %vm5692_vm2 = vcmp.lt.f32.partialorder %v5691_v41, 0.0004427343 }
 0xb90   : > { %v6305_v46 = vmul.f32 %v6304_v62, %v10993_v56  ;;  %8281 = vpow2.f32 %v6018_v50  ;;  %v5690_v56 = vmul.f32 %v11203_v28, %v5689_v6  ;;  %v6134_v12 = vmul.f32 %v11238_v61, %v5958_v48  ;;  %7030 = vst [vmem:[%s10704_s2 + $0x230] sm:$0xff] %v5958_v48 }
 0xb91   : > { %v8272_v55 = vpop.eup %8271  ;;  %v5535_v17 = vsub.f32 0.0, %v5503_v30  ;;  %v6332_v6 = vand.u32 2147483648, %v11224_v38  ;;  %vm5437_vm3 = vcmp.ne.f32.partialorder %v11112_v3, %v11112_v3  ;;  %vm6326_vm5 = vweird.f32 %v11224_v38 }
 0xb92   : > { %v8274_v53 = vpop.eup %8273  ;;  %v6729_v57 = vmul.f32 0.6931472, %v8272_v55  ;;  %8283 = vlog2.f32 %v6305_v46  ;;  %v6198_v21 = vadd.f32 %v11014_v58, %v6134_v12  ;;  %6966 = vst [vmem:[%s10704_s2 + $0x210] sm:$0xff] %v6134_v12  ;;  %v11276_v46 = vadd.f32 0.0001, %v11014_v58 }
 0xb93   : > { %v8276_v52 = vpop.eup %8275  ;;  %v6755_v16 = vmul.f32 0.6931472, %v8274_v53  ;;  %8285 = vpow2.f32 %v6020_v39  ;;  %v5576_v18 = vmul.f32 1.442695, %v5535_v17  ;;  %v5790_v30 = vand.u32 2147483647, %v11107_v7 }
 0xb94   : > { %v8278_v29 = vpop.eup %8277  ;;  %v6791_v51 = vmul.f32 %v11093_v26, %v6729_v57  ;;  %v5687_v59 = vmul.f32 0.6931472, %v8276_v52  ;;  %v5784_v26 = vadd.f32 1.0, %v11107_v7  ;;  %v11261_v40 = vadd.f32 0.0001, %v6198_v21  ;;  %v5370_v52 = vpop.f32.mrf.mxu0 }
 0xb95   : > { %v6322_v31 = vmul.f32 %v8278_v29, %v11224_v38  ;;  %v6804_v45 = vmul.f32 %v10975_v27, %v6755_v16  ;;  %v11258_v25 = vpop.eup %8279  ;;  %v6330_v27 = vand.u32 2147483647, %v11224_v38  ;;  %8287 = vpow2.f32 %v5576_v18 }
 0xb96   : > { %v6823_v28 = vsub.f32 0.0, %v6791_v51  ;;  %v5693_v37 = vsel %vm5692_vm2, %v5690_v56, %v5687_v59  ;;  %v11263_v1 = vpop.eup %8281  ;;  %vm6327_vm4 = vweird.f32 %v8278_v29  ;;  %8289 = vrcp.f32 %v11261_v40 }
 0xb97   : > { %v6323_v24 = vsub.f32 1.0, %v6322_v31  ;;  %v6836_v43 = vsub.f32 0.0, %v6804_v45  ;;  %v5917_v49 = vadd.f32 %v5693_v37, %v5405_v35  ;;  %8291 = vpow2.f32 %v5602_v34  ;;  %7004 = vst [vmem:[%s10704_s2 + $0x2e0] sm:$0xff] %v11263_v1  ;;  %vm6328_vm6 = vmor %vm6326_vm5, %vm6327_vm4 }
 0xb98   : > { %6919 = vst [vmem:[%s10704_s2 + $0x8] sm:$0xff] %v6823_v28  ;;  %v8284_v23 = vpop.eup %8283  ;;  %8293 = vlog2.f32 %v5784_v26  ;;  %vm6331_vm7 = vcmp.eq.f32.partialorder %v6330_v27, 8.507059e+37  ;;  %v6333_v34 = vor.u32 1.1754944e-38, %v6332_v6  ;;  %v6495_v48 = vand.u32 2147483647, %v11261_v40 }
 0xb99   : > { %v6324_v50 = vmul.f32 %v8278_v29, %v6323_v24  ;;  %6932 = vst [vmem:[%s10704_s2 + $0x1c0] sm:$0xff] %v6836_v43  ;;  %v5949_v62 = vsel %vm5437_vm3, %v11112_v3, %v5917_v49  ;;  %v8286_v35 = vpop.eup %8285  ;;  %v6733_v47 = vmul.f32 0.6931472, %v8284_v23  ;;  %v5787_v3 = vmul.f32 -0.5, %v11107_v7 }
 0xb9a   : > { %v6125_v55 = vmul.f32 %v10867_v15, %v5949_v62  ;;  %7021 = vst [vmem:[%s10704_s2 + $0xf8] sm:$0xff] %v5949_v62  ;;  %v11285_v15 = vld [vmem:[%s10704_s2 + $0xe8] sm:$0xff]  ;;  %v5407_v38 = vmax.f32 %v11232_v19, 0.0  ;;  %v6497_v51 = vand.u32 2147483648, %v11261_v40  ;;  %vm6491_vm8 = vweird.f32 %v11261_v40 }
 0xb9b   : > { %v6325_v41 = vadd.f32 %v8278_v29, %v6324_v50  ;;  %v6793_v39 = vmul.f32 %v11136_v36, %v6733_v47  ;;  %7005 = vst [vmem:[%s10704_s2 + $0x2e8] sm:$0xff] %v8286_v35  ;;  %v8288_v36 = vpop.eup %8287  ;;  %v5788_v45 = vadd.f32 1.0, %v5787_v3  ;;  %vm5448_vm9 = vcmp.ne.f32.partialorder %v11005_v20, %v11005_v20 }
 0xb9c   : > { %v6189_v53 = vadd.f32 %v11285_v15, %v6125_v55  ;;  %6957 = vst [vmem:[%s10704_s2 + $0xd8] sm:$0xff] %v6125_v55  ;;  %v8290_v59 = vpop.eup %8289  ;;  %v5706_v31 = vmul.f32 -0.5, %v8288_v36  ;;  %v11305_v28 = vadd.f32 %v5370_v52, %v10953_v10  ;;  %vm11308_vm10 = vcmp.eq.f32.partialorder %v6495_v48, 8.507059e+37 }
 0xb9d   : > { %v6329_v57 = vsel %vm6328_vm6, %v8278_v29, %v6325_v41  ;;  %v6825_v16 = vsub.f32 0.0, %v6793_v39  ;;  %v5703_v29 = vadd.f32 1.0, %v8288_v36  ;;  %v11297_v21 = vpop.eup %8291  ;;  %v5709_v26 = vand.u32 2147483647, %v8288_v36 }
 0xb9e   : > { %v6334_v56 = vsel %vm6331_vm7, %v6333_v34, %v6329_v57  ;;  %v11293_v12 = vadd.f32 0.0001, %v6189_v53  ;;  %v8294_v37 = vpop.eup %8293  ;;  %v6498_v24 = vor.u32 1.1754944e-38, %v6497_v51  ;;  %v5707_v43 = vadd.f32 1.0, %v5706_v31  ;;  %v11332_v57 = vpop.permute.xlu0 %6085 }
 0xb9f   : > { %v6335_v17 = vmul.f32 %v6334_v56, %v10997_v42  ;;  %6921 = vst [vmem:[%s10704_s2 + $0x48] sm:$0xff] %v6825_v16  ;;  %v6487_v42 = vmul.f32 %v8290_v59, %v11261_v40  ;;  %vm11312_vm11 = vcmp.lt.f32.partialorder %v5790_v30, 0.0004427343  ;;  %v5786_v23 = vmul.f32 0.6931472, %v8294_v37 }
 0xba0   : > { %8295 = vrcp.f32 %v11293_v12  ;;  %v6360_v27 = vand.u32 2147483647, %v11293_v12  ;;  %v5789_v50 = vmul.f32 %v11107_v7, %v5788_v45  ;;  %v6362_v62 = vand.u32 2147483648, %v11293_v12 }
 0xba1   : > { %8297 = vlog2.f32 %v6335_v17  ;;  %v6488_v6 = vsub.f32 1.0, %v6487_v42  ;;  %v5505_v35 = vand.u32 2147483647, %v11305_v28  ;;  %v5802_v47 = vadd.f32 1.0, %v11258_v25  ;;  %v5373_v17 = vpop.f32.mrf.mxu0 }
 0xba2   : > { %8299 = vlog2.f32 %v5703_v29  ;;  %v5805_v55 = vmul.f32 -0.5, %v11258_v25  ;;  %vm6492_vm12 = vweird.f32 %v8290_v59  ;;  %vm5439_vm13 = vcmp.ne.f32.partialorder %v11232_v19, %v11232_v19 }
 0xba3   : > { %v6489_v41 = vmul.f32 %v8290_v59, %v6488_v6  ;;  %vm11324_vm14 = vcmp.lt.f32.partialorder %v5709_v26, 0.0004427343  ;;  %v5792_v7 = vsel %vm11312_vm11, %v5789_v50, %v5786_v23  ;;  %v5708_v34 = vmul.f32 %v8288_v36, %v5707_v43  ;;  %vm6493_vm0 = vmor %vm6491_vm8, %vm6492_vm12 }
 0xba4   : > { %v5928_v53 = vadd.f32 %v5792_v7, %v5416_v60  ;;  %v5537_v48 = vsub.f32 0.0, %v5505_v35  ;;  %8301 = vlog2.f32 %v5802_v47  ;;  %v5806_v56 = vadd.f32 1.0, %v5805_v55 }
 0xba5   : > { %v6490_v16 = vadd.f32 %v8290_v59, %v6489_v41  ;;  %v5808_v51 = vand.u32 2147483647, %v11258_v25  ;;  %v11349_v40 = vadd.f32 %v5373_v17, %v10953_v10  ;;  %vm6356_vm1 = vweird.f32 %v11293_v12 }
 0xba6   : > { %v8296_v39 = vpop.eup %8295  ;;  %v5960_v60 = vsel %vm5448_vm9, %v11005_v20, %v5928_v53  ;;  %v5580_v36 = vmul.f32 1.442695, %v5537_v48  ;;  %vm11357_vm2 = vcmp.eq.f32.partialorder %v6360_v27, 8.507059e+37  ;;  %v6363_v55 = vor.u32 1.1754944e-38, %v6362_v62 }
 0xba7   : > { %v8298_v30 = vpop.eup %8297  ;;  %v6352_v52 = vmul.f32 %v8296_v39, %v11293_v12  ;;  %vm6357_vm15 = vweird.f32 %v8296_v39  ;;  %v6494_v37 = vsel %vm6493_vm0, %v8290_v59, %v6490_v16  ;;  %7032 = vst [vmem:[%s10704_s2 + $0x270] sm:$0xff] %v5960_v60  ;;  %v6136_v26 = vmul.f32 %v11332_v57, %v5960_v60 }
 0xba8   : > { %v8300_v29 = vpop.eup %8299  ;;  %v6737_v31 = vmul.f32 0.6931472, %v8298_v30  ;;  %v6499_v49 = vsel %vm11308_vm10, %v6498_v24, %v6494_v37  ;;  %8303 = vpow2.f32 %v5580_v36  ;;  %vm6358_vm3 = vmor %vm6356_vm1, %vm6357_vm15  ;;  %v5807_v27 = vmul.f32 %v11258_v25, %v5806_v56  ;;  %v11396_v30 = vld [vmem:[%s10704_s2 + $0x128] sm:$0xff] }
 0xba9   : > { %v6353_v45 = vsub.f32 1.0, %v6352_v52  ;;  %v5705_v42 = vmul.f32 0.6931472, %v8300_v29  ;;  %v6500_v20 = vmul.f32 %v6499_v49, %v11276_v46  ;;  %v6200_v23 = vadd.f32 %v11051_v33, %v6136_v26  ;;  %6968 = vst [vmem:[%s10704_s2 + $0x250] sm:$0xff] %v6136_v26  ;;  %v11408_v60 = vpop.f32.mrf.mxu0 }
 0xbaa   : > { %v6795_v43 = vmul.f32 %v11212_v22, %v6737_v31  ;;  %v8302_v50 = vpop.eup %8301  ;;  %vm11372_vm4 = vcmp.lt.f32.partialorder %v5808_v51, 0.0004427343  ;;  %v5507_v62 = vand.u32 2147483647, %v11349_v40  ;;  %v5418_v25 = vmax.f32 %v11064_v0, 0.0 }
 0xbab   : > { %v6354_v6 = vmul.f32 %v8296_v39, %v6353_v45  ;;  %v5711_v59 = vsel %vm11324_vm14, %v5708_v34, %v5705_v42  ;;  %8305 = vlog2.f32 %v6500_v20  ;;  %v11363_v46 = vadd.f32 0.0001, %v6200_v23  ;;  %v11381_v34 = vld [vmem:[%s10704_s2 + $0x168] sm:$0xff]  ;;  %v11410_v45 = vpop.permute.xlu2 %6090 }
 0xbac   : > { %v6827_v35 = vsub.f32 0.0, %v6795_v43  ;;  %v5919_v18 = vadd.f32 %v5711_v59, %v5407_v38  ;;  %v5804_v47 = vmul.f32 0.6931472, %v8302_v50  ;;  %v5420_v56 = vmax.f32 %v11101_v32, 0.0 }
 0xbad   : > { %v6355_v24 = vadd.f32 %v8296_v39, %v6354_v6  ;;  %8307 = vrcp.f32 %v11363_v46  ;;  %v11402_v51 = vadd.f32 0.0001, %v11051_v33  ;;  %vm5450_vm5 = vcmp.ne.f32.partialorder %v11064_v0, %v11064_v0 }
 0xbae   : > { %6923 = vst [vmem:[%s10704_s2 + $0x88] sm:$0xff] %v6827_v35  ;;  %v5951_v12 = vsel %vm5439_vm13, %v11232_v19, %v5919_v18  ;;  %v8304_v7 = vpop.eup %8303  ;;  %v11384_v19 = vadd.f32 0.0001, %v11381_v34  ;;  %v5539_v31 = vsub.f32 0.0, %v5507_v62  ;;  %v5820_v42 = vadd.f32 1.0, %v11297_v21 }
 0xbaf   : > { %v6359_v41 = vsel %vm6358_vm3, %v8296_v39, %v6355_v24  ;;  %v6127_v3 = vmul.f32 %v10893_v9, %v5951_v12  ;;  %7023 = vst [vmem:[%s10704_s2 + $0x138] sm:$0xff] %v5951_v12  ;;  %v5810_v39 = vsel %vm11372_vm4, %v5807_v27, %v5804_v47  ;;  %v11392_v9 = vadd.f32 0.0001, %v10963_v54 }
 0xbb0   : > { %v6364_v53 = vsel %vm11357_vm2, %v6363_v55, %v6359_v41  ;;  %v5721_v16 = vadd.f32 1.0, %v8304_v7  ;;  %v5930_v17 = vadd.f32 %v5810_v39, %v5418_v25  ;;  %v6525_v43 = vand.u32 2147483647, %v11363_v46 }
 0xbb1   : > { %v6365_v48 = vmul.f32 %v6364_v53, %v11001_v14  ;;  %v6191_v52 = vadd.f32 %v11396_v30, %v6127_v3  ;;  %6959 = vst [vmem:[%s10704_s2 + $0x118] sm:$0xff] %v6127_v3  ;;  %v8306_v29 = vpop.eup %8305  ;;  %v5724_v14 = vmul.f32 -0.5, %v8304_v7  ;;  %v5409_v49 = vmax.f32 %v11305_v28, 0.0 }
 0xbb2   : > { %v6759_v36 = vmul.f32 0.6931472, %v8306_v29  ;;  %v5962_v37 = vsel %vm5450_vm5, %v11064_v0, %v5930_v17  ;;  %v11418_v6 = vadd.f32 0.0001, %v11117_v11  ;;  %v6527_v0 = vand.u32 2147483648, %v11363_v46 }
 0xbb3   : > { %8309 = vlog2.f32 %v6365_v48  ;;  %v11406_v54 = vadd.f32 0.0001, %v6191_v52  ;;  %v8308_v26 = vpop.eup %8307  ;;  %7034 = vst [vmem:[%s10704_s2 + $0x2b0] sm:$0xff] %v5962_v37  ;;  %v5411_v23 = vmax.f32 %v11349_v40, 0.0  ;;  %vm5441_vm6 = vcmp.ne.f32.partialorder %v11305_v28, %v11305_v28 }
 0xbb4   : > { %8311 = vlog2.f32 %v5721_v16  ;;  %v6806_v20 = vmul.f32 %v11014_v58, %v6759_v36  ;;  %v6517_v59 = vmul.f32 %v8308_v26, %v11363_v46  ;;  %v5725_v50 = vadd.f32 1.0, %v5724_v14 }
 0xbb5   : > { %8313 = vrcp.f32 %v11406_v54  ;;  %v5727_v35 = vand.u32 2147483647, %v8304_v7  ;;  %v6138_v22 = vmul.f32 %v11410_v45, %v5962_v37  ;;  %v5584_v18 = vmul.f32 1.442695, %v5539_v31  ;;  %v5378_v37 = vpop.f32.mrf.mxu0 }
 0xbb6   : > { %v6838_v24 = vsub.f32 0.0, %v6806_v20  ;;  %v6518_v47 = vsub.f32 1.0, %v6517_v59  ;;  %vm6521_vm7 = vweird.f32 %v11363_v46  ;;  %8315 = vlog2.f32 %v5820_v42 }
 0xbb7   : > { %vm11429_vm8 = vcmp.eq.f32.partialorder %v6525_v43, 8.507059e+37  ;;  %v6202_v12 = vadd.f32 %v11117_v11, %v6138_v22  ;;  %6970 = vst [vmem:[%s10704_s2 + $0x290] sm:$0xff] %v6138_v22  ;;  %8317 = vpow2.f32 %v5584_v18  ;;  %v5823_v27 = vmul.f32 -0.5, %v11297_v21 }
 0xbb8   : > { %6934 = vst [vmem:[%s10704_s2 + $0x200] sm:$0xff] %v6838_v24  ;;  %v6519_v3 = vmul.f32 %v8308_v26, %v6518_v47  ;;  %vm6522_vm9 = vweird.f32 %v8308_v26  ;;  %v6528_v62 = vor.u32 1.1754944e-38, %v6527_v0  ;;  %v5726_v39 = vmul.f32 %v8304_v7, %v5725_v50 }
 0xbb9   : > { %v8310_v58 = vpop.eup %8309  ;;  %vm11437_vm10 = vcmp.lt.f32.partialorder %v5727_v35, 0.0004427343  ;;  %v11441_v52 = vadd.f32 0.0001, %v6202_v12  ;;  %v6390_v29 = vand.u32 2147483647, %v11406_v54  ;;  %vm6523_vm11 = vmor %vm6521_vm7, %vm6522_vm9  ;;  %vm5452_vm13 = vcmp.ne.f32.partialorder %v11101_v32, %v11101_v32 }
 0xbba   : > { %v8312_v38 = vpop.eup %8311  ;;  %v6741_v41 = vmul.f32 0.6931472, %v8310_v58  ;;  %v6520_v14 = vadd.f32 %v8308_v26, %v6519_v3  ;;  %v6392_v31 = vand.u32 2147483648, %v11406_v54  ;;  %v5824_v36 = vadd.f32 1.0, %v5823_v27 }
 0xbbb   : > { %v8314_v25 = vpop.eup %8313  ;;  %v5723_v53 = vmul.f32 0.6931472, %v8312_v38  ;;  %8319 = vrcp.f32 %v11441_v52  ;;  %v5826_v35 = vand.u32 2147483647, %v11297_v21  ;;  %vm6386_vm14 = vweird.f32 %v11406_v54 }
 0xbbc   : > { %v6797_v16 = vmul.f32 %v11285_v15, %v6741_v41  ;;  %v6382_v17 = vmul.f32 %v8314_v25, %v11406_v54  ;;  %v8316_v42 = vpop.eup %8315  ;;  %v6524_v20 = vsel %vm6523_vm11, %v8308_v26, %v6520_v14  ;;  %vm6387_vm12 = vweird.f32 %v8314_v25 }
 0xbbd   : > { %v5729_v7 = vsel %vm11437_vm10, %v5726_v39, %v5723_v53  ;;  %v8318_v0 = vpop.eup %8317  ;;  %v6529_v46 = vsel %vm11429_vm8, %v6528_v62, %v6524_v20  ;;  %v5822_v50 = vmul.f32 0.6931472, %v8316_v42  ;;  %vm11464_vm15 = vcmp.eq.f32.partialorder %v6390_v29, 8.507059e+37  ;;  %vm6388_vm0 = vmor %vm6386_vm14, %vm6387_vm12 }
 0xbbe   : > { %v6829_v15 = vsub.f32 0.0, %v6797_v16  ;;  %v6383_v43 = vsub.f32 1.0, %v6382_v17  ;;  %v5921_v59 = vadd.f32 %v5729_v7, %v5409_v49  ;;  %v6530_v18 = vmul.f32 %v6529_v46, %v11402_v51  ;;  %v11490_v16 = vpop.permute.xlu1 %6095 }
 0xbbf   : > { %v5739_v49 = vadd.f32 1.0, %v8318_v0  ;;  %v11472_v58 = vadd.f32 %v11408_v60, %v10953_v10  ;;  %v5742_v55 = vmul.f32 -0.5, %v8318_v0  ;;  %v5825_v12 = vmul.f32 %v11297_v21, %v5824_v36 }
 0xbc0   : > { %6925 = vst [vmem:[%s10704_s2 + $0xc8] sm:$0xff] %v6829_v15  ;;  %v6384_v22 = vmul.f32 %v8314_v25, %v6383_v43  ;;  %v5953_v26 = vsel %vm5441_vm6, %v11305_v28, %v5921_v59  ;;  %8321 = vlog2.f32 %v6530_v18  ;;  %v6393_v54 = vor.u32 1.1754944e-38, %v6392_v31  ;;  %v5380_v31 = vpop.f32.mrf.mxu0 }
 0xbc1   : > { %v6129_v47 = vmul.f32 %v10911_v2, %v5953_v26  ;;  %7025 = vst [vmem:[%s10704_s2 + $0x178] sm:$0xff] %v5953_v26  ;;  %v8320_v28 = vpop.eup %8319  ;;  %8323 = vlog2.f32 %v5739_v49  ;;  %vm5827_vm1 = vcmp.lt.f32.partialorder %v5826_v35, 0.0004427343  ;;  %v11480_v60 = vadd.f32 %v5378_v37, %v10953_v10 }
 0xbc2   : > { %v6385_v51 = vadd.f32 %v8314_v25, %v6384_v22  ;;  %v6547_v38 = vmul.f32 %v8320_v28, %v11441_v52  ;;  %v5828_v41 = vsel %vm5827_vm1, %v5825_v12, %v5822_v50  ;;  %v6557_v62 = vand.u32 2147483648, %v11441_v52 }
 0xbc3   : > { %v6193_v27 = vadd.f32 %v11381_v34, %v6129_v47  ;;  %6961 = vst [vmem:[%s10704_s2 + $0x158] sm:$0xff] %v6129_v47  ;;  %v5932_v53 = vadd.f32 %v5828_v41, %v5420_v56  ;;  %v5509_v17 = vand.u32 2147483647, %v11472_v58  ;;  %vm6552_vm2 = vweird.f32 %v8320_v28 }
 0xbc4   : > { %v6389_v2 = vsel %vm6388_vm0, %v8314_v25, %v6385_v51  ;;  %v6548_v48 = vsub.f32 1.0, %v6547_v38  ;;  %v5743_v25 = vadd.f32 1.0, %v5742_v55  ;;  %v6555_v29 = vand.u32 2147483647, %v11441_v52 }
 0xbc5   : > { %v6394_v3 = vsel %vm11464_vm15, %v6393_v54, %v6389_v2  ;;  %v11484_v21 = vadd.f32 0.0001, %v6193_v27  ;;  %v5745_v14 = vand.u32 2147483647, %v8318_v0  ;;  %v5541_v56 = vsub.f32 0.0, %v5509_v17 }
 0xbc6   : > { %v6395_v39 = vmul.f32 %v6394_v3, %v11018_v4  ;;  %v8322_v7 = vpop.eup %8321  ;;  %v6549_v36 = vmul.f32 %v8320_v28, %v6548_v48  ;;  %v5964_v4 = vsel %vm5452_vm13, %v11101_v32, %v5932_v53  ;;  %vm6551_vm3 = vweird.f32 %v11441_v52 }
 0xbc7   : > { %8325 = vrcp.f32 %v11484_v21  ;;  %v8324_v37 = vpop.eup %8323  ;;  %v6763_v42 = vmul.f32 0.6931472, %v8322_v7  ;;  %v6558_v15 = vor.u32 1.1754944e-38, %v6557_v62  ;;  %v6140_v43 = vmul.f32 %v11490_v16, %v5964_v4  ;;  %7036 = vst [vmem:[%s10704_s2 + $0x2f0] sm:$0xff] %v5964_v4  ;;  %vm6553_vm4 = vmor %vm6551_vm3, %vm6552_vm2 }
 0xbc8   : > { %8327 = vlog2.f32 %v6395_v39  ;;  %v6550_v20 = vadd.f32 %v8320_v28, %v6549_v36  ;;  %v5741_v59 = vmul.f32 0.6931472, %v8324_v37  ;;  %v5744_v46 = vmul.f32 %v8318_v0, %v5743_v25  ;;  %v5383_v39 = vpop.f32.mrf.mxu0  ;;  %v11533_v25 = vld [vmem:[%s10704_s2 + $0x1a8] sm:$0xff] }
 0xbc9   : > { %v5588_v50 = vmul.f32 1.442695, %v5541_v56  ;;  %v6808_v35 = vmul.f32 %v11051_v33, %v6763_v42  ;;  %vm5746_vm5 = vcmp.lt.f32.partialorder %v5745_v14, 0.0004427343  ;;  %v6204_v32 = vadd.f32 %v11263_v1, %v6140_v43  ;;  %6972 = vst [vmem:[%s10704_s2 + $0x2d0] sm:$0xff] %v6140_v43 }
 0xbca   : > { %v5511_v22 = vand.u32 2147483647, %v11480_v60  ;;  %v6554_v52 = vsel %vm6553_vm4, %v8320_v28, %v6550_v20  ;;  %vm6556_vm6 = vcmp.eq.f32.partialorder %v6555_v29, 8.507059e+37  ;;  %v5747_v18 = vsel %vm5746_vm5, %v5744_v46, %v5741_v59  ;;  %v11516_v28 = vld [vmem:[%s10704_s2 + $0x1e8] sm:$0xff] }
 0xbcb   : > { %8329 = vpow2.f32 %v5588_v50  ;;  %v6840_v49 = vsub.f32 0.0, %v6808_v35  ;;  %v6559_v0 = vsel %vm6556_vm6, %v6558_v15, %v6554_v52  ;;  %v5923_v33 = vadd.f32 %v5747_v18, %v5411_v23 }
 0xbcc   : > { %v11509_v24 = vadd.f32 0.0001, %v6204_v32  ;;  %v6560_v55 = vmul.f32 %v6559_v0, %v11418_v6  ;;  %vm5443_vm7 = vcmp.ne.f32.partialorder %v11349_v40, %v11349_v40  ;;  %v5543_v12 = vsub.f32 0.0, %v5511_v22 }
 0xbcd   : > { %v8326_v26 = vpop.eup %8325  ;;  %v11519_v54 = vadd.f32 0.0001, %v11516_v28  ;;  %6936 = vst [vmem:[%s10704_s2 + $0x240] sm:$0xff] %v6840_v49  ;;  %v5955_v23 = vsel %vm5443_vm7, %v11349_v40, %v5923_v33  ;;  %v11527_v38 = vadd.f32 0.0001, %v11263_v1  ;;  %v6422_v62 = vand.u32 2147483648, %v11484_v21 }
 0xbce   : > { %v8328_v47 = vpop.eup %8327  ;;  %v6412_v51 = vmul.f32 %v8326_v26, %v11484_v21  ;;  %8331 = vrcp.f32 %v11509_v24  ;;  %v6131_v6 = vmul.f32 %v11007_v5, %v5955_v23  ;;  %7027 = vst [vmem:[%s10704_s2 + $0x1b8] sm:$0xff] %v5955_v23  ;;  %v6420_v3 = vand.u32 2147483647, %v11484_v21 }
 0xbcf   : > { %v6745_v27 = vmul.f32 0.6931472, %v8328_v47  ;;  %8333 = vlog2.f32 %v6560_v55  ;;  %v5592_v53 = vmul.f32 1.442695, %v5543_v12  ;;  %vm6417_vm8 = vweird.f32 %v8326_v26 }
 0xbd0   : > { %v6413_v2 = vsub.f32 1.0, %v6412_v51  ;;  %v6195_v5 = vadd.f32 %v11533_v25, %v6131_v6  ;;  %6963 = vst [vmem:[%s10704_s2 + $0x198] sm:$0xff] %v6131_v6  ;;  %v11538_v17 = vadd.f32 %v5380_v31, %v10953_v10  ;;  %vm6416_vm9 = vweird.f32 %v11484_v21 }
 0xbd1   : > { %v6799_v41 = vmul.f32 %v11396_v30, %v6745_v27  ;;  %v8330_v40 = vpop.eup %8329  ;;  %v6585_v30 = vand.u32 2147483647, %v11509_v24  ;;  %8335 = vpow2.f32 %v5592_v53  ;;  %vm6418_vm10 = vmor %vm6416_vm9, %vm6417_vm8  ;;  %v6423_v37 = vor.u32 1.1754944e-38, %v6422_v62 }
 0xbd2   : > { %v6414_v48 = vmul.f32 %v8326_v26, %v6413_v2  ;;  %v5757_v14 = vadd.f32 1.0, %v8330_v40  ;;  %v11542_v36 = vadd.f32 0.0001, %v6195_v5  ;;  %v5760_v4 = vmul.f32 -0.5, %v8330_v40 }
 0xbd3   : > { %v6831_v29 = vsub.f32 0.0, %v6799_v41  ;;  %v6587_v42 = vand.u32 2147483648, %v11509_v24  ;;  %v5413_v31 = vmax.f32 %v11472_v58, 0.0  ;;  %vm6421_vm11 = vcmp.eq.f32.partialorder %v6420_v3, 8.507059e+37 }
 0xbd4   : > { %v6415_v7 = vadd.f32 %v8326_v26, %v6414_v48  ;;  %v8332_v56 = vpop.eup %8331  ;;  %8337 = vlog2.f32 %v5757_v14  ;;  %v5513_v43 = vand.u32 2147483647, %v11538_v17  ;;  %v5415_v50 = vmax.f32 %v11480_v60, 0.0 }
 0xbd5   : > { %6927 = vst [vmem:[%s10704_s2 + $0x108] sm:$0xff] %v6831_v29  ;;  %v8334_v15 = vpop.eup %8333  ;;  %8339 = vrcp.f32 %v11542_v36  ;;  %v6577_v46 = vmul.f32 %v8332_v56, %v11509_v24  ;;  %vm6581_vm12 = vweird.f32 %v11509_v24  ;;  %vm11554_vm13 = vcmp.eq.f32.partialorder %v6585_v30, 8.507059e+37 }
 0xbd6   : > { %v6419_v21 = vsel %vm6418_vm10, %v8326_v26, %v6415_v7  ;;  %v6767_v59 = vmul.f32 0.6931472, %v8334_v15  ;;  %vm5445_vm14 = vcmp.ne.f32.partialorder %v11472_v58, %v11472_v58  ;;  %v5761_v22 = vadd.f32 1.0, %v5760_v4 }
 0xbd7   : > { %v6424_v20 = vsel %vm6421_vm11, %v6423_v37, %v6419_v21  ;;  %v6578_v18 = vsub.f32 1.0, %v6577_v46  ;;  %v6588_v26 = vor.u32 1.1754944e-38, %v6587_v42  ;;  %v5763_v49 = vand.u32 2147483647, %v8330_v40  ;;  %v8336_v0 = vpop.eup %8335 }
 0xbd8   : > { %v6425_v35 = vmul.f32 %v6424_v20, %v11384_v19  ;;  %v6810_v52 = vmul.f32 %v11117_v11, %v6767_v59  ;;  %v6450_v19 = vand.u32 2147483647, %v11542_v36  ;;  %v5545_v33 = vsub.f32 0.0, %v5513_v43  ;;  %v5385_v11 = vpop.f32.mrf.mxu0 }
 0xbd9   : > { %v11563_v47 = vadd.f32 %v5383_v39, %v10953_v10  ;;  %vm6446_vm15 = vweird.f32 %v11542_v36  ;;  %v6579_v12 = vmul.f32 %v8332_v56, %v6578_v18  ;;  %vm6582_vm0 = vweird.f32 %v8332_v56 }
 0xbda   : > { %8341 = vlog2.f32 %v6425_v35  ;;  %v8338_v51 = vpop.eup %8337  ;;  %v6842_v55 = vsub.f32 0.0, %v6810_v52  ;;  %v5775_v27 = vadd.f32 1.0, %v8336_v0  ;;  %v5762_v6 = vmul.f32 %v8330_v40, %v5761_v22  ;;  %vm6583_vm2 = vmor %vm6581_vm12, %vm6582_vm0 }
 0xbdb   : > { %v8340_v23 = vpop.eup %8339  ;;  %v5759_v2 = vmul.f32 0.6931472, %v8338_v51  ;;  %v5778_v41 = vmul.f32 -0.5, %v8336_v0  ;;  %v5596_v3 = vmul.f32 1.442695, %v5545_v33  ;;  %v6580_v53 = vadd.f32 %v8332_v56, %v6579_v12 }
 0xbdc   : > { %6938 = vst [vmem:[%s10704_s2 + $0x280] sm:$0xff] %v6842_v55  ;;  %v6442_v62 = vmul.f32 %v8340_v23, %v11542_v36  ;;  %vm5764_vm1 = vcmp.lt.f32.partialorder %v5763_v49, 0.0004427343  ;;  %8343 = vlog2.f32 %v5775_v27  ;;  %v6452_v39 = vand.u32 2147483648, %v11542_v36  ;;  %v5339_v55 = vpop.f32.mrf.mxu1 }
 0xbdd   : > { %v5765_v48 = vsel %vm5764_vm1, %v5762_v6, %v5759_v2  ;;  %8345 = vpow2.f32 %v5596_v3  ;;  %v11572_v5 = vadd.f32 %v5385_v11, %v10953_v10  ;;  %v6584_v29 = vsel %vm6583_vm2, %v8332_v56, %v6580_v53  ;;  %v11608_v11 = vld [vmem:[%s10704_s2 + $0x228] sm:$0xff] }
 0xbde   : > { %v6443_v40 = vsub.f32 1.0, %v6442_v62  ;;  %v5925_v30 = vadd.f32 %v5765_v48, %v5413_v31  ;;  %v5515_v14 = vand.u32 2147483647, %v11563_v47  ;;  %vm6447_vm3 = vweird.f32 %v8340_v23  ;;  %v11614_v2 = vld [vmem:[%s10704_s2 + $0x268] sm:$0xff] }
 0xbdf   : > { %v6589_v4 = vsel %vm11554_vm13, %v6588_v26, %v6584_v29  ;;  %v5779_v37 = vadd.f32 1.0, %v5778_v41  ;;  %v5781_v42 = vand.u32 2147483647, %v8336_v0  ;;  %vm11582_vm4 = vcmp.eq.f32.partialorder %v6450_v19, 8.507059e+37  ;;  %vm6448_vm5 = vmor %vm6446_vm15, %vm6447_vm3 }
 0xbe0   : > { %v8342_v7 = vpop.eup %8341  ;;  %v6444_v15 = vmul.f32 %v8340_v23, %v6443_v40  ;;  %v6590_v21 = vmul.f32 %v6589_v4, %v11527_v38  ;;  %v5957_v56 = vsel %vm5445_vm14, %v11472_v58, %v5925_v30  ;;  %v5547_v20 = vsub.f32 0.0, %v5515_v14  ;;  %v5388_v53 = vpop.f32.mrf.mxu0 }
 0xbe1   : > { %v6749_v24 = vmul.f32 0.6931472, %v8342_v7  ;;  %v6133_v43 = vmul.f32 %v11059_v13, %v5957_v56  ;;  %7029 = vst [vmem:[%s10704_s2 + $0x1f8] sm:$0xff] %v5957_v56  ;;  %v5517_v59 = vand.u32 2147483647, %v11572_v5  ;;  %v6453_v38 = vor.u32 1.1754944e-38, %v6452_v39 }
 0xbe2   : > { %v8344_v46 = vpop.eup %8343  ;;  %v6445_v32 = vadd.f32 %v8340_v23, %v6444_v15  ;;  %8347 = vlog2.f32 %v6590_v21  ;;  %v5780_v52 = vmul.f32 %v8336_v0, %v5779_v37  ;;  %vm5782_vm6 = vcmp.lt.f32.partialorder %v5781_v42, 0.0004427343 }
 0xbe3   : > { %v6801_v35 = vmul.f32 %v11381_v34, %v6749_v24  ;;  %v11590_v22 = vpop.eup %8345  ;;  %v6197_v58 = vadd.f32 %v11516_v28, %v6133_v43  ;;  %6965 = vst [vmem:[%s10704_s2 + $0x1d8] sm:$0xff] %v6133_v43  ;;  %v5777_v13 = vmul.f32 0.6931472, %v8344_v46  ;;  %v5600_v49 = vmul.f32 1.442695, %v5547_v20  ;;  %v5139_v20 = vpop.f32.mrf.mxu2 }
 0xbe4   : > { %v6449_v34 = vsel %vm6448_vm5, %v8340_v23, %v6445_v32  ;;  %v5793_v26 = vadd.f32 1.0, %v11590_v22  ;;  %v5549_v51 = vsub.f32 0.0, %v5517_v59  ;;  %v5796_v27 = vmul.f32 -0.5, %v11590_v22 }
 0xbe5   : > { %v6833_v18 = vsub.f32 0.0, %v6801_v35  ;;  %v6454_v19 = vsel %vm11582_vm4, %v6453_v38, %v6449_v34  ;;  %v11600_v33 = vadd.f32 0.0001, %v6197_v58  ;;  %v5783_v36 = vsel %vm5782_vm6, %v5780_v52, %v5777_v13  ;;  %v5188_v38 = vpop.f32.mrf.mxu3 }
 0xbe6   : > { %v6455_v0 = vmul.f32 %v6454_v19, %v11392_v9  ;;  %v5927_v12 = vadd.f32 %v5783_v36, %v5415_v50  ;;  %8349 = vlog2.f32 %v5793_v26  ;;  %v11611_v23 = vadd.f32 0.0001, %v11608_v11  ;;  %v11623_v50 = vld [vmem:[%s10704_s2 + $0x2a8] sm:$0xff] }
 0xbe7   : > { %6929 = vst [vmem:[%s10704_s2 + $0x148] sm:$0xff] %v6833_v18  ;;  %v11617_v6 = vadd.f32 0.0001, %v11614_v2  ;;  %8351 = vrcp.f32 %v11600_v33  ;;  %vm5447_vm7 = vcmp.ne.f32.partialorder %v11480_v60, %v11480_v60  ;;  %v11626_v41 = vadd.f32 0.0001, %v11623_v50 }
 0xbe8   : > { %v8348_v9 = vpop.eup %8347  ;;  %8353 = vlog2.f32 %v6455_v0  ;;  %v5959_v3 = vsel %vm5447_vm7, %v11480_v60, %v5927_v12  ;;  %v11630_v62 = vadd.f32 %v5339_v55, %v10677_v63  ;;  %v5417_v40 = vmax.f32 %v11538_v17, 0.0 }
 0xbe9   : > { %v6771_v39 = vmul.f32 0.6931472, %v8348_v9  ;;  %v6135_v48 = vmul.f32 %v11238_v61, %v5959_v3  ;;  %7031 = vst [vmem:[%s10704_s2 + $0x238] sm:$0xff] %v5959_v3  ;;  %v5799_v29 = vand.u32 2147483647, %v11590_v22  ;;  %vm5449_vm8 = vcmp.ne.f32.partialorder %v11538_v17, %v11538_v17 }
 0xbea   : > { %v6480_v30 = vand.u32 2147483647, %v11600_v33  ;;  %v5797_v14 = vadd.f32 1.0, %v5796_v27  ;;  %8355 = vpow2.f32 %v5600_v49  ;;  %v5604_v60 = vmul.f32 1.442695, %v5549_v51 }
 0xbeb   : > { %v6812_v7 = vmul.f32 %v11263_v1, %v6771_v39  ;;  %v6482_v4 = vand.u32 2147483648, %v11600_v33  ;;  %v6199_v37 = vadd.f32 %v11608_v11, %v6135_v48  ;;  %6967 = vst [vmem:[%s10704_s2 + $0x218] sm:$0xff] %v6135_v48  ;;  %v11644_v61 = vadd.f32 %v5388_v53, %v10953_v10 }
 0xbec   : > { %v8350_v42 = vpop.eup %8349  ;;  %v5419_v24 = vmax.f32 %v11563_v47, 0.0  ;;  %v5421_v15 = vmax.f32 %v11572_v5, 0.0  ;;  %8357 = vpow2.f32 %v5604_v60  ;;  %v5518_v21 = vand.u32 2147483647, %v11630_v62 }
 0xbed   : > { %v8352_v56 = vpop.eup %8351  ;;  %v6844_v31 = vsub.f32 0.0, %v6812_v7  ;;  %vm6476_vm9 = vweird.f32 %v11600_v33  ;;  %v11650_v1 = vadd.f32 0.0001, %v6199_v37  ;;  %v5795_v43 = vmul.f32 0.6931472, %v8350_v42  ;;  %v5341_v37 = vpop.f32.mrf.mxu1 }
 0xbee   : > { %v8354_v59 = vpop.eup %8353  ;;  %v6472_v46 = vmul.f32 %v8352_v56, %v11600_v33  ;;  %vm11653_vm10 = vcmp.eq.f32.partialorder %v6480_v30, 8.507059e+37  ;;  %v5798_v32 = vmul.f32 %v11590_v22, %v5797_v14  ;;  %vm5800_vm11 = vcmp.lt.f32.partialorder %v5799_v29, 0.0004427343 }
 0xbef   : > { %v6753_v58 = vmul.f32 0.6931472, %v8354_v59  ;;  %6940 = vst [vmem:[%s10704_s2 + $0x2c0] sm:$0xff] %v6844_v31  ;;  %v6483_v13 = vor.u32 1.1754944e-38, %v6482_v4  ;;  %8359 = vrcp.f32 %v11650_v1  ;;  %v5519_v52 = vand.u32 2147483647, %v11644_v61 }
 0xbf0   : > { %v8356_v18 = vpop.eup %8355  ;;  %v6473_v34 = vsub.f32 1.0, %v6472_v46  ;;  %v5801_v26 = vsel %vm5800_vm11, %v5798_v32, %v5795_v43  ;;  %v5550_v49 = vsub.f32 0.0, %v5518_v21  ;;  %v5140_v19 = vadd.f32 %v5139_v20, %v10683_v8 }
 0xbf1   : > { %v6803_v36 = vmul.f32 %v11533_v25, %v6753_v58  ;;  %v5929_v51 = vadd.f32 %v5801_v26, %v5417_v40  ;;  %v5811_v22 = vadd.f32 1.0, %v8356_v18  ;;  %v5189_v55 = vadd.f32 %v5188_v38, %v10685_v44 }
 0xbf2   : > { %v8358_v0 = vpop.eup %8357  ;;  %v6474_v12 = vmul.f32 %v8352_v56, %v6473_v34  ;;  %vm6477_vm12 = vweird.f32 %v8352_v56  ;;  %v6512_v27 = vand.u32 2147483648, %v11650_v1  ;;  %v5814_v9 = vmul.f32 -0.5, %v8356_v18 }
 0xbf3   : > { %v6835_v3 = vsub.f32 0.0, %v6803_v36  ;;  %v5961_v53 = vsel %vm5449_vm8, %v11538_v17, %v5929_v51  ;;  %8361 = vlog2.f32 %v5811_v22  ;;  %v5829_v39 = vadd.f32 1.0, %v8358_v0  ;;  %vm6478_vm13 = vmor %vm6476_vm9, %vm6477_vm12 }
 0xbf4   : > { %v6475_v25 = vadd.f32 %v8352_v56, %v6474_v12  ;;  %v6137_v48 = vmul.f32 %v11332_v57, %v5961_v53  ;;  %7033 = vst [vmem:[%s10704_s2 + $0x278] sm:$0xff] %v5961_v53  ;;  %v5606_v40 = vmul.f32 1.442695, %v5550_v49  ;;  %v5551_v29 = vsub.f32 0.0, %v5519_v52 }
 0xbf5   : > { %v8360_v30 = vpop.eup %8359  ;;  %6931 = vst [vmem:[%s10704_s2 + $0x188] sm:$0xff] %v6835_v3  ;;  %vm6506_vm14 = vweird.f32 %v11650_v1  ;;  %8363 = vlog2.f32 %v5829_v39  ;;  %v5832_v14 = vmul.f32 -0.5, %v8358_v0  ;;  %v6022_v60 = vmul.f32 1.442695, %v5140_v19 }
 0xbf6   : > { %v6479_v17 = vsel %vm6478_vm13, %v8352_v56, %v6475_v25  ;;  %v6502_v7 = vmul.f32 %v8360_v30, %v11650_v1  ;;  %v6201_v4 = vadd.f32 %v11614_v2, %v6137_v48  ;;  %6969 = vst [vmem:[%s10704_s2 + $0x258] sm:$0xff] %v6137_v48  ;;  %v5817_v57 = vand.u32 2147483647, %v8356_v18 }
 0xbf7   : > { %v6484_v42 = vsel %vm11653_vm10, %v6483_v13, %v6479_v17  ;;  %v6510_v21 = vand.u32 2147483647, %v11650_v1  ;;  %v6513_v33 = vor.u32 1.1754944e-38, %v6512_v27  ;;  %vm5451_vm15 = vcmp.ne.f32.partialorder %v11563_v47, %v11563_v47  ;;  %v5141_v17 = vpop.f32.mrf.mxu2 }
 0xbf8   : > { %v5815_v31 = vadd.f32 1.0, %v5814_v9  ;;  %v6485_v43 = vmul.f32 %v6484_v42, %v11519_v54  ;;  %v6503_v56 = vsub.f32 1.0, %v6502_v7  ;;  %v11684_v20 = vadd.f32 0.0001, %v6201_v4  ;;  %v5390_v54 = vpop.f32.mrf.mxu0 }
 0xbf9   : > { %vm5453_vm0 = vcmp.ne.f32.partialorder %v11572_v5, %v11572_v5  ;;  %v5833_v59 = vadd.f32 1.0, %v5832_v14  ;;  %v8362_v46 = vpop.eup %8361  ;;  %v5835_v32 = vand.u32 2147483647, %v8358_v0  ;;  %8365 = vpow2.f32 %v6022_v60 }
 0xbfa   : > { %v6024_v35 = vmul.f32 1.442695, %v5189_v55  ;;  %v11689_v38 = vadd.f32 %v5341_v37, %v10677_v63  ;;  %8367 = vlog2.f32 %v6485_v43  ;;  %v6504_v58 = vmul.f32 %v8360_v30, %v6503_v56 }
 0xbfb   : > { %vm6507_vm1 = vweird.f32 %v8360_v30  ;;  %vm11691_vm2 = vcmp.lt.f32.partialorder %v5817_v57, 0.0004427343  ;;  %v8364_v52 = vpop.eup %8363  ;;  %8369 = vrcp.f32 %v11684_v20  ;;  %v5813_v34 = vmul.f32 0.6931472, %v8362_v46 }
 0xbfc   : > { %v5816_v26 = vmul.f32 %v8356_v18, %v5815_v31  ;;  %v5520_v49 = vand.u32 2147483647, %v11689_v38  ;;  %v6505_v19 = vadd.f32 %v8360_v30, %v6504_v58  ;;  %v5831_v36 = vmul.f32 0.6931472, %v8364_v52  ;;  %vm6508_vm3 = vmor %vm6506_vm14, %vm6507_vm1 }
 0xbfd   : > { %v5834_v51 = vmul.f32 %v8358_v0, %v5833_v59  ;;  %8371 = vpow2.f32 %v6024_v35  ;;  %vm5836_vm4 = vcmp.lt.f32.partialorder %v5835_v32, 0.0004427343  ;;  %v11702_v12 = vadd.f32 %v5390_v54, %v10953_v10 }
 0xbfe   : > { %v5819_v22 = vsel %vm11691_vm2, %v5816_v26, %v5813_v34  ;;  %v5552_v55 = vsub.f32 0.0, %v5520_v49  ;;  %v6509_v27 = vsel %vm6508_vm3, %v8360_v30, %v6505_v19  ;;  %vm6511_vm5 = vcmp.eq.f32.partialorder %v6510_v21, 8.507059e+37  ;;  %v11735_v21 = vld [vmem:[%s10704_s2 + $0x2e8] sm:$0xff] }
 0xbff   : > { %v5931_v18 = vadd.f32 %v5819_v22, %v5419_v24  ;;  %v5837_v0 = vsel %vm5836_vm4, %v5834_v51, %v5831_v36  ;;  %v11706_v9 = vpop.eup %8365  ;;  %v6514_v1 = vsel %vm6511_vm5, %v6513_v33, %v6509_v27  ;;  %v5521_v39 = vand.u32 2147483647, %v11702_v12  ;;  %v5344_v22 = vpop.f32.mrf.mxu1 }
 0xc00   : > { %v5933_v3 = vadd.f32 %v5837_v0, %v5421_v15  ;;  %v5610_v53 = vmul.f32 1.442695, %v5552_v55  ;;  %v8368_v25 = vpop.eup %8367  ;;  %v6515_v48 = vmul.f32 %v6514_v1, %v11611_v23  ;;  %8373 = vpow2.f32 %v5606_v40  ;;  %7006 = vst [vmem:[%s10704_s2 + $0x320] sm:$0xff] %v11706_v9 }
 0xc01   : > { %v5963_v30 = vsel %vm5451_vm15, %v11563_v47, %v5931_v18  ;;  %v5608_v24 = vmul.f32 1.442695, %v5551_v29  ;;  %v8370_v14 = vpop.eup %8369  ;;  %v6757_v60 = vmul.f32 0.6931472, %v8368_v25  ;;  %v5190_v47 = vpop.f32.mrf.mxu3  ;;  %v6540_v7 = vand.u32 2147483647, %v11684_v20 }
 0xc02   : > { %v6139_v15 = vmul.f32 %v11410_v45, %v5963_v30  ;;  %7035 = vst [vmem:[%s10704_s2 + $0x2b8] sm:$0xff] %v5963_v30  ;;  %v5965_v23 = vsel %vm5453_vm0, %v11572_v5, %v5933_v3  ;;  %8375 = vpow2.f32 %v5610_v53  ;;  %v6532_v29 = vmul.f32 %v8370_v14, %v11684_v20 }
 0xc03   : > { %v11724_v40 = vpop.eup %8371  ;;  %8377 = vlog2.f32 %v6515_v48  ;;  %v6141_v45 = vmul.f32 %v11490_v16, %v5965_v23  ;;  %7037 = vst [vmem:[%s10704_s2 + $0x2f8] sm:$0xff] %v5965_v23  ;;  %v6805_v4 = vmul.f32 %v11516_v28, %v6757_v60  ;;  %v6542_v5 = vand.u32 2147483648, %v11684_v20 }
 0xc04   : > { %v6203_v57 = vadd.f32 %v11623_v50, %v6139_v15  ;;  %6971 = vst [vmem:[%s10704_s2 + $0x298] sm:$0xff] %v6139_v15  ;;  %v5553_v37 = vsub.f32 0.0, %v5521_v39  ;;  %v6533_v42 = vsub.f32 1.0, %v6532_v29  ;;  %v5142_v31 = vadd.f32 %v5141_v17, %v10683_v8 }
 0xc05   : > { %v6205_v33 = vadd.f32 %v11735_v21, %v6141_v45  ;;  %6973 = vst [vmem:[%s10704_s2 + $0x2d8] sm:$0xff] %v6141_v45  ;;  %v5191_v16 = vadd.f32 %v5190_v47, %v10685_v44  ;;  %v11742_v43 = vadd.f32 0.0001, %v11735_v21  ;;  %v6837_v28 = vsub.f32 0.0, %v6805_v4 }
 0xc06   : > { %v11744_v56 = vadd.f32 0.0001, %v6203_v57  ;;  %8379 = vpow2.f32 %v5608_v24  ;;  %7007 = vst [vmem:[%s10704_s2 + $0x328] sm:$0xff] %v11724_v40  ;;  %v11748_v59 = vpop.eup %8373  ;;  %v6534_v46 = vmul.f32 %v8370_v14, %v6533_v42  ;;  %vm6537_vm6 = vweird.f32 %v8370_v14 }
 0xc07   : > { %v11750_v32 = vadd.f32 0.0001, %v6205_v33  ;;  %v5612_v35 = vmul.f32 1.442695, %v5553_v37  ;;  %6933 = vst [vmem:[%s10704_s2 + $0x1c8] sm:$0xff] %v6837_v28  ;;  %vm6536_vm7 = vweird.f32 %v11684_v20  ;;  %vm11756_vm8 = vcmp.eq.f32.partialorder %v6540_v7, 8.507059e+37  ;;  %v5393_v7 = vpop.f32.mrf.mxu0 }
 0xc08   : > { %v11752_v58 = vpop.eup %8375  ;;  %v6543_v54 = vor.u32 1.1754944e-38, %v6542_v5  ;;  %8381 = vrcp.f32 %v11744_v56  ;;  %v6535_v34 = vadd.f32 %v8370_v14, %v6534_v46  ;;  %v6026_v26 = vmul.f32 1.442695, %v5142_v31  ;;  %vm6538_vm9 = vmor %vm6536_vm7, %vm6537_vm6  ;;  %v5144_v31 = vpop.f32.mrf.mxu2 }
 0xc09   : > { %v8378_v52 = vpop.eup %8377  ;;  %8383 = vrcp.f32 %v11750_v32  ;;  %v6028_v49 = vmul.f32 1.442695, %v5191_v16  ;;  %v6570_v36 = vand.u32 2147483647, %v11744_v56  ;;  %v6572_v20 = vand.u32 2147483648, %v11744_v56 }
 0xc0a   : > { %v6761_v19 = vmul.f32 0.6931472, %v8378_v52  ;;  %v5424_v51 = vmax.f32 %v11689_v38, 0.0  ;;  %v6539_v55 = vsel %vm6538_vm9, %v8370_v14, %v6535_v34  ;;  %v6600_v27 = vand.u32 2147483647, %v11750_v32 }
 0xc0b   : > { %8385 = vpow2.f32 %v5612_v35  ;;  %v5856_v18 = vadd.f32 1.0, %v11752_v58  ;;  %v6544_v3 = vsel %vm11756_vm8, %v6543_v54, %v6539_v55  ;;  %v6602_v53 = vand.u32 2147483648, %v11750_v32  ;;  %v5193_v54 = vpop.f32.mrf.mxu3 }
 0xc0c   : > { %v11768_v0 = vpop.eup %8379  ;;  %v6807_v1 = vmul.f32 %v11608_v11, %v6761_v19  ;;  %v5859_v39 = vmul.f32 -0.5, %v11752_v58  ;;  %v6545_v25 = vmul.f32 %v6544_v3, %v11617_v6  ;;  %v5425_v48 = vmax.f32 %v11702_v12, 0.0 }
 0xc0d   : > { %8387 = vlog2.f32 %v5856_v18  ;;  %v11778_v30 = vadd.f32 %v5344_v22, %v10677_v63  ;;  %vm6566_vm10 = vweird.f32 %v11744_v56  ;;  %vm6596_vm11 = vweird.f32 %v11750_v32 }
 0xc0e   : > { %v8382_v24 = vpop.eup %8381  ;;  %v6839_v14 = vsub.f32 0.0, %v6807_v1  ;;  %8389 = vpow2.f32 %v6026_v26  ;;  %vm11783_vm12 = vcmp.eq.f32.partialorder %v6570_v36, 8.507059e+37  ;;  %v6573_v6 = vor.u32 1.1754944e-38, %v6572_v20 }
 0xc0f   : > { %v8384_v11 = vpop.eup %8383  ;;  %8391 = vlog2.f32 %v6545_v25  ;;  %v6562_v60 = vmul.f32 %v8382_v24, %v11744_v56  ;;  %v5860_v23 = vadd.f32 1.0, %v5859_v39  ;;  %vm11789_vm13 = vcmp.eq.f32.partialorder %v6600_v27, 8.507059e+37 }
 0xc10   : > { %6935 = vst [vmem:[%s10704_s2 + $0x208] sm:$0xff] %v6839_v14  ;;  %v6592_v17 = vmul.f32 %v8384_v11, %v11750_v32  ;;  %v6603_v29 = vor.u32 1.1754944e-38, %v6602_v53  ;;  %vm5456_vm14 = vcmp.ne.f32.partialorder %v11689_v38, %v11689_v38  ;;  %8393 = vpow2.f32 %v6028_v49 }
 0xc11   : > { %v8386_v45 = vpop.eup %8385  ;;  %v6563_v4 = vsub.f32 1.0, %v6562_v60  ;;  %vm6567_vm15 = vweird.f32 %v8382_v24  ;;  %v5862_v5 = vand.u32 2147483647, %v11752_v58  ;;  %v5522_v57 = vand.u32 2147483647, %v11778_v30 }
 0xc12   : > { %v6593_v37 = vsub.f32 1.0, %v6592_v17  ;;  %vm6597_vm0 = vweird.f32 %v8384_v11  ;;  %v5865_v42 = vadd.f32 1.0, %v8386_v45  ;;  %v5868_v33 = vmul.f32 -0.5, %v8386_v45  ;;  %vm6568_vm2 = vmor %vm6566_vm10, %vm6567_vm15  ;;  %v6106_v17 = vpop.permute.xlu2 %6105 }
 0xc13   : > { %v8388_v16 = vpop.eup %8387  ;;  %v6564_v28 = vmul.f32 %v8382_v24, %v6563_v4  ;;  %v5861_v46 = vmul.f32 %v11752_v58, %v5860_v23  ;;  %v5554_v35 = vsub.f32 0.0, %v5522_v57  ;;  %v11799_v13 = vadd.f32 %v5393_v7, %v10953_v10  ;;  %vm6598_vm3 = vmor %vm6596_vm11, %vm6597_vm0 }
 0xc14   : > { %v11801_v52 = vpop.eup %8389  ;;  %v6594_v34 = vmul.f32 %v8384_v11, %v6593_v37  ;;  %v5858_v26 = vmul.f32 0.6931472, %v8388_v16  ;;  %8395 = vlog2.f32 %v5865_v42  ;;  %v5869_v49 = vadd.f32 1.0, %v5868_v33 }
 0xc15   : > { %v8392_v19 = vpop.eup %8391  ;;  %v6565_v36 = vadd.f32 %v8382_v24, %v6564_v28  ;;  %vm5863_vm1 = vcmp.lt.f32.partialorder %v5862_v5, 0.0004427343  ;;  %v5871_v20 = vand.u32 2147483647, %v8386_v45  ;;  %7008 = vst [vmem:[%s10704_s2 + $0x360] sm:$0xff] %v11801_v52  ;;  %v5145_v58 = vadd.f32 %v5144_v31, %v10683_v8 }
 0xc16   : > { %v11806_v22 = vpop.eup %8393  ;;  %v6765_v55 = vmul.f32 0.6931472, %v8392_v19  ;;  %v6595_v27 = vadd.f32 %v8384_v11, %v6594_v34  ;;  %v5864_v18 = vsel %vm5863_vm1, %v5861_v46, %v5858_v26  ;;  %v5194_v1 = vadd.f32 %v5193_v54, %v10685_v44 }
 0xc17   : > { %v6569_v3 = vsel %vm6568_vm2, %v8382_v24, %v6565_v36  ;;  %v5870_v53 = vmul.f32 %v8386_v45, %v5869_v49  ;;  %v5936_v39 = vadd.f32 %v5864_v18, %v5424_v51  ;;  %7009 = vst [vmem:[%s10704_s2 + $0x368] sm:$0xff] %v11806_v22  ;;  %v5614_v25 = vmul.f32 1.442695, %v5554_v35 }
 0xc18   : > { %v6809_v56 = vmul.f32 %v11614_v2, %v6765_v55  ;;  %v6574_v14 = vsel %vm11783_vm12, %v6573_v6, %v6569_v3  ;;  %v6599_v60 = vsel %vm6598_vm3, %v8384_v11, %v6595_v27  ;;  %v5523_v24 = vand.u32 2147483647, %v11799_v13 }
 0xc19   : > { %v6575_v32 = vmul.f32 %v6574_v14, %v11626_v41  ;;  %v6604_v23 = vsel %vm11789_vm13, %v6603_v29, %v6599_v60  ;;  %v5968_v51 = vsel %vm5456_vm14, %v11689_v38, %v5936_v39  ;;  %8397 = vpow2.f32 %v5614_v25 }
 0xc1a   : > { %v8396_v2 = vpop.eup %8395  ;;  %v6841_v15 = vsub.f32 0.0, %v6809_v56  ;;  %v6605_v11 = vmul.f32 %v6604_v23, %v11742_v43  ;;  %v6144_v6 = vmul.f32 %v6106_v17, %v5968_v51  ;;  %7040 = vst [vmem:[%s10704_s2 + $0x370] sm:$0xff] %v5968_v51  ;;  %v5555_v7 = vsub.f32 0.0, %v5523_v24 }
 0xc1b   : > { %8399 = vlog2.f32 %v6575_v32  ;;  %v5867_v41 = vmul.f32 0.6931472, %v8396_v2  ;;  %v6030_v45 = vmul.f32 1.442695, %v5145_v58  ;;  %v6032_v47 = vmul.f32 1.442695, %v5194_v1 }
 0xc1c   : > { %6937 = vst [vmem:[%s10704_s2 + $0x248] sm:$0xff] %v6841_v15  ;;  %8401 = vlog2.f32 %v6605_v11  ;;  %vm5872_vm4 = vcmp.lt.f32.partialorder %v5871_v20, 0.0004427343  ;;  %v6208_v29 = vadd.f32 %v11801_v52, %v6144_v6  ;;  %v5616_v4 = vmul.f32 1.442695, %v5555_v7 }
 0xc1d   : > { %v5873_v38 = vsel %vm5872_vm4, %v5870_v53, %v5867_v41  ;;  %6976 = vst [vmem:[%s10704_s2 + $0x350] sm:$0xff] %v6144_v6  ;;  %8403 = vpow2.f32 %v6030_v45  ;;  %v5838_v57 = vadd.f32 1.0, %v11748_v59  ;;  %v5422_v42 = vmax.f32 %v11630_v62, 0.0 }
 0xc1e   : > { %v5937_v43 = vadd.f32 %v5873_v38, %v5425_v48  ;;  %v11837_v5 = vadd.f32 0.0001, %v6208_v29  ;;  %8405 = vpow2.f32 %v5616_v4  ;;  %v5423_v33 = vmax.f32 %v11644_v61, 0.0 }
 0xc1f   : > { %v8398_v37 = vpop.eup %8397  ;;  %vm5457_vm5 = vcmp.ne.f32.partialorder %v11702_v12, %v11702_v12  ;;  %8407 = vpow2.f32 %v6032_v47  ;;  %v5426_v48 = vmax.f32 %v11778_v30, 0.0  ;;  %v5427_v16 = vmax.f32 %v11799_v13, 0.0 }
 0xc20   : > { %v5969_v31 = vsel %vm5457_vm5, %v11702_v12, %v5937_v43  ;;  %8409 = vrcp.f32 %v11837_v5  ;;  %v11850_v35 = vadd.f32 0.0001, %v11801_v52  ;;  %v5874_v54 = vadd.f32 1.0, %v8398_v37 }
 0xc21   : > { %v8400_v28 = vpop.eup %8399  ;;  %v6145_v46 = vmul.f32 %v6106_v17, %v5969_v31  ;;  %7041 = vst [vmem:[%s10704_s2 + $0x378] sm:$0xff] %v5969_v31  ;;  %v5877_v34 = vmul.f32 -0.5, %v8398_v37  ;;  %8411 = vlog2.f32 %v5838_v57  ;;  %v5841_v12 = vmul.f32 -0.5, %v11748_v59 }
 0xc22   : > { %v8402_v26 = vpop.eup %8401  ;;  %v6769_v49 = vmul.f32 0.6931472, %v8400_v28  ;;  %v5844_v19 = vand.u32 2147483647, %v11748_v59  ;;  %v6645_v58 = vand.u32 2147483647, %v11837_v5  ;;  %8413 = vlog2.f32 %v5874_v54 }
 0xc23   : > { %v11854_v36 = vpop.eup %8403  ;;  %v6773_v20 = vmul.f32 0.6931472, %v8402_v26  ;;  %6977 = vst [vmem:[%s10704_s2 + $0x358] sm:$0xff] %v6145_v46  ;;  %v6209_v55 = vadd.f32 %v11806_v22, %v6145_v46  ;;  %v6647_v1 = vand.u32 2147483648, %v11837_v5  ;;  %v5880_v3 = vand.u32 2147483647, %v8398_v37 }
 0xc24   : > { %v8406_v27 = vpop.eup %8405  ;;  %v6811_v18 = vmul.f32 %v11623_v50, %v6769_v49  ;;  %7010 = vst [vmem:[%s10704_s2 + $0x3a0] sm:$0xff] %v11854_v36  ;;  %v5847_v53 = vadd.f32 1.0, %v11768_v0  ;;  %v5878_v14 = vadd.f32 1.0, %v5877_v34  ;;  %vm6641_vm6 = vweird.f32 %v11837_v5 }
 0xc25   : > { %v11864_v39 = vpop.eup %8407  ;;  %v6813_v25 = vmul.f32 %v11735_v21, %v6773_v20  ;;  %v11867_v56 = vadd.f32 0.0001, %v6209_v55  ;;  %v5883_v60 = vadd.f32 1.0, %v8406_v27  ;;  %vm5458_vm7 = vcmp.ne.f32.partialorder %v11778_v30, %v11778_v30 }
 0xc26   : > { %v8410_v24 = vpop.eup %8409  ;;  %v6843_v32 = vsub.f32 0.0, %v6811_v18  ;;  %v5886_v50 = vmul.f32 -0.5, %v8406_v27  ;;  %7011 = vst [vmem:[%s10704_s2 + $0x3a8] sm:$0xff] %v11864_v39  ;;  %v5850_v23 = vmul.f32 -0.5, %v11768_v0  ;;  %vm11876_vm8 = vcmp.eq.f32.partialorder %v6645_v58, 8.507059e+37 }
 0xc27   : > { %v6845_v17 = vsub.f32 0.0, %v6813_v25  ;;  %v6637_v21 = vmul.f32 %v8410_v24, %v11837_v5  ;;  %8415 = vrcp.f32 %v11867_v56  ;;  %v8412_v2 = vpop.eup %8411  ;;  %v6648_v15 = vor.u32 1.1754944e-38, %v6647_v1  ;;  %v6111_v1 = vpop.permute.xlu1 %6110 }
 0xc28   : > { %6939 = vst [vmem:[%s10704_s2 + $0x288] sm:$0xff] %v6843_v32  ;;  %vm11882_vm9 = vcmp.lt.f32.partialorder %v5880_v3, 0.0004427343  ;;  %8417 = vlog2.f32 %v5883_v60  ;;  %v5889_v6 = vand.u32 2147483647, %v8406_v27  ;;  %vm5454_vm10 = vcmp.ne.f32.partialorder %v11630_v62, %v11630_v62  ;;  %v8414_v7 = vpop.eup %8413 }
 0xc29   : > { %6941 = vst [vmem:[%s10704_s2 + $0x2c8] sm:$0xff] %v6845_v17  ;;  %v6638_v41 = vsub.f32 1.0, %v6637_v21  ;;  %v6660_v45 = vand.u32 2147483647, %v11867_v56  ;;  %v5879_v47 = vmul.f32 %v8398_v37, %v5878_v14  ;;  %v5842_v29 = vadd.f32 1.0, %v5841_v12 }
 0xc2a   : > { %vm6642_vm11 = vweird.f32 %v8410_v24  ;;  %v5876_v4 = vmul.f32 0.6931472, %v8414_v7  ;;  %v5887_v38 = vadd.f32 1.0, %v5886_v50  ;;  %v5840_v43 = vmul.f32 0.6931472, %v8412_v2  ;;  %v6101_v50 = vpop.permute.xlu0 %6100 }
 0xc2b   : > { %v6639_v57 = vmul.f32 %v8410_v24, %v6638_v41  ;;  %v6662_v31 = vand.u32 2147483648, %v11867_v56  ;;  %vm5459_vm12 = vcmp.ne.f32.partialorder %v11799_v13, %v11799_v13  ;;  %v5843_v28 = vmul.f32 %v11748_v59, %v5842_v29  ;;  %vm6643_vm0 = vmor %vm6641_vm6, %vm6642_vm11 }
 0xc2c   : > { %vm11894_vm13 = vcmp.lt.f32.partialorder %v5844_v19, 0.0004427343  ;;  %vm6656_vm14 = vweird.f32 %v11867_v56  ;;  %v5882_v37 = vsel %vm11882_vm9, %v5879_v47, %v5876_v4  ;;  %8419 = vlog2.f32 %v5847_v53 }
 0xc2d   : > { %v5851_v54 = vadd.f32 1.0, %v5850_v23  ;;  %v5853_v34 = vand.u32 2147483647, %v11768_v0  ;;  %v8416_v26 = vpop.eup %8415  ;;  %v6640_v49 = vadd.f32 %v8410_v24, %v6639_v57  ;;  %v5938_v12 = vadd.f32 %v5882_v37, %v5426_v48  ;;  %v5346_v48 = vpop.f32.mrf.mxu1 }
 0xc2e   : > { %vm11904_vm15 = vcmp.lt.f32.partialorder %v5889_v6, 0.0004427343  ;;  %v5846_v19 = vsel %vm11894_vm13, %v5843_v28, %v5840_v43  ;;  %v8418_v20 = vpop.eup %8417  ;;  %v6652_v58 = vmul.f32 %v8416_v26, %v11867_v56  ;;  %vm6657_vm1 = vweird.f32 %v8416_v26 }
 0xc2f   : > { %v5888_v55 = vmul.f32 %v8406_v27, %v5887_v38  ;;  %v5852_v18 = vmul.f32 %v11768_v0, %v5851_v54  ;;  %v6644_v3 = vsel %vm6643_vm0, %v8410_v24, %v6640_v49  ;;  %v5970_v53 = vsel %vm5458_vm7, %v11778_v30, %v5938_v12  ;;  %v5395_v24 = vpop.f32.mrf.mxu0  ;;  %vm6658_vm3 = vmor %vm6656_vm14, %vm6657_vm1 }
 0xc30   : > { %v5885_v25 = vmul.f32 0.6931472, %v8418_v20  ;;  %v5934_v5 = vadd.f32 %v5846_v19, %v5422_v42  ;;  %v6649_v14 = vsel %vm11876_vm8, %v6648_v15, %v6644_v3  ;;  %v6653_v60 = vsub.f32 1.0, %v6652_v58  ;;  %7042 = vst [vmem:[%s10704_s2 + $0x3b0] sm:$0xff] %v5970_v53 }
 0xc31   : > { %v6146_v27 = vmul.f32 %v6111_v1, %v5970_v53  ;;  %vm11924_vm2 = vcmp.lt.f32.partialorder %v5853_v34, 0.0004427343  ;;  %v6650_v32 = vmul.f32 %v6649_v14, %v11850_v35  ;;  %v11936_v23 = vadd.f32 %v5346_v48, %v10677_v63 }
 0xc32   : > { %v5891_v30 = vsel %vm11904_vm15, %v5888_v55, %v5885_v25  ;;  %v5966_v42 = vsel %vm5454_vm10, %v11630_v62, %v5934_v5  ;;  %v8420_v17 = vpop.eup %8419  ;;  %v6654_v21 = vmul.f32 %v8416_v26, %v6653_v60  ;;  %v11945_v11 = vadd.f32 %v5395_v24, %v10953_v10  ;;  %v5146_v55 = vpop.f32.mrf.mxu2 }
 0xc33   : > { %6978 = vst [vmem:[%s10704_s2 + $0x390] sm:$0xff] %v6146_v27  ;;  %v5939_v51 = vadd.f32 %v5891_v30, %v5427_v16  ;;  %v6210_v35 = vadd.f32 %v11854_v36, %v6146_v27  ;;  %v6142_v2 = vmul.f32 %v6101_v50, %v5966_v42  ;;  %8421 = vlog2.f32 %v6650_v32 }
 0xc34   : > { %v5849_v15 = vmul.f32 0.6931472, %v8420_v17  ;;  %7038 = vst [vmem:[%s10704_s2 + $0x330] sm:$0xff] %v5966_v42  ;;  %v5524_v62 = vand.u32 2147483647, %v11936_v23  ;;  %v6655_v63 = vadd.f32 %v8416_v26, %v6654_v21  ;;  %v6663_v10 = vor.u32 1.1754944e-38, %v6662_v31  ;;  %v5195_v17 = vpop.f32.mrf.mxu3 }
 0xc35   : > { %v5971_v6 = vsel %vm5459_vm12, %v11799_v13, %v5939_v51  ;;  %v11951_v16 = vadd.f32 0.0001, %v6210_v35  ;;  %v6206_v7 = vadd.f32 %v11706_v9, %v6142_v2  ;;  %6974 = vst [vmem:[%s10704_s2 + $0x310] sm:$0xff] %v6142_v2  ;;  %v6177_v41 = vadd.f32 0.0001, %v11806_v22 }
 0xc36   : > { %v6147_v47 = vmul.f32 %v6111_v1, %v5971_v6  ;;  %7043 = vst [vmem:[%s10704_s2 + $0x3b8] sm:$0xff] %v5971_v6  ;;  %v5855_v29 = vsel %vm11924_vm2, %v5852_v18, %v5849_v15  ;;  %v6659_v4 = vsel %vm6658_vm3, %v8416_v26, %v6655_v63  ;;  %vm6661_vm4 = vcmp.eq.f32.partialorder %v6660_v45, 8.507059e+37 }
 0xc37   : > { %8423 = vrcp.f32 %v11951_v16  ;;  %v5556_v13 = vsub.f32 0.0, %v5524_v62  ;;  %v6664_v38 = vsel %vm6661_vm4, %v6663_v10, %v6659_v4  ;;  %v5935_v57 = vadd.f32 %v5855_v29, %v5423_v33 }
 0xc38   : > { %6979 = vst [vmem:[%s10704_s2 + $0x398] sm:$0xff] %v6147_v47  ;;  %v6211_v43 = vadd.f32 %v11864_v39, %v6147_v47  ;;  %v5525_v31 = vand.u32 2147483647, %v11945_v11  ;;  %v6665_v28 = vmul.f32 %v6664_v38, %v6177_v41  ;;  %vm5455_vm5 = vcmp.ne.f32.partialorder %v11644_v61, %v11644_v61 }
 0xc39   : > { %v11972_v46 = vadd.f32 0.0001, %v6206_v7  ;;  %v8422_v56 = vpop.eup %8421  ;;  %v6675_v45 = vand.u32 2147483647, %v11951_v16  ;;  %v5967_v54 = vsel %vm5455_vm5, %v11644_v61, %v5935_v57  ;;  %v11979_v33 = vadd.f32 0.0001, %v11854_v36 }
 0xc3a   : > { %v11975_v37 = vadd.f32 0.0001, %v6211_v43  ;;  %v6779_v34 = vmul.f32 0.6931472, %v8422_v56  ;;  %8425 = vlog2.f32 %v6665_v28  ;;  %7039 = vst [vmem:[%s10704_s2 + $0x338] sm:$0xff] %v5967_v54  ;;  %v6143_v26 = vmul.f32 %v6101_v50, %v5967_v54 }
 0xc3b   : > { %v11983_v49 = vadd.f32 0.0001, %v11864_v39  ;;  %v5618_v12 = vmul.f32 1.442695, %v5556_v13  ;;  %v5557_v59 = vsub.f32 0.0, %v5525_v31  ;;  %v6677_v58 = vand.u32 2147483648, %v11951_v16 }
 0xc3c   : > { %8427 = vrcp.f32 %v11975_v37  ;;  %v6816_v20 = vmul.f32 %v11801_v52, %v6779_v34  ;;  %v6207_v61 = vadd.f32 %v11724_v40, %v6143_v26  ;;  %6975 = vst [vmem:[%s10704_s2 + $0x318] sm:$0xff] %v6143_v26  ;;  %vm6671_vm6 = vweird.f32 %v11951_v16 }
 0xc3d   : > { %v8424_v19 = vpop.eup %8423  ;;  %8429 = vrcp.f32 %v11972_v46  ;;  %vm11993_vm7 = vcmp.eq.f32.partialorder %v6675_v45, 8.507059e+37  ;;  %v11998_v1 = vadd.f32 0.0001, %v11706_v9  ;;  %v6690_v3 = vand.u32 2147483647, %v11975_v37 }
 0xc3e   : > { %v6667_v18 = vmul.f32 %v8424_v19, %v11951_v16  ;;  %v6848_v52 = vsub.f32 0.0, %v6816_v20  ;;  %v6692_v53 = vand.u32 2147483648, %v11975_v37  ;;  %v12002_v25 = vadd.f32 0.0001, %v6207_v61 }
 0xc3f   : > { %8431 = vpow2.f32 %v5618_v12  ;;  %v5620_v14 = vmul.f32 1.442695, %v5557_v59  ;;  %v5147_v60 = vadd.f32 %v5146_v55, %v10683_v8  ;;  %vm6672_vm8 = vweird.f32 %v8424_v19 }
 0xc40   : > { %v6668_v5 = vsub.f32 1.0, %v6667_v18  ;;  %v8426_v27 = vpop.eup %8425  ;;  %6944 = vst [vmem:[%s10704_s2 + $0x340] sm:$0xff] %v6848_v52  ;;  %v6678_v0 = vor.u32 1.1754944e-38, %v6677_v58  ;;  %v6615_v24 = vand.u32 2147483647, %v11972_v46  ;;  %8433 = vrcp.f32 %v12002_v25  ;;  %vm6673_vm12 = vmor %vm6671_vm6, %vm6672_vm8 }
 0xc41   : > { %v6781_v30 = vmul.f32 0.6931472, %v8426_v27  ;;  %vm6611_vm9 = vweird.f32 %v11972_v46  ;;  %v6617_v50 = vand.u32 2147483648, %v11972_v46  ;;  %8435 = vpow2.f32 %v5620_v14 }
 0xc42   : > { %v8428_v32 = vpop.eup %8427  ;;  %v6669_v42 = vmul.f32 %v8424_v19, %v6668_v5  ;;  %vm6686_vm10 = vweird.f32 %v11975_v37  ;;  %vm12012_vm11 = vcmp.eq.f32.partialorder %v6690_v3, 8.507059e+37  ;;  %v6034_v35 = vmul.f32 1.442695, %v5147_v60 }
 0xc43   : > { %v8430_v21 = vpop.eup %8429  ;;  %v6682_v8 = vmul.f32 %v8428_v32, %v11975_v37  ;;  %v6817_v2 = vmul.f32 %v11806_v22, %v6781_v30  ;;  %v6693_v62 = vor.u32 1.1754944e-38, %v6692_v53  ;;  %vm12021_vm13 = vcmp.eq.f32.partialorder %v6615_v24, 8.507059e+37 }
 0xc44   : > { %v6670_v15 = vadd.f32 %v8424_v19, %v6669_v42  ;;  %v6607_v63 = vmul.f32 %v8430_v21, %v11972_v46  ;;  %8437 = vpow2.f32 %v6034_v35  ;;  %v5196_v41 = vadd.f32 %v5195_v17, %v10685_v44 }
 0xc45   : > { %v6683_v6 = vsub.f32 1.0, %v6682_v8  ;;  %v12026_v10 = vpop.eup %8431  ;;  %v6849_v22 = vsub.f32 0.0, %v6817_v2  ;;  %v6618_v4 = vor.u32 1.1754944e-38, %v6617_v50  ;;  %vm6687_vm14 = vweird.f32 %v8428_v32 }
 0xc46   : > { %v6674_v47 = vsel %vm6673_vm12, %v8424_v19, %v6670_v15  ;;  %v6608_v29 = vsub.f32 1.0, %v6607_v63  ;;  %v8434_v13 = vpop.eup %8433  ;;  %v6036_v43 = vmul.f32 1.442695, %v5196_v41  ;;  %vm6612_vm15 = vweird.f32 %v8430_v21  ;;  %vm6688_vm0 = vmor %vm6686_vm10, %vm6687_vm14 }
 0xc47   : > { %v6679_v16 = vsel %vm11993_vm7, %v6678_v0, %v6674_v47  ;;  %v6684_v38 = vmul.f32 %v8428_v32, %v6683_v6  ;;  %v12030_v57 = vpop.eup %8435  ;;  %6945 = vst [vmem:[%s10704_s2 + $0x348] sm:$0xff] %v6849_v22  ;;  %v6622_v44 = vmul.f32 %v8434_v13, %v12002_v25  ;;  %v6630_v45 = vand.u32 2147483647, %v12002_v25  ;;  %vm6613_vm1 = vmor %vm6611_vm9, %vm6612_vm15 }
 0xc48   : > { %v6680_v31 = vmul.f32 %v6679_v16, %v11979_v33  ;;  %v6609_v28 = vmul.f32 %v8430_v21, %v6608_v29  ;;  %v6632_v54 = vand.u32 2147483648, %v12002_v25  ;;  %8439 = vpow2.f32 %v6036_v43 }
 0xc49   : > { %v6685_v56 = vadd.f32 %v8428_v32, %v6684_v38  ;;  %v6623_v26 = vsub.f32 1.0, %v6622_v44  ;;  %v5892_v12 = vadd.f32 1.0, %v12026_v10  ;;  %vm6627_vm2 = vweird.f32 %v8434_v13 }
 0xc4a   : > { %8441 = vlog2.f32 %v6680_v31  ;;  %v6610_v34 = vadd.f32 %v8430_v21, %v6609_v28  ;;  %v12040_v33 = vpop.eup %8437  ;;  %v5895_v19 = vmul.f32 -0.5, %v12026_v10  ;;  %v5901_v20 = vadd.f32 1.0, %v12030_v57 }
 0xc4b   : > { %v6689_v59 = vsel %vm6688_vm0, %v8428_v32, %v6685_v56  ;;  %v6624_v61 = vmul.f32 %v8434_v13, %v6623_v26  ;;  %7012 = vst [vmem:[%s10704_s2 + $0x3e0] sm:$0xff] %v12040_v33  ;;  %8443 = vlog2.f32 %v5892_v12  ;;  %vm6626_vm3 = vweird.f32 %v12002_v25 }
 0xc4c   : > { %v6694_v58 = vsel %vm12012_vm11, %v6693_v62, %v6689_v59  ;;  %v6614_v37 = vsel %vm6613_vm1, %v8430_v21, %v6610_v34  ;;  %8445 = vlog2.f32 %v5901_v20  ;;  %v5904_v52 = vmul.f32 -0.5, %v12030_v57  ;;  %vm6628_vm4 = vmor %vm6626_vm3, %vm6627_vm2 }
 0xc4d   : > { %v6695_v55 = vmul.f32 %v6694_v58, %v11983_v49  ;;  %v6619_v18 = vsel %vm12021_vm13, %v6618_v4, %v6614_v37  ;;  %v6625_v48 = vadd.f32 %v8434_v13, %v6624_v61  ;;  %v6175_v53 = vadd.f32 0.0001, %v11724_v40  ;;  %v6116_v4 = vpop.permute.xlu0 %6115 }
 0xc4e   : > { %v6620_v46 = vmul.f32 %v6619_v18, %v11998_v1  ;;  %v12056_v3 = vpop.eup %8439  ;;  %v6633_v49 = vor.u32 1.1754944e-38, %v6632_v54  ;;  %v5896_v5 = vadd.f32 1.0, %v5895_v19  ;;  %vm6631_vm5 = vcmp.eq.f32.partialorder %v6630_v45, 8.507059e+37 }
 0xc4f   : > { %8447 = vlog2.f32 %v6695_v55  ;;  %v6629_v60 = vsel %vm6628_vm4, %v8434_v13, %v6625_v48  ;;  %7013 = vst [vmem:[%s10704_s2 + $0x3e8] sm:$0xff] %v12056_v3  ;;  %v5898_v1 = vand.u32 2147483647, %v12026_v10  ;;  %v5905_v0 = vadd.f32 1.0, %v5904_v52 }
 0xc50   : > { %v8442_v14 = vpop.eup %8441  ;;  %8449 = vlog2.f32 %v6620_v46  ;;  %v6634_v27 = vsel %vm6631_vm5, %v6633_v49, %v6629_v60  ;;  %v5907_v30 = vand.u32 2147483647, %v12030_v57  ;;  %v5897_v17 = vmul.f32 %v12026_v10, %v5896_v5 }
 0xc51   : > { %v6783_v25 = vmul.f32 0.6931472, %v8442_v14  ;;  %v8444_v24 = vpop.eup %8443  ;;  %v6635_v32 = vmul.f32 %v6634_v27, %v6175_v53  ;;  %v5428_v8 = vmax.f32 %v11936_v23, 0.0  ;;  %vm5899_vm6 = vcmp.lt.f32.partialorder %v5898_v1, 0.0004427343 }
 0xc52   : > { %v5894_v50 = vmul.f32 0.6931472, %v8444_v24  ;;  %v8446_v21 = vpop.eup %8445  ;;  %v5906_v62 = vmul.f32 %v12030_v57, %v5905_v0  ;;  %vm5908_vm7 = vcmp.lt.f32.partialorder %v5907_v30, 0.0004427343  ;;  %vm5460_vm8 = vcmp.ne.f32.partialorder %v11936_v23, %v11936_v23 }
 0xc53   : > { %v6818_v42 = vmul.f32 %v11854_v36, %v6783_v25  ;;  %8451 = vlog2.f32 %v6635_v32  ;;  %v5903_v15 = vmul.f32 0.6931472, %v8446_v21  ;;  %v5429_v36 = vmax.f32 %v11945_v11, 0.0 }
 0xc54   : > { %v5900_v2 = vsel %vm5899_vm6, %v5897_v17, %v5894_v50  ;;  %vm5461_vm9 = vcmp.ne.f32.partialorder %v11945_v11, %v11945_v11  ;;  %v6180_v46 = vadd.f32 0.0001, %v12040_v33  ;;  %v6181_v14 = vadd.f32 0.0001, %v12056_v3 }
 0xc55   : > { %v8448_v51 = vpop.eup %8447  ;;  %v6850_v35 = vsub.f32 0.0, %v6818_v42  ;;  %v5940_v7 = vadd.f32 %v5900_v2, %v5428_v8  ;;  %v5909_v10 = vsel %vm5908_vm7, %v5906_v62, %v5903_v15 }
 0xc56   : > { %v8450_v63 = vpop.eup %8449  ;;  %v6785_v6 = vmul.f32 0.6931472, %v8448_v51  ;;  %v5941_v47 = vadd.f32 %v5909_v10, %v5429_v36 }
 0xc57   : > { %6946 = vst [vmem:[%s10704_s2 + $0x380] sm:$0xff] %v6850_v35  ;;  %v6775_v41 = vmul.f32 0.6931472, %v8450_v63  ;;  %v5972_v29 = vsel %vm5460_vm8, %v11936_v23, %v5940_v7 }
 0xc58   : > { %v6819_v22 = vmul.f32 %v11864_v39, %v6785_v6  ;;  %7044 = vst [vmem:[%s10704_s2 + $0x3f0] sm:$0xff] %v5972_v29  ;;  %v6148_v16 = vmul.f32 %v6116_v4, %v5972_v29  ;;  %v5973_v57 = vsel %vm5461_vm9, %v11945_v11, %v5941_v47 }
 0xc59   : > { %v6814_v13 = vmul.f32 %v11706_v9, %v6775_v41  ;;  %v8452_v38 = vpop.eup %8451  ;;  %7045 = vst [vmem:[%s10704_s2 + $0x3f8] sm:$0xff] %v5973_v57  ;;  %v6149_v23 = vmul.f32 %v6116_v4, %v5973_v57 }
 0xc5a   : > { %v6851_v43 = vsub.f32 0.0, %v6819_v22  ;;  %v6777_v39 = vmul.f32 0.6931472, %v8452_v38  ;;  %v6212_v28 = vadd.f32 %v12040_v33, %v6148_v16  ;;  %6980 = vst [vmem:[%s10704_s2 + $0x3d0] sm:$0xff] %v6148_v16 }
 0xc5b   : > { %v6846_v31 = vsub.f32 0.0, %v6814_v13  ;;  %v6213_v44 = vadd.f32 %v12056_v3, %v6149_v23  ;;  %6981 = vst [vmem:[%s10704_s2 + $0x3d8] sm:$0xff] %v6149_v23 }
 0xc5c   : > { %6947 = vst [vmem:[%s10704_s2 + $0x388] sm:$0xff] %v6851_v43  ;;  %v6815_v9 = vmul.f32 %v11724_v40, %v6777_v39  ;;  %v6244_v56 = vadd.f32 0.0001, %v6212_v28 }
 0xc5d   : > { %6942 = vst [vmem:[%s10704_s2 + $0x300] sm:$0xff] %v6846_v31  ;;  %v6245_v54 = vadd.f32 0.0001, %v6213_v44 }
 0xc5e   : > { %v6847_v45 = vsub.f32 0.0, %v6815_v9  ;;  %8453 = vrcp.f32 %v6244_v56  ;;  %v6707_v19 = vand.u32 2147483648, %v6244_v56  ;;  %v6705_v40 = vand.u32 2147483647, %v6244_v56 }
 0xc5f   : > { %8455 = vrcp.f32 %v6245_v54  ;;  %vm6701_vm11 = vweird.f32 %v6244_v56  ;;  %v6722_v37 = vand.u32 2147483648, %v6245_v54  ;;  %v6720_v18 = vand.u32 2147483647, %v6245_v54 }
 0xc60   : > { %6943 = vst [vmem:[%s10704_s2 + $0x308] sm:$0xff] %v6847_v45  ;;  %v6708_v48 = vor.u32 1.1754944e-38, %v6707_v19  ;;  %vm6706_vm14 = vcmp.eq.f32.partialorder %v6705_v40, 8.507059e+37  ;;  %vm6716_vm15 = vweird.f32 %v6245_v54 }
 0xc61   : > { %v6723_v5 = vor.u32 1.1754944e-38, %v6722_v37  ;;  %vm6721_vm1 = vcmp.eq.f32.partialorder %v6720_v18, 8.507059e+37 }
 0xc64   : > { %v8454_v11 = vpop.eup %8453 }
 0xc65   : > { %v6697_v34 = vmul.f32 %v8454_v11, %v6244_v56  ;;  %v8456_v26 = vpop.eup %8455  ;;  %vm6702_vm10 = vweird.f32 %v8454_v11 }
 0xc66   : > { %v6712_v59 = vmul.f32 %v8456_v26, %v6245_v54  ;;  %vm6717_vm12 = vweird.f32 %v8456_v26  ;;  %vm6703_vm13 = vmor %vm6701_vm11, %vm6702_vm10 }
 0xc67   : > { %v6698_v12 = vsub.f32 1.0, %v6697_v34  ;;  %vm6718_vm0 = vmor %vm6716_vm15, %vm6717_vm12 }
 0xc68   : > { %v6713_v58 = vsub.f32 1.0, %v6712_v59 }
 0xc69   : > { %v6699_v20 = vmul.f32 %v8454_v11, %v6698_v12 }
 0xc6a   : > { %v6714_v55 = vmul.f32 %v8456_v26, %v6713_v58 }
 0xc6b   : > { %v6700_v61 = vadd.f32 %v8454_v11, %v6699_v20 }
 0xc6c   : > { %v6715_v53 = vadd.f32 %v8456_v26, %v6714_v55 }
 0xc6d   : > { %v6704_v52 = vsel %vm6703_vm13, %v8454_v11, %v6700_v61 }
 0xc6e   : > { %v6709_v49 = vsel %vm6706_vm14, %v6708_v48, %v6704_v52  ;;  %v6719_v1 = vsel %vm6718_vm0, %v8456_v26, %v6715_v53 }
 0xc6f   : > { %v6710_v60 = vmul.f32 %v6709_v49, %v6180_v46  ;;  %v6724_v25 = vsel %vm6721_vm1, %v6723_v5, %v6719_v1 }
 0xc70   : > { %v6725_v27 = vmul.f32 %v6724_v25, %v6181_v14 }
 0xc71   : > { %8457 = vlog2.f32 %v6710_v60 }
 0xc72   : > { %8459 = vlog2.f32 %v6725_v27 }
 0xc77   : > { %v8458_v0 = vpop.eup %8457 }
 0xc78   : > { %v6787_v24 = vmul.f32 0.6931472, %v8458_v0  ;;  %v8460_v32 = vpop.eup %8459 }
 0xc79   : > { %v6789_v30 = vmul.f32 0.6931472, %v8460_v32 }
 0xc7a   : > { %v6820_v42 = vmul.f32 %v12040_v33, %v6787_v24 }
 0xc7b   : > { %v6821_v50 = vmul.f32 %v12056_v3, %v6789_v30 }
 0xc7c   : > { %v6852_v17 = vsub.f32 0.0, %v6820_v42 }
 0xc7d   : > { %v6853_v21 = vsub.f32 0.0, %v6821_v50 }
 0xc7e   : > { %6948 = vst [vmem:[%s10704_s2 + $0x3c0] sm:$0xff] %v6852_v17 }
 0xc7f   : > { %6949 = vst [vmem:[%s10704_s2 + $0x3c8] sm:$0xff] %v6853_v21 }
 0xc80 PF: > { %s84_s28 = sadd.s32 1, %s8484_s28  }
 0xc81   : > { %p81_p4 = scmp.ge.s32.totalorder %s84_s28, 4  }
 0xc83   :  { %83 = sbr.rel (!%p81_p4) target bundleno = 67 (0x43), region = 244 }

</bundles_post_ra>
